<compile_context>
chip_gen: v6e
topology: v6e:2x2x1
jax: 0.10.0
libtpu: 0.0.40
codegen_flags: <defaults>
</compile_context>

<pallas_src>
import jax
import jax.numpy as jnp
from jax.experimental import pallas as pl
from jax.experimental.pallas import tpu as pltpu


def _im2col_3x3(pad_ref, H, W, Cin):
    """(H+2, W+2, Cin) padded ref -> (H*W, 9*Cin) patch matrix (single matmul K)."""
    cols = []
    for kh in range(3):
        for kw in range(3):
            cols.append(
                pad_ref[pl.ds(kh, H), pl.ds(kw, W), :].reshape(H * W, Cin))
    return jnp.concatenate(cols, axis=-1)


def feature_fusion_kernel(x1_ref, x2_ref,
                          w1_ref, s1_ref, b1_ref,
                          w2_ref, b2_ref,
                          w3_ref, s3_ref, b3_ref,
                          out_ref,
                          pad1_ref, pad2_ref):
    """One batch element per grid step; all three conv stages fused."""
    _, H, W, C = out_ref.shape
    C2 = 2 * C
    cdt = pad1_ref.dtype                      # bf16 compute dtype

    # ---- halo: zero only the 1-pixel border (interior is fully rewritten below) ----
    pad1_ref[pl.ds(0, 1), pl.ds(0, W + 2), :] = jnp.zeros((1, W + 2, C2), cdt)
    pad1_ref[pl.ds(H + 1, 1), pl.ds(0, W + 2), :] = jnp.zeros((1, W + 2, C2), cdt)
    pad1_ref[pl.ds(0, H + 2), pl.ds(0, 1), :] = jnp.zeros((H + 2, 1, C2), cdt)
    pad1_ref[pl.ds(0, H + 2), pl.ds(W + 1, 1), :] = jnp.zeros((H + 2, 1, C2), cdt)
    pad2_ref[pl.ds(0, 1), pl.ds(0, W + 2), :] = jnp.zeros((1, W + 2, C), cdt)
    pad2_ref[pl.ds(H + 1, 1), pl.ds(0, W + 2), :] = jnp.zeros((1, W + 2, C), cdt)
    pad2_ref[pl.ds(0, H + 2), pl.ds(0, 1), :] = jnp.zeros((H + 2, 1, C), cdt)
    pad2_ref[pl.ds(0, H + 2), pl.ds(W + 1, 1), :] = jnp.zeros((H + 2, 1, C), cdt)

    # ---- stage A: concat(x1, x2) -> conv3x3(pad=1) -> BN -> ReLU ---------------
    # single lane-dense interior store of the concatenated activations
    pad1_ref[pl.ds(1, H), pl.ds(1, W), :] = jnp.concatenate(
        [x1_ref[0], x2_ref[0]], axis=-1)
    patches1 = _im2col_3x3(pad1_ref, H, W, C2)                  # (H*W, 9*2C) bf16
    acc1 = jnp.dot(patches1, w1_ref[...], preferred_element_type=jnp.float32)
    y1 = jnp.maximum(acc1 * s1_ref[...] + b1_ref[...], 0.0)     # f32 epilogue

    # ---- stage B: conv1x1 (+ bias) ---------------------------------------------
    y2 = jnp.dot(y1.astype(cdt), w2_ref[...],
                 preferred_element_type=jnp.float32) + b2_ref[...]

    # ---- stage C: conv3x3(pad=1) -> BN -> ReLU ----------------------------------
    pad2_ref[pl.ds(1, H), pl.ds(1, W), :] = y2.astype(cdt).reshape(H, W, C)
    patches3 = _im2col_3x3(pad2_ref, H, W, C)                   # (H*W, 9*C) bf16
    acc3 = jnp.dot(patches3, w3_ref[...], preferred_element_type=jnp.float32)
    y3 = jnp.maximum(acc3 * s3_ref[...] + b3_ref[...], 0.0)

    out_ref[...] = y3.reshape(1, H, W, C).astype(out_ref.dtype)


def feature_fusion_nhwc(x1, x2, w1, s1, b1, w2, b2, w3, s3, b3):
    """x1, x2: (N, H, W, C) float32.  Returns (N, H, W, C) float32."""
    N, H, W, C = x1.shape
    cdt = jnp.bfloat16

    # bf16 activations + weights for the MXU; BN scale/bias + conv bias stay f32.
    x1 = x1.astype(cdt)
    x2 = x2.astype(cdt)
    w1f = w1.reshape(9 * 2 * C, C).astype(cdt)   # (3,3,2C,C) HWIO -> im2col row order
    w2c = w2.astype(cdt)
    w3f = w3.reshape(9 * C, C).astype(cdt)

    # NOTE: weight specs are grid-invariant; pl.Buffered(1) would halve their VMEM
    # footprint but is negligible at this demo size, so left at the default.
    def full_spec(a):
        return pl.BlockSpec(a.shape, lambda n, _nd=a.ndim: (0,) * _nd)

    img_spec = pl.BlockSpec((1, H, W, C), lambda n: (n, 0, 0, 0))

    return pl.pallas_call(
        feature_fusion_kernel,
        out_shape=jax.ShapeDtypeStruct((N, H, W, C), jnp.float32),
        grid_spec=pltpu.PrefetchScalarGridSpec(
            num_scalar_prefetch=0,
            grid=(N,),
            in_specs=[
                img_spec, img_spec,
                full_spec(w1f), full_spec(s1), full_spec(b1),
                full_spec(w2c), full_spec(b2),
                full_spec(w3f), full_spec(s3), full_spec(b3),
            ],
            out_specs=img_spec,
            scratch_shapes=[
                pltpu.VMEM((H + 2, W + 2, 2 * C), cdt),   # padded concat (stage A)
                pltpu.VMEM((H + 2, W + 2, C), cdt),       # padded stage-B output
            ],
        ),
        compiler_params=pltpu.CompilerParams(
            dimension_semantics=("parallel",)),
    )(x1, x2, w1f, s1, b1, w2c, b2, w3f, s3, b3)


def feature_fusion_nchw(temporal_feat, spatial_feat, params):
    """Mirrors vfuseACT.feature_fusion (PyTorch NCHW in/out)."""
    x1 = jnp.transpose(temporal_feat, (0, 2, 3, 1))
    x2 = jnp.transpose(spatial_feat, (0, 2, 3, 1))
    y = feature_fusion_nhwc(x1, x2, *params)
    return jnp.transpose(y, (0, 3, 1, 2))


def fold_bn(gamma, beta, mean, var, eps=1e-5):
    scale = gamma / jnp.sqrt(var + eps)
    bias = beta - mean * scale
    return scale[None, :], bias[None, :]   # (1, C) for lane broadcast


def reference_fusion_nhwc(x1, x2, w1, s1, b1, w2, b2, w3, s3, b3):
    """Plain-JAX reference with the same bf16 rounding points as the kernel."""
    dn = ("NHWC", "HWIO", "NHWC")
    cdt = jnp.bfloat16
    x = jnp.concatenate([x1, x2], axis=-1).astype(cdt)
    y = jax.lax.conv_general_dilated(x, w1.astype(cdt), (1, 1), ((1, 1), (1, 1)),
                                     dimension_numbers=dn,
                                     preferred_element_type=jnp.float32)
    y = jnp.maximum(y * s1 + b1, 0.0)
    y = jnp.einsum("nhwc,cd->nhwd", y.astype(cdt), w2.astype(cdt),
                   preferred_element_type=jnp.float32) + b2
    y = jax.lax.conv_general_dilated(y.astype(cdt), w3.astype(cdt), (1, 1),
                                     ((1, 1), (1, 1)), dimension_numbers=dn,
                                     preferred_element_type=jnp.float32)
    y = jnp.maximum(y * s3 + b3, 0.0)
    return y


if __name__ == "__main__":
    # N = batch * clip_seg_num collapsed (1 x 8); spatial 16x16; C=128 per branch
    # (lane-dense stand-in for the real 2048). H*W = 256 rows per MXU matmul.
    N, H, W, C = 8, 16, 16, 128
    key = jax.random.PRNGKey(0)
    ks = jax.random.split(key, 12)

    x1 = jax.random.normal(ks[0], (N, C, H, W), jnp.float32)   # temporal feat (NCHW)
    x2 = jax.random.normal(ks[1], (N, C, H, W), jnp.float32)   # spatial feat (NCHW)

    # feat_combine[0]: conv3x3 (2C -> C, no conv bias) + BN
    w1 = jax.random.normal(ks[2], (3, 3, 2 * C, C), jnp.float32) * 0.05
    g1 = 1.0 + 0.1 * jax.random.normal(ks[3], (C,), jnp.float32)
    be1 = 0.1 * jax.random.normal(ks[4], (C,), jnp.float32)
    m1 = 0.1 * jax.random.normal(ks[5], (C,), jnp.float32)
    v1 = 0.5 + jnp.abs(jax.random.normal(ks[6], (C,), jnp.float32))
    s1, b1 = fold_bn(g1, be1, m1, v1)

    # feat_combine[1]: conv1x1 (C -> C, with bias)
    w2 = jax.random.normal(ks[7], (C, C), jnp.float32) * 0.05
    b2 = (0.1 * jax.random.normal(ks[8], (C,), jnp.float32))[None, :]

    # feat_refine: conv3x3 (C -> C, no conv bias) + BN
    w3 = jax.random.normal(ks[9], (3, 3, C, C), jnp.float32) * 0.05
    g3 = 1.0 + 0.1 * jax.random.normal(ks[10], (C,), jnp.float32)
    be3 = 0.1 * jax.random.normal(ks[11], (C,), jnp.float32)
    m3 = jnp.zeros((C,), jnp.float32)
    v3 = jnp.ones((C,), jnp.float32)
    s3, b3 = fold_bn(g3, be3, m3, v3)

    params = (w1, s1, b1, w2, b2, w3, s3, b3)

    out = feature_fusion_nchw(x1, x2, params)
    out = jax.block_until_ready(out)
    assert out.shape == (N, C, H, W)

    # Cross-check against a plain-JAX reference of the same (bf16) math.
    ref = reference_fusion_nhwc(jnp.transpose(x1, (0, 2, 3, 1)),
                                jnp.transpose(x2, (0, 2, 3, 1)), *params)
    ref = jnp.transpose(ref, (0, 3, 1, 2))
    assert jnp.allclose(out, ref, atol=2e-2, rtol=2e-2), \
        float(jnp.max(jnp.abs(out - ref)))

    print("KERNEL_OK")
</pallas_src>

<mosaic_0001>
module attributes {stable_mosaic.version = 11 : i64} {
  func.func @feature_fusion_kernel(%arg0: i32, %arg1: memref<1x16x16x128xbf16, #tpu.memory_space<vmem>>, %arg2: memref<1x16x16x128xbf16, #tpu.memory_space<vmem>>, %arg3: memref<2304x128xbf16, #tpu.memory_space<vmem>>, %arg4: memref<1x128xf32, #tpu.memory_space<vmem>>, %arg5: memref<1x128xf32, #tpu.memory_space<vmem>>, %arg6: memref<128x128xbf16, #tpu.memory_space<vmem>>, %arg7: memref<1x128xf32, #tpu.memory_space<vmem>>, %arg8: memref<1152x128xbf16, #tpu.memory_space<vmem>>, %arg9: memref<1x128xf32, #tpu.memory_space<vmem>>, %arg10: memref<1x128xf32, #tpu.memory_space<vmem>>, %arg11: memref<1x16x16x128xf32, #tpu.memory_space<vmem>>, %arg12: memref<18x18x256xbf16, #tpu.memory_space<vmem>>, %arg13: memref<18x18x128xbf16, #tpu.memory_space<vmem>>) attributes {dimension_semantics = [#tpu.dimension_semantics<parallel>], iteration_bounds = array<i64: 8>, scalar_prefetch = 0 : i64, scratch_operands = 2 : i64, tpu.core_type = #tpu.core_type<tc>, window_params = [{transform_indices = @transform_0, window_bounds = array<i64: 1, 16, 16, 128>}, {transform_indices = @transform_1, window_bounds = array<i64: 1, 16, 16, 128>}, {pipeline_mode = #tpu.pipeline_mode<synchronous>, transform_indices = @transform_2, window_bounds = array<i64: 2304, 128>}, {pipeline_mode = #tpu.pipeline_mode<synchronous>, transform_indices = @transform_3, window_bounds = array<i64: 1, 128>}, {pipeline_mode = #tpu.pipeline_mode<synchronous>, transform_indices = @transform_4, window_bounds = array<i64: 1, 128>}, {pipeline_mode = #tpu.pipeline_mode<synchronous>, transform_indices = @transform_5, window_bounds = array<i64: 128, 128>}, {pipeline_mode = #tpu.pipeline_mode<synchronous>, transform_indices = @transform_6, window_bounds = array<i64: 1, 128>}, {pipeline_mode = #tpu.pipeline_mode<synchronous>, transform_indices = @transform_7, window_bounds = array<i64: 1152, 128>}, {pipeline_mode = #tpu.pipeline_mode<synchronous>, transform_indices = @transform_8, window_bounds = array<i64: 1, 128>}, {pipeline_mode = #tpu.pipeline_mode<synchronous>, transform_indices = @transform_9, window_bounds = array<i64: 1, 128>}, {transform_indices = @transform_10, window_bounds = array<i64: 1, 16, 16, 128>}]} {
    %cst = arith.constant 0.000000e+00 : bf16
    %0 = vector.broadcast %cst : bf16 to vector<1x18x256xbf16>
    %c0 = arith.constant 0 : index
    %c0_0 = arith.constant 0 : index
    %c0_1 = arith.constant 0 : index
    %1 = vector.load %arg12[%c0, %c0_0, %c0_1] : memref<18x18x256xbf16, #tpu.memory_space<vmem>>, vector<1x18x256xbf16>
    tpu.vector_store %arg12[%c0, %c0_0, %c0_1], %0 {strides = array<i32>} : memref<18x18x256xbf16, #tpu.memory_space<vmem>>, vector<1x18x256xbf16>,
    %cst_2 = arith.constant 0.000000e+00 : bf16
    %2 = vector.broadcast %cst_2 : bf16 to vector<1x18x256xbf16>
    %c17 = arith.constant 17 : index
    %c0_3 = arith.constant 0 : index
    %c0_4 = arith.constant 0 : index
    %3 = vector.load %arg12[%c17, %c0_3, %c0_4] : memref<18x18x256xbf16, #tpu.memory_space<vmem>>, vector<1x18x256xbf16>
    tpu.vector_store %arg12[%c17, %c0_3, %c0_4], %2 {strides = array<i32>} : memref<18x18x256xbf16, #tpu.memory_space<vmem>>, vector<1x18x256xbf16>,
    %cst_5 = arith.constant 0.000000e+00 : bf16
    %4 = vector.broadcast %cst_5 : bf16 to vector<18x1x256xbf16>
    %c0_6 = arith.constant 0 : index
    %c0_7 = arith.constant 0 : index
    %c0_8 = arith.constant 0 : index
    %5 = vector.load %arg12[%c0_6, %c0_7, %c0_8] : memref<18x18x256xbf16, #tpu.memory_space<vmem>>, vector<18x1x256xbf16>
    tpu.vector_store %arg12[%c0_6, %c0_7, %c0_8], %4 {strides = array<i32>} : memref<18x18x256xbf16, #tpu.memory_space<vmem>>, vector<18x1x256xbf16>,
    %cst_9 = arith.constant 0.000000e+00 : bf16
    %6 = vector.broadcast %cst_9 : bf16 to vector<18x1x256xbf16>
    %c0_10 = arith.constant 0 : index
    %c17_11 = arith.constant 17 : index
    %c0_12 = arith.constant 0 : index
    %7 = vector.load %arg12[%c0_10, %c17_11, %c0_12] : memref<18x18x256xbf16, #tpu.memory_space<vmem>>, vector<18x1x256xbf16>
    tpu.vector_store %arg12[%c0_10, %c17_11, %c0_12], %6 {strides = array<i32>} : memref<18x18x256xbf16, #tpu.memory_space<vmem>>, vector<18x1x256xbf16>,
    %cst_13 = arith.constant 0.000000e+00 : bf16
    %8 = vector.broadcast %cst_13 : bf16 to vector<1x18x128xbf16>
    %c0_14 = arith.constant 0 : index
    %c0_15 = arith.constant 0 : index
    %c0_16 = arith.constant 0 : index
    %9 = vector.load %arg13[%c0_14, %c0_15, %c0_16] : memref<18x18x128xbf16, #tpu.memory_space<vmem>>, vector<1x18x128xbf16>
    tpu.vector_store %arg13[%c0_14, %c0_15, %c0_16], %8 {strides = array<i32>} : memref<18x18x128xbf16, #tpu.memory_space<vmem>>, vector<1x18x128xbf16>,
    %cst_17 = arith.constant 0.000000e+00 : bf16
    %10 = vector.broadcast %cst_17 : bf16 to vector<1x18x128xbf16>
    %c17_18 = arith.constant 17 : index
    %c0_19 = arith.constant 0 : index
    %c0_20 = arith.constant 0 : index
    %11 = vector.load %arg13[%c17_18, %c0_19, %c0_20] : memref<18x18x128xbf16, #tpu.memory_space<vmem>>, vector<1x18x128xbf16>
    tpu.vector_store %arg13[%c17_18, %c0_19, %c0_20], %10 {strides = array<i32>} : memref<18x18x128xbf16, #tpu.memory_space<vmem>>, vector<1x18x128xbf16>,
    %cst_21 = arith.constant 0.000000e+00 : bf16
    %12 = vector.broadcast %cst_21 : bf16 to vector<18x1x128xbf16>
    %c0_22 = arith.constant 0 : index
    %c0_23 = arith.constant 0 : index
    %c0_24 = arith.constant 0 : index
    %13 = vector.load %arg13[%c0_22, %c0_23, %c0_24] : memref<18x18x128xbf16, #tpu.memory_space<vmem>>, vector<18x1x128xbf16>
    tpu.vector_store %arg13[%c0_22, %c0_23, %c0_24], %12 {strides = array<i32>} : memref<18x18x128xbf16, #tpu.memory_space<vmem>>, vector<18x1x128xbf16>,
    %cst_25 = arith.constant 0.000000e+00 : bf16
    %14 = vector.broadcast %cst_25 : bf16 to vector<18x1x128xbf16>
    %c0_26 = arith.constant 0 : index
    %c17_27 = arith.constant 17 : index
    %c0_28 = arith.constant 0 : index
    %15 = vector.load %arg13[%c0_26, %c17_27, %c0_28] : memref<18x18x128xbf16, #tpu.memory_space<vmem>>, vector<18x1x128xbf16>
    tpu.vector_store %arg13[%c0_26, %c17_27, %c0_28], %14 {strides = array<i32>} : memref<18x18x128xbf16, #tpu.memory_space<vmem>>, vector<18x1x128xbf16>,
    %c0_29 = arith.constant 0 : index
    %c0_30 = arith.constant 0 : index
    %c0_31 = arith.constant 0 : index
    %c0_32 = arith.constant 0 : index
    %16 = vector.load %arg1[%c0_29, %c0_30, %c0_31, %c0_32] : memref<1x16x16x128xbf16, #tpu.memory_space<vmem>>, vector<1x16x16x128xbf16>
    %17 = vector.shape_cast %16 : vector<1x16x16x128xbf16> to vector<16x16x128xbf16>
    %c0_33 = arith.constant 0 : index
    %c0_34 = arith.constant 0 : index
    %c0_35 = arith.constant 0 : index
    %c0_36 = arith.constant 0 : index
    %18 = vector.load %arg2[%c0_33, %c0_34, %c0_35, %c0_36] : memref<1x16x16x128xbf16, #tpu.memory_space<vmem>>, vector<1x16x16x128xbf16>
    %19 = vector.shape_cast %18 : vector<1x16x16x128xbf16> to vector<16x16x128xbf16>
    %20 = tpu.concatenate %17, %19 in 2 : vector<16x16x128xbf16>, vector<16x16x128xbf16> -> vector<16x16x256xbf16>
    %c1 = arith.constant 1 : index
    %c1_37 = arith.constant 1 : index
    %c0_38 = arith.constant 0 : index
    %21 = vector.load %arg12[%c1, %c1_37, %c0_38] : memref<18x18x256xbf16, #tpu.memory_space<vmem>>, vector<16x16x256xbf16>
    tpu.vector_store %arg12[%c1, %c1_37, %c0_38], %20 {strides = array<i32>} : memref<18x18x256xbf16, #tpu.memory_space<vmem>>, vector<16x16x256xbf16>,
    %c0_39 = arith.constant 0 : index
    %c0_40 = arith.constant 0 : index
    %c0_41 = arith.constant 0 : index
    %22 = vector.load %arg12[%c0_39, %c0_40, %c0_41] : memref<18x18x256xbf16, #tpu.memory_space<vmem>>, vector<16x16x256xbf16>
    %23 = vector.shape_cast %22 : vector<16x16x256xbf16> to vector<256x256xbf16>
    %c0_42 = arith.constant 0 : index
    %c1_43 = arith.constant 1 : index
    %c0_44 = arith.constant 0 : index
    %24 = vector.load %arg12[%c0_42, %c1_43, %c0_44] : memref<18x18x256xbf16, #tpu.memory_space<vmem>>, vector<16x16x256xbf16>
    %25 = vector.shape_cast %24 : vector<16x16x256xbf16> to vector<256x256xbf16>
    %c0_45 = arith.constant 0 : index
    %c2 = arith.constant 2 : index
    %c0_46 = arith.constant 0 : index
    %26 = vector.load %arg12[%c0_45, %c2, %c0_46] : memref<18x18x256xbf16, #tpu.memory_space<vmem>>, vector<16x16x256xbf16>
    %27 = vector.shape_cast %26 : vector<16x16x256xbf16> to vector<256x256xbf16>
    %c1_47 = arith.constant 1 : index
    %c0_48 = arith.constant 0 : index
    %c0_49 = arith.constant 0 : index
    %28 = vector.load %arg12[%c1_47, %c0_48, %c0_49] : memref<18x18x256xbf16, #tpu.memory_space<vmem>>, vector<16x16x256xbf16>
    %29 = vector.shape_cast %28 : vector<16x16x256xbf16> to vector<256x256xbf16>
    %c1_50 = arith.constant 1 : index
    %c1_51 = arith.constant 1 : index
    %c0_52 = arith.constant 0 : index
    %30 = vector.load %arg12[%c1_50, %c1_51, %c0_52] : memref<18x18x256xbf16, #tpu.memory_space<vmem>>, vector<16x16x256xbf16>
    %31 = vector.shape_cast %30 : vector<16x16x256xbf16> to vector<256x256xbf16>
    %c1_53 = arith.constant 1 : index
    %c2_54 = arith.constant 2 : index
    %c0_55 = arith.constant 0 : index
    %32 = vector.load %arg12[%c1_53, %c2_54, %c0_55] : memref<18x18x256xbf16, #tpu.memory_space<vmem>>, vector<16x16x256xbf16>
    %33 = vector.shape_cast %32 : vector<16x16x256xbf16> to vector<256x256xbf16>
    %c2_56 = arith.constant 2 : index
    %c0_57 = arith.constant 0 : index
    %c0_58 = arith.constant 0 : index
    %34 = vector.load %arg12[%c2_56, %c0_57, %c0_58] : memref<18x18x256xbf16, #tpu.memory_space<vmem>>, vector<16x16x256xbf16>
    %35 = vector.shape_cast %34 : vector<16x16x256xbf16> to vector<256x256xbf16>
    %c2_59 = arith.constant 2 : index
    %c1_60 = arith.constant 1 : index
    %c0_61 = arith.constant 0 : index
    %36 = vector.load %arg12[%c2_59, %c1_60, %c0_61] : memref<18x18x256xbf16, #tpu.memory_space<vmem>>, vector<16x16x256xbf16>
    %37 = vector.shape_cast %36 : vector<16x16x256xbf16> to vector<256x256xbf16>
    %c2_62 = arith.constant 2 : index
    %c2_63 = arith.constant 2 : index
    %c0_64 = arith.constant 0 : index
    %38 = vector.load %arg12[%c2_62, %c2_63, %c0_64] : memref<18x18x256xbf16, #tpu.memory_space<vmem>>, vector<16x16x256xbf16>
    %39 = vector.shape_cast %38 : vector<16x16x256xbf16> to vector<256x256xbf16>
    %40 = tpu.concatenate %23, %25, %27, %29, %31, %33, %35, %37, %39 in 1 : vector<256x256xbf16>, vector<256x256xbf16>, vector<256x256xbf16>, vector<256x256xbf16>, vector<256x256xbf16>, vector<256x256xbf16>, vector<256x256xbf16>, vector<256x256xbf16>, vector<256x256xbf16> -> vector<256x2304xbf16>
    %c0_65 = arith.constant 0 : index
    %c0_66 = arith.constant 0 : index
    %41 = vector.load %arg3[%c0_65, %c0_66] : memref<2304x128xbf16, #tpu.memory_space<vmem>>, vector<2304x128xbf16>
    %cst_67 = arith.constant dense<0.000000e+00> : vector<256x128xf32>
    %42 = tpu.matmul %40, %41, %cst_67 {dimension_numbers = #tpu.dot_dimension_numbers<[1], [0], [0], [1], [0, 0, 1, 1], [], []>} : vector<256x2304xbf16>, vector<2304x128xbf16>, vector<256x128xf32> -> vector<256x128xf32>
    %c0_68 = arith.constant 0 : index
    %c0_69 = arith.constant 0 : index
    %43 = vector.load %arg4[%c0_68, %c0_69] : memref<1x128xf32, #tpu.memory_space<vmem>>, vector<1x128xf32>
    %44 = vector.broadcast %43 : vector<1x128xf32> to vector<256x128xf32>
    %45 = arith.mulf %42, %44 : vector<256x128xf32>
    %c0_70 = arith.constant 0 : index
    %c0_71 = arith.constant 0 : index
    %46 = vector.load %arg5[%c0_70, %c0_71] : memref<1x128xf32, #tpu.memory_space<vmem>>, vector<1x128xf32>
    %47 = vector.broadcast %46 : vector<1x128xf32> to vector<256x128xf32>
    %48 = arith.addf %45, %47 : vector<256x128xf32>
    %cst_72 = arith.constant 0.000000e+00 : f32
    %49 = vector.broadcast %cst_72 : f32 to vector<256x128xf32>
    %50 = arith.maximumf %48, %49 : vector<256x128xf32>
    %51 = arith.truncf %50 : vector<256x128xf32> to vector<256x128xbf16>
    %c0_73 = arith.constant 0 : index
    %c0_74 = arith.constant 0 : index
    %52 = vector.load %arg6[%c0_73, %c0_74] : memref<128x128xbf16, #tpu.memory_space<vmem>>, vector<128x128xbf16>
    %cst_75 = arith.constant dense<0.000000e+00> : vector<256x128xf32>
    %53 = tpu.matmul %51, %52, %cst_75 {dimension_numbers = #tpu.dot_dimension_numbers<[1], [0], [0], [1], [0, 0, 1, 1], [], []>} : vector<256x128xbf16>, vector<128x128xbf16>, vector<256x128xf32> -> vector<256x128xf32>
    %c0_76 = arith.constant 0 : index
    %c0_77 = arith.constant 0 : index
    %54 = vector.load %arg7[%c0_76, %c0_77] : memref<1x128xf32, #tpu.memory_space<vmem>>, vector<1x128xf32>
    %55 = vector.broadcast %54 : vector<1x128xf32> to vector<256x128xf32>
    %56 = arith.addf %53, %55 : vector<256x128xf32>
    %57 = arith.truncf %56 : vector<256x128xf32> to vector<256x128xbf16>
    %58 = vector.shape_cast %57 : vector<256x128xbf16> to vector<16x16x128xbf16>
    %c1_78 = arith.constant 1 : index
    %c1_79 = arith.constant 1 : index
    %c0_80 = arith.constant 0 : index
    %59 = vector.load %arg13[%c1_78, %c1_79, %c0_80] : memref<18x18x128xbf16, #tpu.memory_space<vmem>>, vector<16x16x128xbf16>
    tpu.vector_store %arg13[%c1_78, %c1_79, %c0_80], %58 {strides = array<i32>} : memref<18x18x128xbf16, #tpu.memory_space<vmem>>, vector<16x16x128xbf16>,
    %c0_81 = arith.constant 0 : index
    %c0_82 = arith.constant 0 : index
    %c0_83 = arith.constant 0 : index
    %60 = vector.load %arg13[%c0_81, %c0_82, %c0_83] : memref<18x18x128xbf16, #tpu.memory_space<vmem>>, vector<16x16x128xbf16>
    %61 = vector.shape_cast %60 : vector<16x16x128xbf16> to vector<256x128xbf16>
    %c0_84 = arith.constant 0 : index
    %c1_85 = arith.constant 1 : index
    %c0_86 = arith.constant 0 : index
    %62 = vector.load %arg13[%c0_84, %c1_85, %c0_86] : memref<18x18x128xbf16, #tpu.memory_space<vmem>>, vector<16x16x128xbf16>
    %63 = vector.shape_cast %62 : vector<16x16x128xbf16> to vector<256x128xbf16>
    %c0_87 = arith.constant 0 : index
    %c2_88 = arith.constant 2 : index
    %c0_89 = arith.constant 0 : index
    %64 = vector.load %arg13[%c0_87, %c2_88, %c0_89] : memref<18x18x128xbf16, #tpu.memory_space<vmem>>, vector<16x16x128xbf16>
    %65 = vector.shape_cast %64 : vector<16x16x128xbf16> to vector<256x128xbf16>
    %c1_90 = arith.constant 1 : index
    %c0_91 = arith.constant 0 : index
    %c0_92 = arith.constant 0 : index
    %66 = vector.load %arg13[%c1_90, %c0_91, %c0_92] : memref<18x18x128xbf16, #tpu.memory_space<vmem>>, vector<16x16x128xbf16>
    %67 = vector.shape_cast %66 : vector<16x16x128xbf16> to vector<256x128xbf16>
    %c1_93 = arith.constant 1 : index
    %c1_94 = arith.constant 1 : index
    %c0_95 = arith.constant 0 : index
    %68 = vector.load %arg13[%c1_93, %c1_94, %c0_95] : memref<18x18x128xbf16, #tpu.memory_space<vmem>>, vector<16x16x128xbf16>
    %69 = vector.shape_cast %68 : vector<16x16x128xbf16> to vector<256x128xbf16>
    %c1_96 = arith.constant 1 : index
    %c2_97 = arith.constant 2 : index
    %c0_98 = arith.constant 0 : index
    %70 = vector.load %arg13[%c1_96, %c2_97, %c0_98] : memref<18x18x128xbf16, #tpu.memory_space<vmem>>, vector<16x16x128xbf16>
    %71 = vector.shape_cast %70 : vector<16x16x128xbf16> to vector<256x128xbf16>
    %c2_99 = arith.constant 2 : index
    %c0_100 = arith.constant 0 : index
    %c0_101 = arith.constant 0 : index
    %72 = vector.load %arg13[%c2_99, %c0_100, %c0_101] : memref<18x18x128xbf16, #tpu.memory_space<vmem>>, vector<16x16x128xbf16>
    %73 = vector.shape_cast %72 : vector<16x16x128xbf16> to vector<256x128xbf16>
    %c2_102 = arith.constant 2 : index
    %c1_103 = arith.constant 1 : index
    %c0_104 = arith.constant 0 : index
    %74 = vector.load %arg13[%c2_102, %c1_103, %c0_104] : memref<18x18x128xbf16, #tpu.memory_space<vmem>>, vector<16x16x128xbf16>
    %75 = vector.shape_cast %74 : vector<16x16x128xbf16> to vector<256x128xbf16>
    %c2_105 = arith.constant 2 : index
    %c2_106 = arith.constant 2 : index
    %c0_107 = arith.constant 0 : index
    %76 = vector.load %arg13[%c2_105, %c2_106, %c0_107] : memref<18x18x128xbf16, #tpu.memory_space<vmem>>, vector<16x16x128xbf16>
    %77 = vector.shape_cast %76 : vector<16x16x128xbf16> to vector<256x128xbf16>
    %78 = tpu.concatenate %61, %63, %65, %67, %69, %71, %73, %75, %77 in 1 : vector<256x128xbf16>, vector<256x128xbf16>, vector<256x128xbf16>, vector<256x128xbf16>, vector<256x128xbf16>, vector<256x128xbf16>, vector<256x128xbf16>, vector<256x128xbf16>, vector<256x128xbf16> -> vector<256x1152xbf16>
    %c0_108 = arith.constant 0 : index
    %c0_109 = arith.constant 0 : index
    %79 = vector.load %arg8[%c0_108, %c0_109] : memref<1152x128xbf16, #tpu.memory_space<vmem>>, vector<1152x128xbf16>
    %cst_110 = arith.constant dense<0.000000e+00> : vector<256x128xf32>
    %80 = tpu.matmul %78, %79, %cst_110 {dimension_numbers = #tpu.dot_dimension_numbers<[1], [0], [0], [1], [0, 0, 1, 1], [], []>} : vector<256x1152xbf16>, vector<1152x128xbf16>, vector<256x128xf32> -> vector<256x128xf32>
    %c0_111 = arith.constant 0 : index
    %c0_112 = arith.constant 0 : index
    %81 = vector.load %arg9[%c0_111, %c0_112] : memref<1x128xf32, #tpu.memory_space<vmem>>, vector<1x128xf32>
    %82 = vector.broadcast %81 : vector<1x128xf32> to vector<256x128xf32>
    %83 = arith.mulf %80, %82 : vector<256x128xf32>
    %c0_113 = arith.constant 0 : index
    %c0_114 = arith.constant 0 : index
    %84 = vector.load %arg10[%c0_113, %c0_114] : memref<1x128xf32, #tpu.memory_space<vmem>>, vector<1x128xf32>
    %85 = vector.broadcast %84 : vector<1x128xf32> to vector<256x128xf32>
    %86 = arith.addf %83, %85 : vector<256x128xf32>
    %cst_115 = arith.constant 0.000000e+00 : f32
    %87 = vector.broadcast %cst_115 : f32 to vector<256x128xf32>
    %88 = arith.maximumf %86, %87 : vector<256x128xf32>
    %89 = vector.shape_cast %88 : vector<256x128xf32> to vector<1x16x16x128xf32>
    %c0_116 = arith.constant 0 : index
    %c0_117 = arith.constant 0 : index
    %c0_118 = arith.constant 0 : index
    %c0_119 = arith.constant 0 : index
    %90 = vector.load %arg11[%c0_116, %c0_117, %c0_118, %c0_119] : memref<1x16x16x128xf32, #tpu.memory_space<vmem>>, vector<1x16x16x128xf32>
    tpu.vector_store %arg11[%c0_116, %c0_117, %c0_118, %c0_119], %89 {strides = array<i32>} : memref<1x16x16x128xf32, #tpu.memory_space<vmem>>, vector<1x16x16x128xf32>,
    return
  }
  func.func @transform_0(%arg0: i32) -> (i32, i32, i32, i32) {
    %c0_i32 = arith.constant 0 : i32
    %c0_i32_0 = arith.constant 0 : i32
    %c0_i32_1 = arith.constant 0 : i32
    %c0_i32_2 = arith.constant 0 : i32
    return %arg0, %c0_i32, %c0_i32_0, %c0_i32_1 : i32, i32, i32, i32
  }
  func.func @transform_1(%arg0: i32) -> (i32, i32, i32, i32) {
    %c0_i32 = arith.constant 0 : i32
    %c0_i32_0 = arith.constant 0 : i32
    %c0_i32_1 = arith.constant 0 : i32
    %c0_i32_2 = arith.constant 0 : i32
    return %arg0, %c0_i32, %c0_i32_0, %c0_i32_1 : i32, i32, i32, i32
  }
  func.func @transform_2(%arg0: i32) -> (i32, i32) {
    %c0_i32 = arith.constant 0 : i32
    %c0_i32_0 = arith.constant 0 : i32
    %c0_i32_1 = arith.constant 0 : i32
    return %c0_i32, %c0_i32_0 : i32, i32
  }
  func.func @transform_3(%arg0: i32) -> (i32, i32) {
    %c0_i32 = arith.constant 0 : i32
    %c0_i32_0 = arith.constant 0 : i32
    %c0_i32_1 = arith.constant 0 : i32
    return %c0_i32, %c0_i32_0 : i32, i32
  }
  func.func @transform_4(%arg0: i32) -> (i32, i32) {
    %c0_i32 = arith.constant 0 : i32
    %c0_i32_0 = arith.constant 0 : i32
    %c0_i32_1 = arith.constant 0 : i32
    return %c0_i32, %c0_i32_0 : i32, i32
  }
  func.func @transform_5(%arg0: i32) -> (i32, i32) {
    %c0_i32 = arith.constant 0 : i32
    %c0_i32_0 = arith.constant 0 : i32
    %c0_i32_1 = arith.constant 0 : i32
    return %c0_i32, %c0_i32_0 : i32, i32
  }
  func.func @transform_6(%arg0: i32) -> (i32, i32) {
    %c0_i32 = arith.constant 0 : i32
    %c0_i32_0 = arith.constant 0 : i32
    %c0_i32_1 = arith.constant 0 : i32
    return %c0_i32, %c0_i32_0 : i32, i32
  }
  func.func @transform_7(%arg0: i32) -> (i32, i32) {
    %c0_i32 = arith.constant 0 : i32
    %c0_i32_0 = arith.constant 0 : i32
    %c0_i32_1 = arith.constant 0 : i32
    return %c0_i32, %c0_i32_0 : i32, i32
  }
  func.func @transform_8(%arg0: i32) -> (i32, i32) {
    %c0_i32 = arith.constant 0 : i32
    %c0_i32_0 = arith.constant 0 : i32
    %c0_i32_1 = arith.constant 0 : i32
    return %c0_i32, %c0_i32_0 : i32, i32
  }
  func.func @transform_9(%arg0: i32) -> (i32, i32) {
    %c0_i32 = arith.constant 0 : i32
    %c0_i32_0 = arith.constant 0 : i32
    %c0_i32_1 = arith.constant 0 : i32
    return %c0_i32, %c0_i32_0 : i32, i32
  }
  func.func @transform_10(%arg0: i32) -> (i32, i32, i32, i32) {
    %c0_i32 = arith.constant 0 : i32
    %c0_i32_0 = arith.constant 0 : i32
    %c0_i32_1 = arith.constant 0 : i32
    %c0_i32_2 = arith.constant 0 : i32
    return %arg0, %c0_i32, %c0_i32_0, %c0_i32_1 : i32, i32, i32, i32
  }
}

</mosaic_0001>

<bundles_post_ra>
// kernel: tpu_custom_call.1
= control target key start
LH: loop header
LB: loop body
LE: loop exit
PB: predicated region body
PF: predicated region fallthrough
CT: control target
= control target key end

     0   :  { %s20607_s0 = inlined_call_operand.hbm [shape: bf16[8,16,16,128], index: 0, kind: input, shape index: {}]   ;;  %s20608_s1 = inlined_call_operand.hbm [shape: bf16[8,16,16,128], index: 1, kind: input, shape index: {}]   ;;  %s20609_s2 = inlined_call_operand.hbm [shape: bf16[2304,128], index: 2, kind: input, shape index: {}]   ;;  %s20610_s3 = inlined_call_operand.vmem [shape: f32[1,128], index: 3, kind: input, shape index: {}]   ;;  %s20611_s4 = inlined_call_operand.vmem [shape: f32[1,128], index: 4, kind: input, shape index: {}]   ;;  %s20612_s5 = inlined_call_operand.hbm [shape: bf16[128,128], index: 5, kind: input, shape index: {}]   ;;  %s20613_s6 = inlined_call_operand.vmem [shape: f32[1,128], index: 6, kind: input, shape index: {}]   ;;  %s20614_s7 = inlined_call_operand.hbm [shape: bf16[1152,128], index: 7, kind: input, shape index: {}]   ;;  %s20615_s8 = inlined_call_operand.vmem [shape: f32[1,128], index: 8, kind: input, shape index: {}]   ;;  %s20616_s9 = inlined_call_operand.vmem [shape: f32[1,128], index: 9, kind: input, shape index: {}]   ;;  %s20617_s10 = inlined_call_operand.hbm [shape: f32[8,16,16,128], index: 10, kind: output, shape index: {}]  }
   0x1   :  { %20664 = sst [smem:[#allocation64_spill]] %s20607_s0 }
   0x2   :  { %20665 = sst [smem:[#allocation65_spill]] %s20609_s2 }
   0x3   :  { %20666 = sst [smem:[#allocation66_spill]] %s20612_s5 }
   0x4   :  { %20667 = sst [smem:[#allocation67_spill]] %s20614_s7 }
   0x5   :  { %15 = vsyncpa [#allocation5], 0 }
   0x6   :  { %17 = vsyncpa [#allocation5 + $0x1], 0 }
   0x7   :  { %18 = vsyncpa [#allocation8], 0 }
   0x8   :  { %20 = vsyncpa [#allocation8 + $0x1], 0 }
   0x9   :  { %21 = vsyncpa [#allocation11], 0 }
   0xa   :  { %22 = vsyncpa [#allocation6], 0 }
   0xb   :  { %24 = vsyncpa [#allocation6 + $0x1], 0  ;;  %s15267_s13 = smov 0   ;;  %s15269_s14 = smov 0  }
   0xc   :  { %s15271_s15 = smov 0   ;;  %s15273_s16 = smov 0  }
   0xd LB: > { %20668 = sst [smem:[#allocation19_spill]] %s15187_s13  ;;  %s15288_s17 = sadd.s32 4294967295, %s15199_s16   ;;  %s15199_s16 = sphi %s15273_s16, %s21036_s16   ;;  %s15195_s15 = sphi %s15271_s15, %s21038_s15   ;;  %s15191_s14 = sphi %s15269_s14, %s21040_s14   ;;  %s15187_s13 = sphi %s15267_s13, %s21039_s13  }
   0xe   : > { %20669 = sst [smem:[#allocation20_spill]] %s15195_s15  ;;  %s11997_s18 = sadd.s32 4294967294, %s15199_s16  }
   0xf   : > { %p50_p0 = scmp.ne.s32.totalorder %s15191_s14, %s15187_s13  ;;  %p20618_p1 = scmp.eq.s32.totalorder %s15288_s17, 0 }
  0x10   : > { %p268_p2 = scmp.eq.s32.totalorder %s15288_s17, 7  ;;  %p274_p3 = scmp.eq.s32.totalorder %s11997_s18, 7 }
  0x11   : > { %p15297_p4 = por %p20618_p1, %p50_p0  ;;  %p11998_p5 = scmp.ge.s32.totalorder %s15199_s16, 1 }
  0x12   : > { %p15302_p6 = por %p274_p3, %p50_p0  ;;  %p281_p7 = scmp.lt.s32.totalorder %s15199_s16, 9 }
  0x13   : > { %s20670_s19 = scalar_select %p15297_p4, 1, 0 }
  0x14   : > { %s20671_s20 = scalar_select %p15302_p6, 1, 0 }
  0x15   : > { %p15307_p8 = pnand %p11998_p5, %p281_p7  ;;  %s15201_s22 = smov [#allocation9]  }
  0x16   : > { %20672 = sst [smem:[#allocation21_spill]] %s20671_s20  ;;  %s293_s23 = sshll.u32 %s15201_s22, 4  ;;  %s294_s23 = int_to_ptr.vmem [resolvable:$true] %s293_s23 }
  0x17   : > { %p14495_p9 = pneg %p15307_p8  ;;  %s15202_s25 = smov [#allocation10]  }
  0x18   : > { %s312_s26 = sshll.u32 %s15202_s25, 4  ;;  %s15203_s27 = smov [#allocation12]   ;;  %s313_s26 = int_to_ptr.vmem [resolvable:$true] %s312_s26 }
  0x19   : > { %p15315_p10 = pnand %p14495_p9, %p20618_p1  ;;  %s328_s28 = sshll.u32 %s15203_s27, 4  ;;  %s329_s28 = int_to_ptr.vmem [resolvable:$true] %s328_s28 }
  0x1a   : > { %s15000_s29 = scalar_lea.vmem %s294_s23, 18432  ;;  %p15008_p3 = scmp.lt.s32.totalorder %s294_s23, %s294_s23 }
  0x1b   : > { %p14991_p11 = pneg %p15315_p10  ;;  %p15001_p12 = scmp.ne.s32.totalorder %s294_s23, %s15000_s29 }
  0x1c   : > { %p15009_p5 = scmp.lt.s32.totalorder %s15000_s29, %s15000_s29 }
  0x1d   : > { %p15003_p13 = pnand %p15001_p12, %p14991_p11 }
  0x1e   : > { %p15010_p7 = por %p15009_p5, %p15008_p3 }
  0x1f   : > { %p15004_p0 = pneg %p15003_p13 }
  0x21   : > { %p15011_p9 = pnand %p15010_p7, %p15004_p0 }
  0x23   : > { %15014 = shalt.err (!%p15011_p9)
}
  0x24   : > { %s20619_s30 = smov 64   ;;  %s20621_s11 = smov 4  }
  0x25   : > { %s20675_s2 = sld [smem:[#allocation65_spill]]  ;;  %s15026_s22 = scalar_lea.vmem %s313_s26, 1024 }
  0x26   : > { %p15027_p12 = scmp.ne.s32.totalorder %s313_s26, %s15026_s22  ;;  %p15034_p0 = scmp.lt.s32.totalorder %s313_s26, %s313_s26 }
  0x27   : > { %p15035_p5 = scmp.lt.s32.totalorder %s15026_s22, %s15026_s22 }
  0x28   : > { %p15029_p13 = pnand %p15027_p12, %p14991_p11 }
  0x29   : > { %p15036_p7 = por %p15035_p5, %p15034_p0 }
  0x2a   : > { %p15030_p3 = pneg %p15029_p13 }
  0x2b   : > { %14498 = dma.hbm_to_vmem [thread:$0]  (!%p15315_p10), %s20675_s2, 18432, %s294_s23, [#allocation8], %s20619_s30, %s20619_s30, %s20621_s11  }
  0x2c   : > { %p15037_p9 = pnand %p15036_p7, %p15030_p3 }
  0x2e   : > { %15040 = shalt.err (!%p15037_p9)
}
  0x2f   : > { %s20676_s5 = sld [smem:[#allocation66_spill]]  ;;  %s15052_s23 = scalar_lea.vmem %s329_s28, 9216 }
  0x30   : > { %p15053_p1 = scmp.ne.s32.totalorder %s329_s28, %s15052_s23  ;;  %p15060_p0 = scmp.lt.s32.totalorder %s329_s28, %s329_s28 }
  0x31   : > { %p15061_p3 = scmp.lt.s32.totalorder %s15052_s23, %s15052_s23 }
  0x32   : > { %p15055_p12 = pnand %p15053_p1, %p14991_p11 }
  0x33   : > { %p15062_p5 = por %p15061_p3, %p15060_p0 }
  0x34   : > { %p15056_p13 = pneg %p15055_p12 }
  0x35   : > { %14501 = dma.hbm_to_vmem [thread:$0]  (!%p15315_p10), %s20676_s5, 1024, %s313_s26, [#allocation11], %s20619_s30, %s20619_s30, %s20621_s11  }
  0x36   : > { %p15063_p7 = pnand %p15062_p5, %p15056_p13 }
  0x38   : > { %15066 = shalt.err (!%p15063_p7)
}
  0x39   : > { %s20677_s7 = sld [smem:[#allocation67_spill]]  ;;  %s15355_s26 = sadd.s32 1, %s15199_s16  }
  0x3a   : > { %20678 = sst [smem:[#allocation22_spill]] %s15355_s26  ;;  %s34_s24 = ssub.s32 %s15199_s16, %s15355_s26 }
  0x3b   : > { %s37_s18 = sadd.s32 1, %s15195_s15  ;;  %p35_p1 = scmp.eq.s32.totalorder %s34_s24, 0 }
  0x3c   : > { %p44_p11 = scmp.ne.s32.totalorder %s15195_s15, %s15191_s14  ;;  %p45_p9 = scmp.eq.s32.totalorder %s15199_s16, 0 }
  0x3d   : > { %p14519_p12 = scmp.lt.s32.totalorder %s15199_s16, 8  ;;  %s348_s27 = sand.u32 1, %s15195_s15  }
  0x3e   : > { %s15365_s22 = scalar_select %p35_p1, %s15195_s15, %s37_s18  }
  0x3f   : > { %14504 = dma.hbm_to_vmem [thread:$0]  (!%p15315_p10), %s20677_s7, 9216, %s329_s28, [#allocation11], %s20619_s30, %s20619_s30, %s20621_s11  }
  0x40   : > { %20679 = sst [smem:[#allocation23_spill]] %s15365_s22  ;;  %p46_p13 = por %p45_p9, %p44_p11 }
  0x41   : > { %p15369_p0 = por %p268_p2, %p44_p11  ;;  %s12842_s23 = sshll.u32 %s15199_s16, 11 }
  0x42   : > { %s15375_s28 = sshll.u32 %s348_s27, 7  ;;  %s20681_s0 = sld [smem:[#allocation64_spill]] }
  0x43   : > { %s20680_s25 = scalar_select %p15369_p0, 1, 0 }
  0x44   : > { %s352_s18 = scalar_lea.vmem [#allocation4], %s15375_s28  ;;  %p15383_p10 = pnand %p14519_p12, %p46_p13 }
  0x45   : > { %s359_s30 = sshll.u32 %s352_s18, 4  ;;  %s15392_s29 = scalar_lea.hbm %s20608_s1, %s12842_s23  ;;  %s15387_s30 = int_to_ptr.vmem [resolvable:$true] %s359_s30 }
  0x46   : > { %s15394_s12 = scalar_lea.sflag [#allocation5], %s348_s27  ;;  %p15069_p3 = pneg %p15383_p10 }
  0x48   : > { %s15380_s24 = scalar_lea.hbm %s20681_s0, %s12842_s23  ;;  %s15072_s15 = scalar_lea.hbm %s20681_s0, 16384 }
  0x49   : > { %s15067_s7 = scalar_lea.hbm %s15380_s24, 2048  ;;  %p15073_p1 = scmp.lt.s32.totalorder %s15380_s24, %s20681_s0 }
  0x4a   : > { %p15068_p2 = scmp.ne.s32.totalorder %s15380_s24, %s15067_s7  ;;  %p15074_p11 = scmp.lt.s32.totalorder %s15072_s15, %s15067_s7 }
  0x4c   : > { %p15070_p5 = pnand %p15069_p3, %p15068_p2  ;;  %p15075_p9 = por %p15074_p11, %p15073_p1 }
  0x4e   : > { %p15071_p7 = pneg %p15070_p5 }
  0x50   : > { %p15076_p12 = pnand %p15075_p9, %p15071_p7 }
  0x52   : > { %15079 = shalt.err (!%p15076_p12)
}
  0x53   : > { %s15080_s2 = scalar_lea.vmem %s15387_s30, 2048  ;;  %s15206_s5 = smov [#allocation4]  }
  0x54   : > { %p15081_p13 = scmp.ne.s32.totalorder %s15387_s30, %s15080_s2  ;;  %s15085_s22 = sshll.u32 %s15206_s5, 4  ;;  %s15086_s22 = int_to_ptr.vmem [resolvable:$false] %s15085_s22 }
  0x55   : > { %s15087_s27 = scalar_lea.vmem %s15086_s22, 4096  ;;  %p15088_p6 = scmp.lt.s32.totalorder %s15387_s30, %s15086_s22 }
  0x56   : > { %p15083_p2 = pnand %p15081_p13, %p15069_p3  ;;  %p15089_p0 = scmp.lt.s32.totalorder %s15087_s27, %s15080_s2 }
  0x58   : > { %p15084_p5 = pneg %p15083_p2  ;;  %p15090_p4 = por %p15089_p0, %p15088_p6 }
  0x5a   : > { %p15091_p1 = pnand %p15090_p4, %p15084_p5 }
  0x5c   : > { %15094 = shalt.err (!%p15091_p1)
}
  0x5d   : > { %s20683_s7 = smov 4   ;;  %s20684_s15 = smov 64  }
  0x5e   : > { %14508 = dma.hbm_to_vmem [thread:$0]  (!%p15383_p10), %s15380_s24, 2048, %s15387_s30, %s15394_s12, %s20684_s15, %s20684_s15, %s20683_s7  }
  0x5f   : > { %s373_s20 = scalar_lea.vmem [#allocation7], %s15375_s28  ;;  %s369_s23 = sand.u32 1, %s15199_s16  }
  0x60   : > { %s380_s26 = sshll.u32 %s373_s20, 4  ;;  %s370_s18 = scalar_lea.sflag [#allocation8], %s369_s23  ;;  %s15426_s26 = int_to_ptr.vmem [resolvable:$true] %s380_s26 }
  0x61   : > { %s15095_s2 = scalar_lea.hbm %s15392_s29, 2048  ;;  %s15100_s27 = scalar_lea.hbm %s20608_s1, 16384 }
  0x62   : > { %p15096_p4 = scmp.ne.s32.totalorder %s15392_s29, %s15095_s2  ;;  %p15101_p7 = scmp.lt.s32.totalorder %s15392_s29, %s20608_s1 }
  0x63   : > { %p15102_p11 = scmp.lt.s32.totalorder %s15100_s27, %s15095_s2 }
  0x64   : > { %p15098_p6 = pnand %p15096_p4, %p15069_p3 }
  0x65   : > { %p15103_p9 = por %p15102_p11, %p15101_p7 }
  0x66   : > { %p15099_p0 = pneg %p15098_p6 }
  0x68   : > { %p15104_p12 = pnand %p15103_p9, %p15099_p0 }
  0x6a   : > { %15107 = shalt.err (!%p15104_p12)
}
  0x6b   : > { %s15108_s30 = scalar_lea.vmem %s15426_s26, 2048  ;;  %s15207_s28 = smov [#allocation7]  }
  0x6c   : > { %p15109_p13 = scmp.ne.s32.totalorder %s15426_s26, %s15108_s30  ;;  %s15113_s24 = sshll.u32 %s15207_s28, 4  ;;  %s15114_s24 = int_to_ptr.vmem [resolvable:$false] %s15113_s24 }
  0x6d   : > { %s15115_s12 = scalar_lea.vmem %s15114_s24, 4096  ;;  %p15116_p1 = scmp.lt.s32.totalorder %s15426_s26, %s15114_s24 }
  0x6e   : > { %p15111_p2 = pnand %p15109_p13, %p15069_p3  ;;  %p15117_p4 = scmp.lt.s32.totalorder %s15115_s12, %s15108_s30 }
  0x70   : > { %p15112_p5 = pneg %p15111_p2  ;;  %p15118_p6 = por %p15117_p4, %p15116_p1 }
  0x72   : > { %p15119_p7 = pnand %p15118_p6, %p15112_p5 }
  0x74   : > { %15122 = shalt.err (!%p15119_p7)
}
  0x75   : > { %14511 = dma.hbm_to_vmem [thread:$0]  (!%p15383_p10), %s15392_s29, 2048, %s15426_s26, %s370_s18, %s20684_s15, %s20684_s15, %s20683_s7  }
  0x76   : > { %392 = sbr.rel (%p15307_p8) target bundleno = 1750 (0x6d6), region = 60 }
  0x7b   : > { %s15456_s0 = sand.u32 1, %s15191_s14   ;;  %p20685_p3 = scmp.ne.s32.totalorder %s20670_s19, 0 }
  0x7c   : > { %s12010_s13 = sshll.u32 %s15456_s0, 7  ;;  %s395_s20 = scalar_lea.sflag [#allocation5], %s15456_s0 }
  0x7d   : > { %s15460_s23 = scalar_lea.vmem [#allocation4], %s12010_s13 }
  0x7e   : > { %15166 = dma.done.wait (%p20685_p3), %s395_s20, 2048  }
  0x7f   : > { %15168 = vsyncadd (%p20685_p3), %s395_s20, 4294965248  ;;  %s403_s11 = sand.u32 1, %s15288_s17   ;;  %s15467_s29 = scalar_lea.vmem [#allocation7], %s12010_s13 }
  0x80   : > { %s404_s21 = scalar_lea.sflag [#allocation8], %s403_s11 }
  0x81   : > { %15170 = dma.done.wait (%p20685_p3), %s404_s21, 2048  }
  0x82   : > { %15172 = vsyncadd (%p20685_p3), %s404_s21, 4294965248  ;;  %p20686_p8 = scmp.eq.s32.totalorder %s15288_s17, 0 }
  0x84   : > { %15174 = dma.done.wait (%p20686_p8), [#allocation8], 18432   ;;  %p20687_p10 = pmov %p20686_p8 }
  0x85   : > { %p20688_p0 = pmov %p20686_p8 }
  0x86   : > { %15176 = vsyncadd (%p20687_p10), [#allocation8], 4294948864 }
  0x87   : > { %15178 = dma.done.wait (%p20688_p0), [#allocation11], 10240   ;;  %p20689_p11 = pmov %p20688_p0 }
  0x88   : > { %v15208_v0 = vmov 0   ;;  %v14564_v1 = vld [vmem:[#allocation9 + $0x78] sm:$0xff]   ;;  %vm470_vm0 = vsmask.f32 256  ;;  %vm473_vm1 = vsmask.f32 4352 }
  0x89   : > { %15180 = vsyncadd (%p20689_p11), [#allocation11], 4294957056  ;;  %462 = vst [vmem:[#allocation2 + $0x28] sm:$0xff] %v15208_v0  ;;  %vm530_vm2 = vsmask.f32 7938  ;;  %v14565_v2 = vld [vmem:[#allocation9 + $0xf8] sm:$0xff]   ;;  %12877 = vmatprep.subr.bf16.mxu0 %v14564_v1 }
  0x8a   : > { %463 = vst [vmem:[#allocation2 + $0x88] sm:$0xff] %v15208_v0  ;;  %464 = vst [vmem:[#allocation2 + $0x10] sm:$0x11] %v15208_v0  ;;  %vm532_vm3 = vsmask.f32 7954  ;;  %v14566_v3 = vld [vmem:[#allocation9 + $0x38] sm:$0xff]   ;;  %12989 = vmatprep.subr.bf16.mxu1 %v14565_v2 }
  0x8b   : > { %466 = vst [vmem:[#allocation2 + $0x60] sm:$0xff] %v15208_v0  ;;  %468 = vst [vmem:[#allocation2 + $0x190] sm:$0x11] %v15208_v0  ;;  %v14567_v4 = vld [vmem:[#allocation9 + $0xb8] sm:$0xff]   ;;  %12878 = vmatpush3.bf16.msra.mxu0 %v14566_v3  ;;  %v14568_v5 = vld [vmem:[#allocation9 + $0x70] sm:$0xff]   ;;  %vm469_vm4 = vcmask 1040384  }
  0x8c   : > { %589 = vst [vmem:[#allocation3] sm:$0xf] %v15208_v0  ;;  %590 = vst [vmem:[#allocation3 + $0x4] sm:$0xf] %v15208_v0  ;;  %12990 = vmatpush3.bf16.msra.mxu1 %v14567_v4  ;;  %v14569_v6 = vld [vmem:[#allocation9 + $0xf0] sm:$0xff]   ;;  %12879 = vmatprep.subr.bf16.mxu0 %v14568_v5  ;;  %v14572_v9 = vld [vmem:[#allocation9 + $0x68] sm:$0xff]  }
  0x8d   : > { %591 = vst [vmem:[#allocation3 + $0x8] sm:$0x1] %v15208_v0  ;;  %593 = vst [vmem:[#allocation3 + $0xcc] sm:$0xf] %v15208_v0  ;;  %v14570_v7 = vld [vmem:[#allocation9 + $0x30] sm:$0xff]   ;;  %12991 = vmatprep.subr.bf16.mxu1 %v14569_v6  ;;  %vm472_vm5 = vcmask 1044484  }
  0x8e   : > { %594 = vst [vmem:[#allocation3 + $0xd0] sm:$0xf] %v15208_v0  ;;  %595 = vst [vmem:[#allocation3 + $0xd4] sm:$0x1] %v15208_v0  ;;  %v14571_v8 = vld [vmem:[#allocation9 + $0xb0] sm:$0xff]   ;;  %v14573_v10 = vld [vmem:[#allocation9 + $0xe8] sm:$0xff]  }
  0x8f   : > { %12880 = vmatpush3.bf16.msra.mxu0 %v14570_v7  ;;  %v14574_v11 = vld [vmem:[#allocation9 + $0x28] sm:$0xff]   ;;  %vm15493_vm6 = vmand %vm469_vm4, %vm470_vm0  ;;  %v20690_v13 = vmov 0  ;;  %v20695_v15 = vmov 0  ;;  %v14576_v17 = vld [vmem:[#allocation9 + $0x60] sm:$0xff]   ;;  %v20702_v29 = vmov 0  ;;  %v15529_v41 = vrot.slane %v15208_v0, 5 }
  0x90   : > { %12992 = vmatpush3.bf16.msra.mxu1 %v14571_v8  ;;  %12881 = vmatprep.subr.bf16.mxu0 %v14572_v9  ;;  %v14575_v12 = vld [vmem:[#allocation9 + $0xa8] sm:$0xff]   ;;  %v20691_v13 = vsel %vm15493_vm6, 4294967295, %v20690_v13  ;;  %vm15498_vm7 = vmand %vm472_vm5, %vm473_vm1  ;;  %v14577_v18 = vld [vmem:[#allocation9 + $0xe0] sm:$0xff]   ;;  %vm1416_vm12 = vsmask.f32 3328  ;;  %v1435_v42 = vrot.slane %v15208_v0, 4 }
  0x91   : > { %12993 = vmatprep.subr.bf16.mxu1 %v14573_v10  ;;  %20692 = vst [vmem:[#allocation24_spill] sm:$0xff] %v20691_v13  ;;  %vm15503_vm8 = vmand %vm469_vm4, %vm530_vm2  ;;  %v14578_v19 = vld [vmem:[#allocation9 + $0x20] sm:$0xff]   ;;  %v14580_v21 = vld [vmem:[#allocation9 + $0x58] sm:$0xff]   ;;  %vm1417_vm13 = vsmask.f32 7440  ;;  %vm1251_vm14 = vcmask 1043456  }
  0x92   : > { %v20696_v15 = vsel %vm15503_vm8, 4294967295, %v20695_v15  ;;  %vm15508_vm9 = vmand %vm472_vm5, %vm532_vm3  ;;  %v14579_v20 = vld [vmem:[#allocation9 + $0xa0] sm:$0xff]   ;;  %v14581_v22 = vld [vmem:[#allocation9 + $0xd8] sm:$0xff]   ;;  %v1436_v48 = vor.u32 %v1435_v42, %v15529_v41  ;;  %vm1253_vm15 = vcmask 1047556   ;;  %vm928_vm1 = vsmask.f32 4368 }
  0x93   : > { %20697 = vst [vmem:[#allocation25_spill] sm:$0xff] %v20696_v15  ;;  %12882 = vmatpush3.bf16.msra.mxu0 %v14574_v11  ;;  %v14582_v23 = vld [vmem:[#allocation9 + $0x18] sm:$0xff]   ;;  %v14584_v25 = vld [vmem:[#allocation9 + $0x50] sm:$0xff]   ;;  %vm15516_vm10 = vmor %vm15498_vm7, %vm15493_vm6  ;;  %v20705_v56 = vmov 0  ;;  %v20710_v8 = vmov 0  ;;  %s12015_s12 = sshll.u32 %s15456_s0, 8 }
  0x94   : > { %12994 = vmatpush3.bf16.msra.mxu1 %v14575_v12  ;;  %12883 = vmatprep.subr.bf16.mxu0 %v14576_v17  ;;  %v14583_v24 = vld [vmem:[#allocation9 + $0x98] sm:$0xff]   ;;  %v14585_v26 = vld [vmem:[#allocation9 + $0xd0] sm:$0xff]   ;;  %vm15524_vm11 = vmor %vm15508_vm9, %vm15503_vm8  ;;  %v1437_v2 = vrot.slane %v1436_v48, 4  ;;  %vm1868_vm9 = vcmask 1046532   ;;  %s20375_s13 = scalar_lea.vmem [#allocation13], %s12015_s12  ;;  %s12876_s20 = sshll.u32 %s15288_s17, 12 }
  0x95   : > { %12995 = vmatprep.subr.bf16.mxu1 %v14577_v18  ;;  %v14586_v27 = vld [vmem:[#allocation9 + $0x10] sm:$0xff]   ;;  %v20703_v29 = vsel %vm15524_vm11, 4294967295, %v20702_v29  ;;  %v14588_v31 = vld [vmem:[#allocation9 + $0x48] sm:$0xff]   ;;  %v14592_v35 = vld [vmem:[#allocation9 + $0x40] sm:$0xff]   ;;  %s11860_s19 = scalar_lea.sflag [#allocation6], %s15456_s0  ;;  %p21032_p12 = scmp.ne.s32.totalorder %s20680_s25, 0 }
  0x96   : > { %20704 = vst [vmem:[#allocation26_spill] sm:$0xff] %v20703_v29  ;;  %v14587_v30 = vld [vmem:[#allocation9 + $0x90] sm:$0xff]   ;;  %v14589_v32 = vld [vmem:[#allocation9 + $0xc8] sm:$0xff]   ;;  %v14593_v36 = vld [vmem:[#allocation9 + $0xc0] sm:$0xff]   ;;  %s15209_s7 = smov [#allocation13]  }
  0x97   : > { %12884 = vmatpush3.bf16.msra.mxu0 %v14578_v19  ;;  %v14590_v33 = vld [vmem:[#allocation9 + $0x8] sm:$0xff]   ;;  %v14594_v37 = vld [vmem:[#allocation9] sm:$0xff]   ;;  %v14596_v45 = vld [vmem:[#allocation9 + $0x178] sm:$0xff]   ;;  %s15127_s15 = sshll.u32 %s15209_s7, 4  ;;  %s15128_s15 = int_to_ptr.vmem [resolvable:$false] %s15127_s15 }
  0x98   : > { %12996 = vmatpush3.bf16.msra.mxu1 %v14579_v20  ;;  %12885 = vmatprep.subr.bf16.mxu0 %v14580_v21  ;;  %v14591_v34 = vld [vmem:[#allocation9 + $0x88] sm:$0xff]   ;;  %v14595_v38 = vld [vmem:[#allocation9 + $0x80] sm:$0xff]   ;;  %vm15544_vm4 = vmand %vm1251_vm14, %vm530_vm2  ;;  %s15129_s26 = scalar_lea.vmem %s15128_s15, 8192 }
  0x99   : > { %12997 = vmatprep.subr.bf16.mxu1 %v14581_v22  ;;  %v476_v39 = vld [vmem:[#allocation2 + $0x28] sm:$0x11]  ;;  %v535_v40 = vld [vmem:[#allocation2 + $0x10] sm:$0x11]  ;;  %v20706_v56 = vsel %vm15544_vm4, 4294967295, %v20705_v56  ;;  %vm15552_vm5 = vmand %vm1253_vm15, %vm532_vm3 }
  0x9a   : > { %v477_v43 = vsel %vm15516_vm10, 0, %v476_v39  ;;  %v536_v44 = vsel %vm15524_vm11, 0, %v535_v40  ;;  %v479_v46 = vld [vmem:[#allocation2 + $0x48] sm:$0x11]  ;;  %v538_v54 = vld [vmem:[#allocation2 + $0x150] sm:$0x11]  ;;  %vm15563_vm2 = vmor %vm1416_vm12, %vm1417_vm13 }
  0x9b   : > { %12886 = vmatpush3.bf16.msra.mxu0 %v14582_v23  ;;  %478 = vst [vmem:[#allocation2 + $0x28] sm:$0x11] %v477_v43  ;;  %537 = vst [vmem:[#allocation2 + $0x10] sm:$0x11] %v536_v44  ;;  %v704_v47 = vld [vmem:[%s15460_s23] sm:$0xf] }
  0x9c   : > { %12998 = vmatpush3.bf16.msra.mxu1 %v14583_v24  ;;  %12887 = vmatprep.subr.bf16.mxu0 %v14584_v25  ;;  %v480_v49 = vsel %vm15516_vm10, 0, %v479_v46  ;;  %v705_v50 = vld [vmem:[%s15460_s23 + $0x4] sm:$0xf]  ;;  %v736_v51 = vld [vmem:[%s15467_s29] sm:$0xf]  ;;  %20707 = vst [vmem:[#allocation27_spill] sm:$0xff] %v20706_v56  ;;  %vm15574_vm3 = vmor %vm15552_vm5, %vm15544_vm4 }
  0x9d   : > { %12999 = vmatprep.subr.bf16.mxu1 %v14585_v26  ;;  %481 = vst [vmem:[#allocation2 + $0x48] sm:$0x11] %v480_v49  ;;  %v737_v52 = vld [vmem:[%s15467_s29 + $0x4] sm:$0xf]  ;;  %v12016_v53 = vcombine.low %v704_v47, %v736_v51  ;;  %v539_v57 = vsel %vm15524_vm11, 0, %v538_v54  ;;  %v20711_v8 = vsel %vm15563_vm2, 4294967295, %v20710_v8  ;;  %vm15581_vm7 = vmor %vm470_vm0, %vm928_vm1 }
  0x9e   : > { %v12017_v55 = vcombine.low %v705_v50, %v737_v52  ;;  %v482_v58 = vld [vmem:[#allocation2 + $0xf8] sm:$0x11]  ;;  %v706_v59 = vld [vmem:[%s15460_s23 + $0x8] sm:$0xf]  ;;  %540 = vst [vmem:[#allocation2 + $0x150] sm:$0x11] %v539_v57 }
  0x9f   : > { %12888 = vmatpush3.bf16.msra.mxu0 %v14586_v27  ;;  %v931_v60 = vshrl.u32 %v12016_v53, 16  ;;  %v934_v61 = vshll.u32 %v12016_v53, 16  ;;  %v483_v63 = vsel %vm15516_vm10, 0, %v482_v58  ;;  %v707_v1 = vld [vmem:[%s15460_s23 + $0xc] sm:$0xf]  ;;  %20712 = vst [vmem:[#allocation28_spill] sm:$0xff] %v20711_v8 }
  0xa0   : > { %13000 = vmatpush3.bf16.msra.mxu1 %v14587_v30  ;;  %12889 = vmatprep.subr.bf16.mxu0 %v14588_v31  ;;  %v939_v3 = vshrl.u32 %v12017_v55, 16  ;;  %484 = vst [vmem:[#allocation2 + $0xf8] sm:$0x11] %v483_v63  ;;  %v738_v4 = vld [vmem:[%s15467_s29 + $0x8] sm:$0xf]  ;;  %v942_v10 = vshll.u32 %v12017_v55, 16 }
  0xa1   : > { %13001 = vmatprep.subr.bf16.mxu1 %v14589_v32  ;;  %v739_v5 = vld [vmem:[%s15467_s29 + $0xc] sm:$0xf]  ;;  %v933_v9 = vrot.slane %v931_v60, 7  ;;  %v12018_v11 = vcombine.low %v706_v59, %v738_v4  ;;  %v14597_v19 = vld [vmem:[#allocation9 + $0x138] sm:$0xff]   ;;  %v14598_v24 = vld [vmem:[#allocation9 + $0x170] sm:$0xff]   ;;  %v20715_v32 = vmov 0 }
  0xa2   : > { %v1368_v6 = vld [vmem:[#allocation2 + $0x28] sm:$0xff]  ;;  %v1400_v7 = vld [vmem:[#allocation2 + $0x10] sm:$0x11]  ;;  %v15567_v12 = vcombine.low %v707_v1, %v739_v5  ;;  %v941_v30 = vrot.slane %v939_v3, 7  ;;  %v20716_v32 = vsel %vm15581_vm7, 4294967295, %v20715_v32  ;;  %v14599_v42 = vld [vmem:[#allocation9 + $0x130] sm:$0xff]  }
  0xa3   : > { %12890 = vmatpush3.bf16.msra.mxu0 %v14590_v33  ;;  %v1420_v14 = vshrl.u32 %v1368_v6, 16  ;;  %v1423_v16 = vshll.u32 %v1368_v6, 16  ;;  %v12097_v17 = vcombine.high %v1368_v6, %v15208_v0  ;;  %v1439_v18 = vshll.u32 %v1400_v7, 16  ;;  %20717 = vst [vmem:[#allocation29_spill] sm:$0xff] %v20716_v32  ;;  %v14600_v47 = vld [vmem:[#allocation9 + $0x168] sm:$0xff]  }
  0xa4   : > { %13002 = vmatpush3.bf16.msra.mxu1 %v14591_v34  ;;  %12891 = vmatprep.subr.bf16.mxu0 %v14592_v35  ;;  %v12096_v21 = vcombine.low %v1368_v6, %v15208_v0  ;;  %v936_v22 = vor.u32 %v934_v61, %v933_v9  ;;  %v937_v23 = vrot.slane %v933_v9, 4  ;;  %v1256_v31 = vld [vmem:[#allocation2 + $0x48] sm:$0xff]  ;;  %v948_v0 = vshrl.u32 %v12018_v11, 16  ;;  %v541_v57 = vld [vmem:[#allocation2 + $0xd0] sm:$0x11] }
  0xa5   : > { %13003 = vmatprep.subr.bf16.mxu1 %v14593_v36  ;;  %5583 = vmatprep.mubr.bf16.mxu0 %v12097_v17  ;;  %v1422_v25 = vrot.slane %v1420_v14, 4  ;;  %v1425_v26 = vrot.slane %v1423_v16, 5  ;;  %v1441_v27 = vrot.slane %v1439_v18, 5  ;;  %v951_v34 = vshll.u32 %v12018_v11, 16  ;;  %v1260_v40 = vld [vmem:[#allocation2 + $0x150] sm:$0x11] }
  0xa6   : > { %v1257_v33 = vsel %vm15574_vm3, %v936_v22, %v1256_v31  ;;  %v956_v35 = vshrl.u32 %v15567_v12, 16  ;;  %v946_v39 = vrot.slane %v941_v30, 4  ;;  %v959_v51 = vshll.u32 %v15567_v12, 16  ;;  %v485_v63 = vld [vmem:[#allocation2 + $0x130] sm:$0x11]  ;;  %v14602_v6 = vld [vmem:[#allocation9 + $0x160] sm:$0xff]  }
  0xa7   : > { %12892 = vmatpush3.bf16.msra.mxu0 %v14594_v37  ;;  %v1426_v36 = vor.u32 %v1425_v26, %v1422_v25  ;;  %v1442_v37 = vsel %vm15563_vm2, %v1437_v2, %v1441_v27  ;;  %1258 = vst [vmem:[#allocation2 + $0x48] sm:$0xff] %v1257_v33  ;;  %v1444_v43 = vshrl.u32 %v1257_v33, 16  ;;  %v1447_v44 = vshll.u32 %v1257_v33, 16  ;;  %v1263_v62 = vld [vmem:[#allocation2 + $0xf8] sm:$0xff]  ;;  %v14601_v1 = vld [vmem:[#allocation9 + $0x128] sm:$0xff]   ;;  %v14603_v14 = vld [vmem:[#allocation9 + $0x120] sm:$0xff]  }
  0xa8   : > { %13004 = vmatpush3.bf16.msra.mxu1 %v14595_v38  ;;  %13101 = vmatprep.subr.bf16.mxu0 %v14596_v45  ;;  %v944_v38 = vor.u32 %v942_v10, %v941_v30  ;;  %v950_v45 = vrot.slane %v948_v0, 7  ;;  %v15590_v46 = vrot.slane %v956_v35, 7  ;;  %v1261_v50 = vsel %vm15516_vm10, %v946_v39, %v1260_v40  ;;  %v708_v11 = vld [vmem:[%s15460_s23 + $0x10] sm:$0xf]  ;;  %v741_v22 = vld [vmem:[%s15467_s29 + $0x14] sm:$0xf] }
  0xa9   : > { %v1427_v48 = vrot.slane %v1426_v36, 4  ;;  %1262 = vst [vmem:[#allocation2 + $0x150] sm:$0x11] %v1261_v50  ;;  %v1446_v53 = vrot.slane %v1444_v43, 4  ;;  %v1449_v54 = vrot.slane %v1447_v44, 5  ;;  %v542_v18 = vsel %vm15524_vm11, 0, %v541_v57 }
  0xaa   : > { %5584 = vmatmul.mubr.bf16.vlgmr.msra.gmra.mxu0 %v12096_v21  ;;  %v945_v49 = vsel %vm15581_vm7, %v937_v23, %v944_v38  ;;  %v953_v61 = vor.u32 %v951_v34, %v950_v45  ;;  %v961_v9 = vor.u32 %v959_v51, %v15590_v46  ;;  %v963_v10 = vrot.slane %v15590_v46, 4  ;;  %v740_v12 = vld [vmem:[%s15467_s29 + $0x10] sm:$0xf]  ;;  %v709_v21 = vld [vmem:[%s15460_s23 + $0x14] sm:$0xf]  ;;  %v14604_v23 = vld [vmem:[#allocation9 + $0x158] sm:$0xff]  }
  0xab   : > { %13102 = vmatpush3.bf16.msra.mxu0 %v14597_v19  ;;  %1259 = vst [vmem:[#allocation2 + $0x70] sm:$0xff] %v945_v49  ;;  %v12099_v52 = vcombine.high %v1257_v33, %v945_v49  ;;  %v1453_v55 = vshll.u32 %v945_v49, 16  ;;  %v1432_v58 = vsel %vm15563_vm2, %v1427_v48, %v15529_v41  ;;  %v1457_v59 = vshrl.u32 %v945_v49, 16  ;;  %543 = vst [vmem:[#allocation2 + $0xd0] sm:$0x11] %v542_v18  ;;  %v14610_v51 = vld [vmem:[#allocation9 + $0x1f8] sm:$0xff]  }
  0xac   : > { %13103 = vmatprep.subr.bf16.mxu0 %v14598_v24  ;;  %v12098_v60 = vcombine.low %v1257_v33, %v945_v49  ;;  %v12128_v2 = vcombine.low %v1432_v58, %v1442_v37  ;;  %v12129_v3 = vcombine.high %v1432_v58, %v1442_v37  ;;  %v1450_v4 = vor.u32 %v1449_v54, %v1446_v53  ;;  %v544_v30 = vld [vmem:[#allocation2 + $0x108] sm:$0x11]  ;;  %v710_v36 = vld [vmem:[%s15460_s23 + $0x18] sm:$0xf]  ;;  %v711_v44 = vld [vmem:[%s15460_s23 + $0x1c] sm:$0xf] }
  0xad   : > { %5591 = vmatprep.mubr.bf16.mxu0 %v12099_v52  ;;  %v1455_v5 = vrot.slane %v1453_v55, 5  ;;  %v1459_v7 = vrot.slane %v1457_v59, 4  ;;  %v954_v41 = vrot.slane %v950_v45, 4  ;;  %v15606_v17 = vsel %vm15574_vm3, %v953_v61, %v1263_v62  ;;  %v488_v31 = vld [vmem:[#allocation2 + $0x148] sm:$0x11]  ;;  %v14605_v45 = vld [vmem:[#allocation9 + $0x118] sm:$0xff]   ;;  %13213 = vmatprep.subr.bf16.mxu1 %v14610_v51 }
  0xae   : > { %5744 = vmatprep.mubr.bf16.mxu1 %v12129_v3  ;;  %v1451_v16 = vrot.slane %v1450_v4, 4  ;;  %v486_v19 = vsel %vm15516_vm10, 0, %v485_v63  ;;  %1265 = vst [vmem:[#allocation2 + $0xf8] sm:$0xff] %v15606_v17  ;;  %v1468_v26 = vshrl.u32 %v15606_v17, 16  ;;  %v1471_v27 = vshll.u32 %v15606_v17, 16  ;;  %v14606_v62 = vld [vmem:[#allocation9 + $0x150] sm:$0xff]  }
  0xaf   : > { %13104 = vmatpush3.bf16.msra.mxu0 %v14599_v42  ;;  %5745 = vmatmul.mubr.bf16.vlgmr.msra.gmra.mxu1 %v12128_v2  ;;  %v1460_v24 = vor.u32 %v1459_v7, %v1455_v5  ;;  %v962_v25 = vsel %vm15581_vm7, %v954_v41, %v961_v9  ;;  %487 = vst [vmem:[#allocation2 + $0x130] sm:$0x11] %v486_v19  ;;  %v742_v37 = vld [vmem:[%s15467_s29 + $0x18] sm:$0xf]  ;;  %v545_v54 = vsel %vm15524_vm11, 0, %v544_v30  ;;  %v489_v55 = vsel %vm15516_vm10, 0, %v488_v31 }
  0xb0   : > { %13105 = vmatprep.subr.bf16.mxu0 %v14600_v47  ;;  %v15621_v33 = vsel %vm15563_vm2, %v1451_v16, %v1455_v5  ;;  %1266 = vst [vmem:[#allocation2 + $0xe8] sm:$0xff] %v962_v25  ;;  %v12101_v0 = vcombine.high %v15606_v17, %v962_v25  ;;  %v1477_v34 = vshll.u32 %v962_v25, 16  ;;  %v1481_v35 = vshrl.u32 %v962_v25, 16  ;;  %v1401_v38 = vld [vmem:[#allocation2 + $0x150] sm:$0x11]  ;;  %v14611_v63 = vld [vmem:[#allocation9 + $0x1b8] sm:$0xff]  }
  0xb1   : > { %v1461_v39 = vrot.slane %v1460_v24, 4  ;;  %v1470_v40 = vrot.slane %v1468_v26, 4  ;;  %v1473_v42 = vrot.slane %v1471_v27, 5  ;;  %v12100_v43 = vcombine.low %v15606_v17, %v962_v25  ;;  %v743_v57 = vld [vmem:[%s15467_s29 + $0x1c] sm:$0xf]  ;;  %v14607_v5 = vld [vmem:[#allocation9 + $0x110] sm:$0xff]   ;;  %13214 = vmatpush3.bf16.msra.mxu1 %v14611_v63 }
  0xb2   : > { %5592 = vmatmul.mubr.bf16.gmra.mxu0 %v12098_v60  ;;  %v1463_v47 = vshll.u32 %v1401_v38, 16  ;;  %v1479_v48 = vrot.slane %v1477_v34, 5  ;;  %v1483_v49 = vrot.slane %v1481_v35, 4  ;;  %v12020_v50 = vcombine.low %v708_v11, %v740_v12  ;;  %546 = vst [vmem:[#allocation2 + $0x108] sm:$0x11] %v545_v54  ;;  %v14608_v16 = vld [vmem:[#allocation9 + $0x148] sm:$0xff]  }
  0xb3   : > { %13106 = vmatpush3.bf16.msra.mxu0 %v14601_v1  ;;  %5599 = vmatprep.mubr.bf16.mxu0 %v12101_v0  ;;  %v1474_v52 = vor.u32 %v1473_v42, %v1470_v40  ;;  %v12021_v53 = vcombine.low %v709_v21, %v741_v22  ;;  %490 = vst [vmem:[#allocation2 + $0x148] sm:$0x11] %v489_v55  ;;  %v1267_v41 = vld [vmem:[#allocation2 + $0xd0] sm:$0x11]  ;;  %v14613_v24 = vld [vmem:[#allocation9 + $0x1b0] sm:$0xff]   ;;  %vm1867_vm0 = vcmask 1042432  }
  0xb4   : > { %13107 = vmatprep.subr.bf16.mxu0 %v14602_v6  ;;  %v1465_v58 = vrot.slane %v1463_v47, 5  ;;  %v1484_v59 = vor.u32 %v1483_v49, %v1479_v48  ;;  %v965_v60 = vshrl.u32 %v12020_v50, 16  ;;  %v968_v61 = vshll.u32 %v12020_v50, 16  ;;  %v14612_v6 = vld [vmem:[#allocation9 + $0x1f0] sm:$0xff]   ;;  %v744_v31 = vld [vmem:[%s15467_s29 + $0x20] sm:$0xf]  ;;  %vm15940_vm12 = vmor %vm1867_vm0, %vm1868_vm9 }
  0xb5   : > { %v1475_v1 = vrot.slane %v1474_v52, 4  ;;  %v973_v2 = vshrl.u32 %v12021_v53, 16  ;;  %v976_v3 = vshll.u32 %v12021_v53, 16  ;;  %v12022_v4 = vcombine.low %v710_v36, %v742_v37  ;;  %13215 = vmatprep.subr.bf16.mxu1 %v14612_v6  ;;  %v14614_v46 = vld [vmem:[#allocation9 + $0x1e8] sm:$0xff]   ;;  %v491_v52 = vld [vmem:[#allocation2 + $0x138] sm:$0x11] }
  0xb6   : > { %v1466_v7 = vsel %vm15563_vm2, %v1461_v39, %v1465_v58  ;;  %v15635_v9 = vrot.slane %v1484_v59, 4  ;;  %v967_v11 = vrot.slane %v965_v60, 7  ;;  %v12023_v12 = vcombine.low %v711_v44, %v743_v57  ;;  %v1270_v22 = vld [vmem:[#allocation2 + $0x130] sm:$0xff]  ;;  %13216 = vmatpush3.bf16.msra.mxu1 %v14613_v24  ;;  %v14616_v59 = vld [vmem:[#allocation9 + $0x1e0] sm:$0xff]  }
  0xb7   : > { %13108 = vmatpush3.bf16.msra.mxu0 %v14603_v14  ;;  %v547_v14 = vld [vmem:[#allocation2 + $0x180] sm:$0x11]  ;;  %v12131_v17 = vcombine.high %v15621_v33, %v1466_v7  ;;  %v12130_v18 = vcombine.low %v15621_v33, %v1466_v7  ;;  %v1268_v19 = vsel %vm15516_vm10, %v963_v10, %v1267_v41  ;;  %v15645_v21 = vsel %vm15563_vm2, %v1475_v1, %v1479_v48  ;;  %v14615_v53 = vld [vmem:[#allocation9 + $0x1a8] sm:$0xff]   ;;  %v713_v6 = vld [vmem:[%s15460_s23 + $0x24] sm:$0xf] }
  0xb8   : > { %13109 = vmatprep.subr.bf16.mxu0 %v14604_v23  ;;  %v712_v23 = vld [vmem:[%s15460_s23 + $0x20] sm:$0xf]  ;;  %1269 = vst [vmem:[#allocation2 + $0xd0] sm:$0x11] %v1268_v19  ;;  %v970_v25 = vor.u32 %v968_v61, %v967_v11  ;;  %v971_v26 = vrot.slane %v967_v11, 4  ;;  %v975_v27 = vrot.slane %v973_v2, 7  ;;  %13217 = vmatprep.subr.bf16.mxu1 %v14614_v46 }
  0xb9   : > { %v982_v30 = vshrl.u32 %v12022_v4, 16  ;;  %5752 = vmatprep.mubr.bf16.mxu1 %v12131_v17  ;;  %v985_v33 = vshll.u32 %v12022_v4, 16  ;;  %v990_v10 = vshrl.u32 %v12023_v12, 16  ;;  %v993_v0 = vshll.u32 %v12023_v12, 16  ;;  %v1274_v42 = vld [vmem:[#allocation2 + $0x108] sm:$0x11] }
  0xba   : > { %5600 = vmatmul.mubr.bf16.gmra.mxu0 %v12100_v43  ;;  %v548_v34 = vsel %vm15524_vm11, 0, %v547_v14  ;;  %5753 = vmatmul.mubr.bf16.gmra.mxu1 %v12130_v18  ;;  %v978_v35 = vor.u32 %v976_v3, %v975_v27  ;;  %v980_v36 = vrot.slane %v975_v27, 4  ;;  %v1271_v37 = vsel %vm15574_vm3, %v970_v25, %v1270_v22  ;;  %v1277_v51 = vld [vmem:[#allocation2 + $0x148] sm:$0xff] }
  0xbb   : > { %13110 = vmatpush3.bf16.msra.mxu0 %v14605_v45  ;;  %v984_v38 = vrot.slane %v982_v30, 7  ;;  %549 = vst [vmem:[#allocation2 + $0x180] sm:$0x11] %v548_v34  ;;  %1272 = vst [vmem:[#allocation2 + $0x130] sm:$0xff] %v1271_v37  ;;  %v1492_v39 = vshrl.u32 %v1271_v37, 16  ;;  %v1495_v40 = vshll.u32 %v1271_v37, 16  ;;  %v15653_v44 = vcombine.low %v712_v23, %v744_v31  ;;  %13218 = vmatpush3.bf16.msra.mxu1 %v14615_v53 }
  0xbc   : > { %13111 = vmatprep.subr.bf16.mxu0 %v14606_v62  ;;  %v992_v43 = vrot.slane %v990_v10, 7  ;;  %v14609_v45 = vld [vmem:[#allocation9 + $0x108] sm:$0xff]   ;;  %v979_v47 = vsel %vm15581_vm7, %v971_v26, %v978_v35  ;;  %v1275_v48 = vsel %vm15516_vm10, %v980_v36, %v1274_v42  ;;  %v745_v14 = vld [vmem:[%s15467_s29 + $0x24] sm:$0xf]  ;;  %13219 = vmatprep.subr.bf16.mxu1 %v14616_v59  ;;  %v494_v34 = vld [vmem:[#allocation2 + $0x160] sm:$0x11] }
  0xbd   : > { %v987_v49 = vor.u32 %v985_v33, %v984_v38  ;;  %v988_v50 = vrot.slane %v984_v38, 4  ;;  %1273 = vst [vmem:[#allocation2 + $0x80] sm:$0xff] %v979_v47  ;;  %v12103_v54 = vcombine.high %v1271_v37, %v979_v47  ;;  %1276 = vst [vmem:[#allocation2 + $0x108] sm:$0x11] %v1275_v48  ;;  %v1494_v55 = vrot.slane %v1492_v39, 4  ;;  %v14618_v24 = vld [vmem:[#allocation9 + $0x140] sm:$0xff]  }
  0xbe   : > { %v1497_v57 = vrot.slane %v1495_v40, 5  ;;  %v1501_v58 = vshll.u32 %v979_v47, 16  ;;  %v1505_v60 = vshrl.u32 %v979_v47, 16  ;;  %v12102_v61 = vcombine.low %v1271_v37, %v979_v47  ;;  %v550_v31 = vld [vmem:[#allocation2 + $0x1a8] sm:$0x11] }
  0xbf   : > { %13112 = vmatpush3.bf16.msra.mxu0 %v14607_v5  ;;  %v995_v62 = vor.u32 %v993_v0, %v992_v43  ;;  %v997_v63 = vrot.slane %v992_v43, 4  ;;  %v1402_v1 = vld [vmem:[#allocation2 + $0xd0] sm:$0x11]  ;;  %5607 = vmatprep.mubr.bf16.mxu0 %v12103_v54  ;;  %v15661_v4 = vsel %vm15574_vm3, %v987_v49, %v1277_v51  ;;  %v492_v5 = vsel %vm15516_vm10, 0, %v491_v52  ;;  %v14619_v35 = vld [vmem:[#allocation9 + $0x100] sm:$0xff]   ;;  %v14620_v43 = vld [vmem:[#allocation9 + $0x1d8] sm:$0xff]  }
  0xc0   : > { %13113 = vmatprep.subr.bf16.mxu0 %v14608_v16  ;;  %v1498_v2 = vor.u32 %v1497_v57, %v1494_v55  ;;  %v1503_v3 = vrot.slane %v1501_v58, 5  ;;  %v1487_v7 = vshll.u32 %v1402_v1, 16  ;;  %v1507_v41 = vrot.slane %v1505_v60, 4  ;;  %1279 = vst [vmem:[#allocation2 + $0x148] sm:$0xff] %v15661_v4  ;;  %493 = vst [vmem:[#allocation2 + $0x138] sm:$0x11] %v492_v5 }
  0xc1   : > { %v996_v11 = vsel %vm15581_vm7, %v988_v50, %v995_v62  ;;  %v1516_v12 = vshrl.u32 %v15661_v4, 16  ;;  %v14617_v16 = vld [vmem:[#allocation9 + $0x1a0] sm:$0xff]   ;;  %v1519_v18 = vshll.u32 %v15661_v4, 16  ;;  %v12025_v40 = vcombine.low %v713_v6, %v745_v14  ;;  %v714_v42 = vld [vmem:[%s15460_s23 + $0x28] sm:$0xf]  ;;  %v14621_v52 = vld [vmem:[#allocation9 + $0x198] sm:$0xff]  }
  0xc2   : > { %5608 = vmatmul.mubr.bf16.gmra.mxu0 %v12102_v61  ;;  %v1499_v17 = vrot.slane %v1498_v2, 4  ;;  %1280 = vst [vmem:[#allocation2 + $0x18] sm:$0xff] %v996_v11  ;;  %v12105_v19 = vcombine.high %v15661_v4, %v996_v11  ;;  %v1281_v22 = vld [vmem:[#allocation2 + $0x180] sm:$0x11]  ;;  %v1525_v23 = vshll.u32 %v996_v11, 16  ;;  %v1489_v25 = vrot.slane %v1487_v7, 5  ;;  %13220 = vmatpush3.bf16.msra.mxu1 %v14617_v16 }
  0xc3   : > { %13114 = vmatpush3.bf16.msra.mxu0 %v14609_v45  ;;  %v1508_v26 = vor.u32 %v1507_v41, %v1503_v3  ;;  %v1282_v27 = vsel %vm15516_vm10, %v997_v63, %v1281_v22  ;;  %v1518_v30 = vrot.slane %v1516_v12, 4  ;;  %v1521_v33 = vrot.slane %v1519_v18, 5  ;;  %v715_v50 = vld [vmem:[%s15460_s23 + $0x2c] sm:$0xf]  ;;  %v746_v51 = vld [vmem:[%s15467_s29 + $0x28] sm:$0xf]  ;;  %13221 = vmatprep.subr.bf16.mxu1 %v14620_v43 }
  0xc4   : > { %v15677_v46 = vsel %vm15563_vm2, %v1499_v17, %v1503_v3  ;;  %5615 = vmatprep.mubr.bf16.mxu0 %v12105_v19  ;;  %1283 = vst [vmem:[#allocation2 + $0x180] sm:$0x11] %v1282_v27  ;;  %v1527_v10 = vrot.slane %v1525_v23, 5  ;;  %v1529_v0 = vshrl.u32 %v996_v11, 16  ;;  %13115 = vmatprep.subr.bf16.mxu0 %v14618_v24  ;;  %v1490_v36 = vsel %vm15563_vm2, %v15635_v9, %v1489_v25  ;;  %v1403_v37 = vld [vmem:[#allocation2 + $0x108] sm:$0x11] }
  0xc5   : > { %v1509_v38 = vrot.slane %v1508_v26, 4  ;;  %v12104_v39 = vcombine.low %v15661_v4, %v996_v11  ;;  %v12133_v45 = vcombine.high %v15645_v21, %v1490_v36  ;;  %v12132_v47 = vcombine.low %v15645_v21, %v1490_v36  ;;  %v747_v57 = vld [vmem:[%s15467_s29 + $0x2c] sm:$0xf]  ;;  %v14622_v61 = vld [vmem:[#allocation9 + $0x1d0] sm:$0xff]  }
  0xc6   : > { %v1511_v48 = vshll.u32 %v1403_v37, 16  ;;  %v1522_v49 = vor.u32 %v1521_v33, %v1518_v30  ;;  %v1531_v9 = vrot.slane %v1529_v0, 4  ;;  %v999_v53 = vshrl.u32 %v15653_v44, 16  ;;  %13222 = vmatpush3.bf16.msra.mxu1 %v14621_v52  ;;  %v14623_v7 = vld [vmem:[#allocation9 + $0x190] sm:$0xff]   ;;  %v14624_v17 = vld [vmem:[#allocation9 + $0x1c8] sm:$0xff]  }
  0xc7   : > { %13116 = vmatpush3.bf16.msra.mxu0 %v14619_v35  ;;  %v1002_v54 = vshll.u32 %v15653_v44, 16  ;;  %v1007_v55 = vshrl.u32 %v12025_v40, 16  ;;  %5760 = vmatprep.mubr.bf16.mxu1 %v12133_v45  ;;  %v1010_v60 = vshll.u32 %v12025_v40, 16  ;;  %v551_v21 = vsel %vm15524_vm11, 0, %v550_v31  ;;  %v1284_v4 = vld [vmem:[#allocation2 + $0x138] sm:$0xff]  ;;  %v14625_v0 = vld [vmem:[#allocation9 + $0x188] sm:$0xff]  }
  0xc8   : > { %v1513_v58 = vrot.slane %v1511_v48, 5  ;;  %v1523_v59 = vrot.slane %v1522_v49, 4  ;;  %5761 = vmatmul.mubr.bf16.gmra.mxu1 %v12132_v47  ;;  %v1532_v62 = vor.u32 %v1531_v9, %v1527_v10  ;;  %v1001_v63 = vrot.slane %v999_v53, 7  ;;  %552 = vst [vmem:[#allocation2 + $0x1a8] sm:$0x11] %v551_v21  ;;  %13223 = vmatprep.subr.bf16.mxu1 %v14622_v61  ;;  %v14628_v48 = vld [vmem:[#allocation9 + $0x278] sm:$0xff]  }
  0xc9   : > { %v1009_v1 = vrot.slane %v1007_v55, 7  ;;  %v495_v44 = vsel %vm15516_vm10, 0, %v494_v34  ;;  %v12026_v5 = vcombine.low %v714_v42, %v746_v51  ;;  %v15701_v6 = vcombine.low %v715_v50, %v747_v57  ;;  %v716_v53 = vld [vmem:[%s15460_s23 + $0x30] sm:$0xf]  ;;  %v14627_v21 = vld [vmem:[#allocation9 + $0x180] sm:$0xff]   ;;  %13325 = vmatprep.subr.bf16.mxu0 %v14628_v48 }
  0xca   : > { %5616 = vmatmul.mubr.bf16.gmra.mxu0 %v12104_v39  ;;  %v1514_v2 = vsel %vm15563_vm2, %v1509_v38, %v1513_v58  ;;  %v15699_v3 = vsel %vm15563_vm2, %v1523_v59, %v1527_v10  ;;  %496 = vst [vmem:[#allocation2 + $0x160] sm:$0x11] %v495_v44  ;;  %v1533_v14 = vrot.slane %v1532_v62, 4  ;;  %v1004_v16 = vor.u32 %v1002_v54, %v1001_v63  ;;  %v553_v10 = vld [vmem:[#allocation2] sm:$0x11]  ;;  %v14626_v39 = vld [vmem:[#allocation9 + $0x1c0] sm:$0xff]  }
  0xcb   : > { %v12135_v41 = vcombine.high %v15677_v46, %v1514_v2  ;;  %v12134_v11 = vcombine.low %v15677_v46, %v1514_v2  ;;  %v1404_v12 = vld [vmem:[#allocation2 + $0x180] sm:$0x11]  ;;  %v1005_v19 = vrot.slane %v1001_v63, 4  ;;  %v1012_v22 = vor.u32 %v1010_v60, %v1009_v1  ;;  %13224 = vmatpush3.bf16.msra.mxu1 %v14623_v7  ;;  %v497_v38 = vld [vmem:[#allocation2 + $0x68] sm:$0x11] }
  0xcc   : > { %v1535_v18 = vshll.u32 %v1404_v12, 16  ;;  %v1014_v23 = vrot.slane %v1009_v1, 4  ;;  %v1285_v24 = vsel %vm15574_vm3, %v1004_v16, %v1284_v4  ;;  %v1016_v25 = vshrl.u32 %v12026_v5, 16  ;;  %13225 = vmatprep.subr.bf16.mxu1 %v14624_v17  ;;  %v748_v54 = vld [vmem:[%s15467_s29 + $0x30] sm:$0xf] }
  0xcd   : > { %5768 = vmatprep.mubr.bf16.mxu1 %v12135_v41  ;;  %v1019_v26 = vshll.u32 %v12026_v5, 16  ;;  %v1024_v27 = vshrl.u32 %v15701_v6, 16  ;;  %v1013_v31 = vsel %vm15581_vm7, %v1005_v19, %v1012_v22  ;;  %1286 = vst [vmem:[#allocation2 + $0x138] sm:$0xff] %v1285_v24  ;;  %v1540_v46 = vshrl.u32 %v1285_v24, 16  ;;  %v717_v60 = vld [vmem:[%s15460_s23 + $0x34] sm:$0xf] }
  0xce   : > { %v1537_v30 = vrot.slane %v1535_v18, 5  ;;  %v1543_v33 = vshll.u32 %v1285_v24, 16  ;;  %1287 = vst [vmem:[#allocation2 + $0x100] sm:$0xff] %v1013_v31  ;;  %v12107_v34 = vcombine.high %v1285_v24, %v1013_v31  ;;  %v1549_v35 = vshll.u32 %v1013_v31, 16  ;;  %v749_v44 = vld [vmem:[%s15467_s29 + $0x34] sm:$0xf] }
  0xcf   : > { %v1553_v36 = vshrl.u32 %v1013_v31, 16  ;;  %v12106_v37 = vcombine.low %v1285_v24, %v1013_v31  ;;  %v1288_v42 = vld [vmem:[#allocation2 + $0x1a8] sm:$0x11]  ;;  %v1542_v43 = vrot.slane %v1540_v46, 4  ;;  %v1018_v47 = vrot.slane %v1016_v25, 7  ;;  %13226 = vmatpush3.bf16.msra.mxu1 %v14625_v0 }
  0xd0   : > { %v1538_v40 = vsel %vm15563_vm2, %v1533_v14, %v1537_v30  ;;  %v1545_v45 = vrot.slane %v1543_v33, 5  ;;  %5769 = vmatmul.mubr.bf16.gmra.mxu1 %v12134_v11  ;;  %5623 = vmatprep.mubr.bf16.mxu0 %v12107_v34  ;;  %v1289_v51 = vsel %vm15516_vm10, %v1014_v23, %v1288_v42  ;;  %v1551_v52 = vrot.slane %v1549_v35, 5  ;;  %v556_v18 = vld [vmem:[#allocation2 + $0xc8] sm:$0x11]  ;;  %v500_v25 = vld [vmem:[#allocation2 + $0x118] sm:$0x11] }
  0xd1   : > { %v12137_v49 = vcombine.high %v15699_v3, %v1538_v40  ;;  %v12136_v50 = vcombine.low %v15699_v3, %v1538_v40  ;;  %v1291_v9 = vld [vmem:[#allocation2 + $0x160] sm:$0xff]  ;;  %1290 = vst [vmem:[#allocation2 + $0x1a8] sm:$0x11] %v1289_v51  ;;  %v1555_v57 = vrot.slane %v1553_v36, 4  ;;  %v1021_v58 = vor.u32 %v1019_v26, %v1018_v47  ;;  %13227 = vmatprep.subr.bf16.mxu1 %v14626_v39 }
  0xd2   : > { %v1546_v55 = vor.u32 %v1545_v45, %v1542_v43  ;;  %5624 = vmatmul.mubr.bf16.gmra.mxu0 %v12106_v37  ;;  %v1022_v59 = vrot.slane %v1018_v47, 4  ;;  %v1026_v61 = vrot.slane %v1024_v27, 7  ;;  %v1027_v62 = vshll.u32 %v15701_v6, 16 }
  0xd3   : > { %5776 = vmatprep.mubr.bf16.mxu1 %v12137_v49  ;;  %v554_v63 = vsel %vm15524_vm11, 0, %v553_v10  ;;  %v498_v1 = vsel %vm15516_vm10, 0, %v497_v38  ;;  %v1556_v3 = vor.u32 %v1555_v57, %v1551_v52  ;;  %v1292_v4 = vsel %vm15574_vm3, %v1021_v58, %v1291_v9  ;;  %13228 = vmatpush3.bf16.msra.mxu1 %v14627_v21  ;;  %v750_v9 = vld [vmem:[%s15467_s29 + $0x38] sm:$0xf]  ;;  %v719_v58 = vld [vmem:[%s15460_s23 + $0x3c] sm:$0xf] }
  0xd4   : > { %v1547_v2 = vrot.slane %v1546_v55, 4  ;;  %555 = vst [vmem:[#allocation2] sm:$0x11] %v554_v63  ;;  %499 = vst [vmem:[#allocation2 + $0x68] sm:$0x11] %v498_v1  ;;  %v12028_v5 = vcombine.low %v716_v53, %v748_v54  ;;  %v1029_v7 = vor.u32 %v1027_v62, %v1026_v61  ;;  %v1031_v41 = vrot.slane %v1026_v61, 4 }
  0xd5   : > { %1293 = vst [vmem:[#allocation2 + $0x160] sm:$0xff] %v1292_v4  ;;  %v1564_v6 = vshrl.u32 %v1292_v4, 16  ;;  %v1567_v11 = vshll.u32 %v1292_v4, 16  ;;  %v1557_v14 = vrot.slane %v1556_v3, 4  ;;  %v12029_v16 = vcombine.low %v717_v60, %v749_v44  ;;  %v751_v62 = vld [vmem:[%s15467_s29 + $0x3c] sm:$0xf] }
  0xd6   : > { %v15729_v12 = vsel %vm15563_vm2, %v1547_v2, %v1551_v52  ;;  %v1033_v17 = vshrl.u32 %v12028_v5, 16  ;;  %v1030_v19 = vsel %vm15581_vm7, %v1022_v59, %v1029_v7  ;;  %v1036_v24 = vshll.u32 %v12028_v5, 16  ;;  %v718_v52 = vld [vmem:[%s15460_s23 + $0x38] sm:$0xf] }
  0xd7   : > { %v1566_v22 = vrot.slane %v1564_v6, 4  ;;  %v1569_v23 = vrot.slane %v1567_v11, 5  ;;  %1294 = vst [vmem:[#allocation2 + $0x198] sm:$0xff] %v1030_v19  ;;  %v12109_v26 = vcombine.high %v1292_v4, %v1030_v19  ;;  %v1573_v27 = vshll.u32 %v1030_v19, 16  ;;  %v559_v3 = vld [vmem:[#allocation2 + $0x40] sm:$0x11] }
  0xd8   : > { %v1577_v30 = vshrl.u32 %v1030_v19, 16  ;;  %v12108_v31 = vcombine.low %v1292_v4, %v1030_v19  ;;  %5777 = vmatmul.mubr.bf16.gmra.mxu1 %v12136_v50  ;;  %v1405_v46 = vld [vmem:[#allocation2 + $0x1a8] sm:$0x11]  ;;  %v1035_v10 = vrot.slane %v1033_v17, 7  ;;  %v1041_v0 = vshrl.u32 %v12029_v16, 16 }
  0xd9   : > { %v1570_v33 = vor.u32 %v1569_v23, %v1566_v22  ;;  %v1044_v34 = vshll.u32 %v12029_v16, 16  ;;  %v1559_v35 = vshll.u32 %v1405_v46, 16  ;;  %5631 = vmatprep.mubr.bf16.mxu0 %v12109_v26  ;;  %v1575_v36 = vrot.slane %v1573_v27, 5  ;;  %v503_v4 = vld [vmem:[#allocation2 + $0x90] sm:$0x11] }
  0xda   : > { %v1579_v37 = vrot.slane %v1577_v30, 4  ;;  %v557_v38 = vsel %vm15524_vm11, 0, %v556_v18  ;;  %5632 = vmatmul.mubr.bf16.gmra.mxu0 %v12108_v31  ;;  %v1038_v42 = vor.u32 %v1036_v24, %v1035_v10  ;;  %v1039_v43 = vrot.slane %v1035_v10, 4  ;;  %v720_v11 = vld [vmem:[%s15460_s23 + $0x40] sm:$0xf] }
  0xdb   : > { %v1295_v39 = vld [vmem:[#allocation2] sm:$0x11]  ;;  %v1571_v40 = vrot.slane %v1570_v33, 4  ;;  %v1043_v45 = vrot.slane %v1041_v0, 7  ;;  %v1298_v47 = vld [vmem:[#allocation2 + $0x68] sm:$0xff]  ;;  %v1561_v48 = vrot.slane %v1559_v35, 5  ;;  %v12030_v2 = vcombine.low %v718_v52, %v750_v9 }
  0xdc   : > { %558 = vst [vmem:[#allocation2 + $0xc8] sm:$0x11] %v557_v38  ;;  %v1296_v49 = vsel %vm15516_vm10, %v1031_v41, %v1295_v39  ;;  %v1580_v50 = vor.u32 %v1579_v37, %v1575_v36  ;;  %v501_v51 = vsel %vm15516_vm10, 0, %v500_v25  ;;  %v1299_v57 = vsel %vm15574_vm3, %v1038_v42, %v1298_v47  ;;  %v752_v19 = vld [vmem:[%s15467_s29 + $0x40] sm:$0xf] }
  0xdd   : > { %1297 = vst [vmem:[#allocation2] sm:$0x11] %v1296_v49  ;;  %v15743_v53 = vsel %vm15563_vm2, %v1571_v40, %v1575_v36  ;;  %v1046_v54 = vor.u32 %v1044_v34, %v1043_v45  ;;  %v1048_v55 = vrot.slane %v1043_v45, 4  ;;  %502 = vst [vmem:[#allocation2 + $0x118] sm:$0x11] %v501_v51  ;;  %v1562_v59 = vsel %vm15563_vm2, %v1557_v14, %v1561_v48 }
  0xde   : > { %v15750_v60 = vrot.slane %v1580_v50, 4  ;;  %1300 = vst [vmem:[#allocation2 + $0x68] sm:$0xff] %v1299_v57  ;;  %v1588_v21 = vshrl.u32 %v1299_v57, 16  ;;  %v1591_v61 = vshll.u32 %v1299_v57, 16  ;;  %v12139_v63 = vcombine.high %v15729_v12, %v1562_v59  ;;  %v753_v33 = vld [vmem:[%s15467_s29 + $0x44] sm:$0xf] }
  0xdf   : > { %v12138_v1 = vcombine.low %v15729_v12, %v1562_v59  ;;  %v1047_v44 = vsel %vm15581_vm7, %v1039_v43, %v1046_v54  ;;  %v12031_v17 = vcombine.low %v719_v58, %v751_v62  ;;  %v1050_v18 = vshrl.u32 %v12030_v2, 16  ;;  %v721_v12 = vld [vmem:[%s15460_s23 + $0x44] sm:$0xf] }
  0xe0   : > { %1301 = vst [vmem:[#allocation2 + $0x8] sm:$0xff] %v1047_v44  ;;  %v12111_v5 = vcombine.high %v1299_v57, %v1047_v44  ;;  %v1590_v7 = vrot.slane %v1588_v21, 4  ;;  %v1593_v41 = vrot.slane %v1591_v61, 5  ;;  %v1597_v6 = vshll.u32 %v1047_v44, 16  ;;  %5784 = vmatprep.mubr.bf16.mxu1 %v12139_v63  ;;  %v562_v62 = vld [vmem:[#allocation2 + $0x188] sm:$0x11] }
  0xe1   : > { %v1601_v14 = vshrl.u32 %v1047_v44, 16  ;;  %v12110_v16 = vcombine.low %v1299_v57, %v1047_v44  ;;  %5785 = vmatmul.mubr.bf16.gmra.mxu1 %v12138_v1  ;;  %v1053_v25 = vshll.u32 %v12030_v2, 16  ;;  %v560_v26 = vsel %vm15524_vm11, 0, %v559_v3 }
  0xe2   : > { %5639 = vmatprep.mubr.bf16.mxu0 %v12111_v5  ;;  %v1594_v23 = vor.u32 %v1593_v41, %v1590_v7  ;;  %v1599_v24 = vrot.slane %v1597_v6, 5  ;;  %v1052_v31 = vrot.slane %v1050_v18, 7  ;;  %v1058_v46 = vshrl.u32 %v12031_v17, 16  ;;  %561 = vst [vmem:[#allocation2 + $0x40] sm:$0x11] %v560_v26 }
  0xe3   : > { %v1302_v22 = vld [vmem:[#allocation2 + $0xc8] sm:$0x11]  ;;  %v1603_v30 = vrot.slane %v1601_v14, 4  ;;  %5640 = vmatmul.mubr.bf16.gmra.mxu0 %v12110_v16  ;;  %v1061_v34 = vshll.u32 %v12031_v17, 16  ;;  %v504_v36 = vsel %vm15516_vm10, 0, %v503_v4  ;;  %v12032_v37 = vcombine.low %v720_v11, %v752_v19 }
  0xe4   : > { %v1303_v27 = vsel %vm15516_vm10, %v1048_v55, %v1302_v22  ;;  %v1406_v10 = vld [vmem:[#allocation2] sm:$0x11]  ;;  %v1595_v0 = vrot.slane %v1594_v23, 4  ;;  %v1305_v35 = vld [vmem:[#allocation2 + $0x118] sm:$0xff]  ;;  %v1055_v40 = vor.u32 %v1053_v25, %v1052_v31  ;;  %v1056_v42 = vrot.slane %v1052_v31, 4 }
  0xe5   : > { %1304 = vst [vmem:[#allocation2 + $0xc8] sm:$0x11] %v1303_v27  ;;  %v1583_v38 = vshll.u32 %v1406_v10, 16  ;;  %v1604_v39 = vor.u32 %v1603_v30, %v1599_v24  ;;  %505 = vst [vmem:[#allocation2 + $0x90] sm:$0x11] %v504_v36  ;;  %v1060_v45 = vrot.slane %v1058_v46, 7  ;;  %v12033_v47 = vcombine.low %v721_v12, %v753_v33 }
  0xe6   : > { %v15769_v43 = vsel %vm15563_vm2, %v1595_v0, %v1599_v24  ;;  %v1067_v48 = vshrl.u32 %v12032_v37, 16  ;;  %v1306_v51 = vsel %vm15574_vm3, %v1055_v40, %v1305_v35  ;;  %v1070_v52 = vshll.u32 %v12032_v37, 16  ;;  %v506_v22 = vld [vmem:[#allocation2 + $0xa0] sm:$0x11]  ;;  %v722_v27 = vld [vmem:[%s15460_s23 + $0x48] sm:$0xf] }
  0xe7   : > { %v1585_v49 = vrot.slane %v1583_v38, 5  ;;  %v1605_v50 = vrot.slane %v1604_v39, 4  ;;  %v1063_v9 = vor.u32 %v1061_v34, %v1060_v45  ;;  %v1065_v54 = vrot.slane %v1060_v45, 4  ;;  %1307 = vst [vmem:[#allocation2 + $0x118] sm:$0xff] %v1306_v51  ;;  %v723_v10 = vld [vmem:[%s15460_s23 + $0x4c] sm:$0xf] }
  0xe8   : > { %v1612_v55 = vshrl.u32 %v1306_v51, 16  ;;  %v1615_v57 = vshll.u32 %v1306_v51, 16  ;;  %v1069_v59 = vrot.slane %v1067_v48, 7  ;;  %v1075_v21 = vshrl.u32 %v12033_v47, 16  ;;  %v754_v37 = vld [vmem:[%s15467_s29 + $0x48] sm:$0xf] }
  0xe9   : > { %v1586_v58 = vsel %vm15563_vm2, %v15750_v60, %v1585_v49  ;;  %v1078_v61 = vshll.u32 %v12033_v47, 16  ;;  %v1064_v44 = vsel %vm15581_vm7, %v1056_v42, %v1063_v9  ;;  %v1309_v2 = vld [vmem:[#allocation2 + $0x40] sm:$0x11]  ;;  %v563_v26 = vsel %vm15524_vm11, 0, %v562_v62  ;;  %v755_v38 = vld [vmem:[%s15467_s29 + $0x4c] sm:$0xf] }
  0xea   : > { %v12141_v63 = vcombine.high %v15743_v53, %v1586_v58  ;;  %v12140_v1 = vcombine.low %v15743_v53, %v1586_v58  ;;  %v1614_v3 = vrot.slane %v1612_v55, 4  ;;  %1308 = vst [vmem:[#allocation2 + $0xa8] sm:$0xff] %v1064_v44  ;;  %v12113_v5 = vcombine.high %v1306_v51, %v1064_v44  ;;  %564 = vst [vmem:[#allocation2 + $0x188] sm:$0x11] %v563_v26  ;;  %v565_v47 = vld [vmem:[#allocation2 + $0x50] sm:$0x11] }
  0xeb   : > { %v1310_v7 = vsel %vm15516_vm10, %v1065_v54, %v1309_v2  ;;  %v1617_v60 = vrot.slane %v1615_v57, 5  ;;  %v1621_v41 = vshll.u32 %v1064_v44, 16  ;;  %v1625_v11 = vshrl.u32 %v1064_v44, 16  ;;  %v724_v58 = vld [vmem:[%s15460_s23 + $0x50] sm:$0xf] }
  0xec   : > { %v1407_v4 = vld [vmem:[#allocation2 + $0xc8] sm:$0x11]  ;;  %5792 = vmatprep.mubr.bf16.mxu1 %v12141_v63  ;;  %1311 = vst [vmem:[#allocation2 + $0x40] sm:$0x11] %v1310_v7  ;;  %v12112_v14 = vcombine.low %v1306_v51, %v1064_v44  ;;  %v1072_v53 = vor.u32 %v1070_v52, %v1069_v59  ;;  %v1312_v16 = vld [vmem:[#allocation2 + $0x90] sm:$0xff]  ;;  %5647 = vmatprep.mubr.bf16.mxu0 %v12113_v5  ;;  %v1073_v12 = vrot.slane %v1069_v59, 4 }
  0xed   : > { %v1607_v6 = vshll.u32 %v1407_v4, 16  ;;  %5793 = vmatmul.mubr.bf16.gmra.mxu1 %v12140_v1  ;;  %v1618_v17 = vor.u32 %v1617_v60, %v1614_v3  ;;  %v1623_v18 = vrot.slane %v1621_v41, 5  ;;  %v1077_v19 = vrot.slane %v1075_v21, 7  ;;  %v509_v52 = vld [vmem:[#allocation2 + $0x110] sm:$0x11] }
  0xee   : > { %v1627_v24 = vrot.slane %v1625_v11, 4  ;;  %5648 = vmatmul.mubr.bf16.gmra.mxu0 %v12112_v14  ;;  %v1313_v25 = vsel %vm15574_vm3, %v1072_v53, %v1312_v16  ;;  %v507_v36 = vsel %vm15516_vm10, 0, %v506_v22  ;;  %v12034_v57 = vcombine.low %v722_v27, %v754_v37  ;;  %v756_v59 = vld [vmem:[%s15467_s29 + $0x50] sm:$0xf]  ;;  %v725_v4 = vld [vmem:[%s15460_s23 + $0x54] sm:$0xf] }
  0xef   : > { %v1609_v23 = vrot.slane %v1607_v6, 5  ;;  %v1619_v30 = vrot.slane %v1618_v17, 4  ;;  %v1080_v31 = vor.u32 %v1078_v61, %v1077_v19  ;;  %v1082_v46 = vrot.slane %v1077_v19, 4  ;;  %1314 = vst [vmem:[#allocation2 + $0x90] sm:$0xff] %v1313_v25  ;;  %508 = vst [vmem:[#allocation2 + $0xa0] sm:$0x11] %v507_v36 }
  0xf0   : > { %v1636_v33 = vshrl.u32 %v1313_v25, 16  ;;  %v1628_v34 = vor.u32 %v1627_v24, %v1623_v18  ;;  %v1639_v35 = vshll.u32 %v1313_v25, 16  ;;  %v12035_v62 = vcombine.low %v723_v10, %v755_v38  ;;  %v757_v17 = vld [vmem:[%s15467_s29 + $0x54] sm:$0xf] }
  0xf1   : > { %v1610_v0 = vsel %vm15563_vm2, %v1605_v50, %v1609_v23  ;;  %v15798_v42 = vsel %vm15563_vm2, %v1619_v30, %v1623_v18  ;;  %v1081_v45 = vsel %vm15581_vm7, %v1073_v12, %v1080_v31  ;;  %v566_v63 = vsel %vm15524_vm11, 0, %v565_v47  ;;  %v1316_v7 = vld [vmem:[#allocation2 + $0x188] sm:$0x11]  ;;  %v568_v24 = vld [vmem:[#allocation2 + $0x78] sm:$0x11] }
  0xf2   : > { %v12143_v39 = vcombine.high %v15769_v43, %v1610_v0  ;;  %v12142_v40 = vcombine.low %v15769_v43, %v1610_v0  ;;  %v1629_v48 = vrot.slane %v1628_v34, 4  ;;  %1315 = vst [vmem:[#allocation2 + $0xd8] sm:$0xff] %v1081_v45  ;;  %v12115_v49 = vcombine.high %v1313_v25, %v1081_v45  ;;  %567 = vst [vmem:[#allocation2 + $0x50] sm:$0x11] %v566_v63 }
  0xf3   : > { %v1638_v50 = vrot.slane %v1636_v33, 4  ;;  %v1641_v51 = vrot.slane %v1639_v35, 5  ;;  %v1408_v9 = vld [vmem:[#allocation2 + $0x40] sm:$0x11]  ;;  %v1645_v43 = vshll.u32 %v1081_v45, 16  ;;  %v1649_v54 = vshrl.u32 %v1081_v45, 16 }
  0xf4   : > { %5800 = vmatprep.mubr.bf16.mxu1 %v12143_v39  ;;  %v12114_v55 = vcombine.low %v1313_v25, %v1081_v45  ;;  %v1631_v21 = vshll.u32 %v1408_v9, 16  ;;  %5655 = vmatprep.mubr.bf16.mxu0 %v12115_v49  ;;  %v1084_v2 = vshrl.u32 %v12034_v57, 16  ;;  %v1087_v3 = vshll.u32 %v12034_v57, 16  ;;  %v512_v45 = vld [vmem:[#allocation2 + $0x20] sm:$0x11] }
  0xf5   : > { %v1642_v61 = vor.u32 %v1641_v51, %v1638_v50  ;;  %5801 = vmatmul.mubr.bf16.gmra.mxu1 %v12142_v40  ;;  %v1647_v1 = vrot.slane %v1645_v43, 5  ;;  %v1651_v44 = vrot.slane %v1649_v54, 4  ;;  %v1092_v41 = vshrl.u32 %v12035_v62, 16  ;;  %v726_v51 = vld [vmem:[%s15460_s23 + $0x58] sm:$0xf] }
  0xf6   : > { %v1633_v5 = vrot.slane %v1631_v21, 5  ;;  %5656 = vmatmul.mubr.bf16.gmra.mxu0 %v12114_v55  ;;  %v1095_v6 = vshll.u32 %v12035_v62, 16  ;;  %v1317_v11 = vsel %vm15516_vm10, %v1082_v46, %v1316_v7  ;;  %v1086_v53 = vrot.slane %v1084_v2, 7  ;;  %v1319_v22 = vld [vmem:[#allocation2 + $0xa0] sm:$0xff] }
  0xf7   : > { %v1643_v60 = vrot.slane %v1642_v61, 4  ;;  %v1652_v14 = vor.u32 %v1651_v44, %v1647_v1  ;;  %v510_v16 = vsel %vm15516_vm10, 0, %v509_v52  ;;  %1318 = vst [vmem:[#allocation2 + $0x188] sm:$0x11] %v1317_v11  ;;  %v1094_v19 = vrot.slane %v1092_v41, 7 }
  0xf8   : > { %v1634_v18 = vsel %vm15563_vm2, %v1629_v48, %v1633_v5  ;;  %511 = vst [vmem:[#allocation2 + $0x110] sm:$0x11] %v510_v16  ;;  %v12036_v23 = vcombine.low %v724_v58, %v756_v59  ;;  %v1089_v30 = vor.u32 %v1087_v3, %v1086_v53  ;;  %v1090_v31 = vrot.slane %v1086_v53, 4  ;;  %v758_v52 = vld [vmem:[%s15467_s29 + $0x58] sm:$0xf] }
  0xf9   : > { %v15816_v12 = vsel %vm15563_vm2, %v1643_v60, %v1647_v1  ;;  %v12145_v25 = vcombine.high %v15798_v42, %v1634_v18  ;;  %v12144_v26 = vcombine.low %v15798_v42, %v1634_v18  ;;  %v1653_v27 = vrot.slane %v1652_v14, 4  ;;  %v1323_v40 = vld [vmem:[#allocation2 + $0x50] sm:$0x11]  ;;  %v727_v11 = vld [vmem:[%s15460_s23 + $0x5c] sm:$0xf] }
  0xfa   : > { %v1097_v46 = vor.u32 %v1095_v6, %v1094_v19  ;;  %v1099_v33 = vrot.slane %v1094_v19, 4  ;;  %v12037_v10 = vcombine.low %v725_v4, %v757_v17  ;;  %v1320_v0 = vsel %vm15574_vm3, %v1089_v30, %v1319_v22 }
  0xfb   : > { %5808 = vmatprep.mubr.bf16.mxu1 %v12145_v25  ;;  %v1101_v34 = vshrl.u32 %v12036_v23, 16  ;;  %v1104_v35 = vshll.u32 %v12036_v23, 16  ;;  %v569_v36 = vsel %vm15524_vm11, 0, %v568_v24  ;;  %1321 = vst [vmem:[#allocation2 + $0xa0] sm:$0xff] %v1320_v0  ;;  %v1660_v38 = vshrl.u32 %v1320_v0, 16 }
  0xfc   : > { %v1098_v37 = vsel %vm15581_vm7, %v1090_v31, %v1097_v46  ;;  %v1663_v39 = vshll.u32 %v1320_v0, 16  ;;  %v1109_v42 = vshrl.u32 %v12037_v10, 16  ;;  %570 = vst [vmem:[#allocation2 + $0x78] sm:$0x11] %v569_v36  ;;  %v1324_v48 = vsel %vm15516_vm10, %v1099_v33, %v1323_v40 }
  0xfd   : > { %5809 = vmatmul.mubr.bf16.gmra.mxu1 %v12144_v26  ;;  %1322 = vst [vmem:[#allocation2 + $0xc0] sm:$0xff] %v1098_v37  ;;  %v12117_v47 = vcombine.high %v1320_v0, %v1098_v37  ;;  %v1669_v49 = vshll.u32 %v1098_v37, 16  ;;  %v1673_v50 = vshrl.u32 %v1098_v37, 16  ;;  %1325 = vst [vmem:[#allocation2 + $0x50] sm:$0x11] %v1324_v48  ;;  %v1662_v9 = vrot.slane %v1660_v38, 4 }
  0xfe   : > { %v1665_v43 = vrot.slane %v1663_v39, 5  ;;  %v12116_v54 = vcombine.low %v1320_v0, %v1098_v37  ;;  %v1103_v55 = vrot.slane %v1101_v34, 7  ;;  %v1409_v57 = vld [vmem:[#allocation2 + $0x188] sm:$0x11]  ;;  %v1111_v21 = vrot.slane %v1109_v42, 7 }
  0xff   : > { %5663 = vmatprep.mubr.bf16.mxu0 %v12117_v47  ;;  %v1671_v58 = vrot.slane %v1669_v49, 5  ;;  %v1675_v59 = vrot.slane %v1673_v50, 4  ;;  %v1112_v61 = vshll.u32 %v12037_v10, 16  ;;  %v1655_v62 = vshll.u32 %v1409_v57, 16  ;;  %v1326_v2 = vld [vmem:[#allocation2 + $0x110] sm:$0xff] }
 0x100   : > { %v1666_v63 = vor.u32 %v1665_v43, %v1662_v9  ;;  %5664 = vmatmul.mubr.bf16.gmra.mxu0 %v12116_v54  ;;  %v1106_v1 = vor.u32 %v1104_v35, %v1103_v55  ;;  %v1107_v44 = vrot.slane %v1103_v55, 4  ;;  %v1116_v5 = vrot.slane %v1111_v21, 4  ;;  %v759_v26 = vld [vmem:[%s15467_s29 + $0x5c] sm:$0xf]  ;;  %v571_v10 = vld [vmem:[#allocation2 + $0x168] sm:$0x11] }
 0x101   : > { %v1676_v3 = vor.u32 %v1675_v59, %v1671_v58  ;;  %v1114_v4 = vor.u32 %v1112_v61, %v1111_v21  ;;  %v513_v7 = vsel %vm15516_vm10, 0, %v512_v45  ;;  %v1657_v60 = vrot.slane %v1655_v62, 5  ;;  %v515_v37 = vld [vmem:[#allocation2 + $0x38] sm:$0x11]  ;;  %v728_v42 = vld [vmem:[%s15460_s23 + $0x60] sm:$0xf] }
 0x102   : > { %v1667_v41 = vrot.slane %v1666_v63, 4  ;;  %v1327_v6 = vsel %vm15574_vm3, %v1106_v1, %v1326_v2  ;;  %514 = vst [vmem:[#allocation2 + $0x20] sm:$0x11] %v513_v7  ;;  %v12038_v14 = vcombine.low %v726_v51, %v758_v52  ;;  %v12039_v39 = vcombine.low %v727_v11, %v759_v26  ;;  %v760_v45 = vld [vmem:[%s15467_s29 + $0x60] sm:$0xf] }
 0x103   : > { %v1677_v53 = vrot.slane %v1676_v3, 4  ;;  %v1115_v16 = vsel %vm15581_vm7, %v1107_v44, %v1114_v4  ;;  %1328 = vst [vmem:[#allocation2 + $0x110] sm:$0xff] %v1327_v6  ;;  %v1684_v17 = vshrl.u32 %v1327_v6, 16  ;;  %v1687_v18 = vshll.u32 %v1327_v6, 16  ;;  %v1330_v19 = vld [vmem:[#allocation2 + $0x78] sm:$0x11] }
 0x104   : > { %v1658_v22 = vsel %vm15563_vm2, %v1653_v27, %v1657_v60  ;;  %v15841_v23 = vsel %vm15563_vm2, %v1667_v41, %v1671_v58  ;;  %1329 = vst [vmem:[#allocation2 + $0x30] sm:$0xff] %v1115_v16  ;;  %v12119_v24 = vcombine.high %v1327_v6, %v1115_v16  ;;  %v1331_v25 = vsel %vm15516_vm10, %v1116_v5, %v1330_v19  ;;  %v1410_v46 = vld [vmem:[#allocation2 + $0x50] sm:$0x11]  ;;  %v729_v51 = vld [vmem:[%s15460_s23 + $0x64] sm:$0xf] }
 0x105   : > { %v12147_v30 = vcombine.high %v15816_v12, %v1658_v22  ;;  %v12146_v31 = vcombine.low %v15816_v12, %v1658_v22  ;;  %1332 = vst [vmem:[#allocation2 + $0x78] sm:$0x11] %v1331_v25  ;;  %v1686_v33 = vrot.slane %v1684_v17, 4  ;;  %v1689_v27 = vrot.slane %v1687_v18, 5  ;;  %v761_v55 = vld [vmem:[%s15467_s29 + $0x64] sm:$0xf] }
 0x106   : > { %v1679_v0 = vshll.u32 %v1410_v46, 16  ;;  %5671 = vmatprep.mubr.bf16.mxu0 %v12119_v24  ;;  %v1693_v34 = vshll.u32 %v1115_v16, 16  ;;  %v1697_v35 = vshrl.u32 %v1115_v16, 16  ;;  %v12118_v36 = vcombine.low %v1327_v6, %v1115_v16  ;;  %v574_v2 = vld [vmem:[#allocation2 + $0xe0] sm:$0x11] }
 0x107   : > { %5816 = vmatprep.mubr.bf16.mxu1 %v12147_v30  ;;  %v1690_v38 = vor.u32 %v1689_v27, %v1686_v33  ;;  %v1118_v40 = vshrl.u32 %v12038_v14, 16  ;;  %v1121_v12 = vshll.u32 %v12038_v14, 16  ;;  %v572_v50 = vsel %vm15524_vm11, 0, %v571_v10  ;;  %v518_v25 = vld [vmem:[#allocation2 + $0xf0] sm:$0x11] }
 0x108   : > { %5817 = vmatmul.mubr.bf16.gmra.mxu1 %v12146_v31  ;;  %v1681_v47 = vrot.slane %v1679_v0, 5  ;;  %v1695_v48 = vrot.slane %v1693_v34, 5  ;;  %v1699_v49 = vrot.slane %v1697_v35, 4  ;;  %5672 = vmatmul.mubr.bf16.gmra.mxu0 %v12118_v36  ;;  %v1126_v43 = vshrl.u32 %v12039_v39, 16  ;;  %573 = vst [vmem:[#allocation2 + $0x168] sm:$0x11] %v572_v50 }
 0x109   : > { %v1691_v52 = vrot.slane %v1690_v38, 4  ;;  %v1120_v9 = vrot.slane %v1118_v40, 7  ;;  %v1129_v54 = vshll.u32 %v12039_v39, 16  ;;  %v1333_v59 = vld [vmem:[#allocation2 + $0x20] sm:$0xff]  ;;  %v516_v21 = vsel %vm15516_vm10, 0, %v515_v37 }
 0x10a   : > { %v1682_v57 = vsel %vm15563_vm2, %v1677_v53, %v1681_v47  ;;  %v1700_v58 = vor.u32 %v1699_v49, %v1695_v48  ;;  %v12040_v61 = vcombine.low %v728_v42, %v760_v45  ;;  %517 = vst [vmem:[#allocation2 + $0x38] sm:$0x11] %v516_v21  ;;  %v1128_v7 = vrot.slane %v1126_v43, 7  ;;  %v730_v27 = vld [vmem:[%s15460_s23 + $0x68] sm:$0xf] }
 0x10b   : > { %v12149_v62 = vcombine.high %v15841_v23, %v1682_v57  ;;  %v12148_v63 = vcombine.low %v15841_v23, %v1682_v57  ;;  %v15862_v1 = vsel %vm15563_vm2, %v1691_v52, %v1695_v48  ;;  %v1123_v44 = vor.u32 %v1121_v12, %v1120_v9  ;;  %v731_v10 = vld [vmem:[%s15460_s23 + $0x6c] sm:$0xf]  ;;  %v762_v0 = vld [vmem:[%s15467_s29 + $0x68] sm:$0xf]  ;;  %v577_v39 = vld [vmem:[#allocation2 + $0x158] sm:$0x11] }
 0x10c   : > { %v1411_v3 = vld [vmem:[#allocation2 + $0x78] sm:$0x11]  ;;  %v1701_v4 = vrot.slane %v1700_v58, 4  ;;  %v1124_v5 = vrot.slane %v1120_v9, 4  ;;  %v12041_v60 = vcombine.low %v729_v51, %v761_v55  ;;  %v1135_v11 = vshrl.u32 %v12040_v61, 16 }
 0x10d   : > { %5824 = vmatprep.mubr.bf16.mxu1 %v12149_v62  ;;  %v1703_v41 = vshll.u32 %v1411_v3, 16  ;;  %v1334_v6 = vsel %vm15574_vm3, %v1123_v44, %v1333_v59  ;;  %v1138_v14 = vshll.u32 %v12040_v61, 16  ;;  %v1131_v53 = vor.u32 %v1129_v54, %v1128_v7  ;;  %v763_v34 = vld [vmem:[%s15467_s29 + $0x6c] sm:$0xf] }
 0x10e   : > { %v1133_v16 = vrot.slane %v1128_v7, 4  ;;  %1335 = vst [vmem:[#allocation2 + $0x20] sm:$0xff] %v1334_v6  ;;  %v1708_v17 = vshrl.u32 %v1334_v6, 16  ;;  %v1711_v18 = vshll.u32 %v1334_v6, 16  ;;  %v1137_v22 = vrot.slane %v1135_v11, 7 }
 0x10f   : > { %v1705_v19 = vrot.slane %v1703_v41, 5  ;;  %v1143_v23 = vshrl.u32 %v12041_v60, 16  ;;  %v1146_v24 = vshll.u32 %v12041_v60, 16  ;;  %v1132_v26 = vsel %vm15581_vm7, %v1124_v5, %v1131_v53  ;;  %v1337_v30 = vld [vmem:[#allocation2 + $0x168] sm:$0x11] }
 0x110   : > { %5825 = vmatmul.mubr.bf16.gmra.mxu1 %v12148_v63  ;;  %v1710_v31 = vrot.slane %v1708_v17, 4  ;;  %v1713_v46 = vrot.slane %v1711_v18, 5  ;;  %v575_v33 = vsel %vm15524_vm11, 0, %v574_v2  ;;  %1336 = vst [vmem:[#allocation2 + $0x1a0] sm:$0xff] %v1132_v26  ;;  %v12121_v36 = vcombine.high %v1334_v6, %v1132_v26  ;;  %v732_v5 = vld [vmem:[%s15460_s23 + $0x70] sm:$0xf] }
 0x111   : > { %v1706_v35 = vsel %vm15563_vm2, %v1701_v4, %v1705_v19  ;;  %v1338_v37 = vsel %vm15516_vm10, %v1133_v16, %v1337_v30  ;;  %v1717_v38 = vshll.u32 %v1132_v26, 16  ;;  %576 = vst [vmem:[#allocation2 + $0xe0] sm:$0x11] %v575_v33  ;;  %v1721_v45 = vshrl.u32 %v1132_v26, 16  ;;  %v1340_v47 = vld [vmem:[#allocation2 + $0x38] sm:$0xff] }
 0x112   : > { %v12151_v40 = vcombine.high %v15862_v1, %v1706_v35  ;;  %v12150_v12 = vcombine.low %v15862_v1, %v1706_v35  ;;  %1339 = vst [vmem:[#allocation2 + $0x168] sm:$0x11] %v1338_v37  ;;  %v1714_v42 = vor.u32 %v1713_v46, %v1710_v31  ;;  %5679 = vmatprep.mubr.bf16.mxu0 %v12121_v36  ;;  %v1141_v51 = vrot.slane %v1137_v22, 4  ;;  %v521_v1 = vld [vmem:[#allocation2 + $0x170] sm:$0x11] }
 0x113   : > { %v1719_v48 = vrot.slane %v1717_v38, 5  ;;  %v12120_v49 = vcombine.low %v1334_v6, %v1132_v26  ;;  %v1140_v50 = vor.u32 %v1138_v14, %v1137_v22  ;;  %v1723_v9 = vrot.slane %v1721_v45, 4  ;;  %v764_v7 = vld [vmem:[%s15467_s29 + $0x70] sm:$0xf]  ;;  %v733_v26 = vld [vmem:[%s15460_s23 + $0x74] sm:$0xf] }
 0x114   : > { %5832 = vmatprep.mubr.bf16.mxu1 %v12151_v40  ;;  %v1715_v52 = vrot.slane %v1714_v42, 4  ;;  %v1145_v43 = vrot.slane %v1143_v23, 7  ;;  %v519_v54 = vsel %vm15516_vm10, 0, %v518_v25  ;;  %v12042_v57 = vcombine.low %v730_v27, %v762_v0  ;;  %v765_v27 = vld [vmem:[%s15467_s29 + $0x74] sm:$0xf] }
 0x115   : > { %5680 = vmatmul.mubr.bf16.gmra.mxu0 %v12120_v49  ;;  %v1341_v55 = vsel %vm15574_vm3, %v1140_v50, %v1340_v47  ;;  %520 = vst [vmem:[#allocation2 + $0xf0] sm:$0x11] %v519_v54  ;;  %v12043_v58 = vcombine.low %v731_v10, %v763_v34  ;;  %v578_v59 = vsel %vm15524_vm11, 0, %v577_v39  ;;  %v1724_v61 = vor.u32 %v1723_v9, %v1719_v48 }
 0x116   : > { %v15888_v21 = vsel %vm15563_vm2, %v1715_v52, %v1719_v48  ;;  %v1148_v62 = vor.u32 %v1146_v24, %v1145_v43  ;;  %v1150_v63 = vrot.slane %v1145_v43, 4  ;;  %1342 = vst [vmem:[#allocation2 + $0x38] sm:$0xff] %v1341_v55  ;;  %579 = vst [vmem:[#allocation2 + $0x158] sm:$0x11] %v578_v59  ;;  %v1732_v44 = vshrl.u32 %v1341_v55, 16 }
 0x117   : > { %v1735_v2 = vshll.u32 %v1341_v55, 16  ;;  %v1152_v3 = vshrl.u32 %v12042_v57, 16  ;;  %v1155_v4 = vshll.u32 %v12042_v57, 16  ;;  %v1725_v60 = vrot.slane %v1724_v61, 4  ;;  %v580_v57 = vld [vmem:[#allocation2 + $0x58] sm:$0x11] }
 0x118   : > { %5833 = vmatmul.mubr.bf16.gmra.mxu1 %v12150_v12  ;;  %v15894_v41 = vsel %vm15581_vm7, %v1141_v51, %v1148_v62  ;;  %v1344_v6 = vld [vmem:[#allocation2 + $0xe0] sm:$0x11]  ;;  %v1160_v11 = vshrl.u32 %v12043_v58, 16  ;;  %v1163_v14 = vshll.u32 %v12043_v58, 16  ;;  %v1734_v18 = vrot.slane %v1732_v44, 4 }
 0x119   : > { %v1412_v53 = vld [vmem:[#allocation2 + $0x168] sm:$0x11]  ;;  %1343 = vst [vmem:[#allocation2 + $0x120] sm:$0xff] %v15894_v41  ;;  %v12123_v16 = vcombine.high %v1341_v55, %v15894_v41  ;;  %v1345_v17 = vsel %vm15516_vm10, %v1150_v63, %v1344_v6  ;;  %v1737_v19 = vrot.slane %v1735_v2, 5  ;;  %v1741_v23 = vshll.u32 %v15894_v41, 16  ;;  %v2005_v32 = vld [vmem:[#allocation2 + $0x1a0] sm:$0xff] }
 0x11a   : > { %v1727_v22 = vshll.u32 %v1412_v53, 16  ;;  %1346 = vst [vmem:[#allocation2 + $0xe0] sm:$0x11] %v1345_v17  ;;  %v1745_v24 = vshrl.u32 %v15894_v41, 16  ;;  %v12122_v25 = vcombine.low %v1341_v55, %v15894_v41  ;;  %v1154_v31 = vrot.slane %v1152_v3, 7 }
 0x11b   : > { %5687 = vmatprep.mubr.bf16.mxu0 %v12123_v16  ;;  %v1738_v30 = vor.u32 %v1737_v19, %v1734_v18  ;;  %v1162_v46 = vrot.slane %v1160_v11, 7  ;;  %v522_v33 = vsel %vm15516_vm10, 0, %v521_v1  ;;  %v1743_v0 = vrot.slane %v1741_v23, 5 }
 0x11c   : > { %v1729_v10 = vrot.slane %v1727_v22, 5  ;;  %v1747_v34 = vrot.slane %v1745_v24, 4  ;;  %v1347_v35 = vld [vmem:[#allocation2 + $0xf0] sm:$0xff]  ;;  %523 = vst [vmem:[#allocation2 + $0x170] sm:$0x11] %v522_v33  ;;  %v12044_v36 = vcombine.low %v732_v5, %v764_v7  ;;  %v1157_v38 = vor.u32 %v1155_v4, %v1154_v31 }
 0x11d   : > { %v1739_v37 = vrot.slane %v1738_v30, 4  ;;  %5688 = vmatmul.mubr.bf16.gmra.mxu0 %v12122_v25  ;;  %v1158_v39 = vrot.slane %v1154_v31, 4  ;;  %v1165_v40 = vor.u32 %v1163_v14, %v1162_v46  ;;  %v1351_v12 = vld [vmem:[#allocation2 + $0x158] sm:$0x11]  ;;  %v1167_v47 = vrot.slane %v1162_v46, 4 }
 0x11e   : > { %v1730_v42 = vsel %vm15563_vm2, %v1725_v60, %v1729_v10  ;;  %v1748_v45 = vor.u32 %v1747_v34, %v1743_v0  ;;  %v12045_v48 = vcombine.low %v733_v26, %v765_v27  ;;  %v1348_v43 = vsel %vm15574_vm3, %v1157_v38, %v1347_v35  ;;  %v1803_v31 = vld [vmem:[#allocation2 + $0x28] sm:$0xee] }
 0x11f   : > { %v12153_v49 = vcombine.high %v15888_v21, %v1730_v42  ;;  %v12152_v50 = vcombine.low %v15888_v21, %v1730_v42  ;;  %v1744_v51 = vsel %vm15563_vm2, %v1739_v37, %v1743_v0  ;;  %v15915_v52 = vsel %vm15581_vm7, %v1158_v39, %v1165_v40  ;;  %1349 = vst [vmem:[#allocation2 + $0xf0] sm:$0xff] %v1348_v43  ;;  %v14878_v40 = vld [vmem:[#allocation2 + $0x88] sm:$0xff]  ;;  %v14660_v42 = vld [vmem:[#allocation9 + $0x2f8] sm:$0xff]  }
 0x120   : > { %v1749_v9 = vrot.slane %v1748_v45, 4  ;;  %1350 = vst [vmem:[#allocation2 + $0xb8] sm:$0xff] %v15915_v52  ;;  %v1352_v54 = vsel %vm15516_vm10, %v1167_v47, %v1351_v12  ;;  %v1765_v55 = vshll.u32 %v15915_v52, 16  ;;  %v1756_v59 = vshrl.u32 %v1348_v43, 16  ;;  %v14879_v45 = vld [vmem:[#allocation2 + $0x10] sm:$0x11]  ;;  %13437 = vmatprep.subr.bf16.mxu1 %v14660_v42 }
 0x121   : > { %5840 = vmatprep.mubr.bf16.mxu1 %v12153_v49  ;;  %v15923_v58 = vld [vmem:[#allocation2 + $0xe0] sm:$0x11]  ;;  %v1759_v21 = vshll.u32 %v1348_v43, 16  ;;  %v12125_v61 = vcombine.high %v1348_v43, %v15915_v52  ;;  %1353 = vst [vmem:[#allocation2 + $0x158] sm:$0x11] %v1352_v54  ;;  %v1769_v62 = vshrl.u32 %v15915_v52, 16  ;;  %v12124_v44 = vcombine.low %v1348_v43, %v15915_v52 }
 0x122   : > { %5841 = vmatmul.mubr.bf16.gmra.mxu1 %v12152_v50  ;;  %v1751_v63 = vshll.u32 %v15923_v58, 16  ;;  %v1767_v1 = vrot.slane %v1765_v55, 5  ;;  %v1169_v2 = vshrl.u32 %v12044_v36, 16  ;;  %v1758_v3 = vrot.slane %v1756_v59, 4 }
 0x123   : > { %5695 = vmatprep.mubr.bf16.mxu0 %v12125_v61  ;;  %v1761_v4 = vrot.slane %v1759_v21, 5  ;;  %v1771_v5 = vrot.slane %v1769_v62, 4  ;;  %v1172_v7 = vshll.u32 %v12044_v36, 16  ;;  %v1177_v11 = vshrl.u32 %v12045_v48, 16  ;;  %v1354_v17 = vld [vmem:[#allocation2 + $0x170] sm:$0xff] }
 0x124   : > { %v1753_v60 = vrot.slane %v1751_v63, 5  ;;  %v1171_v6 = vrot.slane %v1169_v2, 7  ;;  %v1180_v14 = vshll.u32 %v12045_v48, 16  ;;  %v581_v18 = vsel %vm15524_vm11, 0, %v580_v57  ;;  %v1804_v62 = vld [vmem:[#allocation2 + $0x48] sm:$0xee] }
 0x125   : > { %v1762_v53 = vor.u32 %v1761_v4, %v1758_v3  ;;  %v1772_v16 = vor.u32 %v1771_v5, %v1767_v1  ;;  %5696 = vmatmul.mubr.bf16.gmra.mxu0 %v12124_v44  ;;  %v1179_v24 = vrot.slane %v1177_v11, 7  ;;  %582 = vst [vmem:[#allocation2 + $0x58] sm:$0x11] %v581_v18  ;;  %v20718_v38 = vmov 0  ;;  %v1805_v5 = vld [vmem:[#allocation2 + $0xf8] sm:$0xee] }
 0x126   : > { %v1754_v19 = vsel %vm15563_vm2, %v1749_v9, %v1753_v60  ;;  %v1174_v22 = vor.u32 %v1172_v7, %v1171_v6  ;;  %v1175_v23 = vrot.slane %v1171_v6, 4  ;;  %v20719_v38 = vsel %vm15940_vm12, 4294967295, %v20718_v38  ;;  %v14880_v11 = vld [vmem:[#allocation2 + $0x70] sm:$0xff] }
 0x127   : > { %v12155_v25 = vcombine.high %v1744_v51, %v1754_v19  ;;  %v12154_v26 = vcombine.low %v1744_v51, %v1754_v19  ;;  %v1763_v30 = vrot.slane %v1762_v53, 4  ;;  %v1182_v33 = vor.u32 %v1180_v14, %v1179_v24  ;;  %20720 = vst [vmem:[#allocation30_spill] sm:$0xff] %v20719_v38  ;;  %v14881_v53 = vld [vmem:[#allocation2 + $0x150] sm:$0x11]  ;;  %v14630_v19 = vld [vmem:[#allocation9 + $0x238] sm:$0xff]  }
 0x128   : > { %v15933_v46 = vld [vmem:[#allocation2 + $0x158] sm:$0x11]  ;;  %v1355_v27 = vsel %vm15574_vm3, %v1174_v22, %v1354_v17  ;;  %v1773_v10 = vrot.slane %v1772_v16, 4  ;;  %v1184_v37 = vrot.slane %v1179_v24, 4  ;;  %v12048_v39 = vrot.slane %v1803_v31, 9 }
 0x129   : > { %5848 = vmatprep.mubr.bf16.mxu1 %v12155_v25  ;;  %v1775_v0 = vshll.u32 %v15933_v46, 16  ;;  %1356 = vst [vmem:[#allocation2 + $0x170] sm:$0xff] %v1355_v27  ;;  %v1780_v34 = vshrl.u32 %v1355_v27, 16  ;;  %v1783_v35 = vshll.u32 %v1355_v27, 16  ;;  %v1183_v36 = vsel %vm15581_vm7, %v1175_v23, %v1182_v33  ;;  %v14882_v25 = vld [vmem:[#allocation2 + $0xe8] sm:$0xff]  ;;  %v14634_v33 = vld [vmem:[#allocation9 + $0x270] sm:$0xff]  }
 0x12a   : > { %5849 = vmatmul.mubr.bf16.gmra.mxu1 %v12154_v26  ;;  %v1872_v12 = vrot.slane %v14878_v40, 5  ;;  %v1875_v47 = vrot.slane %v14879_v45, 5  ;;  %v1768_v48 = vsel %vm15563_vm2, %v1763_v30, %v1767_v1  ;;  %1357 = vst [vmem:[#allocation2 + $0x178] sm:$0xff] %v1183_v36  ;;  %v15946_v50 = vcombine.high %v1355_v27, %v1183_v36  ;;  %v14883_v30 = vld [vmem:[#allocation2 + $0xd0] sm:$0x11]  ;;  %v14636_v40 = vld [vmem:[#allocation9 + $0x230] sm:$0xff]  }
 0x12b   : > { %v1777_v49 = vrot.slane %v1775_v0, 5  ;;  %v1782_v51 = vrot.slane %v1780_v34, 4  ;;  %v1789_v9 = vshll.u32 %v1183_v36, 16  ;;  %v1793_v43 = vshrl.u32 %v1183_v36, 16  ;;  %v1806_v0 = vld [vmem:[#allocation2 + $0x130] sm:$0xee] }
 0x12c   : > { %v15948_v54 = vcombine.low %v1355_v27, %v1183_v36  ;;  %5703 = vmatprep.mubr.bf16.mxu0 %v15946_v50  ;;  %v1358_v57 = vld [vmem:[#allocation2 + $0x58] sm:$0x11]  ;;  %v1785_v59 = vrot.slane %v1783_v35, 5  ;;  %v1873_v21 = vsel %vm15940_vm12, %v12048_v39, %v1872_v12  ;;  %v1874_v61 = vrot.slane %v1872_v12, 4  ;;  %v14884_v12 = vld [vmem:[#allocation2 + $0x80] sm:$0xff] }
 0x12d   : > { %v1778_v55 = vsel %vm15563_vm2, %v1773_v10, %v1777_v49  ;;  %v1359_v44 = vsel %vm15516_vm10, %v1184_v37, %v1358_v57  ;;  %v1791_v2 = vrot.slane %v1789_v9, 5  ;;  %v1795_v3 = vrot.slane %v1793_v43, 4  ;;  %v15973_v9 = vld [vmem:[#allocation2 + $0x48] sm:$0xff]  ;;  %v15975_v43 = vld [vmem:[#allocation2 + $0x70] sm:$0xff] }
 0x12e   : > { %v12157_v63 = vcombine.high %v1768_v48, %v1778_v55  ;;  %v12156_v1 = vcombine.low %v1768_v48, %v1778_v55  ;;  %5704 = vmatmul.mubr.bf16.gmra.mxu0 %v15948_v54  ;;  %1360 = vst [vmem:[#allocation2 + $0x58] sm:$0x11] %v1359_v44  ;;  %v1876_v4 = vsel %vm15940_vm12, %v1874_v61, %v1875_v47  ;;  %v12049_v60 = vrot.slane %v1804_v62, 9  ;;  %v14640_v48 = vld [vmem:[#allocation9 + $0x268] sm:$0xff]   ;;  %v14885_v62 = vld [vmem:[#allocation2 + $0x108] sm:$0x11] }
 0x12f   : > { %v12161_v7 = vcombine.high %v1873_v21, %v1876_v4  ;;  %v1786_v6 = vor.u32 %v1785_v59, %v1782_v51  ;;  %v1879_v14 = vrot.slane %v14880_v11, 5  ;;  %v1882_v16 = vrot.slane %v14881_v53, 5  ;;  %v15987_v53 = vld [vmem:[#allocation2 + $0xe8] sm:$0xff] }
 0x130   : > { %5856 = vmatprep.mubr.bf16.mxu1 %v12157_v63  ;;  %v12160_v17 = vcombine.low %v1873_v21, %v1876_v4  ;;  %v1796_v18 = vor.u32 %v1795_v3, %v1791_v2  ;;  %v12050_v24 = vrot.slane %v1805_v5, 9  ;;  %v1886_v26 = vrot.slane %v14882_v25, 5  ;;  %v14646_v4 = vld [vmem:[#allocation9 + $0x260] sm:$0xff]   ;;  %v15981_v5 = vld [vmem:[#allocation2 + $0xf8] sm:$0xff] }
 0x131   : > { %5905 = vmatprep.mubr.bf16.mxu0 %v12161_v7  ;;  %v1880_v22 = vsel %vm15940_vm12, %v12049_v60, %v1879_v14  ;;  %v1881_v23 = vrot.slane %v1879_v14, 4  ;;  %v1889_v31 = vrot.slane %v14883_v30, 5  ;;  %v15962_v27 = vrot.slane %v1786_v6, 4  ;;  %v14886_v6 = vld [vmem:[#allocation2 + $0x18] sm:$0xff]  ;;  %v14647_v14 = vld [vmem:[#allocation9 + $0x220] sm:$0xff]  }
 0x132   : > { %5857 = vmatmul.mubr.bf16.gmra.mxu1 %v12156_v1  ;;  %v1888_v36 = vrot.slane %v1886_v26, 4  ;;  %v1797_v37 = vrot.slane %v1796_v18, 4  ;;  %v1893_v42 = vrot.slane %v14884_v12, 5  ;;  %v1887_v45 = vsel %vm15940_vm12, %v12050_v24, %v1886_v26  ;;  %v14642_v1 = vld [vmem:[#allocation9 + $0x228] sm:$0xff]   ;;  %v14887_v26 = vld [vmem:[#allocation2 + $0x180] sm:$0x11] }
 0x133   : > { %20721 = vst [vmem:[#allocation31_spill] sm:$0xff] %v15962_v27  ;;  %v1883_v10 = vsel %vm15940_vm12, %v1881_v23, %v1882_v16  ;;  %v1792_v49 = vsel %vm15563_vm2, %v15962_v27, %v1791_v2  ;;  %v12051_v57 = vrot.slane %v1806_v0, 9  ;;  %v1896_v63 = vrot.slane %v14885_v62, 5  ;;  %v1807_v16 = vld [vmem:[#allocation2 + $0x148] sm:$0xee]  ;;  %v14662_v0 = vld [vmem:[#allocation9 + $0x2f0] sm:$0xff]  }
 0x134   : > { %v12163_v35 = vcombine.high %v1880_v22, %v1883_v10  ;;  %v1890_v47 = vsel %vm15940_vm12, %v1888_v36, %v1889_v31  ;;  %v12162_v55 = vcombine.low %v1880_v22, %v1883_v10  ;;  %v1895_v61 = vrot.slane %v1893_v42, 4  ;;  %v14652_v31 = vld [vmem:[#allocation9 + $0x218] sm:$0xff]   ;;  %v1808_v36 = vld [vmem:[#allocation2 + $0x138] sm:$0xee]  ;;  %v14889_v62 = vld [vmem:[#allocation2 + $0x1a8] sm:$0x11] }
 0x135   : > { %v1415_v34 = vld [vmem:[#allocation2 + $0x58] sm:$0x11]  ;;  %v12165_v21 = vcombine.high %v1887_v45, %v1890_v47  ;;  %v12193_v2 = vcombine.high %v15973_v9, %v15975_v43  ;;  %v1894_v7 = vsel %vm15940_vm12, %v12051_v57, %v1893_v42  ;;  %v1900_v11 = vrot.slane %v14886_v6, 5  ;;  %v14661_v10 = vld [vmem:[#allocation9 + $0x2b8] sm:$0xff]  }
 0x136   : > { %5906 = vmatmul.mubr.bf16.vlgmr.msra.gmra.mxu0 %v12160_v17  ;;  %v1799_v39 = vshll.u32 %v1415_v34, 16  ;;  %v1897_v60 = vsel %vm15940_vm12, %v1895_v61, %v1896_v63  ;;  %v14650_v17 = vld [vmem:[#allocation9 + $0x258] sm:$0xff]   ;;  %v12164_v18 = vcombine.low %v1887_v45, %v1890_v47  ;;  %v12195_v23 = vcombine.high %v15981_v5, %v15987_v53  ;;  %v15993_v34 = vld [vmem:[#allocation2 + $0x130] sm:$0xff]  ;;  %v14663_v47 = vld [vmem:[#allocation9 + $0x2b0] sm:$0xff]  }
 0x137   : > { %13326 = vmatpush3.bf16.msra.mxu0 %v14630_v19  ;;  %5913 = vmatprep.mubr.bf16.mxu0 %v12163_v35  ;;  %v12192_v19 = vcombine.low %v15973_v9, %v15975_v43  ;;  %v12167_v22 = vcombine.high %v1894_v7, %v1897_v60  ;;  %v12052_v24 = vrot.slane %v1807_v16, 9  ;;  %v1902_v25 = vrot.slane %v1900_v11, 4  ;;  %v15995_v35 = vld [vmem:[#allocation2 + $0x80] sm:$0xff]  ;;  %v14656_v45 = vld [vmem:[#allocation9 + $0x248] sm:$0xff]  }
 0x138   : > { %13327 = vmatprep.subr.bf16.mxu0 %v14634_v33  ;;  %v1801_v51 = vrot.slane %v1799_v39, 5  ;;  %v1903_v30 = vrot.slane %v14887_v26, 5  ;;  %v14654_v33 = vld [vmem:[#allocation9 + $0x250] sm:$0xff]   ;;  %v14888_v12 = vld [vmem:[#allocation2 + $0x100] sm:$0xff]  ;;  %v12053_v57 = vrot.slane %v1808_v36, 9  ;;  %v1910_v63 = vrot.slane %v14889_v62, 5 }
 0x139   : > { %v15999_v39 = vsel %vm15940_vm12, %v12052_v24, %v1900_v11  ;;  %v1907_v42 = vrot.slane %v14888_v12, 5  ;;  %v2031_v6 = vshrl.u32 %v15973_v9, 16  ;;  %v1809_v16 = vld [vmem:[#allocation2 + $0x160] sm:$0xee]  ;;  %v2055_v24 = vshrl.u32 %v15981_v5, 16 }
 0x13a   : > { %v1802_v59 = vsel %vm15563_vm2, %v1797_v37, %v1801_v51  ;;  %v14655_v37 = vld [vmem:[#allocation9 + $0x210] sm:$0xff]   ;;  %v12194_v51 = vcombine.low %v15981_v5, %v15987_v53  ;;  %v2082_v20 = vshll.u32 %v15993_v34, 16 }
 0x13b   : > { %13328 = vmatpush3.bf16.msra.mxu0 %v14636_v40  ;;  %v12159_v44 = vcombine.high %v1792_v49, %v1802_v59  ;;  %v12158_v3 = vcombine.low %v1792_v49, %v1802_v59  ;;  %v16003_v40 = vsel %vm15940_vm12, %v1902_v25, %v1903_v30  ;;  %v14666_v49 = vld [vmem:[#allocation9 + $0x2e8] sm:$0xff]   ;;  %v1909_v61 = vrot.slane %v1907_v42, 4  ;;  %v1816_v30 = vld [vmem:[#allocation2 + $0x38] sm:$0xee] }
 0x13c   : > { %13329 = vmatprep.subr.bf16.mxu0 %v14640_v48  ;;  %v12166_v48 = vcombine.low %v1894_v7, %v1897_v60  ;;  %v14658_v59 = vld [vmem:[#allocation9 + $0x208] sm:$0xff]   ;;  %v14890_v7 = vld [vmem:[#allocation2 + $0x198] sm:$0xff]  ;;  %v16018_v11 = vsel %vm15940_vm12, %v12053_v57, %v1907_v42  ;;  %v12196_v25 = vcombine.low %v15993_v34, %v15995_v35  ;;  %v12168_v26 = vcombine.low %v15999_v39, %v16003_v40 }
 0x13d   : > { %5864 = vmatprep.mubr.bf16.mxu1 %v12159_v44  ;;  %v14670_v44 = vld [vmem:[#allocation9 + $0x240] sm:$0xff]   ;;  %v1914_v60 = vrot.slane %v14890_v7, 5  ;;  %v1966_v57 = vrot.slane %v15923_v58, 5  ;;  %v734_v58 = vld [vmem:[%s15460_s23 + $0x78] sm:$0xf] }
 0x13e   : > { %5914 = vmatmul.mubr.bf16.gmra.mxu0 %v12162_v55  ;;  %5865 = vmatmul.mubr.bf16.gmra.mxu1 %v12158_v3  ;;  %v12169_v55 = vcombine.high %v15999_v39, %v16003_v40  ;;  %v14668_v3 = vld [vmem:[#allocation9 + $0x2e0] sm:$0xff]   ;;  %v2058_v39 = vshll.u32 %v15981_v5, 16 }
 0x13f   : > { %5921 = vmatprep.mubr.bf16.mxu0 %v12165_v21  ;;  %6066 = vmatprep.mubr.bf16.mxu1 %v12193_v2  ;;  %v12197_v21 = vcombine.high %v15993_v34, %v15995_v35  ;;  %v16011_v2 = vld [vmem:[#allocation2 + $0x148] sm:$0xff]  ;;  %v1916_v36 = vrot.slane %v1914_v60, 4 }
 0x140   : > { %13330 = vmatpush3.bf16.msra.mxu0 %v14642_v1  ;;  %v14667_v1 = vld [vmem:[#allocation9 + $0x2a8] sm:$0xff]  }
 0x141   : > { %13331 = vmatprep.subr.bf16.mxu0 %v14646_v4  ;;  %v16013_v4 = vld [vmem:[#allocation2 + $0x18] sm:$0xff] }
 0x142   : > { %v12199_v42 = vcombine.high %v16011_v2, %v16013_v4  ;;  %v12198_v40 = vcombine.low %v16011_v2, %v16013_v4 }
 0x144   : > { %13332 = vmatpush3.bf16.msra.mxu0 %v14647_v14  ;;  %v16022_v14 = vsel %vm15940_vm12, %v1909_v61, %v1910_v63 }
 0x145   : > { %13333 = vmatprep.subr.bf16.mxu0 %v14650_v17  ;;  %v14669_v17 = vld [vmem:[#allocation9 + $0x2a0] sm:$0xff]   ;;  %v12170_v7 = vcombine.low %v16018_v11, %v16022_v14 }
 0x146   : > { %5922 = vmatmul.mubr.bf16.gmra.mxu0 %v12164_v18  ;;  %6067 = vmatmul.mubr.bf16.vlgmr.msra.gmra.mxu1 %v12192_v19  ;;  %v14671_v18 = vld [vmem:[#allocation9 + $0x200] sm:$0xff]   ;;  %v2034_v19 = vshll.u32 %v15973_v9, 16  ;;  %v16107_v9 = vld [vmem:[#allocation2 + $0x160] sm:$0xff] }
 0x147   : > { %5929 = vmatprep.mubr.bf16.mxu0 %v12167_v22  ;;  %6074 = vmatprep.mubr.bf16.mxu1 %v12195_v23  ;;  %v16025_v22 = vld [vmem:[#allocation2 + $0x138] sm:$0xff]  ;;  %v14680_v23 = vld [vmem:[#allocation9 + $0x378] sm:$0xff]  }
 0x148   : > { %13334 = vmatpush3.bf16.msra.mxu0 %v14652_v31  ;;  %13438 = vmatpush3.bf16.msra.mxu1 %v14661_v10  ;;  %v14672_v31 = vld [vmem:[#allocation9 + $0x2d8] sm:$0xff]   ;;  %v12171_v10 = vcombine.high %v16018_v11, %v16022_v14  ;;  %v14893_v11 = vld [vmem:[#allocation2 + $0xc8] sm:$0x11] }
 0x149   : > { %13335 = vmatprep.subr.bf16.mxu0 %v14654_v33  ;;  %13439 = vmatprep.subr.bf16.mxu1 %v14662_v0  ;;  %v16032_v33 = vld [vmem:[#allocation2 + $0x100] sm:$0xff]  ;;  %v12054_v0 = vrot.slane %v1809_v16, 9  ;;  %v14892_v16 = vld [vmem:[#allocation2 + $0x8] sm:$0xff]  ;;  %v1924_v14 = vrot.slane %v14893_v11, 5 }
 0x14a   : > { %v12200_v61 = vcombine.low %v16025_v22, %v16032_v33  ;;  %v14895_v11 = vld [vmem:[#allocation2 + $0x40] sm:$0x11] }
 0x14b   : > { %v16051_v62 = vsel %vm15940_vm12, %v12054_v0, %v1914_v60 }
 0x14c   : > { %13336 = vmatpush3.bf16.msra.mxu0 %v14655_v37  ;;  %13440 = vmatpush3.bf16.msra.mxu1 %v14663_v47  ;;  %v14891_v37 = vld [vmem:[#allocation2] sm:$0x11]  ;;  %v1817_v47 = vld [vmem:[#allocation2 + $0xf0] sm:$0xee] }
 0x14d   : > { %13337 = vmatprep.subr.bf16.mxu0 %v14656_v45  ;;  %13441 = vmatprep.subr.bf16.mxu1 %v14666_v49  ;;  %v1917_v12 = vrot.slane %v14891_v37, 5  ;;  %v16038_v45 = vld [vmem:[#allocation2 + $0x68] sm:$0xee]  ;;  %v12201_v49 = vcombine.high %v16025_v22, %v16032_v33  ;;  %v14676_v37 = vld [vmem:[#allocation9 + $0x2c8] sm:$0xff]  }
 0x14e   : > { %5930 = vmatmul.mubr.bf16.gmra.mxu0 %v12166_v48  ;;  %6075 = vmatmul.mubr.bf16.gmra.mxu1 %v12194_v51  ;;  %v14673_v48 = vld [vmem:[#allocation9 + $0x298] sm:$0xff]   ;;  %v12061_v51 = vrot.slane %v1816_v30, 9  ;;  %v1973_v30 = vrot.slane %v15933_v46, 5 }
 0x14f   : > { %5937 = vmatprep.mubr.bf16.mxu0 %v12169_v55  ;;  %6082 = vmatprep.mubr.bf16.mxu1 %v12197_v21  ;;  %v1963_v55 = vrot.slane %v15894_v41, 5  ;;  %v524_v21 = vld [vmem:[#allocation2 + $0x98] sm:$0x11]  ;;  %v16055_v63 = vsel %vm15940_vm12, %v1916_v36, %v1917_v12 }
 0x150   : > { %13338 = vmatpush3.bf16.msra.mxu0 %v14658_v59  ;;  %13442 = vmatpush3.bf16.msra.mxu1 %v14667_v1  ;;  %v14674_v59 = vld [vmem:[#allocation9 + $0x2d0] sm:$0xff]   ;;  %v525_v36 = vsel %vm15516_vm10, 0, %v524_v21  ;;  %v2033_v21 = vrot.slane %v2031_v6, 4  ;;  %v12172_v6 = vcombine.low %v16051_v62, %v16055_v63 }
 0x151   : > { %13339 = vmatprep.subr.bf16.mxu0 %v14670_v44  ;;  %13443 = vmatprep.subr.bf16.mxu1 %v14668_v3  ;;  %v16057_v1 = vld [vmem:[#allocation2 + $0x118] sm:$0xee]  ;;  %v735_v44 = vld [vmem:[%s15460_s23 + $0x7c] sm:$0xf]  ;;  %v766_v3 = vld [vmem:[%s15467_s29 + $0x78] sm:$0xf]  ;;  %v16066_v60 = vsel %vm15940_vm12, %v12061_v51, %v1963_v55 }
 0x152   : > { %v14675_v41 = vld [vmem:[#allocation9 + $0x290] sm:$0xff]   ;;  %526 = vst [vmem:[#allocation2 + $0x98] sm:$0x11] %v525_v36  ;;  %v12046_v51 = vcombine.low %v734_v58, %v766_v3  ;;  %v1815_v58 = vld [vmem:[#allocation2 + $0x20] sm:$0xee]  ;;  %s11873_s23 = sshll.u32 %s20375_s13, 4  ;;  %s20563_s23 = int_to_ptr.vmem [resolvable:$true] %s11873_s23 }
 0x153   : > { %s15123_s17 = scalar_lea.vmem %s20563_s23, 4096  ;;  %p15130_p5 = scmp.lt.s32.totalorder %s20563_s23, %s15128_s15 }
 0x154   : > { %13340 = vmatpush3.bf16.msra.mxu0 %v14671_v18  ;;  %13444 = vmatpush3.bf16.msra.mxu1 %v14669_v17  ;;  %v1921_v17 = vrot.slane %v14892_v16, 5  ;;  %v1965_v18 = vrot.slane %v1963_v55, 4  ;;  %v2036_v16 = vrot.slane %v2034_v19, 5  ;;  %v1189_v3 = vshll.u32 %v12046_v51, 16  ;;  %p15124_p9 = scmp.ne.s32.totalorder %s20563_s23, %s15123_s17  ;;  %p15131_p1 = scmp.lt.s32.totalorder %s15129_s26, %s15123_s17 }
 0x155   : > { %13549 = vmatprep.subr.bf16.mxu0 %v14680_v23  ;;  %13445 = vmatprep.subr.bf16.mxu1 %v14672_v31  ;;  %v12055_v23 = vrot.slane %v16038_v45, 9  ;;  %v767_v31 = vld [vmem:[%s15467_s29 + $0x7c] sm:$0xf]  ;;  %v14677_v45 = vld [vmem:[#allocation9 + $0x288] sm:$0xff]   ;;  %s20561_s29 = scalar_lea.hbm %s20617_s10, %s12876_s20 }
 0x156   : > { %5938 = vmatmul.mubr.bf16.gmra.mxu0 %v12168_v26  ;;  %6083 = vmatmul.mubr.bf16.gmra.mxu1 %v12196_v25  ;;  %v12062_v25 = vrot.slane %v1817_v47, 9  ;;  %v1970_v26 = vrot.slane %v15915_v52, 5  ;;  %v16076_v0 = vsel %vm15940_vm12, %v1965_v18, %v1966_v57  ;;  %v1923_v47 = vrot.slane %v1921_v17, 4  ;;  %p15125_p13 = pnand %p15124_p9, %p21032_p12  ;;  %p15132_p4 = por %p15131_p1, %p15130_p5 }
 0x157   : > { %5945 = vmatprep.mubr.bf16.mxu0 %v12171_v10  ;;  %6090 = vmatprep.mubr.bf16.mxu1 %v12199_v42  ;;  %v12173_v10 = vcombine.high %v16051_v62, %v16055_v63  ;;  %v12047_v55 = vcombine.low %v735_v44, %v767_v31  ;;  %v2040_v18 = vshll.u32 %v15975_v43, 16  ;;  %v1186_v44 = vshrl.u32 %v12046_v51, 16  ;;  %v14679_v62 = vld [vmem:[#allocation9 + $0x280] sm:$0xff]  }
 0x158   : > { %13446 = vmatpush3.bf16.msra.mxu1 %v14673_v48  ;;  %v16086_v12 = vsel %vm15940_vm12, %v12062_v25, %v1970_v26  ;;  %v1972_v42 = vrot.slane %v1970_v26, 4  ;;  %v12056_v48 = vrot.slane %v16057_v1, 9  ;;  %v14894_v25 = vld [vmem:[#allocation2 + $0xa8] sm:$0xff]  ;;  %v16113_v19 = vsel %vm15940_vm12, %v12055_v23, %v1921_v17  ;;  %p15126_p2 = pneg %p15125_p13 }
 0x159   : > { %13447 = vmatprep.subr.bf16.mxu1 %v14674_v59  ;;  %v14678_v59 = vld [vmem:[#allocation9 + $0x2c0] sm:$0xff]   ;;  %v1928_v26 = vrot.slane %v14894_v25, 5  ;;  %v16122_v2 = vsel %vm15940_vm12, %v1923_v47, %v1924_v14  ;;  %v1188_v4 = vrot.slane %v1186_v44, 7  ;;  %v2037_v31 = vor.u32 %v2036_v16, %v2033_v21 }
 0x15a   : > { %v16091_v57 = vsel %vm15940_vm12, %v1972_v42, %v1973_v30  ;;  %v16118_v30 = vld [vmem:[#allocation2 + $0x198] sm:$0xff]  ;;  %v2042_v17 = vrot.slane %v2040_v18, 5  ;;  %v2044_v23 = vshrl.u32 %v15975_v43, 16  ;;  %v12175_v47 = vcombine.high %v16113_v19, %v16122_v2  ;;  %v16143_v18 = vld [vmem:[#allocation2 + $0xd0] sm:$0x11]  ;;  %p15133_p6 = pnand %p15132_p4, %p15126_p2 }
 0x15b   : > { %v1191_v36 = vor.u32 %v1189_v3, %v1188_v4  ;;  %v1361_v42 = vld [vmem:[#allocation2 + $0x98] sm:$0xff]  ;;  %v2038_v14 = vrot.slane %v2037_v31, 4  ;;  %v1930_v51 = vrot.slane %v1928_v26, 4  ;;  %v12203_v43 = vcombine.high %v16107_v9, %v16118_v30 }
 0x15c   : > { %13448 = vmatpush3.bf16.msra.mxu1 %v14675_v41  ;;  %v16102_v41 = vld [vmem:[#allocation2 + $0x150] sm:$0x11]  ;;  %v2046_v21 = vrot.slane %v2044_v23, 4  ;;  %v2079_v25 = vshrl.u32 %v15993_v34, 16  ;;  %v2057_v23 = vrot.slane %v2055_v24, 4  ;;  %v12202_v5 = vcombine.low %v16107_v9, %v16118_v30 }
 0x15d   : > { %13449 = vmatprep.subr.bf16.mxu1 %v14676_v37  ;;  %v1192_v37 = vrot.slane %v1188_v4, 4  ;;  %v16137_v16 = vsel %vm15574_vm3, %v1191_v36, %v1361_v42  ;;  %v16152_v4 = vld [vmem:[#allocation2 + $0x68] sm:$0xff]  ;;  %v2074_v36 = vshll.u32 %v16143_v18, 16 }
 0x15e   : > { %5946 = vmatmul.mubr.bf16.gmra.mxu0 %v12170_v7  ;;  %6091 = vmatmul.mubr.bf16.gmra.mxu1 %v12198_v40  ;;  %v1194_v7 = vshrl.u32 %v12047_v55, 16  ;;  %v1197_v40 = vshll.u32 %v12047_v55, 16  ;;  %v16130_v55 = vld [vmem:[#allocation2 + $0x90] sm:$0xee]  ;;  %1363 = vst [vmem:[#allocation2 + $0x98] sm:$0xff] %v16137_v16  ;;  %v2047_v3 = vor.u32 %v2046_v21, %v2042_v17 }
 0x15f   : > { %5953 = vmatprep.mubr.bf16.mxu0 %v12173_v10  ;;  %6098 = vmatprep.mubr.bf16.mxu1 %v12201_v49  ;;  %v2050_v10 = vshll.u32 %v16102_v41, 16  ;;  %v1931_v49 = vrot.slane %v14895_v11, 5  ;;  %v12057_v31 = vrot.slane %v16130_v55, 9  ;;  %v16192_v21 = vld [vmem:[#allocation2 + $0x108] sm:$0x11] }
 0x160   : > { %v16124_v63 = vrot.slane %v1194_v7, 7  ;;  %13450 = vmatpush3.bf16.msra.mxu1 %v14677_v45 }
 0x161   : > { %13451 = vmatprep.subr.bf16.mxu1 %v14678_v59  ;;  %v16141_v59 = vsel %vm15563_vm2, %v2038_v14, %v2042_v17  ;;  %v2052_v7 = vrot.slane %v2050_v10, 5  ;;  %v16169_v17 = vld [vmem:[#allocation2 + $0x8] sm:$0xff]  ;;  %v16173_v24 = vsel %vm15940_vm12, %v1930_v51, %v1931_v49  ;;  %v14896_v10 = vld [vmem:[#allocation2 + $0xd8] sm:$0xff] }
 0x162   : > { %v1199_v45 = vor.u32 %v1197_v40, %v16124_v63  ;;  %v16156_v40 = vsel %vm15940_vm12, %v12056_v48, %v1928_v26  ;;  %v2064_v48 = vshll.u32 %v15987_v53, 16  ;;  %v2068_v26 = vshrl.u32 %v15987_v53, 16 }
 0x163   : > { %v1935_v33 = vrot.slane %v14896_v10, 5  ;;  %v12205_v30 = vcombine.high %v16152_v4, %v16169_v17  ;;  %v2092_v10 = vshrl.u32 %v15995_v35, 16 }
 0x164   : > { %v16148_v44 = vsel %vm15581_vm7, %v1192_v37, %v1199_v45  ;;  %13452 = vmatpush3.bf16.msra.mxu1 %v14679_v62  ;;  %v2060_v62 = vrot.slane %v2058_v39, 5  ;;  %v12174_v39 = vcombine.low %v16113_v19, %v16122_v2  ;;  %v2066_v51 = vrot.slane %v2064_v48, 5 }
 0x165   : > { %1364 = vst [vmem:[#allocation2 + $0x128] sm:$0xff] %v16148_v44  ;;  %v12177_v19 = vcombine.high %v16156_v40, %v16173_v24  ;;  %v2070_v45 = vrot.slane %v2068_v26, 4  ;;  %v2088_v48 = vshll.u32 %v15995_v35, 16 }
 0x166   : > { %5954 = vmatmul.mubr.bf16.gmra.mxu0 %v12172_v6  ;;  %6099 = vmatmul.mubr.bf16.gmra.mxu1 %v12200_v61  ;;  %v2048_v6 = vrot.slane %v2047_v3, 4  ;;  %v14897_v61 = vld [vmem:[#allocation2 + $0x188] sm:$0x11]  ;;  %v2061_v42 = vor.u32 %v2060_v62, %v2057_v23  ;;  %v2076_v3 = vrot.slane %v2074_v36, 5  ;;  %v2084_v23 = vrot.slane %v2082_v20, 5 }
 0x167   : > { %5961 = vmatprep.mubr.bf16.mxu0 %v12175_v47  ;;  %6106 = vmatprep.mubr.bf16.mxu1 %v12203_v43  ;;  %v1938_v11 = vrot.slane %v14897_v61, 5  ;;  %v1937_v43 = vrot.slane %v1935_v33, 4  ;;  %v2071_v62 = vor.u32 %v2070_v45, %v2066_v51 }
 0x168   : > { %v16182_v37 = vsel %vm15563_vm2, %v2048_v6, %v2052_v7  ;;  %v2062_v55 = vrot.slane %v2061_v42, 4  ;;  %v2081_v7 = vrot.slane %v2079_v25, 4  ;;  %v2098_v42 = vshll.u32 %v16192_v21, 16 }
 0x169   : > { %v16203_v25 = vsel %vm15940_vm12, %v12057_v31, %v1935_v33  ;;  %v2072_v36 = vrot.slane %v2071_v62, 4  ;;  %v16207_v35 = vsel %vm15940_vm12, %v1937_v43, %v1938_v11  ;;  %v1997_v31 = vld [vmem:[#allocation2 + $0xa8] sm:$0xff]  ;;  %v12176_v33 = vcombine.low %v16156_v40, %v16173_v24 }
 0x16a   : > { %v12893_v34 = vpop.f32.mrf.mxu0  ;;  %v16196_v6 = vsel %vm15563_vm2, %v2062_v55, %v2066_v51  ;;  %v2085_v26 = vor.u32 %v2084_v23, %v2081_v7  ;;  %v2090_v55 = vrot.slane %v2088_v48, 5  ;;  %v2094_v7 = vrot.slane %v2092_v10, 4 }
 0x16b   : > { %v12179_v40 = vcombine.high %v16203_v25, %v16207_v35 }
 0x16c   : > { %v12894_v53 = vpop.f32.mrf.mxu0  ;;  %v2086_v45 = vrot.slane %v2085_v26, 4 }
 0x16d   : > { %v12895_v49 = vadd.f32 %v12894_v53, %v12893_v34  ;;  %v1813_v53 = vld [vmem:[#allocation2 + $0xa0] sm:$0xee] }
 0x16e   : > { %v12896_v2 = vpop.f32.mrf.mxu0  ;;  %5962 = vmatmul.mubr.bf16.gmra.mxu0 %v12174_v39  ;;  %6107 = vmatmul.mubr.bf16.gmra.mxu1 %v12202_v5  ;;  %v14898_v39 = vld [vmem:[#allocation2 + $0xc0] sm:$0xff]  ;;  %v12204_v5 = vcombine.low %v16152_v4, %v16169_v17  ;;  %v16225_v48 = vsel %vm15563_vm2, %v2086_v45, %v2090_v55 }
 0x16f   : > { %5969 = vmatprep.mubr.bf16.mxu0 %v12177_v19  ;;  %6114 = vmatprep.mubr.bf16.mxu1 %v12205_v30  ;;  %v13005_v51 = vpop.f32.mrf.mxu1  ;;  %v16211_v19 = vld [vmem:[#allocation2 + $0x118] sm:$0xff]  ;;  %v12058_v30 = vrot.slane %v1813_v53, 9  ;;  %v2095_v53 = vor.u32 %v2094_v7, %v2090_v55 }
 0x170   : > { %v12897_v34 = vpop.f32.mrf.mxu0  ;;  %v12207_v26 = vcombine.high %v16211_v19, %v1997_v31 }
 0x171   : > { %v12898_v61 = vadd.f32 %v12897_v34, %v12896_v2  ;;  %v1942_v2 = vrot.slane %v14898_v39, 5  ;;  %v16217_v34 = vsel %vm15563_vm2, %v2072_v36, %v2076_v3  ;;  %v13006_v11 = vpop.f32.mrf.mxu1  ;;  %v2100_v3 = vrot.slane %v2098_v42, 5  ;;  %v14899_v39 = vld [vmem:[#allocation2 + $0x50] sm:$0x11] }
 0x172   : > { %v12899_v20 = vpop.f32.mrf.mxu0  ;;  %v13007_v10 = vadd.f32 %v13006_v11, %v13005_v51  ;;  %v2096_v14 = vrot.slane %v2095_v53, 4  ;;  %v16232_v51 = vld [vmem:[#allocation2 + $0x90] sm:$0xff] }
 0x173   : > { %v1944_v36 = vrot.slane %v1942_v2, 4  ;;  %v1943_v42 = vsel %vm15940_vm12, %v12058_v30, %v1942_v2  ;;  %v1814_v30 = vld [vmem:[#allocation2 + $0x110] sm:$0xee] }
 0x174   : > { %v12900_v23 = vpop.f32.mrf.mxu0  ;;  %v16230_v62 = vadd.f32 %v13007_v10, %v12895_v49  ;;  %v16238_v7 = vsel %vm15563_vm2, %v2096_v14, %v2100_v3  ;;  %v1999_v49 = vld [vmem:[#allocation2 + $0xd8] sm:$0xff]  ;;  %v14900_v10 = vld [vmem:[#allocation2 + $0x30] sm:$0xff]  ;;  %v12178_v14 = vcombine.low %v16203_v25, %v16207_v35  ;;  %v12206_v3 = vcombine.low %v16211_v19, %v1997_v31  ;;  %v16254_v25 = vld [vmem:[#allocation2 + $0xa0] sm:$0xff] }
 0x175   : > { %v12901_v43 = vadd.f32 %v12900_v23, %v12899_v20  ;;  %v13008_v20 = vpop.f32.mrf.mxu1  ;;  %v1945_v23 = vrot.slane %v14899_v39, 5  ;;  %v12209_v39 = vcombine.high %v16232_v51, %v1999_v49  ;;  %v14902_v31 = vld [vmem:[#allocation2 + $0x1a0] sm:$0xff] }
 0x176   : > { %v12902_v24 = vpop.f32.mrf.mxu0  ;;  %5970 = vmatmul.mubr.bf16.gmra.mxu0 %v12176_v33  ;;  %6115 = vmatmul.mubr.bf16.gmra.mxu1 %v12204_v5 }
 0x177   : > { %v13009_v45 = vpop.f32.mrf.mxu1  ;;  %5977 = vmatprep.mubr.bf16.mxu0 %v12179_v40  ;;  %6122 = vmatprep.mubr.bf16.mxu1 %v12207_v26  ;;  %v1946_v33 = vsel %vm15940_vm12, %v1944_v36, %v1945_v23  ;;  %v12059_v23 = vrot.slane %v1814_v30, 9 }
 0x178   : > { %v12903_v17 = vpop.f32.mrf.mxu0  ;;  %v13010_v11 = vadd.f32 %v13009_v45, %v13008_v20  ;;  %v12181_v20 = vcombine.high %v1943_v42, %v1946_v33 }
 0x179   : > { %v12904_v47 = vadd.f32 %v12903_v17, %v12902_v24  ;;  %v1949_v17 = vrot.slane %v14900_v10, 5  ;;  %v14901_v10 = vld [vmem:[#allocation2 + $0x78] sm:$0x11] }
 0x17a   : > { %v12905_v55 = vpop.f32.mrf.mxu0  ;;  %v16246_v24 = vadd.f32 %v13010_v11, %v12898_v61  ;;  %v13011_v26 = vpop.f32.mrf.mxu1  ;;  %v1952_v5 = vrot.slane %v14901_v10, 5 }
 0x17b   : > { %v1951_v45 = vrot.slane %v1949_v17, 4  ;;  %v1950_v30 = vsel %vm15940_vm12, %v12059_v23, %v1949_v17 }
 0x17c   : > { %v12906_v2 = vpop.f32.mrf.mxu0  ;;  %v13012_v61 = vpop.f32.mrf.mxu1 }
 0x17d   : > { %v16250_v53 = vadd.f32 %v12906_v2, %v12905_v55  ;;  %v13013_v40 = vadd.f32 %v13012_v61, %v13011_v26  ;;  %v1956_v55 = vrot.slane %v14902_v31, 5  ;;  %v1953_v10 = vsel %vm15940_vm12, %v1951_v45, %v1952_v5 }
 0x17e   : > { %v12908_v36 = vpop.f32.mrf.mxu0  ;;  %5978 = vmatmul.mubr.bf16.gmra.mxu0 %v12178_v14  ;;  %6123 = vmatmul.mubr.bf16.gmra.mxu1 %v12206_v3  ;;  %v13014_v35 = vpop.f32.mrf.mxu1  ;;  %v2001_v14 = vld [vmem:[#allocation2 + $0xc0] sm:$0xff]  ;;  %v12208_v3 = vcombine.low %v16232_v51, %v1999_v49  ;;  %v12060_v31 = vrot.slane %v1815_v58, 9 }
 0x17f   : > { %5985 = vmatprep.mubr.bf16.mxu0 %v12181_v20  ;;  %6130 = vmatprep.mubr.bf16.mxu1 %v12209_v39  ;;  %v16256_v2 = vadd.f32 %v13013_v40, %v12901_v43  ;;  %v12183_v20 = vcombine.high %v1950_v30, %v1953_v10  ;;  %v1958_v39 = vrot.slane %v1956_v55, 4  ;;  %v14903_v43 = vld [vmem:[#allocation2 + $0x168] sm:$0x11]  ;;  %v12211_v46 = vcombine.high %v16254_v25, %v2001_v14 }
 0x180   : > { %v12909_v11 = vpop.f32.mrf.mxu0  ;;  %v13015_v26 = vpop.f32.mrf.mxu1  ;;  %v1959_v40 = vrot.slane %v14903_v43, 5 }
 0x181   : > { %v12910_v1 = vadd.f32 %v12909_v11, %v12908_v36  ;;  %20722 = vst [vmem:[#allocation32_spill] sm:$0xff] %v16256_v2  ;;  %v13016_v61 = vadd.f32 %v13015_v26, %v13014_v35  ;;  %v12180_v11 = vcombine.low %v1943_v42, %v1946_v33  ;;  %v1957_v42 = vsel %vm15940_vm12, %v12060_v31, %v1956_v55  ;;  %v16270_v35 = vld [vmem:[#allocation2 + $0x110] sm:$0xff] }
 0x182   : > { %v12911_v36 = vpop.f32.mrf.mxu0  ;;  %v1960_v58 = vsel %vm15940_vm12, %v1958_v39, %v1959_v40  ;;  %v2003_v26 = vld [vmem:[#allocation2 + $0x30] sm:$0xff] }
 0x183   : > { %v16264_v17 = vadd.f32 %v13016_v61, %v12904_v47  ;;  %v12182_v61 = vcombine.low %v1950_v30, %v1953_v10  ;;  %v14693_v2 = vld [vmem:[#allocation9 + $0x308] sm:$0xff]  }
 0x184   : > { %v12912_v52 = vpop.f32.mrf.mxu0 }
 0x185   : > { %20723 = vst [vmem:[#allocation33_spill] sm:$0xff] %v16264_v17  ;;  %v12913_v23 = vadd.f32 %v12912_v52, %v12911_v36  ;;  %v12210_v52 = vcombine.low %v16254_v25, %v2001_v14 }
 0x186   : > { %v12914_v5 = vpop.f32.mrf.mxu0  ;;  %5986 = vmatmul.mubr.bf16.gmra.mxu0 %v12180_v11  ;;  %6131 = vmatmul.mubr.bf16.gmra.mxu1 %v12208_v3  ;;  %v12185_v3 = vcombine.high %v1957_v42, %v1960_v58 }
 0x187   : > { %5993 = vmatprep.mubr.bf16.mxu0 %v12183_v20  ;;  %6138 = vmatprep.mubr.bf16.mxu1 %v12211_v46  ;;  %v12213_v46 = vcombine.high %v16270_v35, %v2003_v26 }
 0x188   : > { %v12915_v45 = vpop.f32.mrf.mxu0  ;;  %v13017_v33 = vpop.f32.mrf.mxu1 }
 0x189   : > { %v12916_v49 = vadd.f32 %v12915_v45, %v12914_v5  ;;  %v16277_v45 = vld [vmem:[#allocation2 + $0x20] sm:$0xff] }
 0x18a   : > { %v12917_v47 = vpop.f32.mrf.mxu0  ;;  %v13018_v36 = vpop.f32.mrf.mxu1 }
 0x18b   : > { %v13019_v20 = vadd.f32 %v13018_v36, %v13017_v33  ;;  %v12184_v33 = vcombine.low %v1957_v42, %v1960_v58  ;;  %v12212_v36 = vcombine.low %v16270_v35, %v2003_v26  ;;  %v16288_v58 = vld [vmem:[#allocation2 + $0x38] sm:$0xff]  ;;  %v2007_v26 = vld [vmem:[#allocation2 + $0x120] sm:$0xff] }
 0x18c   : > { %v12918_v11 = vpop.f32.mrf.mxu0  ;;  %v13020_v5 = vpop.f32.mrf.mxu1 }
 0x18d   : > { %v12919_v43 = vadd.f32 %v12918_v11, %v12917_v47  ;;  %v16275_v31 = vadd.f32 %v13019_v20, %v16250_v53 }
 0x18e   : > { %v12920_v55 = vpop.f32.mrf.mxu0  ;;  %5994 = vmatmul.mubr.bf16.gmra.mxu0 %v12182_v61  ;;  %6139 = vmatmul.mubr.bf16.gmra.mxu1 %v12210_v52  ;;  %v13021_v39 = vpop.f32.mrf.mxu1  ;;  %v12215_v61 = vcombine.high %v16277_v45, %v2005_v32 }
 0x18f   : > { %20724 = vst [vmem:[#allocation34_spill] sm:$0xff] %v16275_v31  ;;  %6001 = vmatprep.mubr.bf16.mxu0 %v12185_v3  ;;  %6146 = vmatprep.mubr.bf16.mxu1 %v12213_v46  ;;  %v13022_v30 = vadd.f32 %v13021_v39, %v13020_v5 }
 0x190   : > { %v12921_v40 = vpop.f32.mrf.mxu0  ;;  %v13023_v14 = vpop.f32.mrf.mxu1 }
 0x191   : > { %v12922_v10 = vadd.f32 %v12921_v40, %v12920_v55  ;;  %v16279_v56 = vadd.f32 %v13022_v30, %v12910_v1  ;;  %v20727_v1 = vcombine.high %v16066_v60, %v16076_v0  ;;  %v14904_v40 = vld [vmem:[#allocation2 + $0x178] sm:$0xff] }
 0x192   : > { %v12923_v47 = vpop.f32.mrf.mxu0  ;;  %v13024_v53 = vpop.f32.mrf.mxu1  ;;  %v1977_v30 = vrot.slane %v14904_v40, 5 }
 0x193   : > { %20725 = vst [vmem:[#allocation35_spill] sm:$0xff] %v16279_v56  ;;  %v13025_v52 = vadd.f32 %v13024_v53, %v13023_v14 }
 0x194   : > { %v12924_v11 = vpop.f32.mrf.mxu0  ;;  %v13026_v3 = vpop.f32.mrf.mxu1 }
 0x195   : > { %v12925_v20 = vadd.f32 %v12924_v11, %v12923_v47  ;;  %v16283_v46 = vadd.f32 %v13025_v52, %v12913_v23  ;;  %v1818_v23 = vld [vmem:[#allocation2 + $0x170] sm:$0xee] }
 0x196   : > { %6002 = vmatmul.mubr.bf16.gmra.mxu0 %v12184_v33  ;;  %v12926_v5 = vpop.f32.mrf.mxu0  ;;  %6147 = vmatmul.mubr.bf16.gmra.mxu1 %v12212_v36  ;;  %v13027_v55 = vpop.f32.mrf.mxu1  ;;  %v12214_v33 = vcombine.low %v16277_v45, %v2005_v32  ;;  %v12217_v36 = vcombine.high %v16288_v58, %v2007_v26 }
 0x197   : > { %20726 = vst [vmem:[#allocation36_spill] sm:$0xff] %v16283_v46  ;;  %6009 = vmatprep.mubr.bf16.mxu0 %v20727_v1  ;;  %6154 = vmatprep.mubr.bf16.mxu1 %v12215_v61  ;;  %v13028_v42 = vadd.f32 %v13027_v55, %v13026_v3  ;;  %v12063_v61 = vrot.slane %v1818_v23, 9  ;;  %v1979_v3 = vrot.slane %v1977_v30, 4  ;;  %v14905_v55 = vld [vmem:[#allocation2 + $0x58] sm:$0x11] }
 0x198   : > { %v12927_v39 = vpop.f32.mrf.mxu0  ;;  %v13029_v14 = vpop.f32.mrf.mxu1  ;;  %v1980_v15 = vrot.slane %v14905_v55, 5 }
 0x199   : > { %v12928_v47 = vadd.f32 %v12927_v39, %v12926_v5  ;;  %v16290_v53 = vadd.f32 %v13028_v42, %v12916_v49  ;;  %v20730_v5 = vcombine.low %v16066_v60, %v16076_v0  ;;  %v20731_v42 = vcombine.high %v16086_v12, %v16091_v57  ;;  %v2009_v60 = vld [vmem:[#allocation2 + $0xb8] sm:$0xff] }
 0x19a   : > { %v13030_v52 = vpop.f32.mrf.mxu1  ;;  %v12929_v11 = vpop.f32.mrf.mxu0  ;;  %v1981_v23 = vsel %vm15940_vm12, %v1979_v3, %v1980_v15  ;;  %v14694_v3 = vld [vmem:[#allocation9 + $0x3f8] sm:$0xff]  }
 0x19b   : > { %20728 = vst [vmem:[#allocation37_spill] sm:$0xff] %v16290_v53  ;;  %v13031_v1 = vadd.f32 %v13030_v52, %v13029_v14  ;;  %v2008_v14 = vld [vmem:[#allocation2 + $0xf0] sm:$0xff]  ;;  %13661 = vmatprep.subr.bf16.mxu1 %v14694_v3 }
 0x19c   : > { %v13032_v13 = vpop.f32.mrf.mxu1  ;;  %v12930_v27 = vpop.f32.mrf.mxu0 }
 0x19d   : > { %v16294_v46 = vadd.f32 %v13031_v1, %v12919_v43  ;;  %v16299_v49 = vadd.f32 %v12930_v27, %v12929_v11  ;;  %v1978_v43 = vsel %vm15940_vm12, %v12063_v61, %v1977_v30  ;;  %v12216_v11 = vcombine.low %v16288_v58, %v2007_v26 }
 0x19e   : > { %6010 = vmatmul.mubr.bf16.gmra.mxu0 %v20730_v5  ;;  %6155 = vmatmul.mubr.bf16.gmra.mxu1 %v12214_v33  ;;  %v13033_v32 = vpop.f32.mrf.mxu1  ;;  %v12932_v39 = vpop.f32.mrf.mxu0  ;;  %v12191_v1 = vcombine.high %v1978_v43, %v1981_v23  ;;  %v20733_v30 = vcombine.low %v16086_v12, %v16091_v57  ;;  %v14906_v12 = vld [vmem:[#allocation2 + $0x148] sm:$0xff] }
 0x19f   : > { %20729 = vst [vmem:[#allocation38_spill] sm:$0xff] %v16294_v46  ;;  %6017 = vmatprep.mubr.bf16.mxu0 %v20731_v42  ;;  %6162 = vmatprep.mubr.bf16.mxu1 %v12217_v36  ;;  %v13034_v40 = vadd.f32 %v13033_v32, %v13032_v13  ;;  %v12219_v36 = vcombine.high %v2008_v14, %v2009_v60  ;;  %v2103_v57 = vshrl.u32 %v14906_v12, 16 }
 0x1a0   : > { %v12933_v0 = vpop.f32.mrf.mxu0 }
 0x1a1   : > { %v16308_v27 = vadd.f32 %v13034_v40, %v12922_v10  ;;  %v13035_v33 = vpop.f32.mrf.mxu1  ;;  %v16310_v52 = vadd.f32 %v12933_v0, %v12932_v39  ;;  %v12190_v0 = vcombine.low %v1978_v43, %v1981_v23  ;;  %v2483_v23 = vrot.slane %v16102_v41, 5  ;;  %v16376_v41 = vld [vmem:[#allocation2 + $0xf8] sm:$0xee] }
 0x1a3   : > { %20732 = vst [vmem:[#allocation39_spill] sm:$0xff] %v16308_v27  ;;  %v12935_v55 = vpop.f32.mrf.mxu0  ;;  %v13036_v13 = vpop.f32.mrf.mxu1 }
 0x1a4   : > { %v13037_v5 = vadd.f32 %v13036_v13, %v13035_v33  ;;  %v12218_v13 = vcombine.low %v2008_v14, %v2009_v60 }
 0x1a5   : > { %v12936_v32 = vpop.f32.mrf.mxu0  ;;  %v13038_v42 = vpop.f32.mrf.mxu1 }
 0x1a6   : > { %6018 = vmatmul.mubr.bf16.gmra.mxu0 %v20733_v30  ;;  %v16316_v15 = vadd.f32 %v12936_v32, %v12935_v55  ;;  %6163 = vmatmul.mubr.bf16.gmra.mxu1 %v12216_v11  ;;  %v16318_v10 = vadd.f32 %v13037_v5, %v12925_v20  ;;  %v2106_v55 = vshll.u32 %v14906_v12, 16  ;;  %v2414_v5 = vld [vmem:[#allocation2 + $0x48] sm:$0xee]  ;;  %v14907_v32 = vld [vmem:[#allocation2 + $0x70] sm:$0xff]  ;;  %v2105_v20 = vrot.slane %v2103_v57, 4 }
 0x1a7   : > { %6025 = vmatprep.mubr.bf16.mxu0 %v12191_v1  ;;  %v12938_v61 = vpop.f32.mrf.mxu0  ;;  %6170 = vmatprep.mubr.bf16.mxu1 %v12219_v36  ;;  %v13039_v26 = vpop.f32.mrf.mxu1 }
 0x1a8   : > { %20734 = vst [vmem:[#allocation40_spill] sm:$0xff] %v16318_v10  ;;  %v13040_v39 = vadd.f32 %v13039_v26, %v13038_v42  ;;  %v2480_v42 = vrot.slane %v14907_v32, 5  ;;  %v20736_v26 = vcombine.high %v16141_v59, %v16182_v37  ;;  %v2108_v32 = vrot.slane %v2106_v55, 5 }
 0x1a9   : > { %v12939_v40 = vpop.f32.mrf.mxu0 }
 0x1aa   : > { %v16320_v33 = vadd.f32 %v12939_v40, %v12938_v61  ;;  %v16322_v27 = vadd.f32 %v13040_v39, %v12928_v47  ;;  %v16336_v39 = vld [vmem:[#allocation2 + $0x18] sm:$0xff]  ;;  %v12064_v61 = vrot.slane %v2414_v5, 9  ;;  %v2482_v47 = vrot.slane %v2480_v42, 4 }
 0x1ab   : > { %v2112_v40 = vshll.u32 %v16336_v39, 16  ;;  %v2116_v12 = vshrl.u32 %v16336_v39, 16 }
 0x1ac   : > { %20735 = vst [vmem:[#allocation41_spill] sm:$0xff] %v16322_v27 }
 0x1ad   : > { %v13041_v36 = vpop.f32.mrf.mxu1  ;;  %v16351_v5 = vrot.slane %v2112_v40, 5 }
 0x1ae   : > { %6026 = vmatmul.mubr.bf16.gmra.mxu0 %v12190_v0  ;;  %v12941_v60 = vpop.f32.mrf.mxu0  ;;  %6171 = vmatmul.mubr.bf16.gmra.mxu1 %v12218_v13 }
 0x1af   : > { %v13042_v3 = vpop.f32.mrf.mxu1  ;;  %6227 = vmatprep.mubr.bf16.mxu0 %v20736_v26  ;;  %6178 = vmatprep.mubr.bf16.mxu1 %v15946_v50  ;;  %v14681_v26 = vld [vmem:[#allocation9 + $0x338] sm:$0xff]   ;;  %v14682_v50 = vld [vmem:[#allocation9 + $0x370] sm:$0xff]  }
 0x1b0   : > { %v13043_v30 = vadd.f32 %v13042_v3, %v13041_v36  ;;  %v12942_v13 = vpop.f32.mrf.mxu0  ;;  %v2118_v3 = vrot.slane %v2116_v12, 4  ;;  %v20739_v12 = vcombine.low %v16141_v59, %v16182_v37 }
 0x1b1   : > { %v13044_v14 = vpop.f32.mrf.mxu1  ;;  %v16344_v43 = vadd.f32 %v12942_v13, %v12941_v60  ;;  %v16357_v13 = vld [vmem:[#allocation2 + $0x180] sm:$0x11] }
 0x1b2   : > { %v16347_v1 = vadd.f32 %v13043_v30, %v16299_v49  ;;  %v12944_v11 = vpop.f32.mrf.mxu0  ;;  %v12223_v49 = vcombine.high %v16137_v16, %v16148_v44  ;;  %v2119_v59 = vor.u32 %v2118_v3, %v16351_v5  ;;  %v2122_v37 = vshll.u32 %v16357_v13, 16 }
 0x1b3   : > { %v13045_v36 = vpop.f32.mrf.mxu1 }
 0x1b4   : > { %20737 = vst [vmem:[#allocation42_spill] sm:$0xff] %v16347_v1  ;;  %v13046_v60 = vadd.f32 %v13045_v36, %v13044_v14  ;;  %v12945_v30 = vpop.f32.mrf.mxu0  ;;  %v16370_v14 = vsel %vm15940_vm12, %v12064_v61, %v2480_v42  ;;  %v16374_v36 = vsel %vm15940_vm12, %v2482_v47, %v2483_v23  ;;  %v16404_v1 = vld [vmem:[#allocation2 + $0x1a8] sm:$0x11]  ;;  %v2120_v46 = vrot.slane %v2119_v59, 4 }
 0x1b5   : > { %v13047_v55 = vpop.f32.mrf.mxu1  ;;  %v16360_v0 = vadd.f32 %v12945_v30, %v12944_v11  ;;  %v2109_v11 = vor.u32 %v2108_v32, %v2105_v20  ;;  %v16381_v30 = vld [vmem:[#allocation2 + $0x100] sm:$0xff]  ;;  %v20740_v20 = vcombine.high %v16196_v6, %v16217_v34  ;;  %v14686_v59 = vld [vmem:[#allocation9 + $0x360] sm:$0xff]  }
 0x1b6   : > { %v16363_v40 = vadd.f32 %v13046_v60, %v16310_v52  ;;  %6228 = vmatmul.mubr.bf16.vlgmr.msra.gmra.mxu0 %v20739_v12  ;;  %v12947_v57 = vpop.f32.mrf.mxu0  ;;  %6179 = vmatmul.mubr.bf16.gmra.mxu1 %v15948_v54  ;;  %v14683_v60 = vld [vmem:[#allocation9 + $0x330] sm:$0xff]   ;;  %v2136_v42 = vshll.u32 %v16381_v30, 16  ;;  %v2140_v23 = vshrl.u32 %v16381_v30, 16  ;;  %v14910_v54 = vld [vmem:[#allocation2 + $0xe8] sm:$0xff]  ;;  %v20742_v12 = vshll.u32 %v16025_v22, 16 }
 0x1b7   : > { %v13048_v52 = vpop.f32.mrf.mxu1  ;;  %13550 = vmatpush3.bf16.msra.mxu0 %v14681_v26  ;;  %6186 = vmatprep.mubr.bf16.mxu1 %v12223_v49  ;;  %v2487_v61 = vrot.slane %v14910_v54, 5  ;;  %v20741_v26 = vshrl.u32 %v16025_v22, 16  ;;  %v12222_v49 = vcombine.low %v16137_v16, %v16148_v44  ;;  %v12257_v54 = vcombine.high %v16370_v14, %v16374_v36 }
 0x1b8   : > { %20738 = vst [vmem:[#allocation43_spill] sm:$0xff] %v16363_v40  ;;  %v13049_v47 = vadd.f32 %v13048_v52, %v13047_v55  ;;  %6235 = vmatprep.mubr.bf16.mxu0 %v20740_v20  ;;  %v12948_v32 = vpop.f32.mrf.mxu0  ;;  %v2132_v27 = vrot.slane %v20742_v12, 5  ;;  %v14684_v40 = vld [vmem:[#allocation9 + $0x368] sm:$0xff]   ;;  %13551 = vmatprep.subr.bf16.mxu0 %v14682_v50  ;;  %v12065_v22 = vrot.slane %v16376_v41, 9  ;;  %v2110_v12 = vrot.slane %v2109_v11, 4 }
 0x1b9   : > { %v2129_v3 = vrot.slane %v20741_v26, 4  ;;  %v13050_v55 = vpop.f32.mrf.mxu1  ;;  %v16396_v52 = vadd.f32 %v12948_v32, %v12947_v57  ;;  %v2124_v16 = vrot.slane %v2122_v37, 5  ;;  %v16406_v44 = vrot.slane %v2136_v42, 5  ;;  %v14685_v41 = vld [vmem:[#allocation9 + $0x328] sm:$0xff]  }
 0x1ba   : > { %v16399_v20 = vadd.f32 %v13049_v47, %v16316_v15  ;;  %v12950_v26 = vpop.f32.mrf.mxu0  ;;  %v2142_v57 = vrot.slane %v2140_v23, 4  ;;  %v2489_v32 = vrot.slane %v2487_v61, 4  ;;  %v2490_v15 = vrot.slane %v16143_v18, 5  ;;  %v16433_v23 = vld [vmem:[#allocation2 + $0x198] sm:$0xff] }
 0x1bb   : > { %v13051_v10 = vpop.f32.mrf.mxu1  ;;  %13552 = vmatpush3.bf16.msra.mxu0 %v14683_v60  ;;  %v2133_v53 = vor.u32 %v2132_v27, %v2129_v3  ;;  %v2146_v60 = vshll.u32 %v16404_v1, 16  ;;  %v16423_v18 = vsel %vm15563_vm2, %v2110_v12, %v16351_v5  ;;  %v16430_v42 = vsel %vm15563_vm2, %v2120_v46, %v2124_v16 }
 0x1bc   : > { %20743 = vst [vmem:[#allocation44_spill] sm:$0xff] %v16399_v20  ;;  %v13052_v50 = vadd.f32 %v13051_v10, %v13050_v55  ;;  %v12951_v47 = vpop.f32.mrf.mxu0  ;;  %v16409_v20 = vld [vmem:[#allocation2 + $0x130] sm:$0xee]  ;;  %13553 = vmatprep.subr.bf16.mxu0 %v14684_v40  ;;  %v20745_v10 = vcombine.low %v16196_v6, %v16217_v34  ;;  %v20746_v40 = vcombine.high %v16225_v48, %v16238_v7  ;;  %v2160_v6 = vshll.u32 %v16433_v23, 16  ;;  %v14912_v55 = vld [vmem:[#allocation2 + $0x80] sm:$0xff] }
 0x1bd   : > { %v13053_v11 = vpop.f32.mrf.mxu1  ;;  %v16411_v56 = vadd.f32 %v12951_v47, %v12950_v26  ;;  %v2164_v34 = vshrl.u32 %v16433_v23, 16  ;;  %v2494_v26 = vrot.slane %v14912_v55, 5  ;;  %v2134_v12 = vrot.slane %v2133_v53, 4 }
 0x1be   : > { %v16415_v37 = vadd.f32 %v13052_v50, %v16320_v33  ;;  %6236 = vmatmul.mubr.bf16.gmra.mxu0 %v20745_v10  ;;  %6187 = vmatmul.mubr.bf16.gmra.mxu1 %v12222_v49  ;;  %v2143_v33 = vor.u32 %v2142_v57, %v16406_v44  ;;  %v12066_v49 = vrot.slane %v16409_v20, 9  ;;  %v14687_v50 = vld [vmem:[#allocation9 + $0x320] sm:$0xff]   ;;  %v12256_v46 = vcombine.low %v16370_v14, %v16374_v36  ;;  %v14688_v20 = vld [vmem:[#allocation9 + $0x358] sm:$0xff]  }
 0x1bf   : > { %v13054_v27 = vpop.f32.mrf.mxu1  ;;  %6243 = vmatprep.mubr.bf16.mxu0 %v20746_v40  ;;  %6388 = vmatprep.mubr.bf16.mxu1 %v12257_v54  ;;  %v16442_v57 = vsel %vm15940_vm12, %v12065_v22, %v2487_v61  ;;  %v16446_v54 = vsel %vm15940_vm12, %v2489_v32, %v2490_v15  ;;  %v2148_v47 = vrot.slane %v2146_v60, 5  ;;  %v16453_v14 = vld [vmem:[#allocation2] sm:$0x11]  ;;  %v20748_v36 = vshrl.u32 %v16107_v9, 16 }
 0x1c0   : > { %20744 = vst [vmem:[#allocation45_spill] sm:$0xff] %v16415_v37  ;;  %v13055_v5 = vadd.f32 %v13054_v27, %v13053_v11  ;;  %v12953_v3 = vpop.f32.mrf.mxu0  ;;  %13554 = vmatpush3.bf16.msra.mxu0 %v14685_v41  ;;  %v12231_v41 = vcombine.high %v16423_v18, %v16430_v42  ;;  %v20749_v22 = vshll.u32 %v16107_v9, 16  ;;  %v2144_v60 = vrot.slane %v2143_v33, 4  ;;  %v16466_v37 = vld [vmem:[#allocation2 + $0x148] sm:$0xee]  ;;  %v14689_v9 = vld [vmem:[#allocation9 + $0x318] sm:$0xff]  }
 0x1c1   : > { %v13056_v16 = vpop.f32.mrf.mxu1  ;;  %13555 = vmatprep.subr.bf16.mxu0 %v14686_v59  ;;  %v2153_v61 = vrot.slane %v20748_v36, 4  ;;  %v16461_v59 = vrot.slane %v2160_v6, 5  ;;  %v12259_v40 = vcombine.high %v16442_v57, %v16446_v54  ;;  %v2497_v55 = vrot.slane %v16192_v21, 5  ;;  %v14690_v36 = vld [vmem:[#allocation9 + $0x350] sm:$0xff]  }
 0x1c2   : > { %v16449_v11 = vadd.f32 %v13055_v5, %v16344_v43  ;;  %v12954_v53 = vpop.f32.mrf.mxu0  ;;  %v2156_v10 = vrot.slane %v20749_v22, 5  ;;  %v2166_v43 = vrot.slane %v2164_v34, 4  ;;  %v2496_v5 = vrot.slane %v2494_v26, 4  ;;  %v583_v22 = vld [vmem:[#allocation2 + $0x140] sm:$0x11] }
 0x1c3   : > { %v13057_v32 = vpop.f32.mrf.mxu1  ;;  %v16459_v15 = vadd.f32 %v12954_v53, %v12953_v3  ;;  %v2501_v6 = vrot.slane %v16336_v39, 5  ;;  %v14695_v34 = vld [vmem:[#allocation9 + $0x3b8] sm:$0xff]   ;;  %v20751_v21 = vcombine.low %v16225_v48, %v16238_v7  ;;  %v16484_v53 = vsel %vm15563_vm2, %v2134_v12, %v16406_v44  ;;  %v16498_v12 = vld [vmem:[#allocation2 + $0x138] sm:$0xee] }
 0x1c4   : > { %20747 = vst [vmem:[#allocation46_spill] sm:$0xff] %v16449_v11  ;;  %v13058_v27 = vadd.f32 %v13057_v32, %v13056_v16  ;;  %v12956_v11 = vpop.f32.mrf.mxu0  ;;  %13556 = vmatpush3.bf16.msra.mxu0 %v14687_v50  ;;  %v16479_v50 = vsel %vm15940_vm12, %v12066_v49, %v2494_v26  ;;  %v2157_v39 = vor.u32 %v2156_v10, %v2153_v61  ;;  %v584_v61 = vsel %vm15524_vm11, 0, %v583_v22  ;;  %v16512_v22 = vld [vmem:[#allocation2 + $0xc8] sm:$0x11] }
 0x1c5   : > { %13557 = vmatprep.subr.bf16.mxu0 %v14688_v20  ;;  %v14696_v20 = vld [vmem:[#allocation9 + $0x3f0] sm:$0xff]   ;;  %v16490_v48 = vsel %vm15563_vm2, %v2144_v60, %v2148_v47  ;;  %v2167_v7 = vor.u32 %v2166_v43, %v16461_v59  ;;  %v16496_v44 = vsel %vm15940_vm12, %v2496_v5, %v2497_v55  ;;  %v12230_v10 = vcombine.low %v16423_v18, %v16430_v42 }
 0x1c6   : > { %v16472_v3 = vadd.f32 %v13058_v27, %v16360_v0  ;;  %6244 = vmatmul.mubr.bf16.gmra.mxu0 %v20751_v21  ;;  %v12957_v16 = vpop.f32.mrf.mxu0  ;;  %6389 = vmatmul.mubr.bf16.vlgmr.msra.gmra.mxu1 %v12256_v46  ;;  %v2170_v0 = vshll.u32 %v16453_v14, 16  ;;  %v16500_v46 = vld [vmem:[#allocation2 + $0x8] sm:$0xff]  ;;  %v12067_v60 = vrot.slane %v16466_v37, 9  ;;  %v2503_v43 = vrot.slane %v2501_v6, 4  ;;  %v14697_v5 = vld [vmem:[#allocation9 + $0x3b0] sm:$0xff]  }
 0x1c7   : > { %v16486_v32 = vadd.f32 %v12957_v16, %v12956_v11  ;;  %6251 = vmatprep.mubr.bf16.mxu0 %v12231_v41  ;;  %6396 = vmatprep.mubr.bf16.mxu1 %v12259_v40  ;;  %v2184_v11 = vshll.u32 %v16500_v46, 16  ;;  %v2188_v47 = vshrl.u32 %v16500_v46, 16  ;;  %v14691_v41 = vld [vmem:[#allocation9 + $0x310] sm:$0xff]   ;;  %v2504_v27 = vrot.slane %v16357_v13, 5  ;;  %v14692_v40 = vld [vmem:[#allocation9 + $0x348] sm:$0xff]  }
 0x1c8   : > { %20750 = vst [vmem:[#allocation47_spill] sm:$0xff] %v16472_v3  ;;  %v13059_v49 = vpop.f32.mrf.mxu1  ;;  %v12959_v26 = vpop.f32.mrf.mxu0  ;;  %13558 = vmatpush3.bf16.msra.mxu0 %v14689_v9  ;;  %13662 = vmatpush3.bf16.msra.mxu1 %v14695_v34  ;;  %585 = vst [vmem:[#allocation2 + $0x140] sm:$0x11] %v584_v61  ;;  %v12233_v9 = vcombine.high %v16484_v53, %v16490_v48  ;;  %v2158_v16 = vrot.slane %v2157_v39, 4  ;;  %v20752_v18 = vshrl.u32 %v16152_v4, 16  ;;  %v20753_v37 = vshll.u32 %v16152_v4, 16 }
 0x1c9   : > { %13559 = vmatprep.subr.bf16.mxu0 %v14690_v36  ;;  %13663 = vmatprep.subr.bf16.mxu1 %v14696_v20  ;;  %v14698_v36 = vld [vmem:[#allocation9 + $0x3e8] sm:$0xff]   ;;  %v2168_v33 = vrot.slane %v2167_v7, 4  ;;  %v2172_v3 = vrot.slane %v2170_v0, 5  ;;  %v12261_v39 = vcombine.high %v16479_v50, %v16496_v44  ;;  %v16526_v17 = vrot.slane %v2184_v11, 5  ;;  %v14702_v0 = vld [vmem:[#allocation9 + $0x340] sm:$0xff]  }
 0x1ca   : > { %v13060_v55 = vpop.f32.mrf.mxu1  ;;  %v12960_v21 = vpop.f32.mrf.mxu0  ;;  %v16516_v42 = vrot.slane %v20752_v18, 4  ;;  %v16520_v13 = vrot.slane %v20753_v37, 5  ;;  %v2190_v18 = vrot.slane %v2188_v47, 4  ;;  %v14699_v4 = vld [vmem:[#allocation9 + $0x3a8] sm:$0xff]   ;;  %v16533_v20 = vsel %vm15940_vm12, %v12067_v60, %v2501_v6 }
 0x1cb   : > { %v13061_v34 = vadd.f32 %v13060_v55, %v13059_v49  ;;  %v16522_v61 = vadd.f32 %v12960_v21, %v12959_v26  ;;  %v12068_v7 = vrot.slane %v16498_v12, 9  ;;  %v16538_v26 = vsel %vm15940_vm12, %v2503_v43, %v2504_v27  ;;  %v14700_v12 = vld [vmem:[#allocation9 + $0x3e0] sm:$0xff]  }
 0x1cc   : > { %v13062_v29 = vpop.f32.mrf.mxu1  ;;  %v12962_v31 = vpop.f32.mrf.mxu0  ;;  %13560 = vmatpush3.bf16.msra.mxu0 %v14691_v41  ;;  %13664 = vmatpush3.bf16.msra.mxu1 %v14697_v5  ;;  %v2508_v47 = vrot.slane %v16381_v30, 5  ;;  %v2181_v6 = vor.u32 %v16520_v13, %v16516_v42  ;;  %v20754_v41 = vcombine.low %v16442_v57, %v16446_v54  ;;  %v2194_v30 = vshll.u32 %v16512_v22, 16  ;;  %v16562_v5 = vld [vmem:[#allocation2 + $0x160] sm:$0xee]  ;;  %v14701_v55 = vld [vmem:[#allocation9 + $0x3a0] sm:$0xff]  }
 0x1cd   : > { %v16529_v37 = vadd.f32 %v13061_v34, %v16396_v52  ;;  %13561 = vmatprep.subr.bf16.mxu0 %v14692_v40  ;;  %v16544_v52 = vsel %vm15563_vm2, %v2158_v16, %v16461_v59  ;;  %13665 = vmatprep.subr.bf16.mxu1 %v14698_v36  ;;  %v20755_v43 = vshrl.u32 %v16211_v19, 16  ;;  %v16560_v40 = vsel %vm15563_vm2, %v2168_v33, %v2172_v3  ;;  %v14703_v21 = vld [vmem:[#allocation9 + $0x300] sm:$0xff]  }
 0x1ce   : > { %v13063_v49 = vpop.f32.mrf.mxu1  ;;  %6252 = vmatmul.mubr.bf16.gmra.mxu0 %v12230_v10  ;;  %v12963_v11 = vpop.f32.mrf.mxu0  ;;  %6397 = vmatmul.mubr.bf16.gmra.mxu1 %v20754_v41  ;;  %v2191_v57 = vor.u32 %v2190_v18, %v16526_v17  ;;  %v12260_v33 = vcombine.low %v16479_v50, %v16496_v44  ;;  %v20756_v3 = vshll.u32 %v16211_v19, 16  ;;  %v20757_v13 = vrot.slane %v16124_v63, 4  ;;  %v16585_v19 = vld [vmem:[#allocation2 + $0x68] sm:$0xee]  ;;  %v14704_v44 = vld [vmem:[#allocation9 + $0x3d8] sm:$0xff]  }
 0x1cf   : > { %v13064_v10 = vadd.f32 %v13063_v49, %v13062_v29  ;;  %v16551_v60 = vadd.f32 %v12963_v11, %v12962_v31  ;;  %6259 = vmatprep.mubr.bf16.mxu0 %v12233_v9  ;;  %v16556_v27 = vrot.slane %v20755_v43, 4  ;;  %6404 = vmatprep.mubr.bf16.mxu1 %v12261_v39  ;;  %v16565_v29 = vld [vmem:[#allocation2 + $0xa8] sm:$0xff]  ;;  %v1365_v9 = vld [vmem:[#allocation2 + $0x140] sm:$0x11]  ;;  %v12263_v39 = vcombine.high %v16533_v20, %v16538_v26 }
 0x1d0   : > { %v13065_v59 = vpop.f32.mrf.mxu1  ;;  %v2208_v31 = vshll.u32 %v16565_v29, 16  ;;  %v2212_v54 = vshrl.u32 %v16565_v29, 16  ;;  %13562 = vmatpush3.bf16.msra.mxu0 %v14693_v2  ;;  %v2204_v42 = vrot.slane %v20756_v3, 5  ;;  %13666 = vmatpush3.bf16.msra.mxu1 %v14699_v4  ;;  %v1366_v36 = vsel %vm15516_vm10, %v20757_v13, %v1365_v9  ;;  %v14714_v2 = vld [vmem:[#allocation9 + $0x478] sm:$0xff]   ;;  %v14710_v13 = vld [vmem:[#allocation9 + $0x3c0] sm:$0xff]  }
 0x1d1   : > { %v16570_v16 = vadd.f32 %v13064_v10, %v16411_v56  ;;  %13563 = vmatprep.subr.bf16.mxu0 %v14702_v0  ;;  %v12232_v56 = vcombine.low %v16484_v53, %v16490_v48  ;;  %v2510_v18 = vrot.slane %v2508_v47, 4  ;;  %v2511_v50 = vrot.slane %v16404_v1, 5  ;;  %13667 = vmatprep.subr.bf16.mxu1 %v14700_v12  ;;  %1367 = vst [vmem:[#allocation2 + $0x140] sm:$0x11] %v1366_v36  ;;  %v16590_v43 = vld [vmem:[#allocation2 + $0x40] sm:$0x11] }
 0x1d2   : > { %v13066_v34 = vpop.f32.mrf.mxu1  ;;  %v12235_v4 = vcombine.high %v16544_v52, %v16560_v40  ;;  %v2515_v0 = vrot.slane %v16433_v23, 5  ;;  %v2182_v49 = vrot.slane %v2181_v6, 4  ;;  %v2192_v41 = vrot.slane %v2191_v57, 4 }
 0x1d3   : > { %v13067_v63 = vadd.f32 %v13066_v34, %v13065_v59  ;;  %v2196_v10 = vrot.slane %v2194_v30, 5  ;;  %v16592_v53 = vrot.slane %v2208_v31, 5  ;;  %v2214_v1 = vrot.slane %v2212_v54, 4  ;;  %v14705_v30 = vld [vmem:[#allocation9 + $0x398] sm:$0xff]   ;;  %v16608_v54 = vld [vmem:[#allocation2 + $0xd8] sm:$0xff] }
 0x1d4   : > { %v13068_v11 = vpop.f32.mrf.mxu1  ;;  %13564 = vmatpush3.bf16.msra.mxu0 %v14703_v21  ;;  %v16599_v59 = vsel %vm15940_vm12, %v12068_v7, %v2508_v47  ;;  %v12069_v9 = vrot.slane %v16562_v5, 9  ;;  %v2205_v6 = vor.u32 %v2204_v42, %v16556_v27  ;;  %13668 = vmatpush3.bf16.msra.mxu1 %v14701_v55  ;;  %v16605_v31 = vsel %vm15940_vm12, %v2510_v18, %v2511_v50  ;;  %v14706_v21 = vld [vmem:[#allocation9 + $0x3d0] sm:$0xff]  }
 0x1d5   : > { %v16595_v48 = vadd.f32 %v13067_v63, %v16459_v15  ;;  %v12965_v12 = vpop.f32.mrf.mxu0  ;;  %13773 = vmatprep.subr.bf16.mxu0 %v14714_v2  ;;  %v2518_v15 = vrot.slane %v16453_v14, 5  ;;  %v2232_v7 = vshll.u32 %v16608_v54, 16  ;;  %v2236_v47 = vshrl.u32 %v16608_v54, 16  ;;  %13669 = vmatprep.subr.bf16.mxu1 %v14704_v44 }
 0x1d6   : > { %v13069_v57 = vpop.f32.mrf.mxu1  ;;  %6260 = vmatmul.mubr.bf16.gmra.mxu0 %v12232_v56  ;;  %6405 = vmatmul.mubr.bf16.gmra.mxu1 %v12260_v33  ;;  %v2517_v3 = vrot.slane %v2515_v0, 4  ;;  %v16617_v42 = vsel %vm15563_vm2, %v2182_v49, %v16526_v17  ;;  %v16624_v33 = vsel %vm15563_vm2, %v2192_v41, %v2196_v10  ;;  %v2215_v34 = vor.u32 %v2214_v1, %v16592_v53  ;;  %v16636_v41 = vld [vmem:[#allocation2 + $0x188] sm:$0x11] }
 0x1d7   : > { %v13070_v27 = vadd.f32 %v13069_v57, %v13068_v11  ;;  %v12966_v55 = vpop.f32.mrf.mxu0  ;;  %6267 = vmatprep.mubr.bf16.mxu0 %v12235_v4  ;;  %6412 = vmatprep.mubr.bf16.mxu1 %v12263_v39  ;;  %v2218_v56 = vshll.u32 %v16590_v43, 16  ;;  %v2522_v17 = vrot.slane %v16500_v46, 5  ;;  %v2206_v44 = vrot.slane %v2205_v6, 4  ;;  %v14707_v4 = vld [vmem:[#allocation9 + $0x390] sm:$0xff]   ;;  %v14708_v57 = vld [vmem:[#allocation9 + $0x3c8] sm:$0xff]  }
 0x1d8   : > { %v13071_v36 = vpop.f32.mrf.mxu1  ;;  %v16620_v2 = vadd.f32 %v12966_v55, %v12965_v12  ;;  %v20758_v63 = vshrl.u32 %v16232_v51, 16  ;;  %13670 = vmatpush3.bf16.msra.mxu1 %v14705_v30  ;;  %v12234_v11 = vcombine.low %v16544_v52, %v16560_v40  ;;  %v20759_v10 = vshll.u32 %v16232_v51, 16 }
 0x1d9   : > { %v16629_v18 = vadd.f32 %v13070_v27, %v16486_v32  ;;  %v12968_v50 = vpop.f32.mrf.mxu0  ;;  %v16640_v32 = vrot.slane %v2232_v7, 5  ;;  %v2238_v12 = vrot.slane %v2236_v47, 4  ;;  %13671 = vmatprep.subr.bf16.mxu1 %v14706_v21  ;;  %v12262_v6 = vcombine.low %v16533_v20, %v16538_v26  ;;  %v14709_v21 = vld [vmem:[#allocation9 + $0x388] sm:$0xff]  }
 0x1da   : > { %v2225_v39 = vrot.slane %v20758_v63, 4  ;;  %v13072_v49 = vpop.f32.mrf.mxu1  ;;  %v2228_v1 = vrot.slane %v20759_v10, 5  ;;  %v12265_v30 = vcombine.high %v16599_v59, %v16605_v31  ;;  %v12237_v52 = vcombine.high %v16617_v42, %v16624_v33 }
 0x1db   : > { %v13073_v27 = vadd.f32 %v13072_v49, %v13071_v36  ;;  %v12969_v55 = vpop.f32.mrf.mxu0  ;;  %v2525_v51 = vrot.slane %v16512_v22, 5  ;;  %v2216_v7 = vrot.slane %v2215_v34, 4  ;;  %v2220_v47 = vrot.slane %v2218_v56, 5 }
 0x1dc   : > { %v13074_v40 = vpop.f32.mrf.mxu1  ;;  %v16648_v63 = vadd.f32 %v12969_v55, %v12968_v50  ;;  %13672 = vmatpush3.bf16.msra.mxu1 %v14707_v4  ;;  %v2524_v36 = vrot.slane %v2522_v17, 4  ;;  %v2229_v49 = vor.u32 %v2228_v1, %v2225_v39  ;;  %v16659_v22 = vsel %vm15563_vm2, %v2206_v44, %v16592_v53  ;;  %v2421_v4 = vld [vmem:[#allocation2 + $0x118] sm:$0xee]  ;;  %v14713_v53 = vld [vmem:[#allocation9 + $0x380] sm:$0xff]  }
 0x1dd   : > { %v16652_v10 = vadd.f32 %v13073_v27, %v16522_v61  ;;  %v12971_v20 = vpop.f32.mrf.mxu0  ;;  %13673 = vmatprep.subr.bf16.mxu1 %v14708_v57  ;;  %v2239_v61 = vor.u32 %v2238_v12, %v16640_v32  ;;  %v2242_v34 = vshll.u32 %v16636_v41, 16  ;;  %v16667_v39 = vsel %vm15563_vm2, %v2216_v7, %v2220_v47 }
 0x1de   : > { %v13075_v26 = vpop.f32.mrf.mxu1  ;;  %6268 = vmatmul.mubr.bf16.gmra.mxu0 %v12234_v11  ;;  %6413 = vmatmul.mubr.bf16.gmra.mxu1 %v12262_v6  ;;  %v16669_v11 = vld [vmem:[#allocation2 + $0xc0] sm:$0xff]  ;;  %v16682_v12 = vsel %vm15940_vm12, %v12069_v9, %v2515_v0  ;;  %v16688_v6 = vsel %vm15940_vm12, %v2517_v3, %v2518_v15  ;;  %v2529_v5 = vrot.slane %v16565_v29, 5  ;;  %v20760_v0 = vshrl.u32 %v16254_v25, 16 }
 0x1df   : > { %v13076_v50 = vadd.f32 %v13075_v26, %v13074_v40  ;;  %v12972_v55 = vpop.f32.mrf.mxu0  ;;  %6275 = vmatprep.mubr.bf16.mxu0 %v12237_v52  ;;  %6420 = vmatprep.mubr.bf16.mxu1 %v12265_v30  ;;  %v2256_v1 = vshll.u32 %v16669_v11, 16  ;;  %v2260_v57 = vshrl.u32 %v16669_v11, 16  ;;  %v12236_v30 = vcombine.low %v16617_v42, %v16624_v33 }
 0x1e0   : > { %v16663_v56 = vadd.f32 %v12972_v55, %v12971_v20  ;;  %13674 = vmatpush3.bf16.msra.mxu1 %v14709_v21  ;;  %v2230_v52 = vrot.slane %v2229_v49, 4  ;;  %v2249_v9 = vrot.slane %v20760_v0, 4  ;;  %v20761_v14 = vshll.u32 %v16254_v25, 16 }
 0x1e1   : > { %v16674_v44 = vadd.f32 %v13076_v50, %v16551_v60  ;;  %v12974_v27 = vpop.f32.mrf.mxu0  ;;  %v16692_v60 = vld [vmem:[#allocation2 + $0x50] sm:$0x11]  ;;  %13675 = vmatprep.subr.bf16.mxu1 %v14710_v13  ;;  %v12264_v15 = vcombine.low %v16599_v59, %v16605_v31  ;;  %v12239_v42 = vcombine.high %v16659_v22, %v16667_v39  ;;  %v2240_v33 = vrot.slane %v2239_v61, 4 }
 0x1e2   : > { %v13077_v23 = vpop.f32.mrf.mxu1  ;;  %v2252_v40 = vrot.slane %v20761_v14, 5  ;;  %v2244_v7 = vrot.slane %v2242_v34, 5  ;;  %v12267_v29 = vcombine.high %v16682_v12, %v16688_v6  ;;  %v16707_v20 = vrot.slane %v2256_v1, 5 }
 0x1e3   : > { %v12975_v3 = vpop.f32.mrf.mxu0  ;;  %v2262_v25 = vrot.slane %v2260_v57, 4  ;;  %v20762_v59 = vrot.slane %v16585_v19, 9  ;;  %v16719_v49 = vsel %vm15940_vm12, %v2524_v36, %v2525_v51  ;;  %v12071_v50 = vrot.slane %v2421_v4, 9  ;;  %v16723_v57 = vld [vmem:[#allocation2 + $0x38] sm:$0xff] }
 0x1e4   : > { %v13078_v47 = vpop.f32.mrf.mxu1  ;;  %v16705_v21 = vadd.f32 %v12975_v3, %v12974_v27  ;;  %13676 = vmatpush3.bf16.msra.mxu1 %v14713_v53  ;;  %v2531_v61 = vrot.slane %v2529_v5, 4  ;;  %v2532_v34 = vrot.slane %v16590_v43, 5  ;;  %v2253_v1 = vor.u32 %v2252_v40, %v2249_v9 }
 0x1e5   : > { %v13079_v26 = vadd.f32 %v13078_v47, %v13077_v23  ;;  %v12977_v13 = vpop.f32.mrf.mxu0  ;;  %v16715_v31 = vsel %vm15940_vm12, %v20762_v59, %v2522_v17  ;;  %v2266_v46 = vshll.u32 %v16692_v60, 16  ;;  %v2322_v19 = vshll.u32 %v16723_v57, 16  ;;  %v14921_v57 = vld [vmem:[#allocation2 + $0xf0] sm:$0xff] }
 0x1e6   : > { %v13080_v55 = vpop.f32.mrf.mxu1  ;;  %6276 = vmatmul.mubr.bf16.gmra.mxu0 %v12236_v30  ;;  %6421 = vmatmul.mubr.bf16.gmra.mxu1 %v12264_v15  ;;  %v16732_v36 = vsel %vm15563_vm2, %v2230_v52, %v16640_v32  ;;  %v16736_v43 = vsel %vm15563_vm2, %v2240_v33, %v2244_v7  ;;  %v2263_v27 = vor.u32 %v2262_v25, %v16707_v20 }
 0x1e7   : > { %v16727_v17 = vadd.f32 %v13079_v26, %v16620_v2  ;;  %v12978_v51 = vpop.f32.mrf.mxu0  ;;  %6283 = vmatprep.mubr.bf16.mxu0 %v12239_v42  ;;  %6428 = vmatprep.mubr.bf16.mxu1 %v12267_v29  ;;  %v16741_v2 = vld [vmem:[#allocation2 + $0x30] sm:$0xff]  ;;  %v12266_v32 = vcombine.low %v16682_v12, %v16688_v6  ;;  %v12269_v52 = vcombine.high %v16715_v31, %v16719_v49  ;;  %v2254_v42 = vrot.slane %v2253_v1, 4 }
 0x1e8   : > { %v13081_v4 = vpop.f32.mrf.mxu1  ;;  %v16738_v53 = vadd.f32 %v12978_v51, %v12977_v13  ;;  %v2280_v30 = vshll.u32 %v16741_v2, 16  ;;  %v2284_v23 = vshrl.u32 %v16741_v2, 16  ;;  %v16751_v14 = vsel %vm15940_vm12, %v12071_v50, %v2529_v5  ;;  %v16770_v13 = vld [vmem:[#allocation2 + $0x78] sm:$0x11]  ;;  %v16779_v51 = vld [vmem:[#allocation2 + $0x1a0] sm:$0xff] }
 0x1e9   : > { %v13082_v0 = vadd.f32 %v13081_v4, %v13080_v55  ;;  %v12980_v9 = vpop.f32.mrf.mxu0  ;;  %v12238_v15 = vcombine.low %v16659_v22, %v16667_v39  ;;  %v16757_v3 = vsel %vm15940_vm12, %v2531_v61, %v2532_v34  ;;  %v2268_v33 = vrot.slane %v2266_v46, 5  ;;  %v2422_v61 = vld [vmem:[#allocation2 + $0x90] sm:$0xee] }
 0x1ea   : > { %v13083_v40 = vpop.f32.mrf.mxu1  ;;  %v12241_v7 = vcombine.high %v16732_v36, %v16736_v43  ;;  %v20763_v5 = vshrl.u32 %v16270_v35, 16  ;;  %v20764_v29 = vshll.u32 %v16270_v35, 16  ;;  %v2264_v26 = vrot.slane %v2263_v27, 4 }
 0x1eb   : > { %v16760_v12 = vadd.f32 %v13082_v0, %v16648_v63  ;;  %v12981_v6 = vpop.f32.mrf.mxu0  ;;  %v16772_v59 = vrot.slane %v2280_v30, 5  ;;  %v2286_v63 = vrot.slane %v2284_v23, 4  ;;  %v12268_v55 = vcombine.low %v16715_v31, %v16719_v49 }
 0x1ec   : > { %v2273_v47 = vrot.slane %v20763_v5, 4  ;;  %v2276_v25 = vrot.slane %v20764_v29, 5  ;;  %v13084_v22 = vpop.f32.mrf.mxu1  ;;  %v16768_v39 = vadd.f32 %v12981_v6, %v12980_v9  ;;  %v12271_v35 = vcombine.high %v16751_v14, %v16757_v3 }
 0x1ed   : > { %v13085_v50 = vadd.f32 %v13084_v22, %v13083_v40  ;;  %v2536_v46 = vrot.slane %v16608_v54, 5  ;;  %v2304_v4 = vshll.u32 %v16779_v51, 16  ;;  %v2308_v27 = vshrl.u32 %v16779_v51, 16  ;;  %v16797_v40 = vld [vmem:[#allocation2 + $0x168] sm:$0x11] }
 0x1ee   : > { %v13086_v34 = vpop.f32.mrf.mxu1  ;;  %v12983_v1 = vpop.f32.mrf.mxu0  ;;  %6284 = vmatmul.mubr.bf16.gmra.mxu0 %v12238_v15  ;;  %6429 = vmatmul.mubr.bf16.gmra.mxu1 %v12266_v32  ;;  %v16789_v31 = vsel %vm15563_vm2, %v2254_v42, %v16707_v20  ;;  %v2277_v49 = vor.u32 %v2276_v25, %v2273_v47  ;;  %v2290_v23 = vshll.u32 %v16770_v13, 16  ;;  %v16794_v9 = vsel %vm15563_vm2, %v2264_v26, %v2268_v33 }
 0x1ef   : > { %v16784_v30 = vadd.f32 %v13085_v50, %v16663_v56  ;;  %6291 = vmatprep.mubr.bf16.mxu0 %v12241_v7  ;;  %6436 = vmatprep.mubr.bf16.mxu1 %v12269_v52  ;;  %v2287_v56 = vor.u32 %v2286_v63, %v16772_v59  ;;  %v20765_v32 = vshrl.u32 %v16277_v45, 16  ;;  %v20766_v20 = vshll.u32 %v16277_v45, 16 }
 0x1f0   : > { %v13087_v54 = vpop.f32.mrf.mxu1  ;;  %v12984_v0 = vpop.f32.mrf.mxu0  ;;  %v12072_v5 = vrot.slane %v2422_v61, 9  ;;  %v2539_v52 = vrot.slane %v16636_v41, 5  ;;  %v12240_v33 = vcombine.low %v16732_v36, %v16736_v43  ;;  %v2538_v25 = vrot.slane %v2536_v46, 4 }
 0x1f1   : > { %v2297_v15 = vrot.slane %v20765_v32, 4  ;;  %v2300_v42 = vrot.slane %v20766_v20, 5  ;;  %v13088_v6 = vadd.f32 %v13087_v54, %v13086_v34  ;;  %v16803_v7 = vadd.f32 %v12984_v0, %v12983_v1  ;;  %v2423_v1 = vld [vmem:[#allocation2 + $0xa0] sm:$0xee] }
 0x1f2   : > { %v13089_v47 = vpop.f32.mrf.mxu1  ;;  %v12986_v29 = vpop.f32.mrf.mxu0  ;;  %v16808_v22 = vrot.slane %v2304_v4, 5  ;;  %v2310_v26 = vrot.slane %v2308_v27, 4  ;;  %v12243_v45 = vcombine.high %v16789_v31, %v16794_v9  ;;  %v2543_v50 = vrot.slane %v16669_v11, 5 }
 0x1f3   : > { %v16811_v63 = vadd.f32 %v13088_v6, %v16705_v21  ;;  %v2278_v61 = vrot.slane %v2277_v49, 4  ;;  %v2288_v54 = vrot.slane %v2287_v56, 4  ;;  %v2292_v0 = vrot.slane %v2290_v23, 5  ;;  %v16828_v23 = vld [vmem:[#allocation2 + $0x120] sm:$0xff] }
 0x1f4   : > { %v13090_v34 = vpop.f32.mrf.mxu1  ;;  %v12987_v41 = vpop.f32.mrf.mxu0  ;;  %v2301_v32 = vor.u32 %v2300_v42, %v2297_v15  ;;  %v2314_v36 = vshll.u32 %v16797_v40, 16  ;;  %v16821_v21 = vsel %vm15940_vm12, %v12072_v5, %v2536_v46  ;;  %v16825_v11 = vsel %vm15940_vm12, %v2538_v25, %v2539_v52 }
 0x1f5   : > { %v13091_v43 = vadd.f32 %v13090_v34, %v13089_v47  ;;  %v16817_v4 = vadd.f32 %v12987_v41, %v12986_v29  ;;  %v2311_v49 = vor.u32 %v2310_v26, %v16808_v22  ;;  %v2328_v56 = vshll.u32 %v16828_v23, 16 }
 0x1f6   : > { %v13092_v27 = vpop.f32.mrf.mxu1  ;;  %v13117_v20 = vpop.f32.mrf.mxu0  ;;  %6292 = vmatmul.mubr.bf16.gmra.mxu0 %v12240_v33  ;;  %v2332_v15 = vshrl.u32 %v16828_v23, 16  ;;  %6437 = vmatmul.mubr.bf16.gmra.mxu1 %v12268_v55  ;;  %v12073_v46 = vrot.slane %v2423_v1, 9  ;;  %v2545_v6 = vrot.slane %v2543_v50, 4  ;;  %v2546_v5 = vrot.slane %v16692_v60, 5 }
 0x1f7   : > { %v16833_v42 = vadd.f32 %v13091_v43, %v16738_v53  ;;  %6299 = vmatprep.mubr.bf16.mxu0 %v12243_v45  ;;  %6444 = vmatprep.mubr.bf16.mxu1 %v12271_v35  ;;  %v12242_v29 = vcombine.low %v16789_v31, %v16794_v9  ;;  %v16841_v33 = vsel %vm15563_vm2, %v2278_v61, %v16772_v59  ;;  %v2302_v55 = vrot.slane %v2301_v32, 4  ;;  %v16847_v45 = vld [vmem:[#allocation2 + $0xe0] sm:$0x11] }
 0x1f8   : > { %v13093_v47 = vpop.f32.mrf.mxu1  ;;  %v13118_v52 = vpop.f32.mrf.mxu0  ;;  %v16845_v53 = vsel %vm15563_vm2, %v2288_v54, %v2292_v0  ;;  %v20767_v60 = vshrl.u32 %v16288_v58, 16  ;;  %v2324_v31 = vrot.slane %v2322_v19, 5  ;;  %v2312_v34 = vrot.slane %v2311_v49, 4 }
 0x1f9   : > { %v13094_v25 = vadd.f32 %v13093_v47, %v13092_v27  ;;  %v13119_v26 = vadd.f32 %v13118_v52, %v13117_v20  ;;  %v2316_v41 = vrot.slane %v2314_v36, 5  ;;  %v16853_v59 = vrot.slane %v2328_v56, 5 }
 0x1fa   : > { %v2321_v35 = vrot.slane %v20767_v60, 4  ;;  %v13120_v9 = vpop.f32.mrf.mxu0  ;;  %v2334_v61 = vrot.slane %v2332_v15, 4  ;;  %v12270_v54 = vcombine.low %v16751_v14, %v16757_v3  ;;  %v12245_v58 = vcombine.high %v16841_v33, %v16845_v53 }
 0x1fb   : > { %v16856_v1 = vadd.f32 %v13094_v25, %v16768_v39  ;;  %v16861_v0 = vadd.f32 %v13119_v26, %v16230_v62  ;;  %v2343_v19 = vshrl.u32 %v14921_v57, 16  ;;  %v12273_v32 = vcombine.high %v16821_v21, %v16825_v11  ;;  %v2424_v39 = vld [vmem:[#allocation2 + $0x110] sm:$0xee] }
 0x1fc   : > { %v13121_v36 = vpop.f32.mrf.mxu0  ;;  %v16869_v43 = vsel %vm15940_vm12, %v12073_v46, %v2543_v50  ;;  %v16873_v14 = vsel %vm15940_vm12, %v2545_v6, %v2546_v5  ;;  %v2325_v62 = vor.u32 %v2324_v31, %v2321_v35  ;;  %v2338_v3 = vshll.u32 %v16847_v45, 16  ;;  %v2425_v5 = vld [vmem:[#allocation2 + $0x20] sm:$0xee] }
 0x1fd   : > { %v13122_v27 = vadd.f32 %v13121_v36, %v13120_v9  ;;  %v2346_v20 = vshll.u32 %v14921_v57, 16  ;;  %v12272_v49 = vcombine.low %v16821_v21, %v16825_v11  ;;  %v16881_v50 = vsel %vm15563_vm2, %v2302_v55, %v16808_v22  ;;  %v16891_v11 = vld [vmem:[#allocation2 + $0xb8] sm:$0xff] }
 0x1fe   : > { %v13123_v56 = vpop.f32.mrf.mxu0  ;;  %6300 = vmatmul.mubr.bf16.gmra.mxu0 %v12242_v29  ;;  %v16885_v15 = vsel %vm15563_vm2, %v2312_v34, %v2316_v41  ;;  %v13095_v46 = vpop.f32.mrf.mxu1  ;;  %6445 = vmatmul.mubr.bf16.gmra.mxu1 %v12270_v54  ;;  %v2335_v21 = vor.u32 %v2334_v61, %v16853_v59  ;;  %v2352_v47 = vshll.u32 %v16891_v11, 16  ;;  %v2356_v22 = vshrl.u32 %v16891_v11, 16  ;;  %v16903_v54 = vld [vmem:[#allocation2 + $0x158] sm:$0x11] }
 0x1ff   : > { %v16888_v6 = vadd.f32 %v13122_v27, %v16246_v24  ;;  %6307 = vmatprep.mubr.bf16.mxu0 %v12245_v58  ;;  %6452 = vmatprep.mubr.bf16.mxu1 %v12273_v32  ;;  %v12275_v52 = vcombine.high %v16869_v43, %v16873_v14  ;;  %v12074_v55 = vrot.slane %v2424_v39, 9  ;;  %v2550_v25 = vrot.slane %v16741_v2, 5  ;;  %v20768_v2 = vld [vmem:[#allocation32_spill] sm:$0xff] }
 0x200   : > { %v13124_v29 = vpop.f32.mrf.mxu0  ;;  %v2557_v24 = vrot.slane %v16779_v51, 5  ;;  %v13096_v26 = vpop.f32.mrf.mxu1  ;;  %v12244_v35 = vcombine.low %v16841_v33, %v16845_v53  ;;  %v2326_v31 = vrot.slane %v2325_v62, 4  ;;  %v2340_v9 = vrot.slane %v2338_v3, 5 }
 0x201   : > { %v13125_v60 = vadd.f32 %v13124_v29, %v13123_v56  ;;  %v13097_v34 = vadd.f32 %v13096_v26, %v13095_v46  ;;  %v12247_v61 = vcombine.high %v16881_v50, %v16885_v15  ;;  %v2345_v58 = vrot.slane %v2343_v19, 4 }
 0x202   : > { %v13126_v41 = vpop.f32.mrf.mxu0  ;;  %v2348_v57 = vrot.slane %v2346_v20, 5  ;;  %v13098_v32 = vpop.f32.mrf.mxu1  ;;  %v2336_v51 = vrot.slane %v2335_v21, 4  ;;  %v16908_v39 = vrot.slane %v2352_v47, 5  ;;  %v2358_v27 = vrot.slane %v2356_v22, 4 }
 0x203   : > { %v16906_v36 = vadd.f32 %v13125_v60, %v20768_v2  ;;  %v16911_v33 = vadd.f32 %v13097_v34, %v16803_v7  ;;  %v2552_v62 = vrot.slane %v2550_v25, 4  ;;  %v2553_v3 = vrot.slane %v16770_v13, 5 }
 0x204   : > { %v13127_v53 = vpop.f32.mrf.mxu0  ;;  %v12075_v56 = vrot.slane %v2425_v5, 9  ;;  %v13099_v46 = vpop.f32.mrf.mxu1  ;;  %v12274_v19 = vcombine.low %v16869_v43, %v16873_v14  ;;  %v2559_v29 = vrot.slane %v2557_v24, 4  ;;  %v2560_v26 = vrot.slane %v16797_v40, 5  ;;  %v20769_v43 = vld [vmem:[#allocation33_spill] sm:$0xff] }
 0x205   : > { %v13128_v20 = vadd.f32 %v13127_v53, %v13126_v41  ;;  %v13100_v21 = vadd.f32 %v13099_v46, %v13098_v32  ;;  %v16919_v7 = vsel %vm15940_vm12, %v12074_v55, %v2550_v25  ;;  %v16924_v13 = vsel %vm15563_vm2, %v2326_v31, %v16853_v59 }
 0x206   : > { %v13129_v47 = vpop.f32.mrf.mxu0  ;;  %6308 = vmatmul.mubr.bf16.gmra.mxu0 %v12244_v35  ;;  %v2349_v5 = vor.u32 %v2348_v57, %v2345_v58  ;;  %v13229_v22 = vpop.f32.mrf.mxu1  ;;  %6453 = vmatmul.mubr.bf16.gmra.mxu1 %v12272_v49  ;;  %v16931_v40 = vsel %vm15563_vm2, %v2336_v51, %v2340_v9  ;;  %v2359_v60 = vor.u32 %v2358_v27, %v16908_v39  ;;  %v2362_v55 = vshll.u32 %v16903_v54, 16  ;;  %v16942_v35 = vld [vmem:[#allocation2 + $0x178] sm:$0xff] }
 0x207   : > { %v16927_v14 = vadd.f32 %v13128_v20, %v20769_v43  ;;  %6315 = vmatprep.mubr.bf16.mxu0 %v12247_v61  ;;  %v16936_v25 = vadd.f32 %v13100_v21, %v16817_v4  ;;  %6460 = vmatprep.mubr.bf16.mxu1 %v12275_v52  ;;  %v16940_v59 = vsel %vm15940_vm12, %v2552_v62, %v2553_v3  ;;  %v2376_v31 = vshll.u32 %v16942_v35, 16  ;;  %v20770_v51 = vld [vmem:[#allocation34_spill] sm:$0xff] }
 0x208   : > { %v13130_v49 = vpop.f32.mrf.mxu0  ;;  %v2380_v9 = vshrl.u32 %v16942_v35, 16  ;;  %v13230_v34 = vpop.f32.mrf.mxu1  ;;  %v12246_v61 = vcombine.low %v16881_v50, %v16885_v15  ;;  %v16950_v4 = vsel %vm15940_vm12, %v12075_v56, %v2557_v24  ;;  %v16954_v52 = vsel %vm15940_vm12, %v2559_v29, %v2560_v26  ;;  %v16966_v56 = vld [vmem:[#allocation2 + $0x58] sm:$0x11] }
 0x209   : > { %v13131_v41 = vadd.f32 %v13130_v49, %v13129_v47  ;;  %v13231_v58 = vadd.f32 %v13230_v34, %v13229_v22  ;;  %v12249_v32 = vcombine.high %v16924_v13, %v16931_v40  ;;  %v2350_v53 = vrot.slane %v2349_v5, 4  ;;  %v14924_v29 = vld [vmem:[#allocation2 + $0x98] sm:$0xff] }
 0x20a   : > { %v13132_v57 = vpop.f32.mrf.mxu0  ;;  %v13232_v2 = vpop.f32.mrf.mxu1  ;;  %v2360_v62 = vrot.slane %v2359_v60, 4  ;;  %v2364_v50 = vrot.slane %v2362_v55, 5  ;;  %v12277_v24 = vcombine.high %v16919_v7, %v16940_v59  ;;  %v2378_v46 = vrot.slane %v2376_v31, 5  ;;  %v2426_v49 = vld [vmem:[#allocation2 + $0x38] sm:$0xee]  ;;  %v20772_v31 = vld [vmem:[#allocation35_spill] sm:$0xff] }
 0x20b   : > { %v16959_v27 = vadd.f32 %v13131_v41, %v20770_v51  ;;  %v16962_v15 = vadd.f32 %v13231_v58, %v16861_v0  ;;  %v2382_v20 = vrot.slane %v2380_v9, 4  ;;  %v2391_v26 = vshrl.u32 %v14924_v29, 16  ;;  %v16989_v58 = vld [vmem:[#allocation2 + $0x128] sm:$0xff] }
 0x20c   : > { %v13133_v3 = vpop.f32.mrf.mxu0  ;;  %v2394_v21 = vshll.u32 %v14924_v29, 16  ;;  %v13233_v47 = vpop.f32.mrf.mxu1  ;;  %v2564_v5 = vrot.slane %v16828_v23, 5  ;;  %v12276_v0 = vcombine.low %v16919_v7, %v16940_v59  ;;  %v12279_v55 = vcombine.high %v16950_v4, %v16954_v52  ;;  %v20774_v29 = vld [vmem:[#allocation36_spill] sm:$0xff] }
 0x20d   : > { %20771 = vst [vmem:[#allocation32_spill] sm:$0xff] %v16962_v15  ;;  %v13134_v22 = vadd.f32 %v13133_v3, %v13132_v57  ;;  %v13234_v43 = vadd.f32 %v13233_v47, %v13232_v2  ;;  %v16979_v23 = vsel %vm15563_vm2, %v2350_v53, %v16908_v39  ;;  %v16983_v7 = vsel %vm15563_vm2, %v2360_v62, %v2364_v50 }
 0x20e   : > { %v13135_v60 = vpop.f32.mrf.mxu0  ;;  %6316 = vmatmul.mubr.bf16.gmra.mxu0 %v12246_v61  ;;  %v13235_v34 = vpop.f32.mrf.mxu1  ;;  %6461 = vmatmul.mubr.bf16.gmra.mxu1 %v12274_v19  ;;  %v2386_v59 = vshll.u32 %v16966_v56, 16  ;;  %v2383_v61 = vor.u32 %v2382_v20, %v2378_v46  ;;  %v2400_v57 = vshll.u32 %v16989_v58, 16  ;;  %v12076_v51 = vrot.slane %v2426_v49, 9 }
 0x20f   : > { %v16974_v9 = vadd.f32 %v13134_v22, %v20772_v31  ;;  %6323 = vmatprep.mubr.bf16.mxu0 %v12249_v32  ;;  %v16987_v41 = vadd.f32 %v13234_v43, %v16888_v6  ;;  %6468 = vmatprep.mubr.bf16.mxu1 %v12277_v24  ;;  %v2404_v32 = vshrl.u32 %v16989_v58, 16  ;;  %v2566_v53 = vrot.slane %v2564_v5, 4 }
 0x210   : > { %v13136_v19 = vpop.f32.mrf.mxu0  ;;  %v13236_v39 = vpop.f32.mrf.mxu1  ;;  %v2567_v62 = vrot.slane %v16847_v45, 5  ;;  %v12248_v6 = vcombine.low %v16924_v13, %v16931_v40  ;;  %v12251_v24 = vcombine.high %v16979_v23, %v16983_v7  ;;  %v2388_v22 = vrot.slane %v2386_v59, 5  ;;  %v17004_v13 = vld [vmem:[#allocation2 + $0x140] sm:$0x11] }
 0x211   : > { %20773 = vst [vmem:[#allocation33_spill] sm:$0xff] %v16987_v41  ;;  %v13137_v2 = vadd.f32 %v13136_v19, %v13135_v60  ;;  %v13237_v50 = vadd.f32 %v13236_v39, %v13235_v34  ;;  %v2393_v43 = vrot.slane %v2391_v26, 4  ;;  %v2396_v31 = vrot.slane %v2394_v21, 5  ;;  %v20775_v21 = vld [vmem:[#allocation37_spill] sm:$0xff] }
 0x212   : > { %v13138_v3 = vpop.f32.mrf.mxu0  ;;  %v13238_v20 = vpop.f32.mrf.mxu1  ;;  %v2384_v45 = vrot.slane %v2383_v61, 4  ;;  %v2402_v34 = vrot.slane %v2400_v57, 5  ;;  %v2406_v19 = vrot.slane %v2404_v32, 4  ;;  %v17012_v26 = vsel %vm15940_vm12, %v2566_v53, %v2567_v62  ;;  %v20776_v61 = vld [vmem:[#allocation31_spill] sm:$0xff] }
 0x213   : > { %v16999_v47 = vadd.f32 %v13137_v2, %v20774_v29  ;;  %v17002_v60 = vadd.f32 %v13237_v50, %v16906_v36  ;;  %v17008_v2 = vsel %vm15940_vm12, %v12076_v51, %v2564_v5  ;;  %v17020_v57 = vsel %vm15563_vm2, %v20776_v61, %v2378_v46  ;;  %v20778_v61 = vld [vmem:[#allocation39_spill] sm:$0xff] }
 0x214   : > { %v13139_v49 = vpop.f32.mrf.mxu0  ;;  %v13239_v39 = vpop.f32.mrf.mxu1  ;;  %v2397_v32 = vor.u32 %v2396_v31, %v2393_v43  ;;  %v2389_v51 = vsel %vm15563_vm2, %v2384_v45, %v2388_v22  ;;  %v2407_v53 = vor.u32 %v2406_v19, %v2402_v34  ;;  %v12250_v46 = vcombine.low %v16979_v23, %v16983_v7  ;;  %v20777_v22 = vld [vmem:[#allocation38_spill] sm:$0xff] }
 0x215   : > { %v13140_v41 = vadd.f32 %v13139_v49, %v13138_v3  ;;  %v13240_v40 = vadd.f32 %v13239_v39, %v13238_v20  ;;  %v2571_v3 = vrot.slane %v16891_v11, 5  ;;  %v2427_v20 = vld [vmem:[#allocation2 + $0xf0] sm:$0xee]  ;;  %v12281_v29 = vcombine.high %v17008_v2, %v17012_v26 }
 0x216   : > { %v13141_v15 = vpop.f32.mrf.mxu0  ;;  %6324 = vmatmul.mubr.bf16.gmra.mxu0 %v12248_v6  ;;  %v13241_v36 = vpop.f32.mrf.mxu1  ;;  %6469 = vmatmul.mubr.bf16.gmra.mxu1 %v12276_v0  ;;  %v2410_v0 = vshll.u32 %v17004_v13, 16  ;;  %v2398_v49 = vrot.slane %v2397_v32, 4  ;;  %v2408_v45 = vrot.slane %v2407_v53, 4  ;;  %v12077_v39 = vrot.slane %v2427_v20, 9 }
 0x217   : > { %v17015_v59 = vadd.f32 %v13140_v41, %v20775_v21  ;;  %6331 = vmatprep.mubr.bf16.mxu0 %v12251_v24  ;;  %v17023_v50 = vadd.f32 %v13240_v40, %v16927_v14  ;;  %6476 = vmatprep.mubr.bf16.mxu1 %v12279_v55  ;;  %v12278_v55 = vcombine.low %v16950_v4, %v16954_v52  ;;  %v2573_v40 = vrot.slane %v2571_v3, 4 }
 0x218   : > { %v13142_v5 = vpop.f32.mrf.mxu0  ;;  %v13242_v41 = vpop.f32.mrf.mxu1  ;;  %v2412_v23 = vrot.slane %v2410_v0, 5  ;;  %v2574_v4 = vrot.slane %v16903_v54, 5  ;;  %v2578_v32 = vrot.slane %v16942_v35, 5  ;;  %v17052_v54 = vsel %vm15563_vm2, %v2398_v49, %v2402_v34 }
 0x219   : > { %v13143_v62 = vadd.f32 %v13142_v5, %v13141_v15  ;;  %v13243_v6 = vadd.f32 %v13242_v41, %v13241_v36  ;;  %v12253_v15 = vcombine.high %v17020_v57, %v2389_v51  ;;  %v12252_v20 = vcombine.low %v17020_v57, %v2389_v51 }
 0x21a   : > { %v13144_v24 = vpop.f32.mrf.mxu0  ;;  %v13244_v14 = vpop.f32.mrf.mxu1  ;;  %v17056_v41 = vsel %vm15563_vm2, %v2408_v45, %v2412_v23  ;;  %v17064_v35 = vsel %vm15940_vm12, %v2573_v40, %v2574_v4  ;;  %v17080_v45 = vld [vmem:[#allocation2 + $0xf8] sm:$0xff]  ;;  %v17082_v23 = vld [vmem:[#allocation2 + $0xe8] sm:$0xff] }
 0x21b   : > { %v17036_v43 = vadd.f32 %v13143_v62, %v20777_v22  ;;  %v17040_v11 = vadd.f32 %v13243_v6, %v16959_v27  ;;  %v2428_v27 = vld [vmem:[#allocation2 + $0x170] sm:$0xee]  ;;  %v17060_v6 = vsel %vm15940_vm12, %v12077_v39, %v2571_v3  ;;  %v2581_v3 = vrot.slane %v16966_v56, 5 }
 0x21c   : > { %v13145_v31 = vpop.f32.mrf.mxu0  ;;  %v13245_v7 = vpop.f32.mrf.mxu1  ;;  %v20780_v39 = vld [vmem:[#allocation41_spill] sm:$0xff]  ;;  %v12288_v28 = vcombine.low %v17080_v45, %v17082_v23 }
 0x21d   : > { %v13146_v19 = vadd.f32 %v13145_v31, %v13144_v24  ;;  %v13246_v52 = vadd.f32 %v13245_v7, %v13244_v14  ;;  %v12078_v14 = vrot.slane %v2428_v27, 9  ;;  %v12255_v31 = vcombine.high %v17052_v54, %v17056_v41 }
 0x21e   : > { %v13147_v36 = vpop.f32.mrf.mxu0  ;;  %6332 = vmatmul.mubr.bf16.gmra.mxu0 %v12250_v46  ;;  %v13247_v21 = vpop.f32.mrf.mxu1  ;;  %6477 = vmatmul.mubr.bf16.gmra.mxu1 %v12278_v55  ;;  %v12280_v46 = vcombine.low %v17008_v2, %v17012_v26  ;;  %v12283_v2 = vcombine.high %v17060_v6, %v17064_v35  ;;  %v2643_v27 = vshll.u32 %v17080_v45, 16 }
 0x21f   : > { %v17044_v5 = vadd.f32 %v13146_v19, %v20778_v61  ;;  %6339 = vmatprep.mubr.bf16.mxu0 %v12253_v15  ;;  %v17048_v53 = vadd.f32 %v13246_v52, %v16974_v9  ;;  %6484 = vmatprep.mubr.bf16.mxu1 %v12281_v29  ;;  %v20779_v29 = vld [vmem:[#allocation40_spill] sm:$0xff]  ;;  %v2580_v15 = vrot.slane %v2578_v32, 4  ;;  %v2429_v52 = vld [vmem:[#allocation2 + $0x98] sm:$0xee] }
 0x220   : > { %v13148_v0 = vpop.f32.mrf.mxu0  ;;  %v13248_v62 = vpop.f32.mrf.mxu1 }
 0x221   : > { %v13149_v9 = vadd.f32 %v13148_v0, %v13147_v36  ;;  %v13249_v24 = vadd.f32 %v13248_v62, %v13247_v21  ;;  %v17093_v4 = vsel %vm15940_vm12, %v2580_v15, %v2581_v3  ;;  %v2640_v36 = vshrl.u32 %v17080_v45, 16  ;;  %v20781_v15 = vld [vmem:[#allocation42_spill] sm:$0xff] }
 0x222   : > { %v13150_v34 = vpop.f32.mrf.mxu0  ;;  %v13250_v55 = vpop.f32.mrf.mxu1  ;;  %v2649_v0 = vshll.u32 %v17082_v23, 16 }
 0x223   : > { %v17070_v22 = vadd.f32 %v13149_v9, %v20779_v29  ;;  %v17076_v49 = vadd.f32 %v13249_v24, %v16999_v47  ;;  %v17089_v47 = vsel %vm15940_vm12, %v12078_v14, %v2578_v32  ;;  %v2653_v32 = vshrl.u32 %v17082_v23, 16 }
 0x224   : > { %v13151_v26 = vpop.f32.mrf.mxu0  ;;  %v13251_v57 = vpop.f32.mrf.mxu1  ;;  %v2585_v24 = vrot.slane %v16989_v58, 5  ;;  %v12079_v14 = vrot.slane %v2429_v52, 9  ;;  %v12285_v29 = vcombine.high %v17089_v47, %v17093_v4  ;;  %v2642_v58 = vrot.slane %v2640_v36, 4  ;;  %v17126_v36 = vld [vmem:[#allocation2 + $0x80] sm:$0xff] }
 0x225   : > { %v13152_v51 = vadd.f32 %v13151_v26, %v13150_v34  ;;  %v13252_v7 = vadd.f32 %v13251_v57, %v13250_v55  ;;  %v12282_v34 = vcombine.low %v17060_v6, %v17064_v35  ;;  %v2623_v35 = vld [vmem:[#allocation2 + $0xd0] sm:$0x11]  ;;  %v2645_v26 = vrot.slane %v2643_v27, 5 }
 0x226   : > { %v13153_v19 = vpop.f32.mrf.mxu0  ;;  %6340 = vmatmul.mubr.bf16.gmra.mxu0 %v12252_v20  ;;  %v13253_v56 = vpop.f32.mrf.mxu1  ;;  %6485 = vmatmul.mubr.bf16.gmra.mxu1 %v12280_v46  ;;  %v17117_v57 = vrot.slane %v2649_v0, 5  ;;  %v20782_v0 = vld [vmem:[#allocation43_spill] sm:$0xff] }
 0x227   : > { %v17085_v40 = vadd.f32 %v13152_v51, %v20780_v39  ;;  %6347 = vmatprep.mubr.bf16.mxu0 %v12255_v31  ;;  %v17097_v21 = vadd.f32 %v13252_v7, %v17015_v59  ;;  %6492 = vmatprep.mubr.bf16.mxu1 %v12283_v2  ;;  %v12254_v59 = vcombine.low %v17052_v54, %v17056_v41  ;;  %v2655_v54 = vrot.slane %v2653_v32, 4  ;;  %v17119_v41 = vld [vmem:[#allocation2 + $0x130] sm:$0xff]  ;;  %v527_v39 = vld [vmem:[#allocation2 + $0x60] sm:$0x11] }
 0x228   : > { %v13154_v61 = vpop.f32.mrf.mxu0  ;;  %v13254_v62 = vpop.f32.mrf.mxu1  ;;  %v12289_v31 = vcombine.high %v17080_v45, %v17082_v23 }
 0x229   : > { %v13155_v9 = vadd.f32 %v13154_v61, %v13153_v19  ;;  %v13255_v46 = vadd.f32 %v13254_v62, %v13253_v56  ;;  %v2587_v19 = vrot.slane %v2585_v24, 4  ;;  %v2588_v56 = vrot.slane %v17004_v13, 5 }
 0x22a   : > { %v13156_v20 = vpop.f32.mrf.mxu0  ;;  %v13256_v55 = vpop.f32.mrf.mxu1  ;;  %v2659_v62 = vshll.u32 %v2623_v35, 16  ;;  %v2667_v13 = vshll.u32 %v17119_v41, 16 }
 0x22b   : > { %v17110_v3 = vadd.f32 %v13155_v9, %v20781_v15  ;;  %v17115_v2 = vadd.f32 %v13255_v46, %v17036_v43  ;;  %v17124_v43 = vsel %vm15940_vm12, %v12079_v14, %v2585_v24  ;;  %v2664_v9 = vshrl.u32 %v17119_v41, 16  ;;  %v586_v14 = vld [vmem:[#allocation2 + $0x190] sm:$0x11] }
 0x22c   : > { %v13157_v6 = vpop.f32.mrf.mxu0  ;;  %v13257_v51 = vpop.f32.mrf.mxu1  ;;  %v2646_v24 = vor.u32 %v2645_v26, %v2642_v58  ;;  %v17141_v15 = vsel %vm15940_vm12, %v2587_v19, %v2588_v56  ;;  %v12284_v58 = vcombine.low %v17089_v47, %v17093_v4  ;;  %v12291_v26 = vcombine.high %v17119_v41, %v17126_v36  ;;  %v14715_v56 = vld [vmem:[#allocation9 + $0x438] sm:$0xff]  }
 0x22d   : > { %v13158_v7 = vadd.f32 %v13157_v6, %v13156_v20  ;;  %v13258_v52 = vadd.f32 %v13257_v51, %v13256_v55  ;;  %v2673_v6 = vshll.u32 %v17126_v36, 16  ;;  %v20783_v51 = vld [vmem:[#allocation44_spill] sm:$0xff]  ;;  %v2661_v19 = vrot.slane %v2659_v62, 5 }
 0x22e   : > { %v13159_v61 = vpop.f32.mrf.mxu0  ;;  %6348 = vmatmul.mubr.bf16.gmra.mxu0 %v12254_v59  ;;  %v13259_v27 = vpop.f32.mrf.mxu1  ;;  %6493 = vmatmul.mubr.bf16.gmra.mxu1 %v12282_v34  ;;  %v2656_v59 = vor.u32 %v2655_v54, %v17117_v57  ;;  %v528_v34 = vsel %vm15516_vm10, 0, %v527_v39  ;;  %v17154_v39 = vrot.slane %v2664_v9, 4  ;;  %v587_v47 = vsel %vm15524_vm11, 0, %v586_v14  ;;  %v14720_v14 = vld [vmem:[#allocation9 + $0x470] sm:$0xff]  }
 0x22f   : > { %v17129_v32 = vadd.f32 %v13158_v7, %v20782_v0  ;;  %6549 = vmatprep.mubr.bf16.mxu0 %v12289_v31  ;;  %v17134_v46 = vadd.f32 %v13258_v52, %v17044_v5  ;;  %6500 = vmatprep.mubr.bf16.mxu1 %v12285_v29  ;;  %v2677_v5 = vshrl.u32 %v17126_v36, 16  ;;  %529 = vst [vmem:[#allocation2 + $0x60] sm:$0x11] %v528_v34  ;;  %v17156_v52 = vld [vmem:[#allocation2 + $0x148] sm:$0xff]  ;;  %v2669_v0 = vrot.slane %v2667_v13, 5  ;;  %v20786_v13 = vld [vmem:[#allocation45_spill] sm:$0xff] }
 0x230   : > { %v13160_v20 = vpop.f32.mrf.mxu0  ;;  %v13260_v55 = vpop.f32.mrf.mxu1  ;;  %v12287_v45 = vcombine.high %v17124_v43, %v17141_v15  ;;  %588 = vst [vmem:[#allocation2 + $0x190] sm:$0x11] %v587_v47  ;;  %v2657_v34 = vrot.slane %v2656_v59, 4  ;;  %v2691_v38 = vshll.u32 %v17156_v52, 16 }
 0x231   : > { %v13161_v31 = vadd.f32 %v13160_v20, %v13159_v61  ;;  %v13261_v29 = vadd.f32 %v13260_v55, %v13259_v27  ;;  %v2647_v27 = vrot.slane %v2646_v24, 4  ;;  %v17165_v20 = vld [vmem:[#allocation2 + $0x18] sm:$0xff]  ;;  %v2624_v55 = vld [vmem:[#allocation2 + $0x108] sm:$0x11] }
 0x232   : > { %v13162_v35 = vpop.f32.mrf.mxu0  ;;  %v13262_v54 = vpop.f32.mrf.mxu1  ;;  %v2697_v59 = vshll.u32 %v17165_v20, 16  ;;  %v2683_v47 = vshll.u32 %v2624_v55, 16 }
 0x233   : > { %v17152_v7 = vadd.f32 %v13161_v31, %v20783_v51  ;;  %v17161_v4 = vadd.f32 %v13261_v29, %v17070_v22  ;;  %v17167_v31 = vrot.slane %v2673_v6, 5  ;;  %v2679_v51 = vrot.slane %v2677_v5, 4 }
 0x234   : > { %v13163_v23 = vpop.f32.mrf.mxu0  ;;  %v13263_v62 = vpop.f32.mrf.mxu1  ;;  %v2688_v29 = vshrl.u32 %v17156_v52, 16  ;;  %v2701_v6 = vshrl.u32 %v17165_v20, 16 }
 0x235   : > { %20785 = vst [vmem:[#allocation34_spill] sm:$0xff] %v17161_v4  ;;  %v13164_v9 = vadd.f32 %v13163_v23, %v13162_v35  ;;  %v13264_v61 = vadd.f32 %v13263_v62, %v13262_v54  ;;  %v14721_v35 = vld [vmem:[#allocation9 + $0x430] sm:$0xff]   ;;  %v12290_v54 = vcombine.low %v17119_v41, %v17126_v36  ;;  %v14726_v23 = vld [vmem:[#allocation9 + $0x468] sm:$0xff]   ;;  %v12286_v41 = vcombine.low %v17124_v43, %v17141_v15 }
 0x236   : > { %v13165_v22 = vpop.f32.mrf.mxu0  ;;  %6550 = vmatmul.mubr.bf16.vlgmr.msra.gmra.mxu0 %v12288_v28  ;;  %v13265_v24 = vpop.f32.mrf.mxu1  ;;  %6501 = vmatmul.mubr.bf16.gmra.mxu1 %v12284_v58  ;;  %v2670_v58 = vor.u32 %v2669_v0, %v17154_v39  ;;  %v2690_v39 = vrot.slane %v2688_v29, 4  ;;  %v2693_v0 = vrot.slane %v2691_v38, 5  ;;  %v17206_v38 = vld [vmem:[#allocation2 + $0x138] sm:$0xff] }
 0x237   : > { %v17172_v4 = vadd.f32 %v13164_v9, %v20786_v13  ;;  %13774 = vmatpush3.bf16.msra.mxu0 %v14715_v56  ;;  %v17177_v5 = vadd.f32 %v13264_v61, %v17085_v40  ;;  %6508 = vmatprep.mubr.bf16.mxu1 %v12287_v45  ;;  %v17185_v56 = vsel %vm15563_vm2, %v2647_v27, %v17117_v57  ;;  %v20788_v61 = vld [vmem:[#allocation46_spill] sm:$0xff]  ;;  %v17199_v27 = vrot.slane %v2697_v59, 5  ;;  %v17208_v59 = vld [vmem:[#allocation2 + $0x100] sm:$0xff] }
 0x238   : > { %v13166_v28 = vpop.f32.mrf.mxu0  ;;  %6557 = vmatprep.mubr.bf16.mxu0 %v12291_v26  ;;  %v13266_v62 = vpop.f32.mrf.mxu1  ;;  %v17189_v40 = vsel %vm15563_vm2, %v2657_v34, %v2661_v19  ;;  %v2680_v26 = vor.u32 %v2679_v51, %v17167_v31  ;;  %13775 = vmatprep.subr.bf16.mxu0 %v14720_v14  ;;  %v12293_v57 = vcombine.high %v17156_v52, %v17165_v20  ;;  %v2625_v19 = vld [vmem:[#allocation2 + $0x180] sm:$0x11]  ;;  %v2703_v34 = vrot.slane %v2701_v6, 4  ;;  %v14727_v14 = vld [vmem:[#allocation9 + $0x428] sm:$0xff]   ;;  %v14730_v6 = vld [vmem:[#allocation9 + $0x460] sm:$0xff]  }
 0x239   : > { %20787 = vst [vmem:[#allocation35_spill] sm:$0xff] %v17177_v5  ;;  %v13167_v45 = vadd.f32 %v13166_v28, %v13165_v22  ;;  %v13267_v9 = vadd.f32 %v13266_v62, %v13265_v24  ;;  %v12321_v43 = vcombine.high %v17185_v56, %v17189_v40  ;;  %v2671_v24 = vrot.slane %v2670_v58, 4 }
 0x23a   : > { %v13168_v36 = vpop.f32.mrf.mxu0  ;;  %v13268_v55 = vpop.f32.mrf.mxu1  ;;  %v2681_v28 = vrot.slane %v2680_v26, 4  ;;  %v2685_v62 = vrot.slane %v2683_v47, 5  ;;  %v2712_v58 = vshrl.u32 %v17206_v38, 16  ;;  %v2715_v47 = vshll.u32 %v17206_v38, 16 }
 0x23b   : > { %v17195_v13 = vadd.f32 %v13167_v45, %v20788_v61  ;;  %13776 = vmatpush3.bf16.msra.mxu0 %v14721_v35  ;;  %v17202_v51 = vadd.f32 %v13267_v9, %v17110_v3  ;;  %v2694_v3 = vor.u32 %v2693_v0, %v2690_v39  ;;  %v2707_v9 = vshll.u32 %v2625_v19, 16  ;;  %v14731_v0 = vld [vmem:[#allocation9 + $0x420] sm:$0xff]  }
 0x23c   : > { %v13169_v15 = vpop.f32.mrf.mxu0  ;;  %13777 = vmatprep.subr.bf16.mxu0 %v14726_v23  ;;  %v13269_v22 = vpop.f32.mrf.mxu1  ;;  %v2704_v23 = vor.u32 %v2703_v34, %v17199_v27  ;;  %v2725_v39 = vshrl.u32 %v17208_v59, 16 }
 0x23d   : > { %20789 = vst [vmem:[#allocation36_spill] sm:$0xff] %v17202_v51  ;;  %v13170_v29 = vadd.f32 %v13169_v15, %v13168_v36  ;;  %v13270_v35 = vadd.f32 %v13269_v22, %v13268_v55  ;;  %v20790_v51 = vld [vmem:[#allocation47_spill] sm:$0xff]  ;;  %v2709_v15 = vrot.slane %v2707_v9, 5 }
 0x23e   : > { %v13171_v45 = vpop.f32.mrf.mxu0  ;;  %6558 = vmatmul.mubr.bf16.gmra.mxu0 %v12290_v54  ;;  %v13271_v61 = vpop.f32.mrf.mxu1  ;;  %6509 = vmatmul.mubr.bf16.gmra.mxu1 %v12286_v41  ;;  %v12320_v54 = vcombine.low %v17185_v56, %v17189_v40  ;;  %v2721_v41 = vshll.u32 %v17208_v59, 16  ;;  %v12292_v56 = vcombine.low %v17156_v52, %v17165_v20  ;;  %v14734_v40 = vld [vmem:[#allocation9 + $0x458] sm:$0xff]  }
 0x23f   : > { %v17211_v5 = vadd.f32 %v13170_v29, %v20790_v51  ;;  %6565 = vmatprep.mubr.bf16.mxu0 %v12293_v57  ;;  %v17217_v26 = vadd.f32 %v13270_v35, %v17129_v32  ;;  %6710 = vmatprep.mubr.bf16.mxu1 %v12321_v43  ;;  %v17226_v57 = vsel %vm15563_vm2, %v2671_v24, %v17167_v31  ;;  %v2695_v43 = vrot.slane %v2694_v3, 4  ;;  %v2626_v24 = vld [vmem:[#allocation2 + $0x1a8] sm:$0x11]  ;;  %v17246_v3 = vld [vmem:[#allocation2 + $0x160] sm:$0xff] }
 0x240   : > { %v13172_v36 = vpop.f32.mrf.mxu0  ;;  %13778 = vmatpush3.bf16.msra.mxu0 %v14727_v14  ;;  %v13272_v55 = vpop.f32.mrf.mxu1  ;;  %v17230_v32 = vsel %vm15563_vm2, %v2681_v28, %v2685_v62  ;;  %v12295_v14 = vcombine.high %v17206_v38, %v17208_v59  ;;  %v2705_v29 = vrot.slane %v2704_v23, 4  ;;  %v2714_v28 = vrot.slane %v2712_v58, 4  ;;  %v14735_v9 = vld [vmem:[#allocation9 + $0x418] sm:$0xff]   ;;  %v17248_v23 = vld [vmem:[#allocation2 + $0x198] sm:$0xff] }
 0x241   : > { %v13173_v19 = vadd.f32 %v13172_v36, %v13171_v45  ;;  %13779 = vmatprep.subr.bf16.mxu0 %v14730_v6  ;;  %v13273_v34 = vadd.f32 %v13272_v55, %v13271_v61  ;;  %v2717_v62 = vrot.slane %v2715_v47, 5  ;;  %v12323_v52 = vcombine.high %v17226_v57, %v17230_v32  ;;  %v14736_v58 = vld [vmem:[#allocation9 + $0x450] sm:$0xff]  }
 0x242   : > { %v13174_v51 = vpop.f32.mrf.mxu0  ;;  %v13274_v22 = vpop.f32.mrf.mxu1  ;;  %v17244_v6 = vrot.slane %v2721_v41, 5  ;;  %v2727_v45 = vrot.slane %v2725_v39, 4  ;;  %v17253_v36 = vsel %vm15563_vm2, %v2695_v43, %v17199_v27  ;;  %v2731_v41 = vshll.u32 %v2626_v24, 16 }
 0x243   : > { %v17237_v31 = vadd.f32 %v13173_v19, %v16529_v37  ;;  %v17240_v35 = vadd.f32 %v13273_v34, %v17152_v7  ;;  %v17260_v55 = vsel %vm15563_vm2, %v2705_v29, %v2709_v15  ;;  %v2718_v19 = vor.u32 %v2717_v62, %v2714_v28 }
 0x244   : > { %v13175_v20 = vpop.f32.mrf.mxu0  ;;  %13780 = vmatpush3.bf16.msra.mxu0 %v14731_v0  ;;  %v13275_v37 = vpop.f32.mrf.mxu1  ;;  %v2728_v34 = vor.u32 %v2727_v45, %v17244_v6  ;;  %v12322_v15 = vcombine.low %v17226_v57, %v17230_v32  ;;  %v12325_v24 = vcombine.high %v17253_v36, %v17260_v55  ;;  %v12294_v62 = vcombine.low %v17206_v38, %v17208_v59  ;;  %v17288_v38 = vld [vmem:[#allocation2 + $0x8] sm:$0xff]  ;;  %v14743_v59 = vld [vmem:[#allocation9 + $0x408] sm:$0xff]  }
 0x245   : > { %v13176_v61 = vadd.f32 %v13175_v20, %v13174_v51  ;;  %13781 = vmatprep.subr.bf16.mxu0 %v14734_v40  ;;  %v13276_v47 = vadd.f32 %v13275_v37, %v13274_v22  ;;  %v2736_v40 = vshrl.u32 %v17246_v3, 16  ;;  %v14737_v51 = vld [vmem:[#allocation9 + $0x410] sm:$0xff]   ;;  %v2749_v22 = vshrl.u32 %v17248_v23, 16  ;;  %v17276_v20 = vld [vmem:[#allocation2 + $0x68] sm:$0xff] }
 0x246   : > { %v13177_v7 = vpop.f32.mrf.mxu0  ;;  %6566 = vmatmul.mubr.bf16.gmra.mxu0 %v12292_v56  ;;  %v13277_v39 = vpop.f32.mrf.mxu1  ;;  %6711 = vmatmul.mubr.bf16.vlgmr.msra.gmra.mxu1 %v12320_v54  ;;  %v2739_v54 = vshll.u32 %v17246_v3, 16  ;;  %v2719_v57 = vrot.slane %v2718_v19, 4  ;;  %v12297_v32 = vcombine.high %v17246_v3, %v17248_v23 }
 0x247   : > { %v17256_v0 = vadd.f32 %v13176_v61, %v16570_v16  ;;  %6573 = vmatprep.mubr.bf16.mxu0 %v12295_v14  ;;  %v17264_v56 = vadd.f32 %v13276_v47, %v17172_v4  ;;  %6718 = vmatprep.mubr.bf16.mxu1 %v12323_v52  ;;  %v2745_v16 = vshll.u32 %v17248_v23, 16  ;;  %v14742_v4 = vld [vmem:[#allocation9 + $0x448] sm:$0xff]   ;;  %v2733_v52 = vrot.slane %v2731_v41, 5 }
 0x248   : > { %v13178_v27 = vpop.f32.mrf.mxu0  ;;  %13782 = vmatpush3.bf16.msra.mxu0 %v14735_v9  ;;  %v13278_v43 = vpop.f32.mrf.mxu1  ;;  %v2738_v37 = vrot.slane %v2736_v40, 4  ;;  %v2729_v47 = vrot.slane %v2728_v34, 4  ;;  %v2751_v19 = vrot.slane %v2749_v22, 4  ;;  %v2763_v40 = vshll.u32 %v17276_v20, 16 }
 0x249   : > { %v13179_v14 = vadd.f32 %v13178_v27, %v13177_v7  ;;  %13783 = vmatprep.subr.bf16.mxu0 %v14736_v58  ;;  %v13279_v29 = vadd.f32 %v13278_v43, %v13277_v39  ;;  %v2741_v7 = vrot.slane %v2739_v54, 5  ;;  %v17286_v39 = vrot.slane %v2745_v16, 5  ;;  %v2627_v27 = vld [vmem:[#allocation2] sm:$0x11] }
 0x24a   : > { %v13180_v28 = vpop.f32.mrf.mxu0  ;;  %v13280_v45 = vpop.f32.mrf.mxu1  ;;  %v2760_v43 = vshrl.u32 %v17276_v20, 16  ;;  %v17298_v16 = vsel %vm15563_vm2, %v2719_v57, %v17244_v6  ;;  %v2773_v22 = vshrl.u32 %v17288_v38, 16 }
 0x24b   : > { %v17279_v9 = vadd.f32 %v13179_v14, %v16595_v48  ;;  %v17284_v61 = vadd.f32 %v13279_v29, %v17195_v13  ;;  %v14748_v13 = vld [vmem:[#allocation9 + $0x440] sm:$0xff]  }
 0x24c   : > { %v13181_v58 = vpop.f32.mrf.mxu0  ;;  %13784 = vmatpush3.bf16.msra.mxu0 %v14737_v51  ;;  %v13281_v41 = vpop.f32.mrf.mxu1  ;;  %v2769_v51 = vshll.u32 %v17288_v38, 16 }
 0x24d   : > { %v13182_v48 = vadd.f32 %v13181_v58, %v13180_v28  ;;  %13785 = vmatprep.subr.bf16.mxu0 %v14742_v4  ;;  %v13282_v14 = vadd.f32 %v13281_v41, %v13280_v45  ;;  %v2742_v28 = vor.u32 %v2741_v7, %v2738_v37  ;;  %v14749_v45 = vld [vmem:[#allocation9 + $0x400] sm:$0xff]   ;;  %v2762_v58 = vrot.slane %v2760_v43, 4  ;;  %v17321_v43 = vld [vmem:[#allocation2 + $0x118] sm:$0xff] }
 0x24e   : > { %v13183_v29 = vpop.f32.mrf.mxu0  ;;  %6574 = vmatmul.mubr.bf16.gmra.mxu0 %v12294_v62  ;;  %v13283_v34 = vpop.f32.mrf.mxu1  ;;  %6719 = vmatmul.mubr.bf16.gmra.mxu1 %v12322_v15  ;;  %v17307_v15 = vsel %vm15563_vm2, %v2729_v47, %v2733_v52  ;;  %v2755_v62 = vshll.u32 %v2627_v27, 16  ;;  %v2765_v41 = vrot.slane %v2763_v40, 5  ;;  %v12296_v52 = vcombine.low %v17246_v3, %v17248_v23  ;;  %v2628_v47 = vld [vmem:[#allocation2 + $0xc8] sm:$0x11] }
 0x24f   : > { %v17293_v54 = vadd.f32 %v13182_v48, %v16629_v18  ;;  %6581 = vmatprep.mubr.bf16.mxu0 %v12297_v32  ;;  %v17303_v4 = vadd.f32 %v13282_v14, %v17211_v5  ;;  %6726 = vmatprep.mubr.bf16.mxu1 %v12325_v24  ;;  %v2752_v32 = vor.u32 %v2751_v19, %v17286_v39  ;;  %v17319_v27 = vrot.slane %v2769_v51, 5 }
 0x250   : > { %v13184_v18 = vpop.f32.mrf.mxu0  ;;  %13786 = vmatpush3.bf16.msra.mxu0 %v14743_v59  ;;  %v13284_v6 = vpop.f32.mrf.mxu1  ;;  %v12324_v5 = vcombine.low %v17253_v36, %v17260_v55  ;;  %v12299_v59 = vcombine.high %v17276_v20, %v17288_v38  ;;  %v2775_v19 = vrot.slane %v2773_v22, 4  ;;  %v12327_v36 = vcombine.high %v17298_v16, %v17307_v15 }
 0x251   : > { %v13185_v57 = vadd.f32 %v13184_v18, %v13183_v29  ;;  %13787 = vmatprep.subr.bf16.mxu0 %v14748_v13  ;;  %v13285_v48 = vadd.f32 %v13284_v6, %v13283_v34  ;;  %v2743_v23 = vrot.slane %v2742_v28, 4  ;;  %v2757_v55 = vrot.slane %v2755_v62, 5  ;;  %v17328_v13 = vld [vmem:[#allocation2 + $0xa8] sm:$0xff] }
 0x252   : > { %v13186_v24 = vpop.f32.mrf.mxu0  ;;  %v13286_v37 = vpop.f32.mrf.mxu1  ;;  %v2753_v29 = vrot.slane %v2752_v32, 4  ;;  %v2766_v34 = vor.u32 %v2765_v41, %v2762_v58  ;;  %v2779_v51 = vshll.u32 %v2628_v47, 16  ;;  %v2787_v6 = vshll.u32 %v17321_v43, 16 }
 0x253   : > { %v17315_v7 = vadd.f32 %v13185_v57, %v16652_v10  ;;  %v17324_v40 = vadd.f32 %v13285_v48, %v17237_v31  ;;  %v2784_v31 = vshrl.u32 %v17321_v43, 16  ;;  %v2776_v62 = vor.u32 %v2775_v19, %v17319_v27 }
 0x254   : > { %v13187_v3 = vpop.f32.mrf.mxu0  ;;  %13788 = vmatpush3.bf16.msra.mxu0 %v14749_v45  ;;  %v13287_v10 = vpop.f32.mrf.mxu1  ;;  %v2793_v45 = vshll.u32 %v17328_v13, 16  ;;  %v2797_v32 = vshrl.u32 %v17328_v13, 16  ;;  %v12326_v41 = vcombine.low %v17298_v16, %v17307_v15  ;;  %v17346_v48 = vsel %vm15563_vm2, %v2743_v23, %v17286_v39 }
 0x255   : > { %v13188_v14 = vadd.f32 %v13187_v3, %v13186_v24  ;;  %v13288_v22 = vadd.f32 %v13287_v10, %v13286_v37  ;;  %v2767_v47 = vrot.slane %v2766_v34, 4  ;;  %v2781_v37 = vrot.slane %v2779_v51, 5  ;;  %v17358_v3 = vld [vmem:[#allocation2 + $0xd8] sm:$0xff] }
 0x256   : > { %v13189_v18 = vpop.f32.mrf.mxu0  ;;  %6582 = vmatmul.mubr.bf16.gmra.mxu0 %v12296_v52  ;;  %v13289_v57 = vpop.f32.mrf.mxu1  ;;  %6727 = vmatmul.mubr.bf16.gmra.mxu1 %v12324_v5  ;;  %v12298_v5 = vcombine.low %v17276_v20, %v17288_v38  ;;  %v17352_v52 = vsel %vm15563_vm2, %v2753_v29, %v2757_v55  ;;  %v12301_v39 = vcombine.high %v17321_v43, %v17328_v13  ;;  %v2786_v19 = vrot.slane %v2784_v31, 4  ;;  %v2629_v55 = vld [vmem:[#allocation2 + $0x40] sm:$0x11] }
 0x257   : > { %v17333_v28 = vadd.f32 %v13188_v14, %v16674_v44  ;;  %6589 = vmatprep.mubr.bf16.mxu0 %v12299_v59  ;;  %v17339_v58 = vadd.f32 %v13288_v22, %v17256_v0  ;;  %6734 = vmatprep.mubr.bf16.mxu1 %v12327_v36  ;;  %v17354_v59 = vld [vmem:[#allocation2 + $0x90] sm:$0xff]  ;;  %v2789_v36 = vrot.slane %v2787_v6, 5  ;;  %v2777_v23 = vrot.slane %v2776_v62, 4 }
 0x258   : > { %v13190_v44 = vpop.f32.mrf.mxu0  ;;  %v13290_v24 = vpop.f32.mrf.mxu1  ;;  %v17363_v10 = vrot.slane %v2793_v45, 5  ;;  %v2799_v14 = vrot.slane %v2797_v32, 4  ;;  %v12329_v34 = vcombine.high %v17346_v48, %v17352_v52  ;;  %v2808_v22 = vshrl.u32 %v17354_v59, 16 }
 0x259   : > { %v13191_v0 = vadd.f32 %v13190_v44, %v13189_v18  ;;  %v13291_v16 = vadd.f32 %v13290_v24, %v13289_v57  ;;  %v2811_v18 = vshll.u32 %v17354_v59, 16  ;;  %v2821_v57 = vshrl.u32 %v17358_v3, 16 }
 0x25a   : > { %v13192_v15 = vpop.f32.mrf.mxu0  ;;  %v13292_v20 = vpop.f32.mrf.mxu1  ;;  %v2790_v32 = vor.u32 %v2789_v36, %v2786_v19  ;;  %v2803_v44 = vshll.u32 %v2629_v55, 16  ;;  %v2630_v19 = vld [vmem:[#allocation2 + $0x188] sm:$0x11]  ;;  %v17394_v55 = vld [vmem:[#allocation2 + $0xa0] sm:$0xff] }
 0x25b   : > { %v17361_v38 = vadd.f32 %v13191_v0, %v16727_v17  ;;  %v17366_v29 = vadd.f32 %v13291_v16, %v17279_v9  ;;  %v2817_v17 = vshll.u32 %v17358_v3, 16  ;;  %v17377_v9 = vsel %vm15563_vm2, %v2767_v47, %v17319_v27 }
 0x25c   : > { %v13193_v51 = vpop.f32.mrf.mxu0  ;;  %v13293_v31 = vpop.f32.mrf.mxu1  ;;  %v17384_v16 = vsel %vm15563_vm2, %v2777_v23, %v2781_v37  ;;  %v12328_v27 = vcombine.low %v17346_v48, %v17352_v52  ;;  %v2813_v36 = vrot.slane %v2811_v18, 5  ;;  %v12300_v37 = vcombine.low %v17321_v43, %v17328_v13 }
 0x25d   : > { %v13194_v6 = vadd.f32 %v13193_v51, %v13192_v15  ;;  %v13294_v62 = vadd.f32 %v13293_v31, %v13292_v20  ;;  %v2800_v15 = vor.u32 %v2799_v14, %v17363_v10  ;;  %v2819_v23 = vrot.slane %v2817_v17, 5 }
 0x25e   : > { %v13195_v45 = vpop.f32.mrf.mxu0  ;;  %6590 = vmatmul.mubr.bf16.gmra.mxu0 %v12298_v5  ;;  %v13295_v24 = vpop.f32.mrf.mxu1  ;;  %6735 = vmatmul.mubr.bf16.gmra.mxu1 %v12326_v41  ;;  %v2810_v41 = vrot.slane %v2808_v22, 4  ;;  %v2791_v48 = vrot.slane %v2790_v32, 4  ;;  %v2805_v52 = vrot.slane %v2803_v44, 5  ;;  %v12303_v43 = vcombine.high %v17354_v59, %v17358_v3 }
 0x25f   : > { %v17380_v0 = vadd.f32 %v13194_v6, %v16760_v12  ;;  %6597 = vmatprep.mubr.bf16.mxu0 %v12301_v39  ;;  %v17388_v5 = vadd.f32 %v13294_v62, %v17293_v54  ;;  %6742 = vmatprep.mubr.bf16.mxu1 %v12329_v34  ;;  %v2823_v39 = vrot.slane %v2821_v57, 4  ;;  %v12331_v54 = vcombine.high %v17377_v9, %v17384_v16  ;;  %v17398_v34 = vld [vmem:[#allocation2 + $0xc0] sm:$0xff] }
 0x260   : > { %v13196_v47 = vpop.f32.mrf.mxu0  ;;  %v13296_v12 = vpop.f32.mrf.mxu1  ;;  %v2801_v31 = vrot.slane %v2800_v15, 4  ;;  %v2827_v13 = vshll.u32 %v2630_v19, 16  ;;  %v2814_v57 = vor.u32 %v2813_v36, %v2810_v41  ;;  %v2832_v62 = vshrl.u32 %v17394_v55, 16 }
 0x261   : > { %v13197_v20 = vadd.f32 %v13196_v47, %v13195_v45  ;;  %v13297_v14 = vadd.f32 %v13296_v12, %v13295_v24  ;;  %v2835_v45 = vshll.u32 %v17394_v55, 16  ;;  %v2824_v24 = vor.u32 %v2823_v39, %v2819_v23 }
 0x262   : > { %v13198_v51 = vpop.f32.mrf.mxu0  ;;  %v13298_v22 = vpop.f32.mrf.mxu1  ;;  %v2845_v15 = vshrl.u32 %v17398_v34, 16  ;;  %v17418_v41 = vsel %vm15563_vm2, %v2791_v48, %v17363_v10  ;;  %v17422_v36 = vsel %vm15563_vm2, %v2801_v31, %v2805_v52  ;;  %v12302_v52 = vcombine.low %v17354_v59, %v17358_v3  ;;  %v2631_v31 = vld [vmem:[#allocation2 + $0x50] sm:$0x11] }
 0x263   : > { %v17401_v18 = vadd.f32 %v13197_v20, %v16784_v30  ;;  %v17406_v6 = vadd.f32 %v13297_v14, %v17315_v7  ;;  %v2841_v30 = vshll.u32 %v17398_v34, 16  ;;  %v2829_v20 = vrot.slane %v2827_v13, 5 }
 0x264   : > { %v13199_v17 = vpop.f32.mrf.mxu0  ;;  %v13299_v32 = vpop.f32.mrf.mxu1  ;;  %v2834_v14 = vrot.slane %v2832_v62, 4  ;;  %v2847_v10 = vrot.slane %v2845_v15, 4  ;;  %v12305_v13 = vcombine.high %v17394_v55, %v17398_v34  ;;  %v17440_v62 = vld [vmem:[#allocation2 + $0x30] sm:$0xff]  ;;  %v12333_v59 = vcombine.high %v17418_v41, %v17422_v36 }
 0x265   : > { %v13200_v44 = vadd.f32 %v13199_v17, %v13198_v51  ;;  %v13300_v47 = vadd.f32 %v13299_v32, %v13298_v22  ;;  %v2825_v17 = vrot.slane %v2824_v24, 4  ;;  %v17427_v32 = vrot.slane %v2841_v30, 5 }
 0x266   : > { %v13201_v12 = vpop.f32.mrf.mxu0  ;;  %6598 = vmatmul.mubr.bf16.gmra.mxu0 %v12300_v37  ;;  %v13301_v19 = vpop.f32.mrf.mxu1  ;;  %6743 = vmatmul.mubr.bf16.gmra.mxu1 %v12328_v27  ;;  %v2815_v27 = vrot.slane %v2814_v57, 4  ;;  %v17438_v57 = vld [vmem:[#allocation2 + $0x110] sm:$0xff] }
 0x267   : > { %v17413_v7 = vadd.f32 %v13200_v44, %v16811_v63  ;;  %6605 = vmatprep.mubr.bf16.mxu0 %v12303_v43  ;;  %v17425_v39 = vadd.f32 %v13300_v47, %v17333_v28  ;;  %6750 = vmatprep.mubr.bf16.mxu1 %v12331_v54  ;;  %v2837_v63 = vrot.slane %v2835_v45, 5  ;;  %v12330_v28 = vcombine.low %v17377_v9, %v17384_v16 }
 0x268   : > { %v13202_v37 = vpop.f32.mrf.mxu0  ;;  %v13302_v51 = vpop.f32.mrf.mxu1  ;;  %v17449_v9 = vsel %vm15563_vm2, %v2815_v27, %v2819_v23  ;;  %v17453_v30 = vsel %vm15563_vm2, %v2825_v17, %v2829_v20  ;;  %v2848_v15 = vor.u32 %v2847_v10, %v17427_v32  ;;  %v2851_v47 = vshll.u32 %v2631_v31, 16 }
 0x269   : > { %v13203_v22 = vadd.f32 %v13202_v37, %v13201_v12  ;;  %v13303_v48 = vadd.f32 %v13302_v51, %v13301_v19  ;;  %v2856_v19 = vshrl.u32 %v17438_v57, 16  ;;  %v2859_v37 = vshll.u32 %v17438_v57, 16 }
 0x26a   : > { %v13204_v44 = vpop.f32.mrf.mxu0  ;;  %v13304_v43 = vpop.f32.mrf.mxu1  ;;  %v2865_v23 = vshll.u32 %v17440_v62, 16  ;;  %v2869_v20 = vshrl.u32 %v17440_v62, 16  ;;  %v12332_v51 = vcombine.low %v17418_v41, %v17422_v36  ;;  %v12304_v10 = vcombine.low %v17394_v55, %v17398_v34  ;;  %v2632_v34 = vld [vmem:[#allocation2 + $0x78] sm:$0x11] }
 0x26b   : > { %v17434_v54 = vadd.f32 %v13203_v22, %v16833_v42  ;;  %v17443_v45 = vadd.f32 %v13303_v48, %v17361_v38  ;;  %v2838_v42 = vor.u32 %v2837_v63, %v2834_v14  ;;  %v12335_v22 = vcombine.high %v17449_v9, %v17453_v30  ;;  %v17472_v48 = vld [vmem:[#allocation2 + $0x20] sm:$0xff] }
 0x26c   : > { %v13205_v3 = vpop.f32.mrf.mxu0  ;;  %v13305_v16 = vpop.f32.mrf.mxu1  ;;  %v2849_v31 = vrot.slane %v2848_v15, 4  ;;  %v2858_v41 = vrot.slane %v2856_v19, 4  ;;  %v2861_v36 = vrot.slane %v2859_v37, 5  ;;  %v12307_v55 = vcombine.high %v17438_v57, %v17440_v62 }
 0x26d   : > { %v13206_v24 = vadd.f32 %v13205_v3, %v13204_v44  ;;  %v13306_v38 = vadd.f32 %v13305_v16, %v13304_v43  ;;  %v2853_v43 = vrot.slane %v2851_v47, 5 }
 0x26e   : > { %v13207_v12 = vpop.f32.mrf.mxu0  ;;  %6606 = vmatmul.mubr.bf16.gmra.mxu0 %v12302_v52  ;;  %v13307_v27 = vpop.f32.mrf.mxu1  ;;  %6751 = vmatmul.mubr.bf16.gmra.mxu1 %v12330_v28  ;;  %v2839_v52 = vrot.slane %v2838_v42, 4  ;;  %v2880_v42 = vshrl.u32 %v17472_v48, 16 }
 0x26f   : > { %v17460_v14 = vadd.f32 %v13206_v24, %v16856_v1  ;;  %6613 = vmatprep.mubr.bf16.mxu0 %v12305_v13  ;;  %v17464_v63 = vadd.f32 %v13306_v38, %v17380_v0  ;;  %6758 = vmatprep.mubr.bf16.mxu1 %v12333_v59  ;;  %v17474_v0 = vld [vmem:[#allocation2 + $0x1a0] sm:$0xff]  ;;  %v17476_v59 = vrot.slane %v2865_v23, 5  ;;  %v2871_v24 = vrot.slane %v2869_v20, 4 }
 0x270   : > { %v13208_v17 = vpop.f32.mrf.mxu0  ;;  %v13308_v1 = vpop.f32.mrf.mxu1  ;;  %v2883_v38 = vshll.u32 %v17472_v48, 16  ;;  %v2893_v19 = vshrl.u32 %v17474_v0, 16  ;;  %v17493_v20 = vsel %vm15563_vm2, %v2839_v52, %v17427_v32 }
 0x271   : > { %v13209_v44 = vadd.f32 %v13208_v17, %v13207_v12  ;;  %v13309_v28 = vadd.f32 %v13308_v1, %v13307_v27  ;;  %v2889_v12 = vshll.u32 %v17474_v0, 16  ;;  %v2875_v17 = vshll.u32 %v2632_v34, 16 }
 0x272   : > { %v13210_v13 = vpop.f32.mrf.mxu0  ;;  %v13310_v3 = vpop.f32.mrf.mxu1  ;;  %v2885_v52 = vrot.slane %v2883_v38, 5 }
 0x273   : > { %v17479_v16 = vadd.f32 %v13209_v44, %v16911_v33  ;;  %v17485_v15 = vadd.f32 %v13309_v28, %v17401_v18  ;;  %v17497_v18 = vsel %vm15563_vm2, %v2849_v31, %v2853_v43  ;;  %v2862_v28 = vor.u32 %v2861_v36, %v2858_v41 }
 0x274   : > { %v13211_v47 = vpop.f32.mrf.mxu0  ;;  %v13311_v37 = vpop.f32.mrf.mxu1  ;;  %v2895_v31 = vrot.slane %v2893_v19, 4  ;;  %v12337_v41 = vcombine.high %v17493_v20, %v17497_v18  ;;  %v2877_v19 = vrot.slane %v2875_v17, 5 }
 0x275   : > { %v13212_v33 = vadd.f32 %v13211_v47, %v13210_v13  ;;  %v13312_v23 = vadd.f32 %v13311_v37, %v13310_v3  ;;  %v2872_v13 = vor.u32 %v2871_v24, %v17476_v59  ;;  %v17506_v47 = vrot.slane %v2889_v12, 5 }
 0x276   : > { %v13341_v27 = vpop.f32.mrf.mxu0  ;;  %6614 = vmatmul.mubr.bf16.gmra.mxu0 %v12304_v10  ;;  %v13313_v1 = vpop.f32.mrf.mxu1  ;;  %6759 = vmatmul.mubr.bf16.gmra.mxu1 %v12332_v51  ;;  %v2882_v10 = vrot.slane %v2880_v42, 4  ;;  %v20791_v42 = vld [vmem:[#allocation32_spill] sm:$0xff]  ;;  %v2863_v12 = vrot.slane %v2862_v28, 4  ;;  %v12309_v37 = vcombine.high %v17472_v48, %v17474_v0 }
 0x277   : > { %v17500_v44 = vadd.f32 %v13212_v33, %v16936_v25  ;;  %6621 = vmatprep.mubr.bf16.mxu0 %v12307_v55  ;;  %v17504_v3 = vadd.f32 %v13312_v23, %v17413_v7  ;;  %6766 = vmatprep.mubr.bf16.mxu1 %v12335_v22  ;;  %v12334_v25 = vcombine.low %v17449_v9, %v17453_v30  ;;  %v2633_v55 = vld [vmem:[#allocation2 + $0x168] sm:$0x11]  ;;  %v17514_v22 = vld [vmem:[#allocation2 + $0x38] sm:$0xff]  ;;  %v17521_v9 = vld [vmem:[#allocation2 + $0x120] sm:$0xff]  ;;  %v2873_v23 = vrot.slane %v2872_v13, 4 }
 0x278   : > { %v13342_v32 = vpop.f32.mrf.mxu0  ;;  %v13314_v43 = vpop.f32.mrf.mxu1  ;;  %v12306_v7 = vcombine.low %v17438_v57, %v17440_v62  ;;  %v2886_v57 = vor.u32 %v2885_v52, %v2882_v10  ;;  %v2896_v62 = vor.u32 %v2895_v31, %v17506_v47  ;;  %v2907_v17 = vshll.u32 %v17514_v22, 16  ;;  %v20793_v13 = vld [vmem:[#allocation33_spill] sm:$0xff] }
 0x279   : > { %v13343_v34 = vadd.f32 %v13342_v32, %v13341_v27  ;;  %v13315_v51 = vadd.f32 %v13314_v43, %v13313_v1  ;;  %v2899_v32 = vshll.u32 %v2633_v55, 16  ;;  %v2904_v43 = vshrl.u32 %v17514_v22, 16 }
 0x27a   : > { %v13344_v36 = vpop.f32.mrf.mxu0  ;;  %v13316_v24 = vpop.f32.mrf.mxu1  ;;  %v17537_v52 = vsel %vm15563_vm2, %v2863_v12, %v17476_v59  ;;  %v2887_v55 = vrot.slane %v2886_v57, 4  ;;  %v12308_v12 = vcombine.low %v17472_v48, %v17474_v0  ;;  %v12311_v57 = vcombine.high %v17514_v22, %v17521_v9 }
 0x27b   : > { %v17517_v38 = vadd.f32 %v13343_v34, %v20791_v42  ;;  %v17524_v30 = vadd.f32 %v13315_v51, %v17434_v54  ;;  %v2913_v42 = vshll.u32 %v17521_v9, 16  ;;  %v2917_v54 = vshrl.u32 %v17521_v9, 16 }
 0x27c   : > { %v13345_v33 = vpop.f32.mrf.mxu0  ;;  %v13317_v27 = vpop.f32.mrf.mxu1 }
 0x27d   : > { %20792 = vst [vmem:[#allocation37_spill] sm:$0xff] %v17524_v30  ;;  %v13346_v1 = vadd.f32 %v13345_v33, %v13344_v36  ;;  %v13318_v28 = vadd.f32 %v13317_v27, %v13316_v24  ;;  %v17544_v36 = vsel %vm15563_vm2, %v2873_v23, %v2877_v19  ;;  %v2901_v27 = vrot.slane %v2899_v32, 5  ;;  %v17557_v32 = vld [vmem:[#allocation2 + $0xf0] sm:$0xff] }
 0x27e   : > { %v13347_v34 = vpop.f32.mrf.mxu0  ;;  %6622 = vmatmul.mubr.bf16.gmra.mxu0 %v12306_v7  ;;  %v13319_v51 = vpop.f32.mrf.mxu1  ;;  %6767 = vmatmul.mubr.bf16.gmra.mxu1 %v12334_v25  ;;  %v2897_v25 = vrot.slane %v2896_v62, 4  ;;  %v12336_v19 = vcombine.low %v17493_v20, %v17497_v18  ;;  %v2634_v62 = vld [vmem:[#allocation2 + $0xe0] sm:$0x11]  ;;  %v12339_v48 = vcombine.high %v17537_v52, %v17544_v36 }
 0x27f   : > { %v17532_v10 = vadd.f32 %v13346_v1, %v20793_v13  ;;  %6629 = vmatprep.mubr.bf16.mxu0 %v12309_v37  ;;  %v17540_v31 = vadd.f32 %v13318_v28, %v17460_v14  ;;  %6774 = vmatprep.mubr.bf16.mxu1 %v12337_v41  ;;  %v2906_v1 = vrot.slane %v2904_v43, 4  ;;  %v2909_v13 = vrot.slane %v2907_v17, 5  ;;  %v17564_v17 = vld [vmem:[#allocation2 + $0xb8] sm:$0xff] }
 0x280   : > { %v13348_v7 = vpop.f32.mrf.mxu0  ;;  %v13320_v24 = vpop.f32.mrf.mxu1  ;;  %v17548_v14 = vrot.slane %v2913_v42, 5  ;;  %v2919_v41 = vrot.slane %v2917_v54, 4  ;;  %v17573_v18 = vsel %vm15563_vm2, %v2897_v25, %v2901_v27  ;;  %v2923_v54 = vshll.u32 %v2634_v62, 16 }
 0x281   : > { %v13349_v33 = vadd.f32 %v13348_v7, %v13347_v34  ;;  %v13321_v30 = vadd.f32 %v13320_v24, %v13319_v51  ;;  %v2910_v34 = vor.u32 %v2909_v13, %v2906_v1  ;;  %v2928_v51 = vshrl.u32 %v17557_v32, 16 }
 0x282   : > { %v13350_v59 = vpop.f32.mrf.mxu0  ;;  %v13322_v37 = vpop.f32.mrf.mxu1  ;;  %v2920_v42 = vor.u32 %v2919_v41, %v17548_v14  ;;  %v2941_v1 = vshrl.u32 %v17564_v17, 16  ;;  %v2925_v62 = vrot.slane %v2923_v54, 5 }
 0x283   : > { %v17553_v23 = vadd.f32 %v13349_v33, %v17002_v60  ;;  %v17560_v43 = vadd.f32 %v13321_v30, %v17479_v16  ;;  %v17569_v60 = vsel %vm15563_vm2, %v2887_v55, %v17506_v47  ;;  %v2931_v47 = vshll.u32 %v17557_v32, 16 }
 0x284   : > { %v13351_v0 = vpop.f32.mrf.mxu0  ;;  %v13323_v28 = vpop.f32.mrf.mxu1  ;;  %v2937_v55 = vshll.u32 %v17564_v17, 16  ;;  %v12338_v33 = vcombine.low %v17537_v52, %v17544_v36  ;;  %v2911_v41 = vrot.slane %v2910_v34, 4  ;;  %v2930_v52 = vrot.slane %v2928_v51, 4  ;;  %v17594_v36 = vld [vmem:[#allocation2 + $0x178] sm:$0xff] }
 0x285   : > { %v13352_v20 = vadd.f32 %v13351_v0, %v13350_v59  ;;  %v13324_v16 = vadd.f32 %v13323_v28, %v13322_v37  ;;  %v17592_v37 = vld [vmem:[#allocation2 + $0x170] sm:$0xff]  ;;  %v12313_v28 = vcombine.high %v17557_v32, %v17564_v17  ;;  %v17606_v34 = vld [vmem:[#allocation2 + $0x158] sm:$0x11] }
 0x286   : > { %v13353_v30 = vpop.f32.mrf.mxu0  ;;  %6630 = vmatmul.mubr.bf16.gmra.mxu0 %v12308_v12  ;;  %v13453_v7 = vpop.f32.mrf.mxu1  ;;  %6775 = vmatmul.mubr.bf16.gmra.mxu1 %v12336_v19  ;;  %v12310_v12 = vcombine.low %v17514_v22, %v17521_v9  ;;  %20794 = vst [vmem:[#allocation31_spill] sm:$0xff] %v17606_v34  ;;  %v2955_v54 = vshll.u32 %v17592_v37, 16 }
 0x287   : > { %v17578_v24 = vadd.f32 %v13352_v20, %v17023_v50  ;;  %6637 = vmatprep.mubr.bf16.mxu0 %v12311_v57  ;;  %v17583_v25 = vadd.f32 %v13324_v16, %v17500_v44  ;;  %6782 = vmatprep.mubr.bf16.mxu1 %v12339_v48  ;;  %v12341_v50 = vcombine.high %v17569_v60, %v17573_v18  ;;  %v2921_v57 = vrot.slane %v2920_v42, 4 }
 0x288   : > { %v13354_v27 = vpop.f32.mrf.mxu0  ;;  %v13454_v13 = vpop.f32.mrf.mxu1  ;;  %v2933_v20 = vrot.slane %v2931_v47, 5  ;;  %v17601_v16 = vrot.slane %v2937_v55, 5  ;;  %v2952_v42 = vshrl.u32 %v17592_v37, 16 }
 0x289   : > { %v13355_v59 = vadd.f32 %v13354_v27, %v13353_v30  ;;  %v13455_v44 = vadd.f32 %v13454_v13, %v13453_v7  ;;  %v2943_v30 = vrot.slane %v2941_v1, 4  ;;  %v2961_v7 = vshll.u32 %v17594_v36, 16 }
 0x28a   : > { %v13356_v19 = vpop.f32.mrf.mxu0  ;;  %v13456_v48 = vpop.f32.mrf.mxu1  ;;  %v2965_v27 = vshrl.u32 %v17594_v36, 16 }
 0x28b   : > { %v17597_v0 = vadd.f32 %v13355_v59, %v17040_v11  ;;  %v17604_v22 = vadd.f32 %v13455_v44, %v17517_v38  ;;  %v17615_v38 = vsel %vm15563_vm2, %v2911_v41, %v17548_v14  ;;  %v17622_v59 = vsel %vm15563_vm2, %v2921_v57, %v2925_v62 }
 0x28c   : > { %v13357_v9 = vpop.f32.mrf.mxu0  ;;  %v13457_v51 = vpop.f32.mrf.mxu1  ;;  %v2934_v44 = vor.u32 %v2933_v20, %v2930_v52  ;;  %v2944_v14 = vor.u32 %v2943_v30, %v17601_v16  ;;  %v2954_v41 = vrot.slane %v2952_v42, 4  ;;  %v2967_v57 = vrot.slane %v2965_v27, 4  ;;  %v17637_v20 = vld [vmem:[#allocation2 + $0x98] sm:$0xff] }
 0x28d   : > { %v13358_v11 = vadd.f32 %v13357_v9, %v13356_v19  ;;  %v13458_v47 = vadd.f32 %v13457_v51, %v13456_v48  ;;  %v2947_v19 = vshll.u32 %v17606_v34, 16  ;;  %v17629_v51 = vld [vmem:[#allocation2 + $0x58] sm:$0x11]  ;;  %v12340_v52 = vcombine.low %v17569_v60, %v17573_v18 }
 0x28e   : > { %v13359_v55 = vpop.f32.mrf.mxu0  ;;  %6638 = vmatmul.mubr.bf16.gmra.mxu0 %v12310_v12  ;;  %v13459_v13 = vpop.f32.mrf.mxu1  ;;  %6783 = vmatmul.mubr.bf16.gmra.mxu1 %v12338_v33  ;;  %v2957_v33 = vrot.slane %v2955_v54, 5  ;;  %20795 = vst [vmem:[#allocation38_spill] sm:$0xff] %v17629_v51  ;;  %v2935_v54 = vrot.slane %v2934_v44, 4  ;;  %v12315_v27 = vcombine.high %v17592_v37, %v17594_v36  ;;  %v2979_v44 = vshll.u32 %v17637_v20, 16 }
 0x28f   : > { %v17618_v1 = vadd.f32 %v13358_v11, %v17048_v53  ;;  %6645 = vmatprep.mubr.bf16.mxu0 %v12313_v28  ;;  %v17626_v12 = vadd.f32 %v13458_v47, %v17532_v10  ;;  %6790 = vmatprep.mubr.bf16.mxu1 %v12341_v50  ;;  %v2963_v11 = vrot.slane %v2961_v7, 5  ;;  %v12343_v10 = vcombine.high %v17615_v38, %v17622_v59  ;;  %v17644_v47 = vld [vmem:[#allocation2 + $0x128] sm:$0xff] }
 0x290   : > { %v13360_v48 = vpop.f32.mrf.mxu0  ;;  %v13460_v9 = vpop.f32.mrf.mxu1  ;;  %v12312_v50 = vcombine.low %v17557_v32, %v17564_v17  ;;  %v2949_v7 = vrot.slane %v2947_v19, 5  ;;  %20796 = vst [vmem:[#allocation39_spill] sm:$0xff] %v17644_v47  ;;  %v2971_v32 = vshll.u32 %v17629_v51, 16  ;;  %v2985_v34 = vshll.u32 %v17644_v47, 16 }
 0x291   : > { %v13361_v53 = vadd.f32 %v13360_v48, %v13359_v55  ;;  %v13461_v62 = vadd.f32 %v13460_v9, %v13459_v13  ;;  %v2945_v55 = vrot.slane %v2944_v14, 4  ;;  %v2958_v13 = vor.u32 %v2957_v33, %v2954_v41 }
 0x292   : > { %v13362_v28 = vpop.f32.mrf.mxu0  ;;  %v13462_v30 = vpop.f32.mrf.mxu1  ;;  %v2968_v9 = vor.u32 %v2967_v57, %v2963_v11  ;;  %v17660_v41 = vsel %vm15563_vm2, %v2935_v54, %v17601_v16  ;;  %v12314_v54 = vcombine.low %v17592_v37, %v17594_v36 }
 0x293   : > { %v17640_v42 = vadd.f32 %v13361_v53, %v17076_v49  ;;  %v17647_v60 = vadd.f32 %v13461_v62, %v17553_v23  ;;  %v2976_v49 = vshrl.u32 %v17637_v20, 16  ;;  %v2989_v23 = vshrl.u32 %v17644_v47, 16 }
 0x294   : > { %v13363_v18 = vpop.f32.mrf.mxu0  ;;  %v13463_v17 = vpop.f32.mrf.mxu1  ;;  %v17667_v57 = vsel %vm15563_vm2, %v2945_v55, %v2949_v7  ;;  %v12342_v55 = vcombine.low %v17615_v38, %v17622_v59 }
 0x295   : > { %v13364_v48 = vadd.f32 %v13363_v18, %v13362_v28  ;;  %v13464_v19 = vadd.f32 %v13463_v17, %v13462_v30  ;;  %v2969_v18 = vrot.slane %v2968_v9, 4  ;;  %v2978_v17 = vrot.slane %v2976_v49, 4  ;;  %v17691_v49 = vld [vmem:[#allocation2 + $0x60] sm:$0xff] }
 0x296   : > { %v13365_v53 = vpop.f32.mrf.mxu0  ;;  %6646 = vmatmul.mubr.bf16.gmra.mxu0 %v12312_v50  ;;  %v13465_v62 = vpop.f32.mrf.mxu1  ;;  %6791 = vmatmul.mubr.bf16.gmra.mxu1 %v12340_v52  ;;  %v2959_v50 = vrot.slane %v2958_v13, 4  ;;  %v2973_v52 = vrot.slane %v2971_v32, 5  ;;  %v12317_v32 = vcombine.high %v17637_v20, %v17644_v47  ;;  %v12345_v37 = vcombine.high %v17660_v41, %v17667_v57 }
 0x297   : > { %v17655_v14 = vadd.f32 %v13364_v48, %v17097_v21  ;;  %6653 = vmatprep.mubr.bf16.mxu0 %v12315_v27  ;;  %v17663_v33 = vadd.f32 %v13464_v19, %v17578_v24  ;;  %6798 = vmatprep.mubr.bf16.mxu1 %v12343_v10  ;;  %v2981_v48 = vrot.slane %v2979_v44, 5  ;;  %v17671_v24 = vld [vmem:[#allocation2 + $0x140] sm:$0x11]  ;;  %v17673_v10 = vrot.slane %v2985_v34, 5 }
 0x298   : > { %v13366_v28 = vpop.f32.mrf.mxu0  ;;  %v13466_v30 = vpop.f32.mrf.mxu1  ;;  %20797 = vst [vmem:[#allocation40_spill] sm:$0xff] %v17671_v24  ;;  %v2991_v27 = vrot.slane %v2989_v23, 4  ;;  %v17689_v34 = vsel %vm15563_vm2, %v2959_v50, %v2963_v11  ;;  %v17699_v23 = vld [vmem:[#allocation2 + $0x88] sm:$0xff] }
 0x299   : > { %v13367_v21 = vadd.f32 %v13366_v28, %v13365_v53  ;;  %v13467_v51 = vadd.f32 %v13466_v30, %v13465_v62  ;;  %v2982_v44 = vor.u32 %v2981_v48, %v2978_v17  ;;  %v3009_v11 = vshll.u32 %v17699_v23, 16 }
 0x29a   : > { %v13368_v16 = vpop.f32.mrf.mxu0  ;;  %v13468_v7 = vpop.f32.mrf.mxu1  ;;  %v2992_v53 = vor.u32 %v2991_v27, %v17673_v10  ;;  %v3013_v62 = vshrl.u32 %v17699_v23, 16  ;;  %v3003_v30 = vshll.u32 %v17691_v49, 16 }
 0x29b   : > { %v17678_v13 = vadd.f32 %v13367_v21, %v17115_v2  ;;  %v17683_v9 = vadd.f32 %v13467_v51, %v17597_v0  ;;  %v17695_v2 = vsel %vm15563_vm2, %v2969_v18, %v2973_v52  ;;  %v2995_v0 = vshll.u32 %v17671_v24, 16  ;;  %v20799_v24 = vld [vmem:[#allocation34_spill] sm:$0xff] }
 0x29c   : > { %v13369_v36 = vpop.f32.mrf.mxu0  ;;  %v13469_v38 = vpop.f32.mrf.mxu1  ;;  %v3000_v52 = vshrl.u32 %v17691_v49, 16  ;;  %v12344_v18 = vcombine.low %v17660_v41, %v17667_v57  ;;  %v12347_v17 = vcombine.high %v17689_v34, %v17695_v2  ;;  %v17717_v41 = vrot.slane %v3009_v11, 5 }
 0x29d   : > { %v13370_v59 = vadd.f32 %v13369_v36, %v13368_v16  ;;  %v13470_v51 = vadd.f32 %v13469_v38, %v13468_v7  ;;  %v14927_v16 = vld [vmem:[#allocation2 + $0xe8] sm:$0xff]  ;;  %v2997_v36 = vrot.slane %v2995_v0, 5  ;;  %v3015_v57 = vrot.slane %v3013_v62, 4  ;;  %v17727_v0 = vld [vmem:[#allocation2 + $0x190] sm:$0x11] }
 0x29e   : > { %v13371_v19 = vpop.f32.mrf.mxu0  ;;  %6654 = vmatmul.mubr.bf16.gmra.mxu0 %v12314_v54  ;;  %v13471_v28 = vpop.f32.mrf.mxu1  ;;  %6799 = vmatmul.mubr.bf16.gmra.mxu1 %v12342_v55  ;;  %v3089_v54 = vrot.slane %v14927_v16, 5  ;;  %v12316_v55 = vcombine.low %v17637_v20, %v17644_v47  ;;  %v3005_v16 = vrot.slane %v3003_v30, 5  ;;  %20800 = vst [vmem:[#allocation42_spill] sm:$0xff] %v17727_v0  ;;  %v14928_v62 = vld [vmem:[#allocation2 + $0xd0] sm:$0x11] }
 0x29f   : > { %v17704_v50 = vadd.f32 %v13370_v59, %v17134_v46  ;;  %6661 = vmatprep.mubr.bf16.mxu0 %v12317_v32  ;;  %v17709_v21 = vadd.f32 %v13470_v51, %v17618_v1  ;;  %6806 = vmatprep.mubr.bf16.mxu1 %v12345_v37  ;;  %v14750_v46 = vld [vmem:[#allocation10 + $0x38] sm:$0xff]   ;;  %v2983_v32 = vrot.slane %v2982_v44, 4  ;;  %v3023_v1 = vld [vmem:[#allocation2 + $0xf8] sm:$0xee]  ;;  %v2993_v51 = vrot.slane %v2992_v53, 4 }
 0x2a0   : > { %v13372_v48 = vpop.f32.mrf.mxu0  ;;  %v13472_v27 = vpop.f32.mrf.mxu1  ;;  %14381 = vmatprep.subr.bf16.mxu1 %v14750_v46  ;;  %v12080_v53 = vrot.slane %v3023_v1, 9  ;;  %v3091_v11 = vrot.slane %v3089_v54, 4 }
 0x2a1   : > { %20798 = vst [vmem:[#allocation41_spill] sm:$0xff] %v17709_v21  ;;  %v13373_v7 = vadd.f32 %v13372_v48, %v13371_v19  ;;  %v13473_v38 = vadd.f32 %v13472_v27, %v13471_v28  ;;  %v12319_v19 = vcombine.high %v17691_v49, %v17699_v23  ;;  %v3002_v48 = vrot.slane %v3000_v52, 4  ;;  %14382 = vmatpush3.bf16.msra.mxu1 %v14750_v46  ;;  %v20801_v46 = vld [vmem:[#allocation35_spill] sm:$0xff] }
 0x2a2   : > { %v13374_v59 = vpop.f32.mrf.mxu0  ;;  %v13474_v37 = vpop.f32.mrf.mxu1  ;;  %v3092_v28 = vrot.slane %v14928_v62, 5  ;;  %v17732_v52 = vsel %vm15563_vm2, %v2983_v32, %v17673_v10  ;;  %v17740_v1 = vsel %vm15563_vm2, %v2993_v51, %v2997_v36 }
 0x2a3   : > { %v17720_v21 = vadd.f32 %v13373_v7, %v20799_v24  ;;  %v17725_v20 = vadd.f32 %v13473_v38, %v17640_v42  ;;  %v3016_v42 = vor.u32 %v3015_v57, %v17717_v41  ;;  %v17748_v57 = vsel %vm15940_vm12, %v12080_v53, %v3089_v54 }
 0x2a4   : > { %v13375_v44 = vpop.f32.mrf.mxu0  ;;  %v13475_v27 = vpop.f32.mrf.mxu1  ;;  %v12318_v54 = vcombine.low %v17691_v49, %v17699_v23 }
 0x2a5   : > { %v13376_v47 = vadd.f32 %v13375_v44, %v13374_v59  ;;  %v13476_v24 = vadd.f32 %v13475_v27, %v13474_v37  ;;  %v3006_v59 = vor.u32 %v3005_v16, %v3002_v48  ;;  %v3024_v16 = vld [vmem:[#allocation2 + $0x130] sm:$0xee]  ;;  %v3017_v53 = vrot.slane %v3016_v42, 4 }
 0x2a6   : > { %v13377_v7 = vpop.f32.mrf.mxu0  ;;  %6662 = vmatmul.mubr.bf16.gmra.mxu0 %v12316_v55  ;;  %v13477_v30 = vpop.f32.mrf.mxu1  ;;  %6807 = vmatmul.mubr.bf16.gmra.mxu1 %v12344_v18  ;;  %v3019_v55 = vshll.u32 %v17727_v0, 16  ;;  %v14929_v18 = vld [vmem:[#allocation2 + $0x80] sm:$0xff] }
 0x2a7   : > { %v17736_v38 = vadd.f32 %v13376_v47, %v20801_v46  ;;  %6669 = vmatprep.mubr.bf16.mxu0 %v12319_v19  ;;  %v17744_v37 = vadd.f32 %v13476_v24, %v17655_v14  ;;  %6814 = vmatprep.mubr.bf16.mxu1 %v12347_v17  ;;  %v17752_v47 = vsel %vm15940_vm12, %v3091_v11, %v3092_v28  ;;  %v3096_v36 = vrot.slane %v14929_v18, 5  ;;  %v20803_v11 = vld [vmem:[#allocation36_spill] sm:$0xff] }
 0x2a8   : > { %v13378_v10 = vpop.f32.mrf.mxu0  ;;  %v13478_v51 = vpop.f32.mrf.mxu1  ;;  %v12346_v19 = vcombine.low %v17689_v34, %v17695_v2  ;;  %v12349_v17 = vcombine.high %v17732_v52, %v17740_v1  ;;  %v3007_v27 = vrot.slane %v3006_v59, 4  ;;  %v3021_v24 = vrot.slane %v3019_v55, 5 }
 0x2a9   : > { %v13379_v48 = vadd.f32 %v13378_v10, %v13377_v7  ;;  %v13479_v14 = vadd.f32 %v13478_v51, %v13477_v30  ;;  %v12353_v34 = vcombine.high %v17748_v57, %v17752_v47  ;;  %v12081_v30 = vrot.slane %v3024_v16, 9  ;;  %v14930_v10 = vld [vmem:[#allocation2 + $0x108] sm:$0x11] }
 0x2aa   : > { %v13380_v44 = vpop.f32.mrf.mxu0  ;;  %v13480_v62 = vpop.f32.mrf.mxu1  ;;  %v3098_v46 = vrot.slane %v3096_v36, 4  ;;  %v3099_v18 = vrot.slane %v14930_v10, 5  ;;  %v17778_v55 = vsel %vm15563_vm2, %v3017_v53, %v3021_v24 }
 0x2ab   : > { %v17761_v28 = vadd.f32 %v13379_v48, %v20803_v11  ;;  %v17766_v2 = vadd.f32 %v13479_v14, %v17678_v13  ;;  %v17774_v13 = vsel %vm15563_vm2, %v3007_v27, %v17717_v41  ;;  %v14751_v41 = vld [vmem:[#allocation10 + $0x30] sm:$0xff]   ;;  %v3025_v27 = vld [vmem:[#allocation2 + $0x148] sm:$0xee] }
 0x2ac   : > { %v13381_v7 = vpop.f32.mrf.mxu0  ;;  %v13481_v51 = vpop.f32.mrf.mxu1  ;;  %14383 = vmatprep.subr.bf16.mxu1 %v14751_v41  ;;  %v12082_v10 = vrot.slane %v3025_v27, 9 }
 0x2ad   : > { %v13382_v49 = vadd.f32 %v13381_v7, %v13380_v44  ;;  %v13482_v42 = vadd.f32 %v13481_v51, %v13480_v62  ;;  %v14931_v44 = vld [vmem:[#allocation2 + $0x18] sm:$0xff]  ;;  %14384 = vmatpush3.bf16.msra.mxu1 %v14751_v41  ;;  %v14933_v41 = vld [vmem:[#allocation2 + $0x100] sm:$0xff] }
 0x2ae   : > { %v13383_v0 = vpop.f32.mrf.mxu0  ;;  %6670 = vmatmul.mubr.bf16.gmra.mxu0 %v12318_v54  ;;  %v13483_v48 = vpop.f32.mrf.mxu1  ;;  %6815 = vmatmul.mubr.bf16.gmra.mxu1 %v12346_v19  ;;  %v3097_v19 = vsel %vm15940_vm12, %v12081_v30, %v3096_v36  ;;  %v3103_v54 = vrot.slane %v14931_v44, 5  ;;  %v12351_v36 = vcombine.high %v17774_v13, %v17778_v55 }
 0x2af   : > { %v17769_v59 = vadd.f32 %v13382_v49, %v17217_v26  ;;  %6871 = vmatprep.mubr.bf16.mxu0 %v12353_v34  ;;  %v17781_v16 = vadd.f32 %v13482_v42, %v17704_v50  ;;  %6822 = vmatprep.mubr.bf16.mxu1 %v12349_v17  ;;  %v3100_v26 = vsel %vm15940_vm12, %v3098_v46, %v3099_v18 }
 0x2b0   : > { %v13384_v14 = vpop.f32.mrf.mxu0  ;;  %v13484_v62 = vpop.f32.mrf.mxu1  ;;  %v12352_v50 = vcombine.low %v17748_v57, %v17752_v47  ;;  %v12348_v34 = vcombine.low %v17732_v52, %v17740_v1  ;;  %v12355_v30 = vcombine.high %v3097_v19, %v3100_v26  ;;  %v3105_v18 = vrot.slane %v3103_v54, 4  ;;  %v14932_v57 = vld [vmem:[#allocation2 + $0x180] sm:$0x11] }
 0x2b1   : > { %v13385_v11 = vadd.f32 %v13384_v14, %v13383_v0  ;;  %v13485_v53 = vadd.f32 %v13484_v62, %v13483_v48  ;;  %v3106_v47 = vrot.slane %v14932_v57, 5  ;;  %v3104_v14 = vsel %vm15940_vm12, %v12082_v10, %v3103_v54 }
 0x2b2   : > { %v13386_v24 = vpop.f32.mrf.mxu0  ;;  %v13486_v17 = vpop.f32.mrf.mxu1  ;;  %v3110_v62 = vrot.slane %v14933_v41, 5 }
 0x2b3   : > { %v17794_v7 = vadd.f32 %v13385_v11, %v17240_v35  ;;  %v17797_v0 = vadd.f32 %v13485_v53, %v17720_v21  ;;  %v3107_v44 = vsel %vm15940_vm12, %v3105_v18, %v3106_v47  ;;  %v3026_v53 = vld [vmem:[#allocation2 + $0x138] sm:$0xee]  ;;  %v14934_v18 = vld [vmem:[#allocation2 + $0x1a8] sm:$0x11] }
 0x2b4   : > { %v13387_v46 = vpop.f32.mrf.mxu0  ;;  %v13487_v51 = vpop.f32.mrf.mxu1  ;;  %v3112_v10 = vrot.slane %v3110_v62, 4  ;;  %v3113_v57 = vrot.slane %v14934_v18, 5 }
 0x2b5   : > { %v13388_v49 = vadd.f32 %v13387_v46, %v13386_v24  ;;  %v13488_v42 = vadd.f32 %v13487_v51, %v13486_v17  ;;  %v12083_v46 = vrot.slane %v3026_v53, 9 }
 0x2b6   : > { %v13389_v52 = vpop.f32.mrf.mxu0  ;;  %6872 = vmatmul.mubr.bf16.vlgmr.msra.gmra.mxu0 %v12352_v50  ;;  %v13489_v1 = vpop.f32.mrf.mxu1  ;;  %6823 = vmatmul.mubr.bf16.gmra.mxu1 %v12348_v34  ;;  %v12354_v50 = vcombine.low %v3097_v19, %v3100_v26 }
 0x2b7   : > { %v17800_v35 = vadd.f32 %v13388_v49, %v17264_v56  ;;  %6879 = vmatprep.mubr.bf16.mxu0 %v12355_v30  ;;  %v17803_v48 = vadd.f32 %v13488_v42, %v17736_v38  ;;  %6830 = vmatprep.mubr.bf16.mxu1 %v12351_v36  ;;  %v12350_v38 = vcombine.low %v17774_v13, %v17778_v55 }
 0x2b8   : > { %v13390_v21 = vpop.f32.mrf.mxu0  ;;  %v13490_v11 = vpop.f32.mrf.mxu1  ;;  %v12357_v36 = vcombine.high %v3104_v14, %v3107_v44  ;;  %v3111_v55 = vsel %vm15940_vm12, %v12083_v46, %v3110_v62  ;;  %v3114_v42 = vsel %vm15940_vm12, %v3112_v10, %v3113_v57 }
 0x2b9   : > { %v13391_v27 = vadd.f32 %v13390_v21, %v13389_v52  ;;  %v13491_v24 = vadd.f32 %v13490_v11, %v13489_v1  ;;  %v14935_v52 = vld [vmem:[#allocation2 + $0x198] sm:$0xff]  ;;  %v14752_v21 = vld [vmem:[#allocation10 + $0x28] sm:$0xff]  }
 0x2ba   : > { %v13392_v56 = vpop.f32.mrf.mxu0  ;;  %v13492_v17 = vpop.f32.mrf.mxu1  ;;  %v3117_v1 = vrot.slane %v14935_v52, 5  ;;  %14385 = vmatprep.subr.bf16.mxu1 %v14752_v21 }
 0x2bb   : > { %v17812_v34 = vadd.f32 %v13391_v27, %v17284_v61  ;;  %v17815_v54 = vadd.f32 %v13491_v24, %v17761_v28  ;;  %v3027_v27 = vld [vmem:[#allocation2 + $0x160] sm:$0xee]  ;;  %v12356_v24 = vcombine.low %v3104_v14, %v3107_v44  ;;  %14386 = vmatpush3.bf16.msra.mxu1 %v14752_v21  ;;  %v3028_v21 = vld [vmem:[#allocation2 + $0x68] sm:$0xee] }
 0x2bc   : > { %v13393_v30 = vpop.f32.mrf.mxu0  ;;  %v13493_v47 = vpop.f32.mrf.mxu1 }
 0x2bd   : > { %v13394_v51 = vadd.f32 %v13393_v30, %v13392_v56  ;;  %v13494_v49 = vadd.f32 %v13493_v47, %v13492_v17  ;;  %v14936_v30 = vld [vmem:[#allocation2] sm:$0x11] }
 0x2be   : > { %v13395_v19 = vpop.f32.mrf.mxu0  ;;  %6880 = vmatmul.mubr.bf16.gmra.mxu0 %v12354_v50  ;;  %v13495_v26 = vpop.f32.mrf.mxu1  ;;  %6831 = vmatmul.mubr.bf16.gmra.mxu1 %v12350_v38  ;;  %v12359_v50 = vcombine.high %v3111_v55, %v3114_v42  ;;  %v12084_v38 = vrot.slane %v3027_v27, 9  ;;  %v3120_v46 = vrot.slane %v14936_v30, 5 }
 0x2bf   : > { %v17818_v13 = vadd.f32 %v13394_v51, %v17303_v4  ;;  %6887 = vmatprep.mubr.bf16.mxu0 %v12357_v36  ;;  %v17821_v61 = vadd.f32 %v13494_v49, %v17769_v59  ;;  %v3119_v36 = vrot.slane %v3117_v1, 4 }
 0x2c0   : > { %v13396_v28 = vpop.f32.mrf.mxu0  ;;  %v13496_v41 = vpop.f32.mrf.mxu1  ;;  %v3118_v51 = vsel %vm15940_vm12, %v12084_v38, %v3117_v1 }
 0x2c1   : > { %v13397_v11 = vadd.f32 %v13396_v28, %v13395_v19  ;;  %v13497_v53 = vadd.f32 %v13496_v41, %v13495_v26  ;;  %v3121_v49 = vsel %vm15940_vm12, %v3119_v36, %v3120_v46  ;;  %v14937_v19 = vld [vmem:[#allocation2 + $0x8] sm:$0xff] }
 0x2c2   : > { %v13398_v4 = vpop.f32.mrf.mxu0  ;;  %v13498_v56 = vpop.f32.mrf.mxu1  ;;  %v3124_v26 = vrot.slane %v14937_v19, 5 }
 0x2c3   : > { %v17828_v59 = vadd.f32 %v13397_v11, %v17324_v40  ;;  %v17831_v62 = vadd.f32 %v13497_v53, %v17794_v7 }
 0x2c4   : > { %v13399_v17 = vpop.f32.mrf.mxu0  ;;  %v13499_v10 = vpop.f32.mrf.mxu1 }
 0x2c5   : > { %v13400_v18 = vadd.f32 %v13399_v17, %v13398_v4  ;;  %v13500_v57 = vadd.f32 %v13499_v10, %v13498_v56  ;;  %v3126_v56 = vrot.slane %v3124_v26, 4 }
 0x2c6   : > { %v13401_v47 = vpop.f32.mrf.mxu0  ;;  %6888 = vmatmul.mubr.bf16.gmra.mxu0 %v12356_v24  ;;  %v13501_v14 = vpop.f32.mrf.mxu1  ;;  %v12085_v24 = vrot.slane %v3028_v21, 9  ;;  %v12360_v21 = vcombine.low %v3118_v51, %v3121_v49 }
 0x2c7   : > { %v17834_v44 = vadd.f32 %v13400_v18, %v17339_v58  ;;  %6895 = vmatprep.mubr.bf16.mxu0 %v12359_v50  ;;  %v17837_v40 = vadd.f32 %v13500_v57, %v17800_v35  ;;  %v12358_v58 = vcombine.low %v3111_v55, %v3114_v42  ;;  %v12361_v35 = vcombine.high %v3118_v51, %v3121_v49  ;;  %v14938_v50 = vld [vmem:[#allocation2 + $0xc8] sm:$0x11] }
 0x2c8   : > { %v13402_v7 = vpop.f32.mrf.mxu0  ;;  %v13502_v28 = vpop.f32.mrf.mxu1  ;;  %v3127_v17 = vrot.slane %v14938_v50, 5  ;;  %v3125_v42 = vsel %vm15940_vm12, %v12085_v24, %v3124_v26  ;;  %v14939_v57 = vld [vmem:[#allocation2 + $0xa8] sm:$0xff] }
 0x2c9   : > { %v13403_v52 = vadd.f32 %v13402_v7, %v13401_v47  ;;  %v13503_v41 = vadd.f32 %v13502_v28, %v13501_v14  ;;  %v3131_v47 = vrot.slane %v14939_v57, 5  ;;  %v14753_v14 = vld [vmem:[#allocation10 + $0x20] sm:$0xff]   ;;  %v3029_v28 = vld [vmem:[#allocation2 + $0x118] sm:$0xee] }
 0x2ca   : > { %v13404_v11 = vpop.f32.mrf.mxu0  ;;  %v13504_v27 = vpop.f32.mrf.mxu1  ;;  %v3128_v18 = vsel %vm15940_vm12, %v3126_v56, %v3127_v17  ;;  %14387 = vmatprep.subr.bf16.mxu1 %v14753_v14 }
 0x2cb   : > { %v17844_v53 = vadd.f32 %v13403_v52, %v17366_v29  ;;  %v17847_v4 = vadd.f32 %v13503_v41, %v17812_v34  ;;  %14388 = vmatpush3.bf16.msra.mxu1 %v14753_v14  ;;  %v3030_v14 = vld [vmem:[#allocation2 + $0x90] sm:$0xee] }
 0x2cc   : > { %v13405_v1 = vpop.f32.mrf.mxu0  ;;  %v13505_v38 = vpop.f32.mrf.mxu1 }
 0x2cd   : > { %v13406_v36 = vadd.f32 %v13405_v1, %v13404_v11  ;;  %v13506_v30 = vadd.f32 %v13505_v38, %v13504_v27  ;;  %v12363_v11 = vcombine.high %v3125_v42, %v3128_v18  ;;  %v12086_v27 = vrot.slane %v3029_v28, 9  ;;  %v14940_v1 = vld [vmem:[#allocation2 + $0x40] sm:$0x11] }
 0x2ce   : > { %v13407_v46 = vpop.f32.mrf.mxu0  ;;  %6896 = vmatmul.mubr.bf16.gmra.mxu0 %v12358_v58  ;;  %v13507_v10 = vpop.f32.mrf.mxu1  ;;  %v3134_v24 = vrot.slane %v14940_v1, 5 }
 0x2cf   : > { %v17850_v55 = vadd.f32 %v13406_v36, %v17388_v5  ;;  %6903 = vmatprep.mubr.bf16.mxu0 %v12361_v35  ;;  %v17853_v29 = vadd.f32 %v13506_v30, %v17818_v13  ;;  %v3133_v35 = vrot.slane %v3131_v47, 4  ;;  %v3132_v36 = vsel %vm15940_vm12, %v12086_v27, %v3131_v47 }
 0x2d0   : > { %v13408_v34 = vpop.f32.mrf.mxu0  ;;  %v13508_v7 = vpop.f32.mrf.mxu1 }
 0x2d1   : > { %v13409_v19 = vadd.f32 %v13408_v34, %v13407_v46  ;;  %v13509_v52 = vadd.f32 %v13508_v7, %v13507_v10  ;;  %v3135_v30 = vsel %vm15940_vm12, %v3133_v35, %v3134_v24  ;;  %v14941_v46 = vld [vmem:[#allocation2 + $0xd8] sm:$0xff] }
 0x2d2   : > { %v13410_v5 = vpop.f32.mrf.mxu0  ;;  %v13510_v41 = vpop.f32.mrf.mxu1  ;;  %v3138_v10 = vrot.slane %v14941_v46, 5 }
 0x2d3   : > { %v17860_v13 = vadd.f32 %v13409_v19, %v17406_v6  ;;  %v17863_v26 = vadd.f32 %v13509_v52, %v17828_v59 }
 0x2d4   : > { %v13411_v58 = vpop.f32.mrf.mxu0  ;;  %v13511_v56 = vpop.f32.mrf.mxu1 }
 0x2d5   : > { %v13412_v50 = vadd.f32 %v13411_v58, %v13410_v5  ;;  %v13512_v17 = vadd.f32 %v13511_v56, %v13510_v41  ;;  %v3140_v41 = vrot.slane %v3138_v10, 4 }
 0x2d6   : > { %v13413_v38 = vpop.f32.mrf.mxu0  ;;  %6904 = vmatmul.mubr.bf16.gmra.mxu0 %v12360_v21  ;;  %v13513_v51 = vpop.f32.mrf.mxu1  ;;  %v12087_v21 = vrot.slane %v3030_v14, 9  ;;  %v12364_v14 = vcombine.low %v3132_v36, %v3135_v30 }
 0x2d7   : > { %v17866_v49 = vadd.f32 %v13412_v50, %v17425_v39  ;;  %6911 = vmatprep.mubr.bf16.mxu0 %v12363_v11  ;;  %v17869_v6 = vadd.f32 %v13512_v17, %v17834_v44  ;;  %v12362_v39 = vcombine.low %v3125_v42, %v3128_v18  ;;  %v12365_v44 = vcombine.high %v3132_v36, %v3135_v30  ;;  %v14942_v11 = vld [vmem:[#allocation2 + $0x188] sm:$0x11]  ;;  %v14943_v17 = vld [vmem:[#allocation2 + $0xc0] sm:$0xff] }
 0x2d8   : > { %v13414_v59 = vpop.f32.mrf.mxu0  ;;  %v13514_v34 = vpop.f32.mrf.mxu1  ;;  %v3141_v58 = vrot.slane %v14942_v11, 5  ;;  %v3139_v18 = vsel %vm15940_vm12, %v12087_v21, %v3138_v10 }
 0x2d9   : > { %v13415_v57 = vadd.f32 %v13414_v59, %v13413_v38  ;;  %v13515_v7 = vadd.f32 %v13514_v34, %v13513_v51  ;;  %v3145_v38 = vrot.slane %v14943_v17, 5  ;;  %v14754_v51 = vld [vmem:[#allocation10 + $0x18] sm:$0xff]  }
 0x2da   : > { %v13416_v19 = vpop.f32.mrf.mxu0  ;;  %v13516_v28 = vpop.f32.mrf.mxu1  ;;  %v3142_v50 = vsel %vm15940_vm12, %v3140_v41, %v3141_v58  ;;  %v3031_v34 = vld [vmem:[#allocation2 + $0xa0] sm:$0xee]  ;;  %14389 = vmatprep.subr.bf16.mxu1 %v14754_v51 }
 0x2db   : > { %v17876_v52 = vadd.f32 %v13415_v57, %v17443_v45  ;;  %v17879_v5 = vadd.f32 %v13515_v7, %v17844_v53  ;;  %14390 = vmatpush3.bf16.msra.mxu1 %v14754_v51  ;;  %v3032_v51 = vld [vmem:[#allocation2 + $0x110] sm:$0xee] }
 0x2dc   : > { %v13417_v47 = vpop.f32.mrf.mxu0  ;;  %v13517_v27 = vpop.f32.mrf.mxu1 }
 0x2dd   : > { %v13418_v35 = vadd.f32 %v13417_v47, %v13416_v19  ;;  %v13518_v1 = vadd.f32 %v13517_v27, %v13516_v28  ;;  %v12367_v19 = vcombine.high %v3139_v18, %v3142_v50  ;;  %v12088_v28 = vrot.slane %v3031_v34, 9  ;;  %v14944_v47 = vld [vmem:[#allocation2 + $0x50] sm:$0x11] }
 0x2de   : > { %v13419_v24 = vpop.f32.mrf.mxu0  ;;  %6912 = vmatmul.mubr.bf16.gmra.mxu0 %v12362_v39  ;;  %v13519_v56 = vpop.f32.mrf.mxu1  ;;  %v3148_v21 = vrot.slane %v14944_v47, 5 }
 0x2df   : > { %v17882_v42 = vadd.f32 %v13418_v35, %v17464_v63  ;;  %6919 = vmatprep.mubr.bf16.mxu0 %v12365_v44  ;;  %v17885_v45 = vadd.f32 %v13518_v1, %v17850_v55  ;;  %v3147_v44 = vrot.slane %v3145_v38, 4  ;;  %v3146_v35 = vsel %vm15940_vm12, %v12088_v28, %v3145_v38 }
 0x2e0   : > { %v13420_v53 = vpop.f32.mrf.mxu0  ;;  %v13520_v59 = vpop.f32.mrf.mxu1 }
 0x2e1   : > { %v13421_v46 = vadd.f32 %v13420_v53, %v13419_v24  ;;  %v13521_v57 = vadd.f32 %v13520_v59, %v13519_v56  ;;  %v3149_v1 = vsel %vm15940_vm12, %v3147_v44, %v3148_v21  ;;  %v14945_v24 = vld [vmem:[#allocation2 + $0x30] sm:$0xff] }
 0x2e2   : > { %v13422_v63 = vpop.f32.mrf.mxu0  ;;  %v13522_v7 = vpop.f32.mrf.mxu1  ;;  %v3152_v56 = vrot.slane %v14945_v24, 5  ;;  %v14755_v24 = vld [vmem:[#allocation10 + $0x10] sm:$0xff]  }
 0x2e3   : > { %v17892_v55 = vadd.f32 %v13421_v46, %v17485_v15  ;;  %v17895_v10 = vadd.f32 %v13521_v57, %v17860_v13  ;;  %v20804_v57 = vld [vmem:[#allocation37_spill] sm:$0xff]  ;;  %14391 = vmatprep.subr.bf16.mxu1 %v14755_v24 }
 0x2e4   : > { %v13423_v39 = vpop.f32.mrf.mxu0  ;;  %v13523_v41 = vpop.f32.mrf.mxu1  ;;  %14392 = vmatpush3.bf16.msra.mxu1 %v14755_v24 }
 0x2e5   : > { %v13424_v11 = vadd.f32 %v13423_v39, %v13422_v63  ;;  %v13524_v58 = vadd.f32 %v13523_v41, %v13522_v7  ;;  %v12089_v7 = vrot.slane %v3032_v51, 9  ;;  %v14946_v39 = vld [vmem:[#allocation2 + $0x78] sm:$0x11]  ;;  %v3033_v51 = vld [vmem:[#allocation2 + $0x20] sm:$0xee] }
 0x2e6   : > { %v13425_v27 = vpop.f32.mrf.mxu0  ;;  %6920 = vmatmul.mubr.bf16.gmra.mxu0 %v12364_v14  ;;  %v13525_v36 = vpop.f32.mrf.mxu1  ;;  %v3155_v28 = vrot.slane %v14946_v39, 5 }
 0x2e7   : > { %v17898_v30 = vadd.f32 %v13424_v11, %v17504_v3  ;;  %6927 = vmatprep.mubr.bf16.mxu0 %v12367_v19  ;;  %v17901_v15 = vadd.f32 %v13524_v58, %v17866_v49  ;;  %v12366_v3 = vcombine.low %v3139_v18, %v3142_v50  ;;  %v12369_v49 = vcombine.high %v3146_v35, %v3149_v1 }
 0x2e8   : > { %v13426_v13 = vpop.f32.mrf.mxu0  ;;  %v13526_v53 = vpop.f32.mrf.mxu1  ;;  %v3154_v19 = vrot.slane %v3152_v56, 4  ;;  %v3153_v58 = vsel %vm15940_vm12, %v12089_v7, %v3152_v56  ;;  %v14948_v7 = vld [vmem:[#allocation2 + $0x168] sm:$0x11] }
 0x2e9   : > { %v13427_v17 = vadd.f32 %v13426_v13, %v13425_v27  ;;  %v13527_v59 = vadd.f32 %v13526_v53, %v13525_v36  ;;  %v14947_v36 = vld [vmem:[#allocation2 + $0x1a0] sm:$0xff] }
 0x2ea   : > { %v13428_v46 = vpop.f32.mrf.mxu0  ;;  %v13528_v34 = vpop.f32.mrf.mxu1  ;;  %v3156_v27 = vsel %vm15940_vm12, %v3154_v19, %v3155_v28  ;;  %v3159_v13 = vrot.slane %v14947_v36, 5  ;;  %v3162_v19 = vrot.slane %v14948_v7, 5 }
 0x2eb   : > { %v17908_v63 = vadd.f32 %v13427_v17, %v20804_v57  ;;  %v17911_v14 = vadd.f32 %v13527_v59, %v17876_v52 }
 0x2ec   : > { %v13429_v38 = vpop.f32.mrf.mxu0  ;;  %v13529_v44 = vpop.f32.mrf.mxu1 }
 0x2ed   : > { %v13430_v47 = vadd.f32 %v13429_v38, %v13428_v46  ;;  %v13530_v21 = vadd.f32 %v13529_v44, %v13528_v34  ;;  %v12368_v46 = vcombine.low %v3146_v35, %v3149_v1  ;;  %v12371_v34 = vcombine.high %v3153_v58, %v3156_v27 }
 0x2ee   : > { %v13431_v41 = vpop.f32.mrf.mxu0  ;;  %6928 = vmatmul.mubr.bf16.gmra.mxu0 %v12366_v3  ;;  %v13531_v11 = vpop.f32.mrf.mxu1  ;;  %v3161_v38 = vrot.slane %v3159_v13, 4 }
 0x2ef   : > { %v17914_v18 = vadd.f32 %v13430_v47, %v17540_v31  ;;  %6935 = vmatprep.mubr.bf16.mxu0 %v12369_v49  ;;  %v17917_v50 = vadd.f32 %v13530_v21, %v17882_v42  ;;  %v12090_v49 = vrot.slane %v3033_v51, 9 }
 0x2f0   : > { %v13432_v52 = vpop.f32.mrf.mxu0  ;;  %v13532_v53 = vpop.f32.mrf.mxu1 }
 0x2f1   : > { %v13433_v17 = vadd.f32 %v13432_v52, %v13431_v41  ;;  %v13533_v59 = vadd.f32 %v13532_v53, %v13531_v11  ;;  %v3163_v41 = vsel %vm15940_vm12, %v3161_v38, %v3162_v19  ;;  %v14949_v11 = vld [vmem:[#allocation2 + $0x120] sm:$0xff]  ;;  %v3034_v53 = vld [vmem:[#allocation2 + $0x38] sm:$0xee] }
 0x2f2   : > { %v13434_v31 = vpop.f32.mrf.mxu0  ;;  %v13534_v3 = vpop.f32.mrf.mxu1  ;;  %v3166_v52 = vrot.slane %v14949_v11, 5 }
 0x2f3   : > { %v17924_v42 = vadd.f32 %v13433_v17, %v17560_v43  ;;  %v17927_v56 = vadd.f32 %v13533_v59, %v17892_v55  ;;  %v3160_v55 = vsel %vm15940_vm12, %v12090_v49, %v3159_v13  ;;  %v12370_v59 = vcombine.low %v3153_v58, %v3156_v27 }
 0x2f4   : > { %v13435_v57 = vpop.f32.mrf.mxu0  ;;  %v13535_v39 = vpop.f32.mrf.mxu1 }
 0x2f5   : > { %v13436_v28 = vadd.f32 %v13435_v57, %v13434_v31  ;;  %v13536_v44 = vadd.f32 %v13535_v39, %v13534_v3  ;;  %v12091_v3 = vrot.slane %v3034_v53, 9  ;;  %v14950_v57 = vld [vmem:[#allocation2 + $0xe0] sm:$0x11] }
 0x2f6   : > { %v13565_v47 = vpop.f32.mrf.mxu0  ;;  %6936 = vmatmul.mubr.bf16.gmra.mxu0 %v12368_v46  ;;  %v13537_v35 = vpop.f32.mrf.mxu1  ;;  %v3169_v49 = vrot.slane %v14950_v57, 5 }
 0x2f7   : > { %v6353_v1 = vadd.f32 %v13436_v28, %v17583_v25  ;;  %6943 = vmatprep.mubr.bf16.mxu0 %v12371_v34  ;;  %v17931_v43 = vadd.f32 %v13536_v44, %v17898_v30  ;;  %v12373_v30 = vcombine.high %v3160_v55, %v3163_v41  ;;  %v3168_v34 = vrot.slane %v3166_v52, 4 }
 0x2f8   : > { %v13566_v21 = vpop.f32.mrf.mxu0  ;;  %v13538_v36 = vpop.f32.mrf.mxu1  ;;  %v3167_v27 = vsel %vm15940_vm12, %v12091_v3, %v3166_v52  ;;  %v20805_v3 = vld [vmem:[#allocation31_spill] sm:$0xff] }
 0x2f9   : > { %v13567_v24 = vadd.f32 %v13566_v21, %v13565_v47  ;;  %v13539_v17 = vadd.f32 %v13538_v36, %v13537_v35  ;;  %v3170_v44 = vsel %vm15940_vm12, %v3168_v34, %v3169_v49  ;;  %v14951_v47 = vld [vmem:[#allocation2 + $0xb8] sm:$0xff]  ;;  %v14756_v21 = vld [vmem:[#allocation10 + $0x8] sm:$0xff]   ;;  %v3176_v34 = vrot.slane %v20805_v3, 5 }
 0x2fa   : > { %v13568_v51 = vpop.f32.mrf.mxu0  ;;  %v13540_v25 = vpop.f32.mrf.mxu1  ;;  %v3173_v35 = vrot.slane %v14951_v47, 5  ;;  %14393 = vmatprep.subr.bf16.mxu1 %v14756_v21 }
 0x2fb   : > { %v17938_v31 = vadd.f32 %v13567_v24, %v17604_v22  ;;  %v17941_v46 = vadd.f32 %v13539_v17, %v17908_v63  ;;  %v3035_v24 = vld [vmem:[#allocation2 + $0xf0] sm:$0xee]  ;;  %v12372_v17 = vcombine.low %v3160_v55, %v3163_v41  ;;  %14394 = vmatpush3.bf16.msra.mxu1 %v14756_v21 }
 0x2fc   : > { %v13569_v13 = vpop.f32.mrf.mxu0  ;;  %v13541_v38 = vpop.f32.mrf.mxu1 }
 0x2fd   : > { %v13570_v7 = vadd.f32 %v13569_v13, %v13568_v51  ;;  %v13542_v19 = vadd.f32 %v13541_v38, %v13540_v25  ;;  %v3175_v13 = vrot.slane %v3173_v35, 4 }
 0x2fe   : > { %v13571_v39 = vpop.f32.mrf.mxu0  ;;  %6944 = vmatmul.mubr.bf16.gmra.mxu0 %v12370_v59  ;;  %v13543_v28 = vpop.f32.mrf.mxu1  ;;  %v12375_v59 = vcombine.high %v3167_v27, %v3170_v44 }
 0x2ff   : > { %v17944_v58 = vadd.f32 %v13570_v7, %v17626_v12  ;;  %6951 = vmatprep.mubr.bf16.mxu0 %v12373_v30  ;;  %v17947_v22 = vadd.f32 %v13542_v19, %v17914_v18  ;;  %v12092_v30 = vrot.slane %v3035_v24, 9 }
 0x300   : > { %v13572_v63 = vpop.f32.mrf.mxu0  ;;  %v13544_v11 = vpop.f32.mrf.mxu1 }
 0x301   : > { %v13573_v36 = vadd.f32 %v13572_v63, %v13571_v39  ;;  %v13545_v53 = vadd.f32 %v13544_v11, %v13543_v28  ;;  %v3174_v19 = vsel %vm15940_vm12, %v12092_v30, %v3173_v35  ;;  %v3177_v39 = vsel %vm15940_vm12, %v3175_v13, %v3176_v34  ;;  %v14952_v28 = vld [vmem:[#allocation2 + $0x178] sm:$0xff]  ;;  %v3036_v11 = vld [vmem:[#allocation2 + $0x170] sm:$0xee] }
 0x302   : > { %v13574_v12 = vpop.f32.mrf.mxu0  ;;  %v13546_v51 = vpop.f32.mrf.mxu1  ;;  %v3180_v63 = vrot.slane %v14952_v28, 5 }
 0x303   : > { %v17954_v18 = vadd.f32 %v13573_v36, %v17647_v60  ;;  %v17957_v52 = vadd.f32 %v13545_v53, %v17924_v42  ;;  %v14757_v36 = vld [vmem:[#allocation10] sm:$0xff]  }
 0x304   : > { %v13575_v25 = vpop.f32.mrf.mxu0  ;;  %v13547_v57 = vpop.f32.mrf.mxu1  ;;  %14395 = vmatprep.subr.bf16.mxu1 %v14757_v36 }
 0x305   : > { %v13576_v49 = vadd.f32 %v13575_v25, %v13574_v12  ;;  %v13548_v38 = vadd.f32 %v13547_v57, %v13546_v51  ;;  %v12377_v12 = vcombine.high %v3174_v19, %v3177_v39  ;;  %v3182_v51 = vrot.slane %v3180_v63, 4  ;;  %14396 = vmatpush3.bf16.msra.mxu1 %v14757_v36 }
 0x306   : > { %v13577_v7 = vpop.f32.mrf.mxu0  ;;  %6952 = vmatmul.mubr.bf16.gmra.mxu0 %v12372_v17  ;;  %v17960_v55 = vpop.f32.mrf.mxu1  ;;  %v12093_v17 = vrot.slane %v3036_v11, 9  ;;  %v12376_v36 = vcombine.low %v3174_v19, %v3177_v39 }
 0x307   : > { %v17963_v60 = vadd.f32 %v13576_v49, %v17663_v33  ;;  %6959 = vmatprep.mubr.bf16.mxu0 %v12375_v59  ;;  %v17965_v41 = vadd.f32 %v13548_v38, %v6353_v1  ;;  %v12374_v33 = vcombine.low %v3167_v27, %v3170_v44  ;;  %v20806_v59 = vld [vmem:[#allocation38_spill] sm:$0xff]  ;;  %v20807_v27 = vld [vmem:[#allocation41_spill] sm:$0xff]  ;;  %v20808_v38 = vld [vmem:[#allocation39_spill] sm:$0xff] }
 0x308   : > { %v13578_v42 = vpop.f32.mrf.mxu0  ;;  %v17971_v47 = vpop.f32.mrf.mxu1  ;;  %v3183_v25 = vrot.slane %v20806_v59, 5  ;;  %v3181_v57 = vsel %vm15940_vm12, %v12093_v17, %v3180_v63  ;;  %v20809_v17 = vld [vmem:[#allocation40_spill] sm:$0xff] }
 0x309   : > { %v13579_v21 = vadd.f32 %v13578_v42, %v13577_v7  ;;  %v3187_v7 = vrot.slane %v20808_v38, 5  ;;  %v3194_v38 = vrot.slane %v17699_v23, 5 }
 0x30a   : > { %v13580_v24 = vpop.f32.mrf.mxu0  ;;  %v17973_v53 = vpop.f32.mrf.mxu1  ;;  %v3184_v49 = vsel %vm15940_vm12, %v3182_v51, %v3183_v25 }
 0x30b   : > { %v17976_v1 = vadd.f32 %v13579_v21, %v17683_v9  ;;  %v3037_v21 = vld [vmem:[#allocation2 + $0x98] sm:$0xee]  ;;  %v3189_v63 = vrot.slane %v3187_v7, 4 }
 0x30c   : > { %v13581_v35 = vpop.f32.mrf.mxu0  ;;  %v17979_v30 = vpop.f32.mrf.mxu1  ;;  %v12094_v59 = vrot.slane %v3037_v21, 9 }
 0x30d   : > { %v13582_v13 = vadd.f32 %v13581_v35, %v13580_v24 }
 0x30e   : > { %v13583_v3 = vpop.f32.mrf.mxu0  ;;  %6960 = vmatmul.mubr.bf16.gmra.mxu0 %v12374_v33  ;;  %v17981_v34 = vpop.f32.mrf.mxu1 }
 0x30f   : > { %v17984_v44 = vadd.f32 %v13582_v13, %v20807_v27  ;;  %6967 = vmatprep.mubr.bf16.mxu0 %v12377_v12  ;;  %v12379_v12 = vcombine.high %v3181_v57, %v3184_v49  ;;  %v3190_v13 = vrot.slane %v20809_v17, 5 }
 0x310   : > { %v13584_v9 = vpop.f32.mrf.mxu0  ;;  %v17991_v42 = vpop.f32.mrf.mxu1 }
 0x311   : > { %v13585_v28 = vadd.f32 %v13584_v9, %v13583_v3  ;;  %v3191_v9 = vsel %vm15940_vm12, %v3189_v63, %v3190_v13 }
 0x312   : > { %v13586_v11 = vpop.f32.mrf.mxu0  ;;  %v17993_v24 = vpop.f32.mrf.mxu1 }
 0x313   : > { %v17996_v33 = vadd.f32 %v13585_v28, %v17725_v20  ;;  %v3188_v20 = vsel %vm15940_vm12, %v12094_v59, %v3187_v7  ;;  %v3196_v7 = vrot.slane %v3194_v38, 4  ;;  %v20812_v59 = vld [vmem:[#allocation42_spill] sm:$0xff] }
 0x314   : > { %v13587_v35 = vpop.f32.mrf.mxu0  ;;  %v17999_v51 = vpop.f32.mrf.mxu1 }
 0x315   : > { %v13588_v25 = vadd.f32 %v13587_v35, %v13586_v11  ;;  %v3038_v11 = vld [vmem:[#allocation2 + $0x60] sm:$0xee]  ;;  %v12378_v35 = vcombine.low %v3181_v57, %v3184_v49 }
 0x316   : > { %v13589_v27 = vpop.f32.mrf.mxu0  ;;  %6968 = vmatmul.mubr.bf16.gmra.mxu0 %v12376_v36  ;;  %v18001_v3 = vpop.f32.mrf.mxu1  ;;  %v12095_v8 = vrot.slane %v3038_v11, 9 }
 0x317   : > { %v18004_v19 = vadd.f32 %v13588_v25, %v17744_v37  ;;  %6975 = vmatprep.mubr.bf16.mxu0 %v12379_v12  ;;  %v12381_v12 = vcombine.high %v3188_v20, %v3191_v9 }
 0x318   : > { %v13590_v39 = vpop.f32.mrf.mxu0  ;;  %v18011_v28 = vpop.f32.mrf.mxu1 }
 0x319   : > { %20810 = vst [vmem:[#allocation43_spill] sm:$0xff] %v18004_v19  ;;  %v13591_v21 = vadd.f32 %v13590_v39, %v13589_v27  ;;  %v3197_v19 = vrot.slane %v20812_v59, 5  ;;  %v12380_v59 = vcombine.low %v3188_v20, %v3191_v9 }
 0x31a   : > { %v13592_v36 = vpop.f32.mrf.mxu0  ;;  %v18013_v17 = vpop.f32.mrf.mxu1 }
 0x31b   : > { %v18016_v37 = vadd.f32 %v13591_v21, %v17766_v2  ;;  %v3195_v2 = vsel %vm15940_vm12, %v12095_v8, %v3194_v38  ;;  %v3198_v39 = vsel %vm15940_vm12, %v3196_v7, %v3197_v19 }
 0x31c   : > { %v13593_v25 = vpop.f32.mrf.mxu0  ;;  %v18019_v63 = vpop.f32.mrf.mxu1  ;;  %v12382_v20 = vcombine.low %v3195_v2, %v3198_v39 }
 0x31d   : > { %20811 = vst [vmem:[#allocation44_spill] sm:$0xff] %v18016_v37  ;;  %v13594_v23 = vadd.f32 %v13593_v25, %v13592_v36 }
 0x31e   : > { %v13595_v13 = vpop.f32.mrf.mxu0  ;;  %6976 = vmatmul.mubr.bf16.gmra.mxu0 %v12378_v35  ;;  %v18021_v27 = vpop.f32.mrf.mxu1  ;;  %v12383_v35 = vcombine.high %v3195_v2, %v3198_v39 }
 0x31f   : > { %v18024_v57 = vadd.f32 %v13594_v23, %v17781_v16  ;;  %6983 = vmatprep.mubr.bf16.mxu0 %v12381_v12 }
 0x320   : > { %v13596_v49 = vpop.f32.mrf.mxu0  ;;  %v18030_v37 = vpop.f32.mrf.mxu1 }
 0x321   : > { %v13597_v21 = vadd.f32 %v13596_v49, %v13595_v13 }
 0x322   : > { %v13598_v11 = vpop.f32.mrf.mxu0  ;;  %v18035_v12 = vpop.f32.mrf.mxu1 }
 0x323   : > { %v18033_v36 = vadd.f32 %v13597_v21, %v17797_v0 }
 0x324   : > { %v13599_v25 = vpop.f32.mrf.mxu0  ;;  %v18040_v9 = vpop.f32.mrf.mxu1 }
 0x325   : > { %v13600_v16 = vadd.f32 %v13599_v25, %v13598_v11 }
 0x326   : > { %v13601_v23 = vpop.f32.mrf.mxu0  ;;  %6984 = vmatmul.mubr.bf16.gmra.mxu0 %v12380_v59  ;;  %v18045_v11 = vpop.f32.mrf.mxu1 }
 0x327   : > { %v18038_v8 = vadd.f32 %v13600_v16, %v17803_v48  ;;  %6991 = vmatprep.mubr.bf16.mxu0 %v12383_v35 }
 0x328   : > { %v13602_v19 = vpop.f32.mrf.mxu0  ;;  %v18050_v16 = vpop.f32.mrf.mxu1 }
 0x329   : > { %v13603_v38 = vadd.f32 %v13602_v19, %v13601_v23 }
 0x32a   : > { %v13604_v7 = vpop.f32.mrf.mxu0  ;;  %v18055_v19 = vpop.f32.mrf.mxu1 }
 0x32b   : > { %v18043_v0 = vadd.f32 %v13603_v38, %v17815_v54 }
 0x32c   : > { %v13605_v13 = vpop.f32.mrf.mxu0 }
 0x32d   : > { %v13606_v49 = vadd.f32 %v13605_v13, %v13604_v7  ;;  %v18060_v13 = vpop.f32.mrf.mxu1 }
 0x32e   : > { %v13607_v21 = vpop.f32.mrf.mxu0  ;;  %6992 = vmatmul.mubr.bf16.gmra.mxu0 %v12382_v20 }
 0x32f   : > { %v18048_v59 = vadd.f32 %v13606_v49, %v17821_v61 }
 0x330   : > { %v13608_v48 = vpop.f32.mrf.mxu0 }
 0x331   : > { %v13609_v35 = vadd.f32 %v13608_v48, %v13607_v21 }
 0x332   : > { %v13610_v25 = vpop.f32.mrf.mxu0 }
 0x333   : > { %v18053_v2 = vadd.f32 %v13609_v35, %v17831_v62  ;;  %v18065_v35 = vpop.f32.mrf.mxu1 }
 0x334   : > { %v13611_v39 = vpop.f32.mrf.mxu0 }
 0x335   : > { %v13612_v54 = vadd.f32 %v13611_v39, %v13610_v25 }
 0x336   : > { %v13613_v23 = vpop.f32.mrf.mxu0 }
 0x337   : > { %v18058_v38 = vadd.f32 %v13612_v54, %v17837_v40  ;;  %v18070_v54 = vpop.f32.mrf.mxu1 }
 0x338   : > { %v13614_v7 = vpop.f32.mrf.mxu0 }
 0x339   : > { %20813 = vst [vmem:[#allocation26_spill] sm:$0xff] %v18058_v38  ;;  %v13615_v20 = vadd.f32 %v13614_v7, %v13613_v23 }
 0x33a   : > { %v13616_v61 = vpop.f32.mrf.mxu0 }
 0x33b   : > { %v18063_v49 = vadd.f32 %v13615_v20, %v17847_v4  ;;  %v18075_v20 = vpop.f32.mrf.mxu1 }
 0x33c   : > { %v13617_v21 = vpop.f32.mrf.mxu0 }
 0x33d   : > { %20814 = vst [vmem:[#allocation45_spill] sm:$0xff] %v18063_v49  ;;  %v13618_v48 = vadd.f32 %v13617_v21, %v13616_v61 }
 0x33e   : > { %v13619_v62 = vpop.f32.mrf.mxu0 }
 0x33f   : > { %v18068_v25 = vadd.f32 %v13618_v48, %v17853_v29  ;;  %v18080_v48 = vpop.f32.mrf.mxu1 }
 0x340   : > { %v13620_v39 = vpop.f32.mrf.mxu0 }
 0x341   : > { %20815 = vst [vmem:[#allocation46_spill] sm:$0xff] %v18068_v25  ;;  %v13621_v32 = vadd.f32 %v13620_v39, %v13619_v62 }
 0x342   : > { %v13622_v40 = vpop.f32.mrf.mxu0 }
 0x343   : > { %v18073_v23 = vadd.f32 %v13621_v32, %v17863_v26  ;;  %v18085_v26 = vpop.f32.mrf.mxu1 }
 0x344   : > { %v13623_v7 = vpop.f32.mrf.mxu0 }
 0x345   : > { %20816 = vst [vmem:[#allocation47_spill] sm:$0xff] %v18073_v23  ;;  %v13624_v38 = vadd.f32 %v13623_v7, %v13622_v40 }
 0x346   : > { %v13625_v4 = vpop.f32.mrf.mxu0 }
 0x347   : > { %v18078_v61 = vadd.f32 %v13624_v38, %v17869_v6  ;;  %v18090_v38 = vpop.f32.mrf.mxu1 }
 0x348   : > { %v13626_v21 = vpop.f32.mrf.mxu0 }
 0x349   : > { %20817 = vst [vmem:[#allocation32_spill] sm:$0xff] %v18078_v61  ;;  %v13627_v49 = vadd.f32 %v13626_v21, %v13625_v4 }
 0x34a   : > { %v13628_v29 = vpop.f32.mrf.mxu0 }
 0x34b   : > { %v18083_v62 = vadd.f32 %v13627_v49, %v17879_v5  ;;  %v18095_v49 = vpop.f32.mrf.mxu1 }
 0x34c   : > { %v13629_v39 = vpop.f32.mrf.mxu0 }
 0x34d   : > { %20818 = vst [vmem:[#allocation33_spill] sm:$0xff] %v18083_v62  ;;  %v13630_v25 = vadd.f32 %v13629_v39, %v13628_v29 }
 0x34e   : > { %v13631_v32 = vpop.f32.mrf.mxu0 }
 0x34f   : > { %v18088_v40 = vadd.f32 %v13630_v25, %v17885_v45  ;;  %v18100_v25 = vpop.f32.mrf.mxu1 }
 0x350   : > { %v13632_v7 = vpop.f32.mrf.mxu0 }
 0x351   : > { %20819 = vst [vmem:[#allocation34_spill] sm:$0xff] %v18088_v40  ;;  %v13633_v23 = vadd.f32 %v13632_v7, %v13631_v32 }
 0x352   : > { %v13634_v6 = vpop.f32.mrf.mxu0 }
 0x353   : > { %v18093_v4 = vadd.f32 %v13633_v23, %v17895_v10  ;;  %v18105_v23 = vpop.f32.mrf.mxu1 }
 0x354   : > { %v13635_v21 = vpop.f32.mrf.mxu0 }
 0x355   : > { %20820 = vst [vmem:[#allocation35_spill] sm:$0xff] %v18093_v4  ;;  %v13636_v61 = vadd.f32 %v13635_v21, %v13634_v6 }
 0x356   : > { %v13637_v5 = vpop.f32.mrf.mxu0 }
 0x357   : > { %v18098_v29 = vadd.f32 %v13636_v61, %v17901_v15  ;;  %v18110_v61 = vpop.f32.mrf.mxu1 }
 0x358   : > { %v13638_v39 = vpop.f32.mrf.mxu0 }
 0x359   : > { %20821 = vst [vmem:[#allocation36_spill] sm:$0xff] %v18098_v29  ;;  %v13639_v62 = vadd.f32 %v13638_v39, %v13637_v5 }
 0x35a   : > { %v13640_v45 = vpop.f32.mrf.mxu0 }
 0x35b   : > { %v18103_v32 = vadd.f32 %v13639_v62, %v17911_v14  ;;  %v18115_v62 = vpop.f32.mrf.mxu1 }
 0x35c   : > { %v13641_v7 = vpop.f32.mrf.mxu0 }
 0x35d   : > { %20822 = vst [vmem:[#allocation37_spill] sm:$0xff] %v18103_v32  ;;  %v13642_v40 = vadd.f32 %v13641_v7, %v13640_v45 }
 0x35e   : > { %v13643_v10 = vpop.f32.mrf.mxu0 }
 0x35f   : > { %v18108_v6 = vadd.f32 %v13642_v40, %v17917_v50  ;;  %v18120_v40 = vpop.f32.mrf.mxu1 }
 0x360   : > { %v13644_v21 = vpop.f32.mrf.mxu0 }
 0x361   : > { %20823 = vst [vmem:[#allocation31_spill] sm:$0xff] %v18108_v6  ;;  %v13645_v4 = vadd.f32 %v13644_v21, %v13643_v10 }
 0x362   : > { %v13646_v15 = vpop.f32.mrf.mxu0 }
 0x363   : > { %v18113_v5 = vadd.f32 %v13645_v4, %v17927_v56  ;;  %v18125_v4 = vpop.f32.mrf.mxu1 }
 0x364   : > { %v13647_v39 = vpop.f32.mrf.mxu0 }
 0x365   : > { %20824 = vst [vmem:[#allocation38_spill] sm:$0xff] %v18113_v5  ;;  %v13648_v29 = vadd.f32 %v13647_v39, %v13646_v15 }
 0x366   : > { %v13649_v14 = vpop.f32.mrf.mxu0 }
 0x367   : > { %v18118_v45 = vadd.f32 %v13648_v29, %v17931_v43  ;;  %v18130_v29 = vpop.f32.mrf.mxu1 }
 0x368   : > { %v13650_v7 = vpop.f32.mrf.mxu0 }
 0x369   : > { %v13651_v32 = vadd.f32 %v13650_v7, %v13649_v14 }
 0x36a   : > { %v13652_v50 = vpop.f32.mrf.mxu0 }
 0x36b   : > { %v18123_v10 = vadd.f32 %v13651_v32, %v17941_v46  ;;  %v13679_v46 = vadd.f32 %v17971_v47, %v17960_v55 }
 0x36c   : > { %v13653_v21 = vpop.f32.mrf.mxu0 }
 0x36d   : > { %20825 = vst [vmem:[#allocation41_spill] sm:$0xff] %v18123_v10  ;;  %v13654_v6 = vadd.f32 %v13653_v21, %v13652_v50  ;;  %v18137_v21 = vpop.f32.mrf.mxu1 }
 0x36e   : > { %v13655_v56 = vpop.f32.mrf.mxu0 }
 0x36f   : > { %v18128_v15 = vadd.f32 %v13654_v6, %v17947_v22  ;;  %v6713_v6 = vadd.f32 %v13679_v46, %v17938_v31  ;;  %v18150_v47 = vpop.f32.mrf.mxu1 }
 0x370   : > { %v13656_v39 = vpop.f32.mrf.mxu0 }
 0x371   : > { %20826 = vst [vmem:[#allocation39_spill] sm:$0xff] %v18128_v15  ;;  %v13657_v5 = vadd.f32 %v13656_v39, %v13655_v56  ;;  %v13682_v56 = vadd.f32 %v17979_v30, %v17973_v53  ;;  %v18159_v30 = vld [vmem:[%s20611_s4] ss:$0 sm:$0xff] }
 0x372   : > { %v13658_v43 = vpop.f32.mrf.mxu0 }
 0x373   : > { %v18133_v14 = vadd.f32 %v13657_v5, %v17957_v52  ;;  %v18148_v52 = vld [vmem:[%s20610_s3] ss:$0 sm:$0xff] }
 0x374   : > { %v13659_v7 = vpop.f32.mrf.mxu0 }
 0x375   : > { %20827 = vst [vmem:[#allocation40_spill] sm:$0xff] %v18133_v14  ;;  %v13660_v32 = vadd.f32 %v13659_v7, %v13658_v43  ;;  %v13685_v7 = vadd.f32 %v17991_v42, %v17981_v34 }
 0x376   : > { %v13789_v50 = vpop.f32.mrf.mxu0 }
 0x377   : > { %v18140_v10 = vadd.f32 %v13660_v32, %v17965_v41  ;;  %v6716_v41 = vadd.f32 %v13682_v56, %v17944_v58  ;;  %v18161_v32 = vpop.f32.mrf.mxu1  ;;  %v6721_v58 = vadd.f32 %v13685_v7, %v17954_v18  ;;  %v13691_v18 = vadd.f32 %v18011_v28, %v18001_v3 }
 0x378   : > { %v13790_v22 = vpop.f32.mrf.mxu0  ;;  %v13694_v28 = vadd.f32 %v18019_v63, %v18013_v17  ;;  %v13697_v17 = vadd.f32 %v18030_v37, %v18021_v27 }
 0x379   : > { %20828 = vst [vmem:[#allocation42_spill] sm:$0xff] %v18140_v10  ;;  %v13791_v39 = vadd.f32 %v13790_v22, %v13789_v50  ;;  %v13688_v22 = vadd.f32 %v17999_v51, %v17993_v24  ;;  %v18168_v10 = vpop.f32.mrf.mxu1  ;;  %v14764_v24 = vld [vmem:[#allocation12 + $0xf0] sm:$0xff]   ;;  %v6729_v3 = vadd.f32 %v13691_v18, %v17976_v1 }
 0x37a   : > { %v13792_v55 = vpop.f32.mrf.mxu0  ;;  %v6732_v18 = vadd.f32 %v13694_v28, %v17984_v44  ;;  %v13700_v44 = vadd.f32 %v18040_v9, %v18035_v12  ;;  %v6737_v37 = vadd.f32 %v13697_v17, %v17996_v33  ;;  %v20830_v12 = vld [vmem:[#allocation43_spill] sm:$0xff]  ;;  %v13703_v33 = vadd.f32 %v18050_v16, %v18045_v11  ;;  %v20831_v11 = vld [vmem:[#allocation44_spill] sm:$0xff] }
 0x37b   : > { %v6874_v5 = vadd.f32 %v13791_v39, %v6713_v6  ;;  %v14758_v39 = vld [vmem:[#allocation12 + $0xf8] sm:$0xff]   ;;  %v6724_v51 = vadd.f32 %v13688_v22, %v17963_v60 }
 0x37c   : > { %v13793_v43 = vpop.f32.mrf.mxu0  ;;  %14021 = vmatprep.subr.bf16.mxu0 %v14758_v39  ;;  %v18175_v39 = vpop.f32.mrf.mxu1  ;;  %v6740_v9 = vadd.f32 %v13700_v44, %v20830_v12  ;;  %v6745_v16 = vadd.f32 %v13703_v33, %v20831_v11 }
 0x37d   : > { %v7007_v31 = vmul.f32 %v18148_v52, %v6874_v5  ;;  %v13794_v46 = vadd.f32 %v13793_v43, %v13792_v55  ;;  %v14759_v55 = vld [vmem:[#allocation12 + $0xb8] sm:$0xff]  }
 0x37e   : > { %v13795_v53 = vpop.f32.mrf.mxu0  ;;  %v14760_v5 = vld [vmem:[#allocation12 + $0x78] sm:$0xff]   ;;  %14022 = vmatpush3.bf16.msra.mxu0 %v14759_v55 }
 0x37f   : > { %v6877_v50 = vadd.f32 %v13794_v46, %v6716_v41  ;;  %v7046_v56 = vadd.f32 %v18159_v30, %v7007_v31  ;;  %13909 = vmatprep.subr.bf16.mxu1 %v14760_v5  ;;  %v14765_v31 = vld [vmem:[#allocation12 + $0xb0] sm:$0xff]   ;;  %14023 = vmatprep.subr.bf16.mxu0 %v14764_v24 }
 0x380   : > { %v13796_v6 = vpop.f32.mrf.mxu0 }
 0x381   : > { %v7008_v34 = vmul.f32 %v18148_v52, %v6877_v50  ;;  %v13797_v42 = vadd.f32 %v13796_v6, %v13795_v53  ;;  %v7078_v50 = vmax.f32 %v7046_v56, 0.0  ;;  %v14771_v56 = vld [vmem:[#allocation12 + $0xa8] sm:$0xff]  }
 0x382   : > { %v13798_v43 = vpop.f32.mrf.mxu0  ;;  %14024 = vmatpush3.bf16.msra.mxu0 %v14765_v31 }
 0x383   : > { %v6882_v14 = vadd.f32 %v13797_v42, %v6721_v58  ;;  %v7047_v41 = vadd.f32 %v18159_v30, %v7008_v34  ;;  %v14770_v58 = vld [vmem:[#allocation12 + $0xe8] sm:$0xff]   ;;  %v602_v34 = vld [vmem:[#allocation3 + $0x18] sm:$0x1] }
 0x384   : > { %v13799_v7 = vpop.f32.mrf.mxu0  ;;  %v603_v22 = vsel %vm15493_vm6, 0, %v602_v34  ;;  %14025 = vmatprep.subr.bf16.mxu0 %v14770_v58 }
 0x385   : > { %v7009_v46 = vmul.f32 %v18148_v52, %v6882_v14  ;;  %v13800_v53 = vadd.f32 %v13799_v7, %v13798_v43  ;;  %v7079_v6 = vmax.f32 %v7047_v41, 0.0  ;;  %604 = vst [vmem:[#allocation3 + $0x18] sm:$0x1] %v603_v22 }
 0x386   : > { %v13801_v42 = vpop.f32.mrf.mxu0  ;;  %14026 = vmatpush3.bf16.msra.mxu0 %v14771_v56  ;;  %v14763_v56 = vld [vmem:[#allocation12 + $0x30] sm:$0xff]  }
 0x387   : > { %v6885_v5 = vadd.f32 %v13800_v53, %v6724_v51  ;;  %v7110_v15 = vpack.c.bf16 %v7079_v6, %v7078_v50  ;;  %v7048_v55 = vadd.f32 %v18159_v30, %v7009_v46  ;;  %v18184_v51 = vpop.f32.mrf.mxu1  ;;  %v14761_v6 = vld [vmem:[#allocation12 + $0x38] sm:$0xff]  }
 0x388   : > { %v13802_v14 = vpop.f32.mrf.mxu0 }
 0x389   : > { %v7010_v43 = vmul.f32 %v18148_v52, %v6885_v5  ;;  %v13803_v41 = vadd.f32 %v13802_v14, %v13801_v42  ;;  %14397 = vmatprep.mubr.bf16.mxu1 %v7110_v15  ;;  %v7080_v31 = vmax.f32 %v7048_v55, 0.0  ;;  %v18191_v58 = vpop.f32.mrf.mxu1  ;;  %v14762_v5 = vld [vmem:[#allocation12 + $0x70] sm:$0xff]  }
 0x38a   : > { %v13804_v24 = vpop.f32.mrf.mxu0 }
 0x38b   : > { %v7049_v7 = vadd.f32 %v18159_v30, %v7010_v43  ;;  %v6890_v1 = vadd.f32 %v13803_v41, %v6729_v3  ;;  %v18198_v55 = vpop.f32.mrf.mxu1 }
 0x38c   : > { %v13805_v63 = vpop.f32.mrf.mxu0 }
 0x38d   : > { %v7081_v46 = vmax.f32 %v7049_v7, 0.0  ;;  %v7011_v53 = vmul.f32 %v18148_v52, %v6890_v1  ;;  %v13806_v50 = vadd.f32 %v13805_v63, %v13804_v24  ;;  %v14766_v24 = vld [vmem:[#allocation12 + $0x68] sm:$0xff]  }
 0x38e   : > { %v13807_v15 = vpop.f32.mrf.mxu0 }
 0x38f   : > { %v7111_v42 = vpack.c.bf16 %v7081_v46, %v7080_v31  ;;  %v6893_v34 = vadd.f32 %v13806_v50, %v6732_v18  ;;  %v7050_v28 = vadd.f32 %v18159_v30, %v7011_v53  ;;  %v14767_v46 = vld [vmem:[#allocation12 + $0x28] sm:$0xff]   ;;  %v18205_v53 = vpop.f32.mrf.mxu1 }
 0x390   : > { %v13808_v22 = vpop.f32.mrf.mxu0 }
 0x391   : > { %v7012_v27 = vmul.f32 %v18148_v52, %v6893_v34  ;;  %v13809_v3 = vadd.f32 %v13808_v22, %v13807_v15  ;;  %14398 = vmatmul.mubr.bf16.vlgmr.msra.gmra.mxu1 %v7111_v42  ;;  %v7082_v17 = vmax.f32 %v7050_v28, 0.0  ;;  %v13706_v42 = vadd.f32 %v18060_v13, %v18055_v19 }
 0x392   : > { %v13810_v14 = vpop.f32.mrf.mxu0  ;;  %13910 = vmatpush3.bf16.msra.mxu1 %v14761_v6  ;;  %v14768_v6 = vld [vmem:[#allocation12 + $0x60] sm:$0xff]   ;;  %v13709_v13 = vadd.f32 %v18070_v54, %v18065_v35 }
 0x393   : > { %v6898_v43 = vadd.f32 %v13809_v3, %v6737_v37  ;;  %v7051_v41 = vadd.f32 %v18159_v30, %v7012_v27  ;;  %13911 = vmatprep.subr.bf16.mxu1 %v14762_v5  ;;  %v14769_v27 = vld [vmem:[#allocation12 + $0x20] sm:$0xff]   ;;  %v18212_v3 = vpop.f32.mrf.mxu1  ;;  %v6748_v19 = vadd.f32 %v13706_v42, %v18024_v57  ;;  %v13712_v57 = vadd.f32 %v18080_v48, %v18075_v20 }
 0x394   : > { %v13811_v7 = vpop.f32.mrf.mxu0  ;;  %v6753_v35 = vadd.f32 %v13709_v13, %v18033_v36  ;;  %v13715_v20 = vadd.f32 %v18090_v38, %v18085_v26 }
 0x395   : > { %v7013_v1 = vmul.f32 %v18148_v52, %v6898_v43  ;;  %v13812_v18 = vadd.f32 %v13811_v7, %v13810_v14  ;;  %v7083_v63 = vmax.f32 %v7051_v41, 0.0  ;;  %v14773_v7 = vld [vmem:[#allocation12 + $0x18] sm:$0xff]  }
 0x396   : > { %v13813_v31 = vpop.f32.mrf.mxu0  ;;  %13912 = vmatpush3.bf16.msra.mxu1 %v14763_v56  ;;  %v14772_v56 = vld [vmem:[#allocation12 + $0x58] sm:$0xff]  }
 0x397   : > { %v6901_v50 = vadd.f32 %v13812_v18, %v6740_v9  ;;  %v7112_v15 = vpack.c.bf16 %v7083_v63, %v7082_v17  ;;  %13913 = vmatprep.subr.bf16.mxu1 %v14766_v24  ;;  %v7052_v5 = vadd.f32 %v18159_v30, %v7013_v1  ;;  %v18219_v1 = vpop.f32.mrf.mxu1 }
 0x398   : > { %v13814_v34 = vpop.f32.mrf.mxu0 }
 0x399   : > { %v7014_v44 = vmul.f32 %v18148_v52, %v6901_v50  ;;  %v13815_v22 = vadd.f32 %v13814_v34, %v13813_v31  ;;  %14401 = vmatprep.mubr.bf16.mxu1 %v7112_v15  ;;  %v7084_v41 = vmax.f32 %v7052_v5, 0.0  ;;  %v18226_v15 = vpop.f32.mrf.mxu1  ;;  %v6756_v34 = vadd.f32 %v13712_v57, %v18038_v8 }
 0x39a   : > { %v13816_v37 = vpop.f32.mrf.mxu0  ;;  %13914 = vmatpush3.bf16.msra.mxu1 %v14767_v46  ;;  %v6761_v8 = vadd.f32 %v13715_v20, %v18043_v0 }
 0x39b   : > { %v7053_v28 = vadd.f32 %v18159_v30, %v7014_v44  ;;  %v6906_v14 = vadd.f32 %v13815_v22, %v6745_v16  ;;  %13915 = vmatprep.subr.bf16.mxu1 %v14768_v6  ;;  %v18233_v22 = vpop.f32.mrf.mxu1 }
 0x39c   : > { %v13817_v43 = vpop.f32.mrf.mxu0 }
 0x39d   : > { %v7085_v24 = vmax.f32 %v7053_v28, 0.0  ;;  %v7015_v12 = vmul.f32 %v18148_v52, %v6906_v14  ;;  %v13818_v9 = vadd.f32 %v13817_v43, %v13816_v37  ;;  %v13718_v28 = vadd.f32 %v18100_v25, %v18095_v49  ;;  %v18240_v13 = vpop.f32.mrf.mxu1 }
 0x39e   : > { %v13819_v33 = vpop.f32.mrf.mxu0  ;;  %13916 = vmatpush3.bf16.msra.mxu1 %v14769_v27  ;;  %v13721_v49 = vadd.f32 %v18110_v61, %v18105_v23 }
 0x39f   : > { %v6909_v18 = vadd.f32 %v13818_v9, %v6748_v19  ;;  %v7113_v17 = vpack.c.bf16 %v7085_v24, %v7084_v41  ;;  %13917 = vmatprep.subr.bf16.mxu1 %v14772_v56  ;;  %v7054_v46 = vadd.f32 %v18159_v30, %v7015_v12  ;;  %v6764_v24 = vadd.f32 %v13718_v28, %v18048_v59  ;;  %v20833_v28 = vld [vmem:[#allocation45_spill] sm:$0xff] }
 0x3a0   : > { %v13820_v63 = vpop.f32.mrf.mxu0  ;;  %v6769_v59 = vadd.f32 %v13721_v49, %v18053_v2 }
 0x3a1   : > { %v7016_v54 = vmul.f32 %v18148_v52, %v6909_v18  ;;  %v13821_v31 = vadd.f32 %v13820_v63, %v13819_v33  ;;  %14402 = vmatmul.mubr.bf16.gmra.mxu1 %v7113_v17  ;;  %v7086_v16 = vmax.f32 %v7054_v46, 0.0  ;;  %v18247_v18 = vpop.f32.mrf.mxu1  ;;  %v13724_v63 = vadd.f32 %v18120_v40, %v18115_v62 }
 0x3a2   : > { %v13822_v50 = vpop.f32.mrf.mxu0  ;;  %13918 = vmatpush3.bf16.msra.mxu1 %v14773_v7  ;;  %v13727_v62 = vadd.f32 %v18130_v29, %v18125_v4 }
 0x3a3   : > { %v6914_v6 = vadd.f32 %v13821_v31, %v6753_v35  ;;  %v7055_v42 = vadd.f32 %v18159_v30, %v7016_v54  ;;  %v18254_v46 = vpop.f32.mrf.mxu1 }
 0x3a4   : > { %v13823_v48 = vpop.f32.mrf.mxu0 }
 0x3a5   : > { %v7017_v36 = vmul.f32 %v18148_v52, %v6914_v6  ;;  %v13824_v11 = vadd.f32 %v13823_v48, %v13822_v50  ;;  %v7087_v5 = vmax.f32 %v7055_v42, 0.0  ;;  %v20832_v42 = vld [vmem:[#allocation26_spill] sm:$0xff] }
 0x3a6   : > { %v13825_v44 = vpop.f32.mrf.mxu0 }
 0x3a7   : > { %v6917_v37 = vadd.f32 %v13824_v11, %v6756_v34  ;;  %v7114_v27 = vpack.c.bf16 %v7087_v5, %v7086_v16  ;;  %v7056_v56 = vadd.f32 %v18159_v30, %v7017_v36  ;;  %v6772_v34 = vadd.f32 %v13724_v63, %v20832_v42  ;;  %v18261_v16 = vpop.f32.mrf.mxu1  ;;  %v20835_v63 = vld [vmem:[#allocation47_spill] sm:$0xff] }
 0x3a8   : > { %v13826_v14 = vpop.f32.mrf.mxu0 }
 0x3a9   : > { %v7018_v26 = vmul.f32 %v18148_v52, %v6917_v37  ;;  %v13827_v38 = vadd.f32 %v13826_v14, %v13825_v44  ;;  %14405 = vmatprep.mubr.bf16.mxu1 %v7114_v27  ;;  %v7088_v12 = vmax.f32 %v7056_v56, 0.0  ;;  %v13730_v37 = vadd.f32 %v18150_v47, %v18137_v21 }
 0x3aa   : > { %v13828_v19 = vpop.f32.mrf.mxu0  ;;  %v6777_v14 = vadd.f32 %v13727_v62, %v20833_v28  ;;  %v13733_v21 = vadd.f32 %v18168_v10, %v18161_v32 }
 0x3ab   : > { %v7057_v43 = vadd.f32 %v18159_v30, %v7018_v26  ;;  %v6922_v41 = vadd.f32 %v13827_v38, %v6761_v8  ;;  %v18268_v26 = vpop.f32.mrf.mxu1 }
 0x3ac   : > { %v13829_v25 = vpop.f32.mrf.mxu0 }
 0x3ad   : > { %v7089_v0 = vmax.f32 %v7057_v43, 0.0  ;;  %v7019_v9 = vmul.f32 %v18148_v52, %v6922_v41  ;;  %v13830_v33 = vadd.f32 %v13829_v25, %v13828_v19  ;;  %v20834_v43 = vld [vmem:[#allocation46_spill] sm:$0xff] }
 0x3ae   : > { %v13831_v7 = vpop.f32.mrf.mxu0  ;;  %v6780_v41 = vadd.f32 %v13730_v37, %v20834_v43 }
 0x3af   : > { %v6925_v17 = vadd.f32 %v13830_v33, %v6764_v24  ;;  %v7115_v57 = vpack.c.bf16 %v7089_v0, %v7088_v12  ;;  %v7058_v61 = vadd.f32 %v18159_v30, %v7019_v9  ;;  %v18275_v9 = vpop.f32.mrf.mxu1 }
 0x3b0   : > { %v13832_v35 = vpop.f32.mrf.mxu0 }
 0x3b1   : > { %v7020_v54 = vmul.f32 %v18148_v52, %v6925_v17  ;;  %v13833_v23 = vadd.f32 %v13832_v35, %v13831_v7  ;;  %14406 = vmatmul.mubr.bf16.gmra.mxu1 %v7115_v57  ;;  %v7090_v48 = vmax.f32 %v7058_v61, 0.0  ;;  %v13736_v17 = vadd.f32 %v18184_v51, %v18175_v39 }
 0x3b2   : > { %v13834_v31 = vpop.f32.mrf.mxu0  ;;  %v6785_v35 = vadd.f32 %v13733_v21, %v20835_v63  ;;  %v13739_v39 = vadd.f32 %v18198_v55, %v18191_v58 }
 0x3b3   : > { %v6930_v50 = vadd.f32 %v13833_v23, %v6769_v59  ;;  %v7059_v6 = vadd.f32 %v18159_v30, %v7020_v54  ;;  %v18282_v23 = vpop.f32.mrf.mxu1 }
 0x3b4   : > { %v13835_v40 = vpop.f32.mrf.mxu0 }
 0x3b5   : > { %v7021_v2 = vmul.f32 %v18148_v52, %v6930_v50  ;;  %v13836_v20 = vadd.f32 %v13835_v40, %v13834_v31  ;;  %v7091_v36 = vmax.f32 %v7059_v6, 0.0  ;;  %v20836_v50 = vld [vmem:[#allocation32_spill] sm:$0xff] }
 0x3b6   : > { %v13837_v11 = vpop.f32.mrf.mxu0  ;;  %v6788_v6 = vadd.f32 %v13736_v17, %v20836_v50 }
 0x3b7   : > { %v6933_v5 = vadd.f32 %v13836_v20, %v6772_v34  ;;  %v7116_v44 = vpack.c.bf16 %v7091_v36, %v7090_v48  ;;  %v7060_v8 = vadd.f32 %v18159_v30, %v7021_v2  ;;  %v18289_v20 = vpop.f32.mrf.mxu1 }
 0x3b8   : > { %v13838_v27 = vpop.f32.mrf.mxu0 }
 0x3b9   : > { %v7022_v4 = vmul.f32 %v18148_v52, %v6933_v5  ;;  %v13839_v29 = vadd.f32 %v13838_v27, %v13837_v11  ;;  %14409 = vmatprep.mubr.bf16.mxu1 %v7116_v44  ;;  %v7092_v24 = vmax.f32 %v7060_v8, 0.0  ;;  %v13742_v11 = vadd.f32 %v18212_v3, %v18205_v53  ;;  %v20837_v44 = vld [vmem:[#allocation33_spill] sm:$0xff] }
 0x3ba   : > { %v13840_v56 = vpop.f32.mrf.mxu0  ;;  %v6793_v37 = vadd.f32 %v13739_v39, %v20837_v44  ;;  %v20842_v44 = vld [vmem:[#allocation31_spill] sm:$0xff] }
 0x3bb   : > { %v7061_v38 = vadd.f32 %v18159_v30, %v7022_v4  ;;  %v6938_v19 = vadd.f32 %v13839_v29, %v6777_v14  ;;  %v13759_v14 = vpop.f32.mrf.mxu1  ;;  %v20838_v29 = vld [vmem:[#allocation34_spill] sm:$0xff] }
 0x3bc   : > { %v13841_v47 = vpop.f32.mrf.mxu0 }
 0x3bd   : > { %v7093_v49 = vmax.f32 %v7061_v38, 0.0  ;;  %v7023_v25 = vmul.f32 %v18148_v52, %v6938_v19  ;;  %v13842_v12 = vadd.f32 %v13841_v47, %v13840_v56  ;;  %v6796_v56 = vadd.f32 %v13742_v11, %v20838_v29  ;;  %v18301_v47 = vpop.f32.mrf.mxu1 }
 0x3be   : > { %v13843_v0 = vpop.f32.mrf.mxu0  ;;  %v13745_v38 = vadd.f32 %v18226_v15, %v18219_v1 }
 0x3bf   : > { %v6941_v33 = vadd.f32 %v13842_v12, %v6780_v41  ;;  %v7117_v7 = vpack.c.bf16 %v7093_v49, %v7092_v24  ;;  %v7062_v32 = vadd.f32 %v18159_v30, %v7023_v25  ;;  %v13748_v25 = vadd.f32 %v18240_v13, %v18233_v22 }
 0x3c0   : > { %v13844_v57 = vpop.f32.mrf.mxu0 }
 0x3c1   : > { %v7024_v59 = vmul.f32 %v18148_v52, %v6941_v33  ;;  %v13845_v10 = vadd.f32 %v13844_v57, %v13843_v0  ;;  %14410 = vmatmul.mubr.bf16.gmra.mxu1 %v7117_v7  ;;  %v7094_v62 = vmax.f32 %v7062_v32, 0.0  ;;  %v20839_v0 = vld [vmem:[#allocation35_spill] sm:$0xff]  ;;  %v13762_v57 = vpop.f32.mrf.mxu1  ;;  %v13751_v32 = vadd.f32 %v18254_v46, %v18247_v18 }
 0x3c2   : > { %v13846_v54 = vpop.f32.mrf.mxu0  ;;  %v6801_v33 = vadd.f32 %v13745_v38, %v20839_v0 }
 0x3c3   : > { %v6946_v61 = vadd.f32 %v13845_v10, %v6785_v35  ;;  %v7063_v31 = vadd.f32 %v18159_v30, %v7024_v59  ;;  %v20840_v59 = vld [vmem:[#allocation36_spill] sm:$0xff] }
 0x3c4   : > { %v13847_v51 = vpop.f32.mrf.mxu0  ;;  %v6804_v10 = vadd.f32 %v13748_v25, %v20840_v59  ;;  %v14776_v59 = vld [vmem:[#allocation12 + $0xe0] sm:$0xff]  }
 0x3c5   : > { %v7025_v42 = vmul.f32 %v18148_v52, %v6946_v61  ;;  %v13848_v34 = vadd.f32 %v13847_v51, %v13846_v54  ;;  %v7095_v40 = vmax.f32 %v7063_v31, 0.0  ;;  %14027 = vmatprep.subr.bf16.mxu0 %v14776_v59  ;;  %v14784_v59 = vld [vmem:[#allocation12 + $0x40] sm:$0xff]  }
 0x3c6   : > { %v13849_v2 = vpop.f32.mrf.mxu0 }
 0x3c7   : > { %v6949_v48 = vadd.f32 %v13848_v34, %v6788_v6  ;;  %v7118_v36 = vpack.c.bf16 %v7095_v40, %v7094_v62  ;;  %v7064_v27 = vadd.f32 %v18159_v30, %v7025_v42  ;;  %v18313_v6 = vpop.f32.mrf.mxu1  ;;  %v13754_v42 = vadd.f32 %v18268_v26, %v18261_v16  ;;  %v20841_v62 = vld [vmem:[#allocation37_spill] sm:$0xff] }
 0x3c8   : > { %v13850_v5 = vpop.f32.mrf.mxu0  ;;  %v6809_v40 = vadd.f32 %v13751_v32, %v20841_v62  ;;  %v13757_v16 = vadd.f32 %v18282_v23, %v18275_v9  ;;  %v20845_v62 = vld [vmem:[#allocation41_spill] sm:$0xff] }
 0x3c9   : > { %v7026_v58 = vmul.f32 %v18148_v52, %v6949_v48  ;;  %v13851_v55 = vadd.f32 %v13850_v5, %v13849_v2  ;;  %14413 = vmatprep.mubr.bf16.mxu1 %v7118_v36  ;;  %v7096_v3 = vmax.f32 %v7064_v27, 0.0  ;;  %v18320_v36 = vpop.f32.mrf.mxu1 }
 0x3ca   : > { %v13852_v28 = vpop.f32.mrf.mxu0 }
 0x3cb   : > { %v7065_v8 = vadd.f32 %v18159_v30, %v7026_v58  ;;  %v6954_v4 = vadd.f32 %v13851_v55, %v6793_v37  ;;  %v6812_v37 = vadd.f32 %v13754_v42, %v20842_v44 }
 0x3cc   : > { %v13853_v53 = vpop.f32.mrf.mxu0 }
 0x3cd   : > { %v7097_v19 = vmax.f32 %v7065_v8, 0.0  ;;  %v7027_v43 = vmul.f32 %v18148_v52, %v6954_v4  ;;  %v13854_v41 = vadd.f32 %v13853_v53, %v13852_v28  ;;  %v599_v8 = vld [vmem:[#allocation3 + $0xc] sm:$0x1] }
 0x3ce   : > { %v13855_v21 = vpop.f32.mrf.mxu0  ;;  %v600_v29 = vsel %vm15493_vm6, 0, %v599_v8  ;;  %v20846_v8 = vld [vmem:[#allocation39_spill] sm:$0xff] }
 0x3cf   : > { %v6957_v24 = vadd.f32 %v13854_v41, %v6796_v56  ;;  %v7119_v49 = vpack.c.bf16 %v7097_v19, %v7096_v3  ;;  %v7066_v15 = vadd.f32 %v18159_v30, %v7027_v43  ;;  %v18329_v56 = vpop.f32.mrf.mxu1  ;;  %601 = vst [vmem:[#allocation3 + $0xc] sm:$0x1] %v600_v29  ;;  %v656_v3 = vld [vmem:[#allocation3 + $0x20] sm:$0x1]  ;;  %v13760_v19 = vadd.f32 %v13759_v14, %v18289_v20  ;;  %v20844_v41 = vld [vmem:[#allocation38_spill] sm:$0xff] }
 0x3d0   : > { %v13856_v12 = vpop.f32.mrf.mxu0  ;;  %v657_v43 = vsel %vm15503_vm8, 0, %v656_v3  ;;  %v14782_v3 = vld [vmem:[#allocation12 + $0xd0] sm:$0xff]  }
 0x3d1   : > { %v7028_v7 = vmul.f32 %v18148_v52, %v6957_v24  ;;  %v13857_v1 = vadd.f32 %v13856_v12, %v13855_v21  ;;  %14414 = vmatmul.mubr.bf16.gmra.mxu1 %v7119_v49  ;;  %v7098_v61 = vmax.f32 %v7066_v15, 0.0  ;;  %v6817_v21 = vadd.f32 %v13757_v16, %v20844_v41  ;;  %658 = vst [vmem:[#allocation3 + $0x20] sm:$0x1] %v657_v43  ;;  %v653_v12 = vld [vmem:[#allocation3 + $0x14] sm:$0x1] }
 0x3d2   : > { %v13858_v17 = vpop.f32.mrf.mxu0  ;;  %v13763_v15 = vadd.f32 %v13762_v57, %v18301_v47  ;;  %v14781_v47 = vld [vmem:[#allocation12 + $0x8] sm:$0xff]   ;;  %v608_v57 = vld [vmem:[#allocation3 + $0x30] sm:$0x1] }
 0x3d3   : > { %v6962_v63 = vadd.f32 %v13857_v1, %v6801_v33  ;;  %v7067_v35 = vadd.f32 %v18159_v30, %v7028_v7  ;;  %v654_v33 = vsel %vm15503_vm8, 0, %v653_v12  ;;  %v13768_v7 = vpop.f32.mrf.mxu1  ;;  %v6820_v1 = vadd.f32 %v13760_v19, %v18118_v45  ;;  %v605_v19 = vld [vmem:[#allocation3 + $0x24] sm:$0x1]  ;;  %v14783_v12 = vld [vmem:[#allocation12 + $0x90] sm:$0xff]  }
 0x3d4   : > { %v13859_v22 = vpop.f32.mrf.mxu0  ;;  %655 = vst [vmem:[#allocation3 + $0x14] sm:$0x1] %v654_v33  ;;  %v20847_v33 = vld [vmem:[#allocation40_spill] sm:$0xff] }
 0x3d5   : > { %v7029_v13 = vmul.f32 %v18148_v52, %v6962_v63  ;;  %v13860_v54 = vadd.f32 %v13859_v22, %v13858_v17  ;;  %v7099_v31 = vmax.f32 %v7067_v35, 0.0  ;;  %v14774_v63 = vld [vmem:[#allocation12 + $0x50] sm:$0xff]  }
 0x3d6   : > { %v13861_v50 = vpop.f32.mrf.mxu0  ;;  %v14775_v35 = vld [vmem:[#allocation12 + $0x10] sm:$0xff]   ;;  %13919 = vmatprep.subr.bf16.mxu1 %v14774_v63 }
 0x3d7   : > { %v6965_v39 = vadd.f32 %v13860_v54, %v6804_v10  ;;  %v7120_v51 = vpack.c.bf16 %v7099_v31, %v7098_v61  ;;  %v7068_v2 = vadd.f32 %v18159_v30, %v7029_v13  ;;  %v14777_v54 = vld [vmem:[#allocation12 + $0xa0] sm:$0xff]   ;;  %v14778_v61 = vld [vmem:[#allocation12 + $0xd8] sm:$0xff]   ;;  %v14779_v31 = vld [vmem:[#allocation12 + $0x48] sm:$0xff]   ;;  %13920 = vmatpush3.bf16.msra.mxu1 %v14775_v35 }
 0x3d8   : > { %v13862_v34 = vpop.f32.mrf.mxu0  ;;  %14028 = vmatpush3.bf16.msra.mxu0 %v14777_v54  ;;  %13921 = vmatprep.subr.bf16.mxu1 %v14779_v31 }
 0x3d9   : > { %v7030_v18 = vmul.f32 %v18148_v52, %v6965_v39  ;;  %v13863_v46 = vadd.f32 %v13862_v34, %v13861_v50  ;;  %14417 = vmatprep.mubr.bf16.mxu1 %v7120_v51  ;;  %v7100_v27 = vmax.f32 %v7068_v2, 0.0  ;;  %v14780_v39 = vld [vmem:[#allocation12 + $0x98] sm:$0xff]   ;;  %v13770_v51 = vpop.f32.mrf.mxu1  ;;  %v596_v34 = vld [vmem:[#allocation3] sm:$0x1]  ;;  %14029 = vmatprep.subr.bf16.mxu0 %v14778_v61 }
 0x3da   : > { %v13864_v48 = vpop.f32.mrf.mxu0 }
 0x3db   : > { %v7069_v11 = vadd.f32 %v18159_v30, %v7030_v18  ;;  %v6970_v5 = vadd.f32 %v13863_v46, %v6809_v40  ;;  %v6825_v40 = vadd.f32 %v13763_v15, %v20845_v62  ;;  %v609_v46 = vsel %vm15493_vm6, 0, %v608_v57  ;;  %13922 = vmatpush3.bf16.msra.mxu1 %v14781_v47  ;;  %v14786_v62 = vld [vmem:[#allocation12] sm:$0xff]  }
 0x3dc   : > { %v13865_v26 = vpop.f32.mrf.mxu0  ;;  %610 = vst [vmem:[#allocation3 + $0x30] sm:$0x1] %v609_v46  ;;  %14030 = vmatpush3.bf16.msra.mxu0 %v14780_v39  ;;  %13923 = vmatprep.subr.bf16.mxu1 %v14784_v59 }
 0x3dd   : > { %v7101_v58 = vmax.f32 %v7069_v11, 0.0  ;;  %v7031_v55 = vmul.f32 %v18148_v52, %v6970_v5  ;;  %v13866_v28 = vadd.f32 %v13865_v26, %v13864_v48  ;;  %v597_v48 = vsel %vm15493_vm6, 0, %v596_v34  ;;  %v650_v11 = vld [vmem:[#allocation3 + $0x8] sm:$0x1]  ;;  %14031 = vmatprep.subr.bf16.mxu0 %v14782_v3 }
 0x3de   : > { %v13867_v4 = vpop.f32.mrf.mxu0  ;;  %v13766_v5 = vadd.f32 %v18320_v36, %v18313_v6  ;;  %598 = vst [vmem:[#allocation3] sm:$0x1] %v597_v48  ;;  %v651_v16 = vsel %vm15503_vm8, 0, %v650_v11  ;;  %v14789_v11 = vld [vmem:[#allocation12 + $0xc0] sm:$0xff]  }
 0x3df   : > { %v6973_v38 = vadd.f32 %v13866_v28, %v6812_v37  ;;  %v7121_v53 = vpack.c.bf16 %v7101_v58, %v7100_v27  ;;  %v7070_v25 = vadd.f32 %v18159_v30, %v7031_v55  ;;  %652 = vst [vmem:[#allocation3 + $0x8] sm:$0x1] %v651_v16  ;;  %v13771_v27 = vpop.f32.mrf.mxu1  ;;  %v13769_v28 = vadd.f32 %v13768_v7, %v18329_v56 }
 0x3e0   : > { %v13868_v9 = vpop.f32.mrf.mxu0  ;;  %v13772_v43 = vadd.f32 %v13771_v27, %v13770_v51  ;;  %14032 = vmatpush3.bf16.msra.mxu0 %v14783_v12  ;;  %v14793_v27 = vld [vmem:[#allocation12 + $0x178] sm:$0xff]   ;;  %13924 = vmatpush3.bf16.msra.mxu1 %v14786_v62  ;;  %v680_v62 = vld [vmem:[#allocation3 + $0x80] sm:$0x1] }
 0x3e1   : > { %v7032_v24 = vmul.f32 %v18148_v52, %v6973_v38  ;;  %v13869_v49 = vadd.f32 %v13868_v9, %v13867_v4  ;;  %14418 = vmatmul.mubr.bf16.gmra.mxu1 %v7121_v53  ;;  %v7102_v22 = vmax.f32 %v7070_v25, 0.0  ;;  %v6828_v4 = vadd.f32 %v13766_v5, %v20846_v8  ;;  %v18358_v9 = vld [vmem:[#allocation3 + $0x4] sm:$0xf]  ;;  %14133 = vmatprep.subr.bf16.mxu1 %v14793_v27  ;;  %v18435_v27 = vld [vmem:[%s20613_s6] ss:$0 sm:$0xff] }
 0x3e2   : > { %v13870_v0 = vpop.f32.mrf.mxu0  ;;  %v7949_v56 = vshrl.u32 %v18358_v9, 16  ;;  %v6833_v7 = vadd.f32 %v13769_v28, %v20847_v33  ;;  %v8385_v46 = vrot.slane %v18358_v9, 5 }
 0x3e3   : > { %v6978_v20 = vadd.f32 %v13869_v49, %v6817_v21  ;;  %v7071_v14 = vadd.f32 %v18159_v30, %v7032_v24  ;;  %v606_v21 = vsel %vm15493_vm6, 0, %v605_v19  ;;  %v7945_v24 = vshll.u32 %v18358_v9, 16 }
 0x3e4   : > { %v13871_v17 = vpop.f32.mrf.mxu0  ;;  %607 = vst [vmem:[#allocation3 + $0x24] sm:$0x1] %v606_v21  ;;  %v7951_v51 = vrot.slane %v7949_v56, 4  ;;  %v8387_v28 = vrot.slane %v8385_v46, 4 }
 0x3e5   : > { %v7033_v10 = vmul.f32 %v18148_v52, %v6978_v20  ;;  %v13872_v32 = vadd.f32 %v13871_v17, %v13870_v0  ;;  %v7103_v13 = vmax.f32 %v7071_v14, 0.0  ;;  %v662_v0 = vld [vmem:[#allocation3 + $0x38] sm:$0x1]  ;;  %v18369_v15 = vrot.slane %v7945_v24, 5 }
 0x3e6   : > { %v13873_v50 = vpop.f32.mrf.mxu0  ;;  %v663_v14 = vsel %vm15503_vm8, 0, %v662_v0 }
 0x3e7   : > { %v6981_v45 = vadd.f32 %v13872_v32, %v6820_v1  ;;  %v7122_v42 = vpack.c.bf16 %v7103_v13, %v7102_v22  ;;  %v7072_v2 = vadd.f32 %v18159_v30, %v7033_v10  ;;  %v18367_v1 = vld [vmem:[#allocation3] sm:$0xf]  ;;  %664 = vst [vmem:[#allocation3 + $0x38] sm:$0x1] %v663_v14  ;;  %v659_v32 = vld [vmem:[#allocation3 + $0x2c] sm:$0x1] }
 0x3e8   : > { %v13874_v18 = vpop.f32.mrf.mxu0  ;;  %v14785_v10 = vld [vmem:[#allocation12 + $0xc8] sm:$0xff]   ;;  %v7936_v22 = vshrl.u32 %v18367_v1, 16  ;;  %v20848_v13 = vld [vmem:[#allocation42_spill] sm:$0xff]  ;;  %v660_v31 = vsel %vm15503_vm8, 0, %v659_v32  ;;  %v7939_v39 = vshll.u32 %v18367_v1, 16  ;;  %v12619_v59 = vcombine.low %v18367_v1, %v18358_v9 }
 0x3e9   : > { %v7034_v44 = vmul.f32 %v18148_v52, %v6981_v45  ;;  %v13875_v37 = vadd.f32 %v13874_v18, %v13873_v50  ;;  %14421 = vmatprep.mubr.bf16.mxu1 %v7122_v42  ;;  %v7104_v6 = vmax.f32 %v7072_v2, 0.0  ;;  %v6836_v54 = vadd.f32 %v13772_v43, %v20848_v13  ;;  %v7919_v50 = vld [vmem:[#allocation3 + $0x8] sm:$0x1]  ;;  %14033 = vmatprep.subr.bf16.mxu0 %v14785_v10  ;;  %v14794_v10 = vld [vmem:[#allocation12 + $0x138] sm:$0xff]   ;;  %v620_v13 = vld [vmem:[#allocation3 + $0x60] sm:$0x1] }
 0x3ea   : > { %v13876_v26 = vpop.f32.mrf.mxu0  ;;  %661 = vst [vmem:[#allocation3 + $0x2c] sm:$0x1] %v660_v31  ;;  %v7938_v47 = vrot.slane %v7936_v22, 4  ;;  %v7955_v57 = vshll.u32 %v7919_v50, 16  ;;  %v7941_v2 = vrot.slane %v7939_v39, 5  ;;  %v7952_v18 = vor.u32 %v7951_v51, %v18369_v15  ;;  %v14799_v32 = vld [vmem:[#allocation12 + $0x170] sm:$0xff]  }
 0x3eb   : > { %v7073_v58 = vadd.f32 %v18159_v30, %v7034_v44  ;;  %v6986_v55 = vadd.f32 %v13875_v37, %v6825_v40  ;;  %v14787_v40 = vld [vmem:[#allocation12 + $0x88] sm:$0xff]   ;;  %v8388_v48 = vrot.slane %v7919_v50, 5  ;;  %v14800_v22 = vld [vmem:[#allocation12 + $0x130] sm:$0xff]   ;;  %v671_v1 = vld [vmem:[#allocation3 + $0x5c] sm:$0x1] }
 0x3ec   : > { %v13877_v36 = vpop.f32.mrf.mxu0  ;;  %14034 = vmatpush3.bf16.msra.mxu0 %v14787_v40  ;;  %v674_v31 = vld [vmem:[#allocation3 + $0x68] sm:$0x1]  ;;  %v672_v39 = vsel %vm15503_vm8, 0, %v671_v1  ;;  %v14805_v51 = vld [vmem:[#allocation12 + $0x168] sm:$0xff]   ;;  %v681_v40 = vsel %vm15503_vm8, 0, %v680_v62 }
 0x3ed   : > { %v7105_v29 = vmax.f32 %v7073_v58, 0.0  ;;  %v7035_v38 = vmul.f32 %v18148_v52, %v6986_v55  ;;  %v13878_v53 = vadd.f32 %v13877_v36, %v13876_v26  ;;  %v8319_v26 = vld [vmem:[#allocation3] sm:$0xe]  ;;  %v7942_v58 = vor.u32 %v7941_v2, %v7938_v47  ;;  %14035 = vmatprep.subr.bf16.mxu0 %v14789_v11  ;;  %673 = vst [vmem:[#allocation3 + $0x5c] sm:$0x1] %v672_v39 }
 0x3ee   : > { %v13879_v41 = vpop.f32.mrf.mxu0  ;;  %v7957_v55 = vrot.slane %v7955_v57, 5  ;;  %v18384_v19 = vsel %vm15940_vm12, %v8387_v28, %v8388_v48  ;;  %v675_v9 = vsel %vm15503_vm8, 0, %v674_v31  ;;  %v623_v57 = vld [vmem:[#allocation3 + $0x6c] sm:$0x1]  ;;  %682 = vst [vmem:[#allocation3 + $0x80] sm:$0x1] %v681_v40 }
 0x3ef   : > { %v6989_v49 = vadd.f32 %v13878_v53, %v6828_v4  ;;  %v7123_v25 = vpack.c.bf16 %v7105_v29, %v7104_v6  ;;  %v7074_v35 = vadd.f32 %v18159_v30, %v7035_v38  ;;  %v14790_v6 = vld [vmem:[#allocation12 + $0x80] sm:$0xff]   ;;  %v7953_v4 = vrot.slane %v7952_v18, 4  ;;  %v614_v38 = vld [vmem:[#allocation3 + $0x48] sm:$0x1]  ;;  %676 = vst [vmem:[#allocation3 + $0x68] sm:$0x1] %v675_v9 }
 0x3f0   : > { %v13880_v20 = vpop.f32.mrf.mxu0  ;;  %v12571_v29 = vrot.slane %v8319_v26, 9  ;;  %v7943_v53 = vrot.slane %v7942_v58, 4  ;;  %v615_v43 = vsel %vm15493_vm6, 0, %v614_v38  ;;  %14036 = vmatpush3.bf16.msra.mxu0 %v14790_v6  ;;  %v677_v2 = vld [vmem:[#allocation3 + $0x74] sm:$0x1]  ;;  %v14812_v48 = vld [vmem:[#allocation12 + $0x120] sm:$0xff]  }
 0x3f1   : > { %v7036_v17 = vmul.f32 %v18148_v52, %v6989_v49  ;;  %v13881_v63 = vadd.f32 %v13880_v20, %v13879_v41  ;;  %14422 = vmatmul.mubr.bf16.gmra.mxu1 %v7123_v25  ;;  %v7106_v37 = vmax.f32 %v7074_v35, 0.0  ;;  %616 = vst [vmem:[#allocation3 + $0x48] sm:$0x1] %v615_v43  ;;  %v7958_v0 = vsel %vm15563_vm2, %v7953_v4, %v7957_v55  ;;  %v632_v11 = vld [vmem:[#allocation3 + $0x90] sm:$0x1] }
 0x3f2   : > { %v13882_v61 = vpop.f32.mrf.mxu0  ;;  %v18392_v24 = vsel %vm15940_vm12, %v12571_v29, %v8385_v46  ;;  %v7948_v12 = vsel %vm15563_vm2, %v7943_v53, %v18369_v15  ;;  %v665_v15 = vld [vmem:[#allocation3 + $0x44] sm:$0x1]  ;;  %v678_v18 = vsel %vm15503_vm8, 0, %v677_v2  ;;  %v14811_v46 = vld [vmem:[#allocation12 + $0x160] sm:$0xff]   ;;  %v638_v62 = vld [vmem:[#allocation3 + $0xa8] sm:$0x1] }
 0x3f3   : > { %v6994_v45 = vadd.f32 %v13881_v63, %v6833_v7  ;;  %v7075_v42 = vadd.f32 %v18159_v30, %v7036_v17  ;;  %v12651_v56 = vcombine.low %v18392_v24, %v18384_v19  ;;  %v611_v7 = vld [vmem:[#allocation3 + $0x3c] sm:$0x1]  ;;  %v12635_v20 = vcombine.low %v7948_v12, %v7958_v0  ;;  %v668_v63 = vld [vmem:[#allocation3 + $0x50] sm:$0x1]  ;;  %679 = vst [vmem:[#allocation3 + $0x74] sm:$0x1] %v678_v18 }
 0x3f4   : > { %v13883_v34 = vpop.f32.mrf.mxu0  ;;  %v612_v14 = vsel %vm15493_vm6, 0, %v611_v7  ;;  %v666_v35 = vsel %vm15503_vm8, 0, %v665_v15  ;;  %v14814_v7 = vld [vmem:[#allocation12 + $0x1f8] sm:$0xff]  }
 0x3f5   : > { %v7037_v5 = vmul.f32 %v18148_v52, %v6994_v45  ;;  %v13884_v44 = vadd.f32 %v13883_v34, %v13882_v61  ;;  %v7107_v16 = vmax.f32 %v7075_v42, 0.0  ;;  %613 = vst [vmem:[#allocation3 + $0x3c] sm:$0x1] %v612_v14  ;;  %667 = vst [vmem:[#allocation3 + $0x44] sm:$0x1] %v666_v35  ;;  %v14806_v45 = vld [vmem:[#allocation12 + $0x128] sm:$0xff]   ;;  %14245 = vmatprep.subr.bf16.mxu0 %v14814_v7 }
 0x3f6   : > { %v617_v61 = vld [vmem:[#allocation3 + $0x54] sm:$0x1]  ;;  %v626_v42 = vld [vmem:[#allocation3 + $0x78] sm:$0x1]  ;;  %v624_v34 = vsel %vm15493_vm6, 0, %v623_v57 }
 0x3f7   : > { %v6997_v36 = vadd.f32 %v13884_v44, %v6836_v54  ;;  %v7124_v8 = vpack.c.bf16 %v7107_v16, %v7106_v37  ;;  %v7076_v41 = vadd.f32 %v18159_v30, %v7037_v5  ;;  %v621_v54 = vsel %vm15493_vm6, 0, %v620_v13  ;;  %625 = vst [vmem:[#allocation3 + $0x6c] sm:$0x1] %v624_v34  ;;  %v629_v44 = vld [vmem:[#allocation3 + $0x84] sm:$0x1]  ;;  %v14819_v57 = vld [vmem:[#allocation12 + $0x158] sm:$0xff]  }
 0x3f8   : > { %622 = vst [vmem:[#allocation3 + $0x60] sm:$0x1] %v621_v54  ;;  %v618_v50 = vsel %vm15493_vm6, 0, %v617_v61  ;;  %v627_v47 = vsel %vm15493_vm6, 0, %v626_v42  ;;  %v633_v5 = vsel %vm15493_vm6, 0, %v632_v11  ;;  %v630_v16 = vsel %vm15493_vm6, 0, %v629_v44 }
 0x3f9   : > { %v7038_v21 = vmul.f32 %v18148_v52, %v6997_v36  ;;  %14425 = vmatprep.mubr.bf16.mxu1 %v7124_v8  ;;  %v7108_v52 = vmax.f32 %v7076_v41, 0.0  ;;  %619 = vst [vmem:[#allocation3 + $0x54] sm:$0x1] %v618_v50  ;;  %628 = vst [vmem:[#allocation3 + $0x78] sm:$0x1] %v627_v47  ;;  %v14820_v34 = vld [vmem:[#allocation12 + $0x118] sm:$0xff]  }
 0x3fa   : > { %634 = vst [vmem:[#allocation3 + $0x90] sm:$0x1] %v633_v5  ;;  %v686_v37 = vld [vmem:[#allocation3 + $0x98] sm:$0x1]  ;;  %631 = vst [vmem:[#allocation3 + $0x84] sm:$0x1] %v630_v16 }
 0x3fb   : > { %v7077_v49 = vadd.f32 %v18159_v30, %v7038_v21  ;;  %v669_v30 = vsel %vm15503_vm8, 0, %v668_v63  ;;  %v687_v26 = vsel %vm15503_vm8, 0, %v686_v37  ;;  %v683_v8 = vld [vmem:[#allocation3 + $0x8c] sm:$0x1]  ;;  %v7786_v13 = vld [vmem:[#allocation3 + $0x20] sm:$0x1] }
 0x3fc   : > { %670 = vst [vmem:[#allocation3 + $0x50] sm:$0x1] %v669_v30  ;;  %688 = vst [vmem:[#allocation3 + $0x98] sm:$0x1] %v687_v26  ;;  %v684_v29 = vsel %vm15503_vm8, 0, %v683_v8 }
 0x3fd   : > { %v7109_v33 = vmax.f32 %v7077_v49, 0.0  ;;  %685 = vst [vmem:[#allocation3 + $0x8c] sm:$0x1] %v684_v29  ;;  %v7775_v30 = vld [vmem:[#allocation3 + $0xc] sm:$0xf] }
 0x3ff   : > { %v7125_v17 = vpack.c.bf16 %v7109_v33, %v7108_v52  ;;  %v7782_v52 = vld [vmem:[#allocation3 + $0x18] sm:$0xf] }
 0x401   : > { %14426 = vmatmul.mubr.bf16.gmra.mxu1 %v7125_v17 }
 0x402   : > { %10944 = vmatprep.mubr.bf16.mxu1 %v12635_v20 }
 0x409   : > { %10945 = vmatmul.mubr.bf16.vlgmr.msra.gmra.mxu1 %v12619_v59 }
 0x40a   : > { %14134 = vmatpush3.bf16.msra.mxu1 %v14794_v10 }
 0x40b   : > { %14135 = vmatprep.subr.bf16.mxu1 %v14799_v32 }
 0x40e   : > { %14136 = vmatpush3.bf16.msra.mxu1 %v14800_v22 }
 0x40f   : > { %14137 = vmatprep.subr.bf16.mxu1 %v14805_v51  ;;  %v7779_v51 = vld [vmem:[#allocation3 + $0x14] sm:$0x1] }
 0x412   : > { %14138 = vmatpush3.bf16.msra.mxu1 %v14806_v45 }
 0x413   : > { %14139 = vmatprep.subr.bf16.mxu1 %v14811_v46 }
 0x416   : > { %14140 = vmatpush3.bf16.msra.mxu1 %v14812_v48  ;;  %v639_v48 = vsel %vm15493_vm6, 0, %v638_v62 }
 0x417   : > { %14141 = vmatprep.subr.bf16.mxu1 %v14819_v57  ;;  %640 = vst [vmem:[#allocation3 + $0xa8] sm:$0x1] %v639_v48 }
 0x41a   : > { %14142 = vmatpush3.bf16.msra.mxu1 %v14820_v34  ;;  %v14815_v34 = vld [vmem:[#allocation12 + $0x1b8] sm:$0xff]  }
 0x451   : > { %v14399_v58 = vpop.f32.mrf.mxu1 }
 0x452   : > { %v7240_v55 = vadd.f32 %v14399_v58, %v18435_v27 }
 0x453   : > { %v7231_v28 = vpop.f32.mrf.mxu1 }
 0x454   : > { %v12846_v6 = vpack.c.bf16 %v7240_v55, %v7240_v55  ;;  %v7232_v36 = vadd.f32 %v18435_v27, %v7231_v28 }
 0x455   : > { %v14400_v4 = vpop.f32.mrf.mxu1 }
 0x456   : > { %v7472_v38 = vshrl.u32 %v12846_v6, 16  ;;  %v12844_v53 = vpack.c.bf16 %v7232_v36, %v7232_v36  ;;  %v7243_v43 = vadd.f32 %v14400_v4, %v18435_v27  ;;  %v7475_v49 = vshll.u32 %v12846_v6, 16 }
 0x457   : > { %v7234_v41 = vpop.f32.mrf.mxu1 }
 0x458   : > { %v7474_v21 = vrot.slane %v7472_v38, 7  ;;  %v7455_v12 = vshrl.u32 %v12844_v53, 16  ;;  %v12847_v0 = vpack.c.bf16 %v7243_v43, %v7243_v43  ;;  %v7235_v33 = vadd.f32 %v18435_v27, %v7234_v41  ;;  %v7796_v41 = vld [vmem:[#allocation3 + $0x30] sm:$0xf] }
 0x459   : > { %v7458_v17 = vshll.u32 %v12844_v53, 16 }
 0x45a   : > { %v7477_v20 = vor.u32 %v7475_v49, %v7474_v21  ;;  %v7457_v14 = vrot.slane %v7455_v12, 7  ;;  %v7480_v63 = vshrl.u32 %v12847_v0, 16  ;;  %v12845_v15 = vpack.c.bf16 %v7235_v33, %v7235_v33 }
 0x45b   : > { %v7483_v22 = vshll.u32 %v12847_v0, 16  ;;  %v7478_v61 = vrot.slane %v7474_v21, 4 }
 0x45c   : > { %v7783_v59 = vsel %vm15544_vm4, %v7477_v20, %v7782_v52  ;;  %v7460_v10 = vor.u32 %v7458_v17, %v7457_v14  ;;  %v7482_v32 = vrot.slane %v7480_v63, 7  ;;  %v7463_v54 = vshrl.u32 %v12845_v15, 16  ;;  %v7789_v20 = vld [vmem:[#allocation3 + $0x24] sm:$0xf] }
 0x45d   : > { %7784 = vst [vmem:[#allocation3 + $0x18] sm:$0xf] %v7783_v59  ;;  %v7466_v39 = vshll.u32 %v12845_v15, 16  ;;  %v7461_v40 = vrot.slane %v7457_v14, 4 }
 0x45e   : > { %v7776_v31 = vsel %vm15544_vm4, %v7460_v10, %v7775_v30  ;;  %v7485_v50 = vor.u32 %v7483_v22, %v7482_v32  ;;  %v7487_v9 = vrot.slane %v7482_v32, 4  ;;  %v7465_v1 = vrot.slane %v7463_v54, 7  ;;  %v7800_v10 = vld [vmem:[#allocation3 + $0x38] sm:$0x1] }
 0x45f   : > { %7777 = vst [vmem:[#allocation3 + $0xc] sm:$0xf] %v7776_v31 }
 0x460   : > { %v7486_v42 = vsel %vm15581_vm7, %v7478_v61, %v7485_v50  ;;  %v7787_v47 = vsel %vm15493_vm6, %v7487_v9, %v7786_v13  ;;  %v7468_v2 = vor.u32 %v7466_v39, %v7465_v1  ;;  %v7470_v18 = vrot.slane %v7465_v1, 4 }
 0x461   : > { %7785 = vst [vmem:[#allocation3 + $0x1c] sm:$0xf] %v7486_v42  ;;  %7788 = vst [vmem:[#allocation3 + $0x20] sm:$0x1] %v7787_v47  ;;  %v14403_v46 = vpop.f32.mrf.mxu1 }
 0x462   : > { %v7256_v11 = vadd.f32 %v14403_v46, %v18435_v27  ;;  %v7469_v5 = vsel %vm15581_vm7, %v7461_v40, %v7468_v2  ;;  %v7780_v44 = vsel %vm15493_vm6, %v7470_v18, %v7779_v51  ;;  %v7793_v2 = vld [vmem:[#allocation3 + $0x2c] sm:$0x1] }
 0x463   : > { %v7247_v37 = vpop.f32.mrf.mxu1  ;;  %7778 = vst [vmem:[#allocation3 + $0x10] sm:$0xf] %v7469_v5  ;;  %7781 = vst [vmem:[#allocation3 + $0x14] sm:$0x1] %v7780_v44 }
 0x464   : > { %v12850_v16 = vpack.c.bf16 %v7256_v11, %v7256_v11  ;;  %v7248_v26 = vadd.f32 %v18435_v27, %v7247_v37  ;;  %v18460_v43 = vld [vmem:[#allocation3 + $0x18] sm:$0xf] }
 0x465   : > { %v14404_v58 = vpop.f32.mrf.mxu1  ;;  %v8568_v17 = vshrl.u32 %v18460_v43, 16  ;;  %v8571_v61 = vshll.u32 %v18460_v43, 16  ;;  %v18473_v31 = vld [vmem:[#allocation3 + $0x18] sm:$0xf] }
 0x466   : > { %v7506_v55 = vshrl.u32 %v12850_v16, 16  ;;  %v12848_v28 = vpack.c.bf16 %v7248_v26, %v7248_v26  ;;  %v7259_v6 = vadd.f32 %v14404_v58, %v18435_v27  ;;  %v8495_v36 = vld [vmem:[#allocation3 + $0xc] sm:$0xf]  ;;  %v7509_v29 = vshll.u32 %v12850_v16, 16 }
 0x467   : > { %v7250_v8 = vpop.f32.mrf.mxu1  ;;  %v8544_v49 = vshrl.u32 %v8495_v36, 16  ;;  %v8547_v12 = vshll.u32 %v8495_v36, 16  ;;  %v18484_v18 = vld [vmem:[#allocation3 + $0xc] sm:$0xf]  ;;  %v7984_v46 = vshrl.u32 %v18473_v31, 16  ;;  %v7987_v48 = vshll.u32 %v18473_v31, 16 }
 0x468   : > { %v7508_v4 = vrot.slane %v7506_v55, 7  ;;  %v7489_v38 = vshrl.u32 %v12848_v28, 16  ;;  %v12851_v53 = vpack.c.bf16 %v7259_v6, %v7259_v6  ;;  %v7251_v21 = vadd.f32 %v18435_v27, %v7250_v8  ;;  %v18478_v57 = vld [vmem:[#allocation3 + $0x1c] sm:$0xf] }
 0x469   : > { %v7492_v33 = vshll.u32 %v12848_v28, 16  ;;  %v18468_v13 = vrot.slane %v8544_v49, 4  ;;  %v18470_v54 = vrot.slane %v8547_v12, 5  ;;  %v18488_v37 = vrot.slane %v8568_v17, 4 }
 0x46a   : > { %v7511_v0 = vor.u32 %v7509_v29, %v7508_v4  ;;  %v7491_v52 = vrot.slane %v7489_v38, 7  ;;  %v7514_v7 = vshrl.u32 %v12851_v53, 16  ;;  %v12849_v14 = vpack.c.bf16 %v7251_v21, %v7251_v21  ;;  %v18466_v32 = vld [vmem:[#allocation3 + $0x10] sm:$0xf] }
 0x46b   : > { %v7517_v59 = vshll.u32 %v12851_v53, 16  ;;  %v7512_v50 = vrot.slane %v7508_v4, 4  ;;  %v12667_v47 = vcombine.low %v8495_v36, %v18466_v32  ;;  %v18490_v26 = vld [vmem:[#allocation3 + $0x10] sm:$0xf]  ;;  %v8550_v58 = vor.u32 %v18470_v54, %v18468_v13  ;;  %v18502_v36 = vld [vmem:[#allocation3 + $0x14] sm:$0x1] }
 0x46c   : > { %v7797_v63 = vsel %vm15544_vm4, %v7511_v0, %v7796_v41  ;;  %v7494_v30 = vor.u32 %v7492_v33, %v7491_v52  ;;  %v7516_v15 = vrot.slane %v7514_v7, 7  ;;  %v7497_v22 = vshrl.u32 %v12849_v14, 16 }
 0x46d   : > { %7798 = vst [vmem:[#allocation3 + $0x30] sm:$0xf] %v7797_v63  ;;  %v7500_v42 = vshll.u32 %v12849_v14, 16  ;;  %v7495_v11 = vrot.slane %v7491_v52, 4  ;;  %11105 = vmatprep.mubr.bf16.mxu0 %v12667_v47  ;;  %v18497_v55 = vrot.slane %v8571_v61, 5  ;;  %v12668_v28 = vcombine.low %v18460_v43, %v18478_v57 }
 0x46e   : > { %v7790_v9 = vsel %vm15544_vm4, %v7494_v30, %v7789_v20  ;;  %v7519_v1 = vor.u32 %v7517_v59, %v7516_v15  ;;  %v7521_v39 = vrot.slane %v7516_v15, 4  ;;  %v7499_v51 = vrot.slane %v7497_v22, 7  ;;  %11106 = vmatmul.mubr.bf16.vlgmr.msra.gmra.mxu0 %v12651_v56  ;;  %v8320_v15 = vld [vmem:[#allocation3 + $0xc] sm:$0xe] }
 0x46f   : > { %7791 = vst [vmem:[#allocation3 + $0x24] sm:$0xf] %v7790_v9  ;;  %v7960_v38 = vshrl.u32 %v18484_v18, 16  ;;  %v7963_v19 = vshll.u32 %v18484_v18, 16  ;;  %14246 = vmatpush3.bf16.msra.mxu0 %v14815_v34  ;;  %v8553_v24 = vshll.u32 %v18466_v32, 16  ;;  %11113 = vmatprep.mubr.bf16.mxu0 %v12668_v28  ;;  %v7969_v43 = vshll.u32 %v18490_v26, 16 }
 0x470   : > { %v7520_v62 = vsel %vm15581_vm7, %v7512_v50, %v7519_v1  ;;  %v7801_v40 = vsel %vm15493_vm6, %v7521_v39, %v7800_v10  ;;  %v7502_v5 = vor.u32 %v7500_v42, %v7499_v51  ;;  %v7504_v44 = vrot.slane %v7499_v51, 4  ;;  %v14822_v59 = vld [vmem:[#allocation12 + $0x1f0] sm:$0xff]  }
 0x471   : > { %7799 = vst [vmem:[#allocation3 + $0x34] sm:$0xf] %v7520_v62  ;;  %7802 = vst [vmem:[#allocation3 + $0x38] sm:$0x1] %v7801_v40  ;;  %v14407_v16 = vpop.f32.mrf.mxu1  ;;  %v7962_v21 = vrot.slane %v7960_v38, 4  ;;  %v7965_v49 = vrot.slane %v7963_v19, 5  ;;  %14247 = vmatprep.subr.bf16.mxu0 %v14822_v59 }
 0x472   : > { %v7272_v6 = vadd.f32 %v14407_v16, %v18435_v27  ;;  %v7503_v8 = vsel %vm15581_vm7, %v7495_v11, %v7502_v5  ;;  %v7794_v4 = vsel %vm15493_vm6, %v7504_v44, %v7793_v2  ;;  %v7973_v12 = vshrl.u32 %v18490_v26, 16  ;;  %v14823_v9 = vld [vmem:[#allocation12 + $0x1b0] sm:$0xff]   ;;  %v7803_v40 = vld [vmem:[#allocation3 + $0x3c] sm:$0xf]  ;;  %v7814_v19 = vld [vmem:[#allocation3 + $0x50] sm:$0x1] }
 0x473   : > { %v7263_v29 = vpop.f32.mrf.mxu1  ;;  %7792 = vst [vmem:[#allocation3 + $0x28] sm:$0xf] %v7503_v8  ;;  %7795 = vst [vmem:[#allocation3 + $0x2c] sm:$0x1] %v7794_v4  ;;  %v7979_v0 = vshll.u32 %v18502_v36, 16  ;;  %v8557_v52 = vshrl.u32 %v18466_v32, 16  ;;  %v7966_v17 = vor.u32 %v7965_v49, %v7962_v21  ;;  %14248 = vmatpush3.bf16.msra.mxu0 %v14823_v9 }
 0x474   : > { %v12854_v56 = vpack.c.bf16 %v7272_v6, %v7272_v6  ;;  %v7264_v53 = vadd.f32 %v18435_v27, %v7263_v29  ;;  %v7971_v63 = vrot.slane %v7969_v43, 5  ;;  %v7975_v30 = vrot.slane %v7973_v12, 4  ;;  %v7810_v1 = vld [vmem:[#allocation3 + $0x48] sm:$0xf] }
 0x475   : > { %v14408_v41 = vpop.f32.mrf.mxu1  ;;  %v7981_v50 = vrot.slane %v7979_v0, 5  ;;  %v7967_v51 = vrot.slane %v7966_v17, 4  ;;  %v8395_v47 = vrot.slane %v18502_v36, 5  ;;  %v12572_v11 = vrot.slane %v8320_v15, 9  ;;  %v14827_v8 = vld [vmem:[#allocation12 + $0x150] sm:$0xff]  }
 0x476   : > { %v7540_v33 = vshrl.u32 %v12854_v56, 16  ;;  %v12852_v7 = vpack.c.bf16 %v7264_v53, %v7264_v53  ;;  %v7275_v20 = vadd.f32 %v14408_v41, %v18435_v27  ;;  %v7543_v14 = vshll.u32 %v12854_v56, 16  ;;  %14143 = vmatprep.subr.bf16.mxu1 %v14827_v8  ;;  %v14828_v21 = vld [vmem:[#allocation12 + $0x110] sm:$0xff]  }
 0x477   : > { %v7976_v42 = vor.u32 %v7975_v30, %v7971_v63  ;;  %v7266_v5 = vpop.f32.mrf.mxu1  ;;  %v8392_v6 = vrot.slane %v18490_v26, 5  ;;  %v7972_v38 = vsel %vm15563_vm2, %v7967_v51, %v7971_v63  ;;  %v12620_v17 = vcombine.low %v18484_v18, %v18490_v26  ;;  %14144 = vmatpush3.bf16.msra.mxu1 %v14828_v21 }
 0x478   : > { %v7542_v10 = vrot.slane %v7540_v33, 7  ;;  %v7523_v22 = vshrl.u32 %v12852_v7, 16  ;;  %v12855_v61 = vpack.c.bf16 %v7275_v20, %v7275_v20  ;;  %v7526_v39 = vshll.u32 %v12852_v7, 16  ;;  %v18533_v7 = vld [vmem:[#allocation3 + $0x1c] sm:$0xf] }
 0x479   : > { %v7977_v28 = vrot.slane %v7976_v42, 4  ;;  %v8393_v53 = vsel %vm15940_vm12, %v12572_v11, %v8392_v6  ;;  %v8394_v43 = vrot.slane %v8392_v6, 4  ;;  %v7267_v41 = vadd.f32 %v18435_v27, %v7266_v5 }
 0x47a   : > { %v7545_v34 = vor.u32 %v7543_v14, %v7542_v10  ;;  %v18518_v62 = vrot.slane %v7523_v22, 7  ;;  %v7548_v2 = vshrl.u32 %v12855_v61, 16  ;;  %v7546_v44 = vrot.slane %v7542_v10, 4  ;;  %v18545_v10 = vld [vmem:[#allocation3 + $0x20] sm:$0x1] }
 0x47b   : > { %v7551_v16 = vshll.u32 %v12855_v61, 16  ;;  %v7982_v56 = vsel %vm15563_vm2, %v7977_v28, %v7981_v50  ;;  %v8396_v20 = vsel %vm15940_vm12, %v8394_v43, %v8395_v47  ;;  %v12853_v14 = vpack.c.bf16 %v7267_v41, %v7267_v41 }
 0x47c   : > { %v7811_v4 = vsel %vm15544_vm4, %v7545_v34, %v7810_v1  ;;  %v7528_v36 = vor.u32 %v7526_v39, %v18518_v62  ;;  %v7550_v29 = vrot.slane %v7548_v2, 7  ;;  %v12636_v33 = vcombine.low %v7972_v38, %v7982_v56  ;;  %v8499_v39 = vld [vmem:[#allocation3 + $0x24] sm:$0xf]  ;;  %v18560_v34 = vld [vmem:[#allocation3 + $0x28] sm:$0xf] }
 0x47d   : > { %7812 = vst [vmem:[#allocation3 + $0x48] sm:$0xf] %v7811_v4  ;;  %v7986_v63 = vrot.slane %v7984_v46, 4  ;;  %v12652_v59 = vcombine.low %v8393_v53, %v8396_v20  ;;  %v7989_v22 = vrot.slane %v7987_v48, 5  ;;  %v8574_v18 = vor.u32 %v18497_v55, %v18488_v37  ;;  %v7807_v2 = vld [vmem:[#allocation3 + $0x44] sm:$0x1] }
 0x47e   : > { %v7804_v49 = vsel %vm15544_vm4, %v7528_v36, %v7803_v40  ;;  %v7553_v12 = vor.u32 %v7551_v16, %v7550_v29  ;;  %v7555_v0 = vrot.slane %v7550_v29, 4  ;;  %10952 = vmatprep.mubr.bf16.mxu1 %v12636_v33  ;;  %v7531_v46 = vshrl.u32 %v12853_v14, 16  ;;  %v18592_v33 = vld [vmem:[#allocation3 + $0x34] sm:$0xf] }
 0x47f   : > { %7805 = vst [vmem:[#allocation3 + $0x3c] sm:$0xf] %v7804_v49  ;;  %10953 = vmatmul.mubr.bf16.gmra.mxu1 %v12620_v17  ;;  %v7993_v26 = vshll.u32 %v18533_v7, 16  ;;  %v7997_v61 = vshrl.u32 %v18533_v7, 16  ;;  %v18555_v50 = vrot.slane %v8553_v24, 5  ;;  %v8559_v9 = vrot.slane %v8557_v52, 4  ;;  %11114 = vmatmul.mubr.bf16.gmra.mxu0 %v12652_v59 }
 0x480   : > { %v7554_v30 = vsel %vm15581_vm7, %v7546_v44, %v7553_v12  ;;  %v7815_v15 = vsel %vm15493_vm6, %v7555_v0, %v7814_v19  ;;  %v7534_v48 = vshll.u32 %v12853_v14, 16  ;;  %v7990_v1 = vor.u32 %v7989_v22, %v7986_v63  ;;  %v18607_v22 = vld [vmem:[#allocation3 + $0x30] sm:$0xf] }
 0x481   : > { %7813 = vst [vmem:[#allocation3 + $0x4c] sm:$0xf] %v7554_v30  ;;  %7816 = vst [vmem:[#allocation3 + $0x50] sm:$0x1] %v7815_v15  ;;  %v14411_v37 = vpop.f32.mrf.mxu1  ;;  %v7533_v55 = vrot.slane %v7531_v46, 7  ;;  %v7995_v51 = vrot.slane %v7993_v26, 5  ;;  %v8560_v28 = vor.u32 %v8559_v9, %v18555_v50  ;;  %v12669_v8 = vcombine.low %v8499_v39, %v18560_v34 }
 0x482   : > { %v7999_v42 = vrot.slane %v7997_v61, 4  ;;  %v8003_v47 = vshll.u32 %v18545_v10, 16  ;;  %v18565_v24 = vrot.slane %v8550_v58, 4  ;;  %v8577_v32 = vshll.u32 %v18478_v57, 16  ;;  %v18601_v15 = vld [vmem:[#allocation3 + $0x24] sm:$0xf] }
 0x483   : > { %v8581_v52 = vshrl.u32 %v18478_v57, 16  ;;  %v7529_v40 = vrot.slane %v18518_v62, 4  ;;  %v7536_v11 = vor.u32 %v7534_v48, %v7533_v55  ;;  %v7538_v5 = vrot.slane %v7533_v55, 4  ;;  %v7279_v4 = vpop.f32.mrf.mxu1  ;;  %v8321_v62 = vld [vmem:[#allocation3 + $0x18] sm:$0xe]  ;;  %11121 = vmatprep.mubr.bf16.mxu0 %v12669_v8 }
 0x484   : > { %v7991_v44 = vrot.slane %v7990_v1, 4  ;;  %v8000_v16 = vor.u32 %v7999_v42, %v7995_v51  ;;  %v8592_v6 = vshrl.u32 %v8499_v39, 16  ;;  %v8005_v58 = vrot.slane %v8003_v47, 5  ;;  %v18611_v26 = vld [vmem:[#allocation3 + $0x28] sm:$0xf] }
 0x485   : > { %v7537_v13 = vsel %vm15581_vm7, %v7529_v40, %v7536_v11  ;;  %v7808_v54 = vsel %vm15493_vm6, %v7538_v5, %v7807_v2  ;;  %v18580_v29 = vrot.slane %v8574_v18, 4  ;;  %v18582_v38 = vrot.slane %v8577_v32, 5  ;;  %v14412_v20 = vpop.f32.mrf.mxu1  ;;  %v18624_v11 = vld [vmem:[#allocation3 + $0x2c] sm:$0x1]  ;;  %v7824_v5 = vld [vmem:[#allocation3 + $0x60] sm:$0xf] }
 0x486   : > { %v8001_v57 = vrot.slane %v8000_v16, 4  ;;  %7806 = vst [vmem:[#allocation3 + $0x40] sm:$0xf] %v7537_v13  ;;  %7809 = vst [vmem:[#allocation3 + $0x44] sm:$0x1] %v7808_v54  ;;  %v8399_v19 = vrot.slane %v18533_v7, 5  ;;  %v7996_v53 = vsel %vm15563_vm2, %v7991_v44, %v7995_v51  ;;  %v12621_v30 = vcombine.low %v18473_v31, %v18533_v7 }
 0x487   : > { %v18585_v56 = vrot.slane %v8581_v52, 4  ;;  %v8595_v41 = vshll.u32 %v8499_v39, 16  ;;  %v8402_v21 = vrot.slane %v18545_v10, 5  ;;  %v12573_v12 = vrot.slane %v8321_v62, 9  ;;  %v7817_v62 = vld [vmem:[#allocation3 + $0x54] sm:$0xf] }
 0x488   : > { %v8006_v43 = vsel %vm15563_vm2, %v8001_v57, %v8005_v58  ;;  %v8401_v0 = vrot.slane %v8399_v19, 4  ;;  %v18594_v14 = vrot.slane %v8560_v28, 4  ;;  %v18596_v17 = vrot.slane %v8592_v6, 4  ;;  %v14830_v57 = vld [vmem:[#allocation12 + $0x1e8] sm:$0xff]  }
 0x489   : > { %v12637_v49 = vcombine.low %v7996_v53, %v8006_v43  ;;  %v8601_v63 = vshll.u32 %v18560_v34, 16  ;;  %v8400_v59 = vsel %vm15940_vm12, %v12573_v12, %v8399_v19  ;;  %v7288_v18 = vadd.f32 %v14411_v37, %v18435_v27  ;;  %v14831_v58 = vld [vmem:[#allocation12 + $0x1a8] sm:$0xff]   ;;  %14249 = vmatprep.subr.bf16.mxu0 %v14830_v57 }
 0x48a   : > { %v8403_v10 = vsel %vm15940_vm12, %v8401_v0, %v8402_v21  ;;  %v7280_v46 = vadd.f32 %v18435_v27, %v7279_v4  ;;  %v18613_v61 = vrot.slane %v8595_v41, 5  ;;  %v12670_v7 = vcombine.low %v18607_v22, %v18592_v33  ;;  %14250 = vmatpush3.bf16.msra.mxu0 %v14831_v58 }
 0x48b   : > { %10960 = vmatprep.mubr.bf16.mxu1 %v12637_v49  ;;  %v12653_v31 = vcombine.low %v8400_v59, %v8403_v10  ;;  %v7291_v9 = vadd.f32 %v14412_v20, %v18435_v27  ;;  %v12858_v48 = vpack.c.bf16 %v7288_v18, %v7288_v18  ;;  %v8008_v39 = vshrl.u32 %v18601_v15, 16  ;;  %v7828_v20 = vld [vmem:[#allocation3 + $0x68] sm:$0x1] }
 0x48c   : > { %10961 = vmatmul.mubr.bf16.gmra.mxu1 %v12621_v30  ;;  %v12856_v1 = vpack.c.bf16 %v7280_v46, %v7280_v46  ;;  %v8011_v55 = vshll.u32 %v18601_v15, 16  ;;  %v8605_v37 = vshrl.u32 %v18560_v34, 16  ;;  %v8017_v42 = vshll.u32 %v18611_v26, 16  ;;  %v8322_v30 = vld [vmem:[#allocation3 + $0x24] sm:$0xe] }
 0x48d   : > { %11122 = vmatmul.mubr.bf16.gmra.mxu0 %v12653_v31  ;;  %v12859_v51 = vpack.c.bf16 %v7291_v9, %v7291_v9  ;;  %v8021_v47 = vshrl.u32 %v18611_v26, 16  ;;  %v8616_v32 = vshrl.u32 %v18607_v22, 16  ;;  %v7574_v52 = vshrl.u32 %v12858_v48, 16  ;;  %v7282_v31 = vpop.f32.mrf.mxu1 }
 0x48e   : > { %11129 = vmatprep.mubr.bf16.mxu0 %v12670_v7  ;;  %v7577_v40 = vshll.u32 %v12858_v48, 16  ;;  %v7557_v2 = vshrl.u32 %v12856_v1, 16  ;;  %v7560_v44 = vshll.u32 %v12856_v1, 16  ;;  %v8010_v28 = vrot.slane %v8008_v39, 4  ;;  %v18631_v7 = vld [vmem:[#allocation3 + $0x30] sm:$0xf] }
 0x48f   : > { %v7582_v16 = vshrl.u32 %v12859_v51, 16  ;;  %v8013_v6 = vrot.slane %v8011_v55, 5  ;;  %v7576_v8 = vrot.slane %v7574_v52, 7  ;;  %v8019_v13 = vrot.slane %v8017_v42, 5  ;;  %v18638_v55 = vld [vmem:[#allocation3 + $0x34] sm:$0xf] }
 0x490   : > { %v18626_v4 = vrot.slane %v7557_v2, 7  ;;  %v8023_v54 = vrot.slane %v8021_v47, 4  ;;  %v7585_v53 = vshll.u32 %v12859_v51, 16  ;;  %v8027_v41 = vshll.u32 %v18624_v11, 16  ;;  %v14836_v2 = vld [vmem:[#allocation12 + $0x108] sm:$0xff]  }
 0x491   : > { %v7584_v19 = vrot.slane %v7582_v16, 7  ;;  %v8014_v43 = vor.u32 %v8013_v6, %v8010_v28  ;;  %v8619_v21 = vshll.u32 %v18607_v22, 16  ;;  %v7579_v49 = vor.u32 %v7577_v40, %v7576_v8  ;;  %v14835_v40 = vld [vmem:[#allocation12 + $0x148] sm:$0xff]   ;;  %v18651_v6 = vld [vmem:[#allocation3 + $0x38] sm:$0x1] }
 0x492   : > { %v7580_v12 = vrot.slane %v7576_v8, 4  ;;  %v7562_v0 = vor.u32 %v7560_v44, %v18626_v4  ;;  %v8024_v46 = vor.u32 %v8023_v54, %v8019_v13  ;;  %v8029_v1 = vrot.slane %v8027_v41, 5  ;;  %14145 = vmatprep.subr.bf16.mxu1 %v14835_v40 }
 0x493   : > { %v7587_v59 = vor.u32 %v7585_v53, %v7584_v19  ;;  %v7589_v10 = vrot.slane %v7584_v19, 4  ;;  %v8015_v18 = vrot.slane %v8014_v43, 4  ;;  %v7825_v9 = vsel %vm15544_vm4, %v7579_v49, %v7824_v5  ;;  %14146 = vmatpush3.bf16.msra.mxu1 %v14836_v2  ;;  %v18676_v2 = vld [vmem:[#allocation3 + $0x40] sm:$0xf] }
 0x494   : > { %v7818_v48 = vsel %vm15544_vm4, %v7562_v0, %v7817_v62  ;;  %v8409_v39 = vrot.slane %v18624_v11, 5  ;;  %7826 = vst [vmem:[#allocation3 + $0x60] sm:$0xf] %v7825_v9  ;;  %v8025_v47 = vrot.slane %v8024_v46, 4  ;;  %v12574_v52 = vrot.slane %v8322_v30, 9 }
 0x495   : > { %7819 = vst [vmem:[#allocation3 + $0x54] sm:$0xf] %v7818_v48  ;;  %v7588_v51 = vsel %vm15581_vm7, %v7580_v12, %v7587_v59  ;;  %v7829_v42 = vsel %vm15493_vm6, %v7589_v10, %v7828_v20  ;;  %v8020_v5 = vsel %vm15563_vm2, %v8015_v18, %v8019_v13  ;;  %v8406_v11 = vrot.slane %v18611_v26, 5  ;;  %v14415_v59 = vpop.f32.mrf.mxu1 }
 0x496   : > { %7827 = vst [vmem:[#allocation3 + $0x64] sm:$0xf] %v7588_v51  ;;  %7830 = vst [vmem:[#allocation3 + $0x68] sm:$0x1] %v7829_v42  ;;  %v7283_v44 = vadd.f32 %v18435_v27, %v7282_v31  ;;  %v8032_v16 = vshrl.u32 %v18631_v7, 16  ;;  %v8030_v28 = vsel %vm15563_vm2, %v8025_v47, %v8029_v1  ;;  %v8035_v8 = vshll.u32 %v18631_v7, 16 }
 0x497   : > { %v8041_v54 = vshll.u32 %v18638_v55, 16  ;;  %v8045_v57 = vshrl.u32 %v18638_v55, 16  ;;  %v12638_v58 = vcombine.low %v8020_v5, %v8030_v28  ;;  %v8408_v13 = vrot.slane %v8406_v11, 4  ;;  %v8503_v1 = vld [vmem:[#allocation3 + $0x3c] sm:$0xf]  ;;  %v7295_v5 = vpop.f32.mrf.mxu1 }
 0x498   : > { %v12857_v62 = vpack.c.bf16 %v7283_v44, %v7283_v44  ;;  %v12622_v19 = vcombine.low %v18601_v15, %v18611_v26  ;;  %v8034_v53 = vrot.slane %v8032_v16, 4  ;;  %v8037_v43 = vrot.slane %v8035_v8, 5  ;;  %v7821_v51 = vld [vmem:[#allocation3 + $0x5c] sm:$0x1]  ;;  %v8323_v8 = vld [vmem:[#allocation3 + $0x30] sm:$0xe] }
 0x499   : > { %v8043_v41 = vrot.slane %v8041_v54, 5  ;;  %v8047_v49 = vrot.slane %v8045_v57, 4  ;;  %10968 = vmatprep.mubr.bf16.mxu1 %v12638_v58  ;;  %v8407_v12 = vsel %vm15940_vm12, %v12574_v52, %v8406_v11  ;;  %v8410_v0 = vsel %vm15940_vm12, %v8408_v13, %v8409_v39  ;;  %v18698_v13 = vld [vmem:[#allocation3 + $0x48] sm:$0xf] }
 0x49a   : > { %v7565_v20 = vshrl.u32 %v12857_v62, 16  ;;  %v8051_v30 = vshll.u32 %v18651_v6, 16  ;;  %v8598_v10 = vor.u32 %v18613_v61, %v18596_v17  ;;  %v12654_v15 = vcombine.low %v8407_v12, %v8410_v0  ;;  %10969 = vmatmul.mubr.bf16.gmra.mxu1 %v12622_v19 }
 0x49b   : > { %v8038_v26 = vor.u32 %v8037_v43, %v8034_v53  ;;  %v8048_v18 = vor.u32 %v8047_v49, %v8043_v41  ;;  %v18667_v46 = vrot.slane %v8616_v32, 4  ;;  %v8625_v31 = vshll.u32 %v18592_v33, 16  ;;  %v14416_v43 = vpop.f32.mrf.mxu1  ;;  %v14839_v49 = vld [vmem:[#allocation12 + $0x1a0] sm:$0xff]  }
 0x49c   : > { %v7567_v9 = vrot.slane %v7565_v20, 7  ;;  %v7568_v48 = vshll.u32 %v12857_v62, 16  ;;  %v18672_v39 = vrot.slane %v8619_v21, 5  ;;  %11130 = vmatmul.mubr.bf16.gmra.mxu0 %v12654_v15  ;;  %v8053_v42 = vrot.slane %v8051_v30, 5  ;;  %v18700_v62 = vld [vmem:[#allocation3 + $0x3c] sm:$0xf] }
 0x49d   : > { %v8039_v17 = vrot.slane %v8038_v26, 4  ;;  %v8049_v61 = vrot.slane %v8048_v18, 4  ;;  %v8629_v47 = vshrl.u32 %v18592_v33, 16  ;;  %v7563_v52 = vrot.slane %v18626_v4, 4  ;;  %v18712_v20 = vld [vmem:[#allocation3 + $0x4c] sm:$0xf] }
 0x49e   : > { %v7570_v32 = vor.u32 %v7568_v48, %v7567_v9  ;;  %v7572_v40 = vrot.slane %v7567_v9, 4  ;;  %v18680_v11 = vrot.slane %v8601_v63, 5  ;;  %v8640_v44 = vshrl.u32 %v8503_v1, 16  ;;  %v18720_v18 = vld [vmem:[#allocation3 + $0x40] sm:$0xf] }
 0x49f   : > { %v8044_v22 = vsel %vm15563_vm2, %v8039_v17, %v8043_v41  ;;  %v8054_v21 = vsel %vm15563_vm2, %v8049_v61, %v8053_v42  ;;  %v8643_v28 = vshll.u32 %v8503_v1, 16  ;;  %v18692_v63 = vrot.slane %v8605_v37, 4  ;;  %v14838_v41 = vld [vmem:[#allocation12 + $0x1e0] sm:$0xff]  }
 0x4a0   : > { %v7571_v33 = vsel %vm15581_vm7, %v7563_v52, %v7570_v32  ;;  %v7822_v4 = vsel %vm15493_vm6, %v7572_v40, %v7821_v51  ;;  %v12639_v16 = vcombine.low %v8044_v22, %v8054_v21  ;;  %v12671_v54 = vcombine.low %v8503_v1, %v18676_v2  ;;  %14251 = vmatprep.subr.bf16.mxu0 %v14838_v41  ;;  %v14841_v1 = vld [vmem:[#allocation12 + $0x1d8] sm:$0xff]   ;;  %v14844_v42 = vld [vmem:[#allocation12 + $0x140] sm:$0xff]   ;;  %v14847_v21 = vld [vmem:[#allocation12 + $0x1d0] sm:$0xff]  }
 0x4a1   : > { %7820 = vst [vmem:[#allocation3 + $0x58] sm:$0xf] %v7571_v33  ;;  %7823 = vst [vmem:[#allocation3 + $0x5c] sm:$0x1] %v7822_v4  ;;  %v8413_v57 = vrot.slane %v18638_v55, 5  ;;  %v12623_v58 = vcombine.low %v18631_v7, %v18638_v55  ;;  %v18702_v19 = vrot.slane %v8598_v10, 4  ;;  %v8622_v34 = vor.u32 %v18672_v39, %v18667_v46  ;;  %14252 = vmatpush3.bf16.msra.mxu0 %v14839_v49 }
 0x4a2   : > { %v18706_v37 = vrot.slane %v8625_v31, 5  ;;  %v18708_v53 = vrot.slane %v8629_v47, 4  ;;  %10976 = vmatprep.mubr.bf16.mxu1 %v12639_v16  ;;  %v8416_v12 = vrot.slane %v18651_v6, 5  ;;  %v8649_v7 = vshll.u32 %v18676_v2, 16  ;;  %11137 = vmatprep.mubr.bf16.mxu0 %v12671_v54  ;;  %v14845_v47 = vld [vmem:[#allocation12 + $0x198] sm:$0xff]   ;;  %v14846_v52 = vld [vmem:[#allocation12 + $0x100] sm:$0xff]  }
 0x4a3   : > { %v12575_v55 = vrot.slane %v8323_v8, 9  ;;  %v8415_v0 = vrot.slane %v8413_v57, 4  ;;  %10977 = vmatmul.mubr.bf16.gmra.mxu1 %v12623_v58  ;;  %v18714_v30 = vrot.slane %v8640_v44, 4  ;;  %v18716_v10 = vrot.slane %v8643_v28, 5  ;;  %14253 = vmatprep.subr.bf16.mxu0 %v14841_v1  ;;  %v18736_v16 = vld [vmem:[#allocation3 + $0x44] sm:$0x1] }
 0x4a4   : > { %v8664_v15 = vshrl.u32 %v18698_v13, 16  ;;  %v7304_v26 = vadd.f32 %v14415_v59, %v18435_v27  ;;  %v7296_v9 = vadd.f32 %v18435_v27, %v7295_v5  ;;  %v7307_v48 = vadd.f32 %v14416_v43, %v18435_v27  ;;  %14147 = vmatprep.subr.bf16.mxu1 %v14844_v42  ;;  %v14848_v43 = vld [vmem:[#allocation12 + $0x190] sm:$0xff]   ;;  %v7842_v1 = vld [vmem:[#allocation3 + $0x80] sm:$0x1] }
 0x4a5   : > { %v8414_v6 = vsel %vm15940_vm12, %v12575_v55, %v8413_v57  ;;  %v8417_v31 = vsel %vm15940_vm12, %v8415_v0, %v8416_v12  ;;  %v12672_v17 = vcombine.low %v18698_v13, %v18712_v20  ;;  %v8056_v61 = vshrl.u32 %v18700_v62, 16  ;;  %14254 = vmatpush3.bf16.msra.mxu0 %v14845_v47  ;;  %14148 = vmatpush3.bf16.msra.mxu1 %v14846_v52  ;;  %v8324_v52 = vld [vmem:[#allocation3 + $0x3c] sm:$0xe]  ;;  %v8325_v39 = vld [vmem:[#allocation3 + $0x48] sm:$0xe] }
 0x4a6   : > { %v12655_v51 = vcombine.low %v8414_v6, %v8417_v31  ;;  %v12862_v59 = vpack.c.bf16 %v7304_v26, %v7304_v26  ;;  %v12860_v32 = vpack.c.bf16 %v7296_v9, %v7296_v9  ;;  %v12863_v40 = vpack.c.bf16 %v7307_v48, %v7307_v48  ;;  %14255 = vmatprep.subr.bf16.mxu0 %v14847_v21  ;;  %v7831_v48 = vld [vmem:[#allocation3 + $0x6c] sm:$0xf] }
 0x4a7   : > { %v8059_v22 = vshll.u32 %v18700_v62, 16  ;;  %v8065_v5 = vshll.u32 %v18720_v18, 16  ;;  %v18733_v44 = vrot.slane %v8664_v15, 4  ;;  %v8667_v33 = vshll.u32 %v18698_v13, 16  ;;  %v7838_v13 = vld [vmem:[#allocation3 + $0x78] sm:$0xf] }
 0x4a8   : > { %11138 = vmatmul.mubr.bf16.gmra.mxu0 %v12655_v51  ;;  %v7608_v4 = vshrl.u32 %v12862_v59, 16  ;;  %v8058_v28 = vrot.slane %v8056_v61, 4  ;;  %v7611_v8 = vshll.u32 %v12862_v59, 16  ;;  %v7591_v54 = vshrl.u32 %v12860_v32, 16 }
 0x4a9   : > { %11145 = vmatprep.mubr.bf16.mxu0 %v12672_v17  ;;  %v7594_v57 = vshll.u32 %v12860_v32, 16  ;;  %v7616_v58 = vshrl.u32 %v12863_v40, 16  ;;  %v8061_v49 = vrot.slane %v8059_v22, 5  ;;  %v8067_v12 = vrot.slane %v8065_v5, 5  ;;  %v7298_v32 = vpop.f32.mrf.mxu1  ;;  %14256 = vmatpush3.bf16.msra.mxu0 %v14848_v43 }
 0x4aa   : > { %v7610_v41 = vrot.slane %v7608_v4, 7  ;;  %v8069_v55 = vshrl.u32 %v18720_v18, 16  ;;  %v18739_v0 = vrot.slane %v7591_v54, 7  ;;  %v7619_v26 = vshll.u32 %v12863_v40, 16  ;;  %v18750_v4 = vld [vmem:[#allocation3 + $0x4c] sm:$0xf] }
 0x4ab   : > { %v7618_v15 = vrot.slane %v7616_v58, 7  ;;  %v8075_v6 = vshll.u32 %v18736_v16, 16  ;;  %v18742_v31 = vrot.slane %v8667_v33, 5  ;;  %v8062_v51 = vor.u32 %v8061_v49, %v8058_v28  ;;  %v18748_v33 = vld [vmem:[#allocation3 + $0x48] sm:$0xf]  ;;  %v14849_v58 = vld [vmem:[#allocation12 + $0x1c8] sm:$0xff]  }
 0x4ac   : > { %v7613_v9 = vor.u32 %v7611_v8, %v7610_v41  ;;  %v8071_v17 = vrot.slane %v8069_v55, 4  ;;  %v7614_v59 = vrot.slane %v7610_v41, 4  ;;  %v7596_v61 = vor.u32 %v7594_v57, %v18739_v0  ;;  %v14851_v55 = vld [vmem:[#allocation12 + $0x188] sm:$0xff]   ;;  %14257 = vmatprep.subr.bf16.mxu0 %v14849_v58 }
 0x4ad   : > { %v7621_v42 = vor.u32 %v7619_v26, %v7618_v15  ;;  %v7623_v47 = vrot.slane %v7618_v15, 4  ;;  %v8063_v22 = vrot.slane %v8062_v51, 4  ;;  %v8423_v21 = vrot.slane %v18736_v16, 5  ;;  %14258 = vmatpush3.bf16.msra.mxu0 %v14851_v55 }
 0x4ae   : > { %v7839_v40 = vsel %vm15544_vm4, %v7613_v9, %v7838_v13  ;;  %v8072_v5 = vor.u32 %v8071_v17, %v8067_v12  ;;  %v7832_v28 = vsel %vm15544_vm4, %v7596_v61, %v7831_v48  ;;  %v8077_v57 = vrot.slane %v8075_v6, 5 }
 0x4af   : > { %7840 = vst [vmem:[#allocation3 + $0x78] sm:$0xf] %v7839_v40  ;;  %v7622_v8 = vsel %vm15581_vm7, %v7614_v59, %v7621_v42  ;;  %v7843_v54 = vsel %vm15493_vm6, %v7623_v47, %v7842_v1  ;;  %7833 = vst [vmem:[#allocation3 + $0x6c] sm:$0xf] %v7832_v28  ;;  %v12576_v43 = vrot.slane %v8324_v52, 9  ;;  %v8420_v41 = vrot.slane %v18720_v18, 5 }
 0x4b0   : > { %7841 = vst [vmem:[#allocation3 + $0x7c] sm:$0xf] %v7622_v8  ;;  %7844 = vst [vmem:[#allocation3 + $0x80] sm:$0x1] %v7843_v54  ;;  %v8073_v16 = vrot.slane %v8072_v5, 4  ;;  %v7299_v49 = vadd.f32 %v18435_v27, %v7298_v32  ;;  %v8068_v13 = vsel %vm15563_vm2, %v8063_v22, %v8067_v12  ;;  %v8080_v15 = vshrl.u32 %v18748_v33, 16  ;;  %v14419_v5 = vpop.f32.mrf.mxu1 }
 0x4b1   : > { %v8083_v26 = vshll.u32 %v18748_v33, 16  ;;  %v8089_v6 = vshll.u32 %v18750_v4, 16  ;;  %v8422_v48 = vrot.slane %v8420_v41, 4  ;;  %v12624_v51 = vcombine.low %v18700_v62, %v18720_v18  ;;  %v18769_v27 = vld [vmem:[#allocation3 + $0x50] sm:$0x1]  ;;  %v14853_v28 = vld [vmem:[#allocation12 + $0x1c0] sm:$0xff]  }
 0x4b2   : > { %v8078_v9 = vsel %vm15563_vm2, %v8073_v16, %v8077_v57  ;;  %v12861_v1 = vpack.c.bf16 %v7299_v49, %v7299_v49  ;;  %v8421_v12 = vsel %vm15940_vm12, %v12576_v43, %v8420_v41  ;;  %v8082_v59 = vrot.slane %v8080_v15, 4  ;;  %v14854_v8 = vld [vmem:[#allocation12 + $0x180] sm:$0xff]   ;;  %14259 = vmatprep.subr.bf16.mxu0 %v14853_v28 }
 0x4b3   : > { %v12640_v17 = vcombine.low %v8068_v13, %v8078_v9  ;;  %v8085_v61 = vrot.slane %v8083_v26, 5  ;;  %v8424_v42 = vsel %vm15940_vm12, %v8422_v48, %v8423_v21  ;;  %v8091_v52 = vrot.slane %v8089_v6, 5  ;;  %v7835_v21 = vld [vmem:[#allocation3 + $0x74] sm:$0x1]  ;;  %v18785_v13 = vld [vmem:[#allocation3 + $0x58] sm:$0xf]  ;;  %14260 = vmatpush3.bf16.msra.mxu0 %v14854_v8  ;;  %v7311_v9 = vpop.f32.mrf.mxu1 }
 0x4b4   : > { %v7599_v47 = vshrl.u32 %v12861_v1, 16  ;;  %v8093_v32 = vshrl.u32 %v18750_v4, 16  ;;  %v8653_v40 = vshrl.u32 %v18676_v2, 16  ;;  %v12656_v62 = vcombine.low %v8421_v12, %v8424_v42 }
 0x4b5   : > { %10984 = vmatprep.mubr.bf16.mxu1 %v12640_v17  ;;  %v8086_v18 = vor.u32 %v8085_v61, %v8082_v59  ;;  %v8099_v22 = vshll.u32 %v18769_v27, 16  ;;  %v8646_v54 = vor.u32 %v18716_v10, %v18714_v30  ;;  %v7602_v58 = vshll.u32 %v12861_v1, 16 }
 0x4b6   : > { %v7601_v57 = vrot.slane %v7599_v47, 7  ;;  %10985 = vmatmul.mubr.bf16.gmra.mxu1 %v12624_v51  ;;  %v8095_v16 = vrot.slane %v8093_v32, 4  ;;  %v8670_v43 = vor.u32 %v18742_v31, %v18733_v44  ;;  %v8673_v41 = vshll.u32 %v18712_v20, 16  ;;  %11146 = vmatmul.mubr.bf16.gmra.mxu0 %v12656_v62  ;;  %v8507_v31 = vld [vmem:[#allocation3 + $0x54] sm:$0xf] }
 0x4b7   : > { %v8677_v49 = vshrl.u32 %v18712_v20, 16  ;;  %v7597_v55 = vrot.slane %v18739_v0, 4  ;;  %v8087_v10 = vrot.slane %v8086_v18, 4  ;;  %v18790_v6 = vrot.slane %v8622_v34, 4  ;;  %v18817_v18 = vld [vmem:[#allocation3 + $0x64] sm:$0xf] }
 0x4b8   : > { %v7604_v15 = vor.u32 %v7602_v58, %v7601_v57  ;;  %v7606_v30 = vrot.slane %v7601_v57, 4  ;;  %v8096_v26 = vor.u32 %v8095_v16, %v8091_v52  ;;  %v18794_v44 = vrot.slane %v8649_v7, 5  ;;  %v18823_v57 = vld [vmem:[#allocation3 + $0x54] sm:$0xf]  ;;  %v18829_v16 = vld [vmem:[#allocation3 + $0x60] sm:$0xf] }
 0x4b9   : > { %v18796_v20 = vrot.slane %v8653_v40, 4  ;;  %v8101_v0 = vrot.slane %v8099_v22, 5  ;;  %v12673_v46 = vcombine.low %v8507_v31, %v18785_v13  ;;  %v18803_v34 = vrot.slane %v8646_v54, 4  ;;  %v14420_v22 = vpop.f32.mrf.mxu1  ;;  %v14855_v58 = vld [vmem:[#allocation12 + $0x238] sm:$0xff]  }
 0x4ba   : > { %v7605_v48 = vsel %vm15581_vm7, %v7597_v55, %v7604_v15  ;;  %v7836_v1 = vsel %vm15493_vm6, %v7606_v30, %v7835_v21  ;;  %v8097_v51 = vrot.slane %v8096_v26, 4  ;;  %v18805_v2 = vrot.slane %v8673_v41, 5  ;;  %14429 = vmatprep.subr.bf16.mxu1 %v14855_v58  ;;  %v7845_v58 = vld [vmem:[#allocation3 + $0x84] sm:$0xf] }
 0x4bb   : > { %v18807_v7 = vrot.slane %v8677_v49, 4  ;;  %7834 = vst [vmem:[#allocation3 + $0x70] sm:$0xf] %v7605_v48  ;;  %7837 = vst [vmem:[#allocation3 + $0x74] sm:$0x1] %v7836_v1  ;;  %v8427_v17 = vrot.slane %v18750_v4, 5  ;;  %v8092_v59 = vsel %vm15563_vm2, %v8087_v10, %v8091_v52  ;;  %11153 = vmatprep.mubr.bf16.mxu0 %v12673_v46  ;;  %v12625_v52 = vcombine.low %v18748_v33, %v18750_v4  ;;  %v7314_v54 = vpop.f32.mrf.mxu1 }
 0x4bc   : > { %v18810_v12 = vrot.slane %v8670_v43, 4  ;;  %v8102_v61 = vsel %vm15563_vm2, %v8097_v51, %v8101_v0  ;;  %v8688_v42 = vshrl.u32 %v8507_v31, 16  ;;  %v8430_v47 = vrot.slane %v18769_v27, 5  ;;  %v18834_v43 = vld [vmem:[%s20613_s6] ss:$0 sm:$0xff] }
 0x4bd   : > { %v12641_v32 = vcombine.low %v8092_v59, %v8102_v61  ;;  %v12577_v40 = vrot.slane %v8325_v39, 9  ;;  %v8429_v62 = vrot.slane %v8427_v17, 4  ;;  %v8691_v28 = vshll.u32 %v8507_v31, 16  ;;  %v18838_v4 = vld [vmem:[#allocation3 + $0x58] sm:$0xf] }
 0x4be   : > { %v8697_v8 = vshll.u32 %v18785_v13, 16  ;;  %v7320_v41 = vadd.f32 %v18834_v43, %v14419_v5  ;;  %v7312_v33 = vadd.f32 %v18834_v43, %v7311_v9  ;;  %v18840_v49 = vrot.slane %v8688_v42, 4  ;;  %v7926_v59 = vld [vmem:[#allocation3 + $0x5c] sm:$0x1] }
 0x4bf   : > { %10992 = vmatprep.mubr.bf16.mxu1 %v12641_v32  ;;  %v8428_v27 = vsel %vm15940_vm12, %v12577_v40, %v8427_v17  ;;  %v8431_v21 = vsel %vm15940_vm12, %v8429_v62, %v8430_v47  ;;  %v12674_v15 = vcombine.low %v18829_v16, %v18817_v18  ;;  %v7323_v30 = vadd.f32 %v18834_v43, %v14420_v22  ;;  %v7852_v62 = vld [vmem:[#allocation3 + $0x90] sm:$0xf] }
 0x4c0   : > { %v12657_v55 = vcombine.low %v8428_v27, %v8431_v21  ;;  %10993 = vmatmul.mubr.bf16.gmra.mxu1 %v12625_v52  ;;  %v12866_v10 = vpack.c.bf16 %v7320_v41, %v7320_v41  ;;  %v12864_v26 = vpack.c.bf16 %v7312_v33, %v7312_v33  ;;  %v8104_v0 = vshrl.u32 %v18823_v57, 16 }
 0x4c1   : > { %v8107_v5 = vshll.u32 %v18823_v57, 16  ;;  %v18847_v31 = vrot.slane %v8691_v28, 5  ;;  %v12867_v9 = vpack.c.bf16 %v7323_v30, %v7323_v30  ;;  %v8113_v48 = vshll.u32 %v18838_v4, 16 }
 0x4c2   : > { %11154 = vmatmul.mubr.bf16.gmra.mxu0 %v12657_v55  ;;  %v8117_v1 = vshrl.u32 %v18838_v4, 16  ;;  %v8712_v51 = vshrl.u32 %v18829_v16, 16  ;;  %v7642_v46 = vshrl.u32 %v12866_v10, 16  ;;  %v7645_v39 = vshll.u32 %v12866_v10, 16 }
 0x4c3   : > { %11161 = vmatprep.mubr.bf16.mxu0 %v12674_v15  ;;  %v7625_v17 = vshrl.u32 %v12864_v26, 16  ;;  %v7628_v61 = vshll.u32 %v12864_v26, 16  ;;  %v7650_v42 = vshrl.u32 %v12867_v9, 16  ;;  %v8106_v47 = vrot.slane %v8104_v0, 4  ;;  %v7856_v26 = vld [vmem:[#allocation3 + $0x98] sm:$0x1] }
 0x4c4   : > { %v8109_v32 = vrot.slane %v8107_v5, 5  ;;  %v7644_v40 = vrot.slane %v7642_v46, 7  ;;  %v8115_v28 = vrot.slane %v8113_v48, 5  ;;  %v8119_v52 = vrot.slane %v8117_v1, 4  ;;  %v8326_v0 = vld [vmem:[#allocation3 + $0x54] sm:$0xe] }
 0x4c5   : > { %v18852_v22 = vrot.slane %v7625_v17, 7  ;;  %v7652_v27 = vrot.slane %v7650_v42, 7  ;;  %v7653_v21 = vshll.u32 %v12867_v9, 16  ;;  %v8123_v33 = vshll.u32 %v7926_v59, 16  ;;  %v18856_v48 = vld [vmem:[#allocation3 + $0x60] sm:$0xf] }
 0x4c6   : > { %v8110_v41 = vor.u32 %v8109_v32, %v8106_v47  ;;  %v8715_v55 = vshll.u32 %v18829_v16, 16  ;;  %v7647_v15 = vor.u32 %v7645_v39, %v7644_v40  ;;  %v7648_v30 = vrot.slane %v7644_v40, 4  ;;  %v18862_v47 = vld [vmem:[#allocation3 + $0x64] sm:$0xf] }
 0x4c7   : > { %v7630_v10 = vor.u32 %v7628_v61, %v18852_v22  ;;  %v7655_v5 = vor.u32 %v7653_v21, %v7652_v27  ;;  %v7657_v46 = vrot.slane %v7652_v27, 4  ;;  %v8120_v17 = vor.u32 %v8119_v52, %v8115_v28 }
 0x4c8   : > { %v8111_v36 = vrot.slane %v8110_v41, 4  ;;  %v7853_v9 = vsel %vm15544_vm4, %v7647_v15, %v7852_v62  ;;  %v8125_v42 = vrot.slane %v8123_v33, 5  ;;  %v8437_v39 = vrot.slane %v7926_v59, 5  ;;  %v18875_v41 = vld [vmem:[#allocation3 + $0x68] sm:$0x1] }
 0x4c9   : > { %v7846_v1 = vsel %vm15544_vm4, %v7630_v10, %v7845_v58  ;;  %7854 = vst [vmem:[#allocation3 + $0x90] sm:$0xf] %v7853_v9  ;;  %v7656_v61 = vsel %vm15581_vm7, %v7648_v30, %v7655_v5  ;;  %v7857_v32 = vsel %vm15493_vm6, %v7657_v46, %v7856_v26  ;;  %v8121_v40 = vrot.slane %v8120_v17, 4 }
 0x4ca   : > { %7847 = vst [vmem:[#allocation3 + $0x84] sm:$0xf] %v7846_v1  ;;  %v12578_v52 = vrot.slane %v8326_v0, 9  ;;  %7855 = vst [vmem:[#allocation3 + $0x94] sm:$0xf] %v7656_v61  ;;  %v8116_v62 = vsel %vm15563_vm2, %v8111_v36, %v8115_v28  ;;  %v8434_v58 = vrot.slane %v18838_v4, 5  ;;  %v7315_v59 = vadd.f32 %v18834_v43, %v7314_v54 }
 0x4cb   : > { %7858 = vst [vmem:[#allocation3 + $0x98] sm:$0x1] %v7857_v32  ;;  %v8128_v27 = vshrl.u32 %v18856_v48, 16  ;;  %v8126_v21 = vsel %vm15563_vm2, %v8121_v40, %v8125_v42  ;;  %v8131_v33 = vshll.u32 %v18856_v48, 16  ;;  %v8137_v15 = vshll.u32 %v18862_v47, 16 }
 0x4cc   : > { %v8141_v30 = vshrl.u32 %v18862_v47, 16  ;;  %v12642_v10 = vcombine.low %v8116_v62, %v8126_v21  ;;  %v8436_v26 = vrot.slane %v8434_v58, 4  ;;  %v12865_v36 = vpack.c.bf16 %v7315_v59, %v7315_v59  ;;  %v8511_v59 = vld [vmem:[#allocation3 + $0x6c] sm:$0xf] }
 0x4cd   : > { %v12626_v28 = vcombine.low %v18823_v57, %v18838_v4  ;;  %v8130_v54 = vrot.slane %v8128_v27, 4  ;;  %v8133_v0 = vrot.slane %v8131_v33, 5  ;;  %v8139_v5 = vrot.slane %v8137_v15, 5  ;;  %v7849_v21 = vld [vmem:[#allocation3 + $0x8c] sm:$0x1] }
 0x4ce   : > { %v8143_v46 = vrot.slane %v8141_v30, 4  ;;  %11000 = vmatprep.mubr.bf16.mxu1 %v12642_v10  ;;  %v8435_v17 = vsel %vm15940_vm12, %v12578_v52, %v8434_v58  ;;  %v8438_v9 = vsel %vm15940_vm12, %v8436_v26, %v8437_v39  ;;  %v7633_v1 = vshrl.u32 %v12865_v36, 16  ;;  %v14423_v39 = vpop.f32.mrf.mxu1  ;;  %v18898_v10 = vld [vmem:[#allocation3 + $0x70] sm:$0xf] }
 0x4cf   : > { %v8147_v42 = vshll.u32 %v18875_v41, 16  ;;  %v8694_v61 = vor.u32 %v18847_v31, %v18840_v49  ;;  %v12658_v32 = vcombine.low %v8435_v17, %v8438_v9  ;;  %11001 = vmatmul.mubr.bf16.gmra.mxu1 %v12626_v28  ;;  %v8134_v57 = vor.u32 %v8133_v0, %v8130_v54 }
 0x4d0   : > { %v8144_v4 = vor.u32 %v8143_v46, %v8139_v5  ;;  %v18891_v40 = vrot.slane %v8712_v51, 4  ;;  %v8721_v62 = vshll.u32 %v18817_v18, 16  ;;  %v7635_v52 = vrot.slane %v7633_v1, 7  ;;  %v8327_v46 = vld [vmem:[#allocation3 + $0x60] sm:$0xe]  ;;  %v7327_v17 = vpop.f32.mrf.mxu1 }
 0x4d1   : > { %v7636_v58 = vshll.u32 %v12865_v36, 16  ;;  %v18894_v27 = vrot.slane %v8715_v55, 5  ;;  %11162 = vmatmul.mubr.bf16.gmra.mxu0 %v12658_v32  ;;  %v8135_v33 = vrot.slane %v8134_v57, 4  ;;  %v8149_v31 = vrot.slane %v8147_v42, 5  ;;  %v8513_v32 = vld [vmem:[#allocation3 + $0x78] sm:$0xf] }
 0x4d2   : > { %v8145_v49 = vrot.slane %v8144_v4, 4  ;;  %v8725_v15 = vshrl.u32 %v18817_v18, 16  ;;  %v7631_v30 = vrot.slane %v18852_v22, 4  ;;  %v7640_v51 = vrot.slane %v7635_v52, 4  ;;  %v635_v57 = vld [vmem:[#allocation3 + $0x9c] sm:$0x1] }
 0x4d3   : > { %v7638_v16 = vor.u32 %v7636_v58, %v7635_v52  ;;  %v18902_v26 = vrot.slane %v8697_v8, 5  ;;  %v8140_v55 = vsel %vm15563_vm2, %v8135_v33, %v8139_v5  ;;  %v8736_v28 = vshrl.u32 %v8511_v59, 16 }
 0x4d4   : > { %v8150_v36 = vsel %vm15563_vm2, %v8145_v49, %v8149_v31  ;;  %v7850_v22 = vsel %vm15493_vm6, %v7640_v51, %v7849_v21  ;;  %v8739_v0 = vshll.u32 %v8511_v59, 16  ;;  %v20854_v8 = vshrl.u32 %v18785_v13, 16  ;;  %v692_v21 = vld [vmem:[#allocation3 + $0xb0] sm:$0x1] }
 0x4d5   : > { %20853 = vst [vmem:[#allocation43_spill] sm:$0xff] %v18902_v26  ;;  %v7639_v18 = vsel %vm15581_vm7, %v7631_v30, %v7638_v16  ;;  %v12643_v54 = vcombine.low %v8140_v55, %v8150_v36  ;;  %7851 = vst [vmem:[#allocation3 + $0x8c] sm:$0x1] %v7850_v22  ;;  %v12675_v5 = vcombine.low %v8511_v59, %v18898_v10  ;;  %v8441_v1 = vrot.slane %v18862_v47, 5  ;;  %v14424_v30 = vpop.f32.mrf.mxu1  ;;  %v18937_v16 = vld [vmem:[#allocation3 + $0x6c] sm:$0xf] }
 0x4d6   : > { %v18914_v9 = vrot.slane %v20854_v8, 4  ;;  %7848 = vst [vmem:[#allocation3 + $0x88] sm:$0xf] %v7639_v18  ;;  %v12627_v42 = vcombine.low %v18856_v48, %v18862_v47  ;;  %v18920_v4 = vrot.slane %v8694_v61, 4  ;;  %v18924_v58 = vrot.slane %v8721_v62, 5 }
 0x4d7   : > { %v18926_v13 = vrot.slane %v8725_v15, 4  ;;  %11008 = vmatprep.mubr.bf16.mxu1 %v12643_v54  ;;  %v8444_v59 = vrot.slane %v18875_v41, 5  ;;  %11169 = vmatprep.mubr.bf16.mxu0 %v12675_v5  ;;  %v12579_v49 = vrot.slane %v8327_v46, 9  ;;  %v8443_v48 = vrot.slane %v8441_v1, 4  ;;  %v18930_v47 = vld [vmem:[#allocation3 + $0x7c] sm:$0xf] }
 0x4d8   : > { %20855 = vst [vmem:[#allocation44_spill] sm:$0xff] %v18914_v9  ;;  %20856 = vst [vmem:[#allocation26_spill] sm:$0xff] %v18920_v4  ;;  %11009 = vmatmul.mubr.bf16.gmra.mxu1 %v12627_v42  ;;  %v18932_v61 = vrot.slane %v8736_v28, 4  ;;  %v18934_v31 = vrot.slane %v8739_v0, 5  ;;  %v8760_v62 = vshrl.u32 %v8513_v32, 16  ;;  %v7336_v15 = vadd.f32 %v18834_v43, %v14423_v39 }
 0x4d9   : > { %20857 = vst [vmem:[#allocation45_spill] sm:$0xff] %v18924_v58  ;;  %20858 = vst [vmem:[#allocation46_spill] sm:$0xff] %v18926_v13  ;;  %v8442_v41 = vsel %vm15940_vm12, %v12579_v49, %v8441_v1  ;;  %v8445_v51 = vsel %vm15940_vm12, %v8443_v48, %v8444_v59  ;;  %v636_v55 = vsel %vm15493_vm6, 0, %v635_v57  ;;  %v7328_v36 = vadd.f32 %v18834_v43, %v7327_v17  ;;  %v18946_v28 = vld [vmem:[#allocation3 + $0x70] sm:$0xf] }
 0x4da   : > { %v12659_v18 = vcombine.low %v8442_v41, %v8445_v51  ;;  %v12676_v22 = vcombine.low %v8513_v32, %v18930_v47  ;;  %v12870_v39 = vpack.c.bf16 %v7336_v15, %v7336_v15  ;;  %637 = vst [vmem:[#allocation3 + $0x9c] sm:$0x1] %v636_v55  ;;  %v693_v54 = vsel %vm15503_vm8, 0, %v692_v21  ;;  %v18956_v57 = vld [vmem:[#allocation3 + $0x74] sm:$0x1] }
 0x4db   : > { %v12868_v0 = vpack.c.bf16 %v7328_v36, %v7328_v36  ;;  %694 = vst [vmem:[#allocation3 + $0xb0] sm:$0x1] %v693_v54  ;;  %v7339_v46 = vadd.f32 %v18834_v43, %v14424_v30  ;;  %v8152_v8 = vshrl.u32 %v18937_v16, 16  ;;  %v8155_v5 = vshll.u32 %v18937_v16, 16  ;;  %v7866_v36 = vld [vmem:[#allocation3 + $0xa8] sm:$0xf] }
 0x4dc   : > { %11170 = vmatmul.mubr.bf16.gmra.mxu0 %v12659_v18  ;;  %v18954_v17 = vrot.slane %v8760_v62, 4  ;;  %v8763_v1 = vshll.u32 %v8513_v32, 16  ;;  %v7676_v42 = vshrl.u32 %v12870_v39, 16  ;;  %v8161_v59 = vshll.u32 %v18946_v28, 16  ;;  %v8328_v13 = vld [vmem:[#allocation3 + $0x6c] sm:$0xe] }
 0x4dd   : > { %11177 = vmatprep.mubr.bf16.mxu0 %v12676_v22  ;;  %v7679_v49 = vshll.u32 %v12870_v39, 16  ;;  %v7659_v21 = vshrl.u32 %v12868_v0, 16  ;;  %v12871_v48 = vpack.c.bf16 %v7339_v46, %v7339_v46  ;;  %v8154_v15 = vrot.slane %v8152_v8, 4  ;;  %v689_v46 = vld [vmem:[#allocation3 + $0xa4] sm:$0x1] }
 0x4de   : > { %v7678_v41 = vrot.slane %v7676_v42, 7  ;;  %v8157_v30 = vrot.slane %v8155_v5, 5  ;;  %v8163_v51 = vrot.slane %v8161_v59, 5  ;;  %v8165_v55 = vshrl.u32 %v18946_v28, 16 }
 0x4df   : > { %v18960_v18 = vrot.slane %v7659_v21, 7  ;;  %v7662_v62 = vshll.u32 %v12868_v0, 16  ;;  %v7684_v32 = vshrl.u32 %v12871_v48, 16  ;;  %v8171_v54 = vshll.u32 %v18956_v57, 16 }
 0x4e0   : > { %v18963_v33 = vrot.slane %v8763_v1, 5  ;;  %v7681_v52 = vor.u32 %v7679_v49, %v7678_v41  ;;  %v8158_v22 = vor.u32 %v8157_v30, %v8154_v15  ;;  %v8167_v39 = vrot.slane %v8165_v55, 4  ;;  %v7330_v1 = vpop.f32.mrf.mxu1  ;;  %v18971_v55 = vld [vmem:[#allocation3 + $0x78] sm:$0xf] }
 0x4e1   : > { %v7682_v8 = vrot.slane %v7678_v41, 4  ;;  %v7664_v5 = vor.u32 %v7662_v62, %v18960_v18  ;;  %v7859_v42 = vld [vmem:[#allocation3 + $0x9c] sm:$0xf]  ;;  %v7686_v59 = vrot.slane %v7684_v32, 7  ;;  %v7687_v58 = vshll.u32 %v12871_v48, 16 }
 0x4e2   : > { %v7867_v21 = vsel %vm15544_vm4, %v7681_v52, %v7866_v36  ;;  %v7870_v0 = vld [vmem:[#allocation3 + $0xb0] sm:$0x1]  ;;  %v8159_v4 = vrot.slane %v8158_v22, 4  ;;  %v8168_v9 = vor.u32 %v8167_v39, %v8163_v51  ;;  %v8173_v26 = vrot.slane %v8171_v54, 5  ;;  %v18976_v32 = vld [vmem:[#allocation3 + $0x7c] sm:$0xf] }
 0x4e3   : > { %7868 = vst [vmem:[#allocation3 + $0xa8] sm:$0xf] %v7867_v21  ;;  %v7860_v49 = vsel %vm15544_vm4, %v7664_v5, %v7859_v42  ;;  %v7689_v15 = vor.u32 %v7687_v58, %v7686_v59  ;;  %v7691_v30 = vrot.slane %v7686_v59, 4  ;;  %v8451_v41 = vrot.slane %v18956_v57, 5  ;;  %v18990_v42 = vld [vmem:[#allocation3 + $0x80] sm:$0x1] }
 0x4e4   : > { %7861 = vst [vmem:[#allocation3 + $0x9c] sm:$0xf] %v7860_v49  ;;  %v8169_v48 = vrot.slane %v8168_v9, 4  ;;  %v12580_v62 = vrot.slane %v8328_v13, 9  ;;  %v8448_v52 = vrot.slane %v18946_v28, 5  ;;  %v690_v36 = vsel %vm15503_vm8, 0, %v689_v46 }
 0x4e5   : > { %v7690_v54 = vsel %vm15581_vm7, %v7682_v8, %v7689_v15  ;;  %v7871_v58 = vsel %vm15493_vm6, %v7691_v30, %v7870_v0  ;;  %v8164_v57 = vsel %vm15563_vm2, %v8159_v4, %v8163_v51  ;;  %691 = vst [vmem:[#allocation3 + $0xa4] sm:$0x1] %v690_v36  ;;  %v7331_v9 = vadd.f32 %v18834_v43, %v7330_v1  ;;  %v19000_v15 = vld [vmem:[#allocation3 + $0x88] sm:$0xf] }
 0x4e6   : > { %7869 = vst [vmem:[#allocation3 + $0xac] sm:$0xf] %v7690_v54  ;;  %7872 = vst [vmem:[#allocation3 + $0xb0] sm:$0x1] %v7871_v58  ;;  %v8174_v13 = vsel %vm15563_vm2, %v8169_v48, %v8173_v26  ;;  %v8450_v22 = vrot.slane %v8448_v52, 4  ;;  %v12628_v39 = vcombine.low %v18937_v16, %v18946_v28  ;;  %v8176_v46 = vshrl.u32 %v18971_v55, 16 }
 0x4e7   : > { %v12644_v8 = vcombine.low %v8164_v57, %v8174_v13  ;;  %v12869_v5 = vpack.c.bf16 %v7331_v9, %v7331_v9  ;;  %v8179_v4 = vshll.u32 %v18971_v55, 16  ;;  %v8185_v51 = vshll.u32 %v18976_v32, 16  ;;  %v19006_v57 = vld [vmem:[#allocation3 + $0x84] sm:$0xf]  ;;  %v14427_v9 = vpop.f32.mrf.mxu1 }
 0x4e8   : > { %v8449_v59 = vsel %vm15940_vm12, %v12580_v62, %v8448_v52  ;;  %v8452_v26 = vsel %vm15940_vm12, %v8450_v22, %v8451_v41  ;;  %v8178_v21 = vrot.slane %v8176_v46, 4  ;;  %v8189_v0 = vshrl.u32 %v18976_v32, 16 }
 0x4e9   : > { %v8749_v16 = vshrl.u32 %v18898_v10, 16  ;;  %11016 = vmatprep.mubr.bf16.mxu1 %v12644_v8  ;;  %v12660_v28 = vcombine.low %v8449_v59, %v8452_v26  ;;  %v7667_v1 = vshrl.u32 %v12869_v5, 16  ;;  %v8181_v49 = vrot.slane %v8179_v4, 5 }
 0x4ea   : > { %v8742_v30 = vor.u32 %v18934_v31, %v18932_v61  ;;  %11017 = vmatmul.mubr.bf16.gmra.mxu1 %v12628_v39  ;;  %v8187_v48 = vrot.slane %v8185_v51, 5  ;;  %v8191_v62 = vrot.slane %v8189_v0, 4  ;;  %v8195_v52 = vshll.u32 %v18990_v42, 16 }
 0x4eb   : > { %v8769_v41 = vshll.u32 %v18930_v47, 16  ;;  %11178 = vmatmul.mubr.bf16.gmra.mxu0 %v12660_v28  ;;  %v7669_v36 = vrot.slane %v7667_v1, 7  ;;  %v7670_v54 = vshll.u32 %v12869_v5, 16  ;;  %v8182_v58 = vor.u32 %v8181_v49, %v8178_v21 }
 0x4ec   : > { %v8766_v13 = vor.u32 %v18963_v33, %v18954_v17  ;;  %v8773_v22 = vshrl.u32 %v18930_v47, 16  ;;  %v7863_v61 = vld [vmem:[#allocation3 + $0xa4] sm:$0x1]  ;;  %v8192_v31 = vor.u32 %v8191_v62, %v8187_v48  ;;  %v12677_v39 = vcombine.low %v19006_v57, %v19000_v15  ;;  %v644_v62 = vld [vmem:[#allocation3 + $0xc0] sm:$0x1] }
 0x4ed   : > { %v7665_v46 = vrot.slane %v18960_v18, 4  ;;  %v7672_v8 = vor.u32 %v7670_v54, %v7669_v36  ;;  %v7674_v4 = vrot.slane %v7669_v36, 4  ;;  %v8183_v51 = vrot.slane %v8182_v58, 4 }
 0x4ee   : > { %v20859_v5 = vor.u32 %v18894_v27, %v18891_v40  ;;  %v20860_v26 = vshll.u32 %v18898_v10, 16  ;;  %v8193_v47 = vrot.slane %v8192_v31, 4  ;;  %v8197_v17 = vrot.slane %v8195_v52, 5  ;;  %11185 = vmatprep.mubr.bf16.mxu0 %v12677_v39  ;;  %v8329_v40 = vld [vmem:[#allocation3 + $0x78] sm:$0xe]  ;;  %v7343_v27 = vpop.f32.mrf.mxu1 }
 0x4ef   : > { %v19023_v21 = vrot.slane %v8749_v16, 4  ;;  %v7673_v18 = vsel %vm15581_vm7, %v7665_v46, %v7672_v8  ;;  %v7864_v0 = vsel %vm15493_vm6, %v7674_v4, %v7863_v61  ;;  %v8784_v28 = vshrl.u32 %v19006_v57, 16  ;;  %v641_v52 = vld [vmem:[#allocation3 + $0xb4] sm:$0x1]  ;;  %v698_v61 = vld [vmem:[#allocation3 + $0xc8] sm:$0x1] }
 0x4f0   : > { %v19017_v59 = vrot.slane %v20859_v5, 4  ;;  %v19021_v33 = vrot.slane %v20860_v26, 5  ;;  %v19030_v1 = vrot.slane %v8742_v30, 4  ;;  %7862 = vst [vmem:[#allocation3 + $0xa0] sm:$0xf] %v7673_v18  ;;  %v8188_v10 = vsel %vm15563_vm2, %v8183_v51, %v8187_v48  ;;  %v14428_v51 = vpop.f32.mrf.mxu1 }
 0x4f1   : > { %7865 = vst [vmem:[#allocation3 + $0xa4] sm:$0x1] %v7864_v0  ;;  %v8198_v16 = vsel %vm15563_vm2, %v8193_v47, %v8197_v17  ;;  %v8455_v49 = vrot.slane %v18976_v32, 5  ;;  %v19037_v36 = vrot.slane %v8766_v13, 4  ;;  %v19039_v54 = vrot.slane %v8769_v41, 5 }
 0x4f2   : > { %20861 = vst [vmem:[#allocation47_spill] sm:$0xff] %v19030_v1  ;;  %v19041_v58 = vrot.slane %v8773_v22, 4  ;;  %v12645_v30 = vcombine.low %v8188_v10, %v8198_v16  ;;  %v8458_v31 = vrot.slane %v18990_v42, 5  ;;  %v12581_v39 = vrot.slane %v8329_v40, 9  ;;  %v19046_v8 = vld [vmem:[#allocation3 + $0x94] sm:$0xf]  ;;  %v7346_v1 = vpop.f32.mrf.mxu1 }
 0x4f3   : > { %20862 = vst [vmem:[#allocation32_spill] sm:$0xff] %v19037_v36  ;;  %20863 = vst [vmem:[#allocation33_spill] sm:$0xff] %v19039_v54  ;;  %v8457_v46 = vrot.slane %v8455_v49, 4  ;;  %v12629_v48 = vcombine.low %v18971_v55, %v18976_v32  ;;  %v19048_v4 = vrot.slane %v8784_v28, 4  ;;  %v8787_v13 = vshll.u32 %v19006_v57, 16 }
 0x4f4   : > { %20864 = vst [vmem:[#allocation34_spill] sm:$0xff] %v19041_v58  ;;  %11024 = vmatprep.mubr.bf16.mxu1 %v12645_v30  ;;  %v8793_v41 = vshll.u32 %v19000_v15, 16  ;;  %v19053_v5 = vld [vmem:[#allocation3 + $0x84] sm:$0xf]  ;;  %v8456_v42 = vsel %vm15940_vm12, %v12581_v39, %v8455_v49  ;;  %v19059_v32 = vld [vmem:[#allocation3 + $0x90] sm:$0xf]  ;;  %v7352_v57 = vadd.f32 %v18834_v43, %v14427_v9  ;;  %v7344_v28 = vadd.f32 %v18834_v43, %v7343_v27 }
 0x4f5   : > { %v8459_v55 = vsel %vm15940_vm12, %v8457_v46, %v8458_v31  ;;  %11025 = vmatmul.mubr.bf16.gmra.mxu1 %v12629_v48  ;;  %v645_v26 = vsel %vm15493_vm6, 0, %v644_v62  ;;  %v19064_v47 = vld [vmem:[#allocation3 + $0x88] sm:$0xf]  ;;  %v12678_v18 = vcombine.low %v19059_v32, %v19046_v8  ;;  %v642_v0 = vsel %vm15493_vm6, 0, %v641_v52  ;;  %v7930_v46 = vld [vmem:[#allocation3 + $0x8c] sm:$0x1] }
 0x4f6   : > { %v12661_v17 = vcombine.low %v8456_v42, %v8459_v55  ;;  %646 = vst [vmem:[#allocation3 + $0xc0] sm:$0x1] %v645_v26  ;;  %v12874_v40 = vpack.c.bf16 %v7352_v57, %v7352_v57  ;;  %643 = vst [vmem:[#allocation3 + $0xb4] sm:$0x1] %v642_v0  ;;  %v699_v10 = vsel %vm15503_vm8, 0, %v698_v61  ;;  %v7355_v16 = vadd.f32 %v18834_v43, %v14428_v51 }
 0x4f7   : > { %v8200_v9 = vshrl.u32 %v19053_v5, 16  ;;  %v19075_v49 = vrot.slane %v8787_v13, 5  ;;  %v12872_v62 = vpack.c.bf16 %v7344_v28, %v7344_v28  ;;  %700 = vst [vmem:[#allocation3 + $0xc8] sm:$0x1] %v699_v10  ;;  %v8203_v30 = vshll.u32 %v19053_v5, 16 }
 0x4f8   : > { %11186 = vmatmul.mubr.bf16.gmra.mxu0 %v12661_v17  ;;  %v8209_v52 = vshll.u32 %v19064_v47, 16  ;;  %v19079_v31 = vrot.slane %v8793_v41, 5  ;;  %v7710_v27 = vshrl.u32 %v12874_v40, 16  ;;  %v12875_v39 = vpack.c.bf16 %v7355_v16, %v7355_v16  ;;  %v8330_v22 = vld [vmem:[#allocation3 + $0x84] sm:$0xe] }
 0x4f9   : > { %11193 = vmatprep.mubr.bf16.mxu0 %v12678_v18  ;;  %v8202_v61 = vrot.slane %v8200_v9, 4  ;;  %v7713_v48 = vshll.u32 %v12874_v40, 16  ;;  %v7693_v51 = vshrl.u32 %v12872_v62, 16  ;;  %v7696_v42 = vshll.u32 %v12872_v62, 16  ;;  %v695_v18 = vld [vmem:[#allocation3 + $0xbc] sm:$0x1] }
 0x4fa   : > { %20865 = vst [vmem:[#allocation35_spill] sm:$0xff] %v19079_v31  ;;  %v8205_v55 = vrot.slane %v8203_v30, 5  ;;  %v7712_v13 = vrot.slane %v7710_v27, 7  ;;  %v7718_v26 = vshrl.u32 %v12875_v39, 16  ;;  %v8211_v57 = vrot.slane %v8209_v52, 5 }
 0x4fb   : > { %v8213_v17 = vshrl.u32 %v19064_v47, 16  ;;  %v19082_v0 = vrot.slane %v7693_v51, 7  ;;  %v7721_v28 = vshll.u32 %v12875_v39, 16  ;;  %v8219_v41 = vshll.u32 %v7930_v46, 16 }
 0x4fc   : > { %v8206_v10 = vor.u32 %v8205_v55, %v8202_v61  ;;  %v7715_v31 = vor.u32 %v7713_v48, %v7712_v13  ;;  %v7720_v36 = vrot.slane %v7718_v26, 7  ;;  %v8465_v40 = vrot.slane %v7930_v46, 5  ;;  %v19092_v26 = vld [vmem:[#allocation3 + $0x90] sm:$0xf] }
 0x4fd   : > { %v7880_v16 = vld [vmem:[#allocation3 + $0xc0] sm:$0xf]  ;;  %v8215_v9 = vrot.slane %v8213_v17, 4  ;;  %v7716_v58 = vrot.slane %v7712_v13, 4  ;;  %v7698_v62 = vor.u32 %v7696_v42, %v19082_v0  ;;  %v7873_v30 = vld [vmem:[#allocation3 + $0xb4] sm:$0xf] }
 0x4fe   : > { %v8207_v27 = vrot.slane %v8206_v10, 4  ;;  %v8221_v52 = vrot.slane %v8219_v41, 5  ;;  %v7881_v51 = vsel %vm15544_vm4, %v7715_v31, %v7880_v16  ;;  %v7723_v54 = vor.u32 %v7721_v28, %v7720_v36  ;;  %v7884_v61 = vld [vmem:[#allocation3 + $0xc8] sm:$0x1]  ;;  %v19094_v17 = vld [vmem:[#allocation3 + $0x94] sm:$0xf] }
 0x4ff   : > { %v7725_v39 = vrot.slane %v7720_v36, 4  ;;  %v8216_v55 = vor.u32 %v8215_v9, %v8211_v57  ;;  %7882 = vst [vmem:[#allocation3 + $0xc0] sm:$0xf] %v7881_v51  ;;  %v7874_v48 = vsel %vm15544_vm4, %v7698_v62, %v7873_v30  ;;  %v12582_v13 = vrot.slane %v8330_v22, 9 }
 0x500   : > { %v8212_v46 = vsel %vm15563_vm2, %v8207_v27, %v8211_v57  ;;  %v8462_v42 = vrot.slane %v19064_v47, 5  ;;  %7875 = vst [vmem:[#allocation3 + $0xb4] sm:$0xf] %v7874_v48  ;;  %v7724_v36 = vsel %vm15581_vm7, %v7716_v58, %v7723_v54  ;;  %v696_v35 = vsel %vm15503_vm8, 0, %v695_v18  ;;  %v19109_v58 = vld [vmem:[#allocation3 + $0x98] sm:$0x1] }
 0x501   : > { %v7885_v31 = vsel %vm15493_vm6, %v7725_v39, %v7884_v61  ;;  %v8217_v28 = vrot.slane %v8216_v55, 4  ;;  %7883 = vst [vmem:[#allocation3 + $0xc4] sm:$0xf] %v7724_v36  ;;  %697 = vst [vmem:[#allocation3 + $0xbc] sm:$0x1] %v696_v35  ;;  %v7347_v10 = vadd.f32 %v18834_v43, %v7346_v1  ;;  %v12630_v41 = vcombine.low %v19053_v5, %v19064_v47 }
 0x502   : > { %7886 = vst [vmem:[#allocation3 + $0xc8] sm:$0x1] %v7885_v31  ;;  %v8463_v22 = vsel %vm15940_vm12, %v12582_v13, %v8462_v42  ;;  %v8464_v57 = vrot.slane %v8462_v42, 4  ;;  %v8224_v16 = vshrl.u32 %v19092_v26, 16  ;;  %v8227_v18 = vshll.u32 %v19092_v26, 16 }
 0x503   : > { %v8222_v54 = vsel %vm15563_vm2, %v8217_v28, %v8221_v52  ;;  %v8233_v9 = vshll.u32 %v19094_v17, 16  ;;  %v12873_v27 = vpack.c.bf16 %v7347_v10, %v7347_v10  ;;  %v8237_v43 = vshrl.u32 %v19094_v17, 16 }
 0x504   : > { %v12646_v62 = vcombine.low %v8212_v46, %v8222_v54  ;;  %v8466_v30 = vsel %vm15940_vm12, %v8464_v57, %v8465_v40  ;;  %v8226_v5 = vrot.slane %v8224_v16, 4  ;;  %v8229_v47 = vrot.slane %v8227_v18, 5  ;;  %v8519_v46 = vld [vmem:[#allocation3 + $0x9c] sm:$0xf] }
 0x505   : > { %v12662_v1 = vcombine.low %v8463_v22, %v8466_v30  ;;  %v8235_v51 = vrot.slane %v8233_v9, 5  ;;  %v20866_v52 = vshrl.u32 %v19000_v15, 16  ;;  %v7701_v61 = vshrl.u32 %v12873_v27, 16  ;;  %v19127_v22 = vld [vmem:[#allocation3 + $0xa0] sm:$0xf] }
 0x506   : > { %11032 = vmatprep.mubr.bf16.mxu1 %v12646_v62  ;;  %v8239_v55 = vrot.slane %v8237_v43, 4  ;;  %v8243_v48 = vshll.u32 %v19109_v58, 16  ;;  %v8790_v40 = vor.u32 %v19075_v49, %v19048_v4  ;;  %v8808_v13 = vshrl.u32 %v19059_v32, 16  ;;  %v8331_v43 = vld [vmem:[#allocation3 + $0x90] sm:$0xe] }
 0x507   : > { %v19119_v39 = vrot.slane %v20866_v52, 4  ;;  %v8811_v42 = vshll.u32 %v19059_v32, 16  ;;  %11194 = vmatmul.mubr.bf16.gmra.mxu0 %v12662_v1  ;;  %11033 = vmatmul.mubr.bf16.gmra.mxu1 %v12630_v41  ;;  %v8230_v36 = vor.u32 %v8229_v47, %v8226_v5  ;;  %v8817_v15 = vshll.u32 %v19046_v8, 16  ;;  %v8521_v52 = vld [vmem:[#allocation3 + $0xa8] sm:$0xf] }
 0x508   : > { %v7703_v31 = vrot.slane %v7701_v61, 7  ;;  %v7704_v28 = vshll.u32 %v12873_v27, 16  ;;  %v8240_v35 = vor.u32 %v8239_v55, %v8235_v51  ;;  %v7699_v57 = vrot.slane %v19082_v0, 4  ;;  %v7877_v10 = vld [vmem:[#allocation3 + $0xbc] sm:$0x1] }
 0x509   : > { %v8231_v54 = vrot.slane %v8230_v36, 4  ;;  %v8832_v16 = vshrl.u32 %v8519_v46, 16  ;;  %v8835_v4 = vshll.u32 %v8519_v46, 16  ;;  %v8245_v32 = vrot.slane %v8243_v48, 5  ;;  %v19145_v61 = vld [vmem:[#allocation3 + $0x9c] sm:$0xf] }
 0x50a   : > { %v7706_v49 = vor.u32 %v7704_v28, %v7703_v31  ;;  %v7708_v18 = vrot.slane %v7703_v31, 4  ;;  %v8241_v9 = vrot.slane %v8240_v35, 4  ;;  %v19130_v62 = vrot.slane %v8790_v40, 4  ;;  %v19157_v36 = vld [vmem:[#allocation3 + $0xa0] sm:$0xf] }
 0x50b   : > { %v19132_v41 = vrot.slane %v8808_v13, 4  ;;  %v19134_v30 = vrot.slane %v8811_v42, 5  ;;  %v12679_v27 = vcombine.low %v8519_v46, %v19127_v22  ;;  %v8236_v5 = vsel %vm15563_vm2, %v8231_v54, %v8235_v51 }
 0x50c   : > { %v7707_v0 = vsel %vm15581_vm7, %v7699_v57, %v7706_v49  ;;  %v7878_v1 = vsel %vm15493_vm6, %v7708_v18, %v7877_v10  ;;  %v8246_v47 = vsel %vm15563_vm2, %v8241_v9, %v8245_v32  ;;  %v19147_v55 = vrot.slane %v8817_v15, 5 }
 0x50d   : > { %7876 = vst [vmem:[#allocation3 + $0xb8] sm:$0xf] %v7707_v0  ;;  %7879 = vst [vmem:[#allocation3 + $0xbc] sm:$0x1] %v7878_v1  ;;  %v12647_v45 = vcombine.low %v8236_v5, %v8246_v47  ;;  %11201 = vmatprep.mubr.bf16.mxu0 %v12679_v27  ;;  %v8469_v46 = vrot.slane %v19094_v17, 5  ;;  %v19151_v40 = vrot.slane %v8832_v16, 4  ;;  %v12631_v42 = vcombine.low %v19092_v26, %v19094_v17 }
 0x50e   : > { %v19153_v13 = vrot.slane %v8835_v4, 5  ;;  %v12583_v51 = vrot.slane %v8331_v43, 9  ;;  %v8472_v15 = vrot.slane %v19109_v58, 5  ;;  %v8856_v28 = vshrl.u32 %v8521_v52, 16  ;;  %v19166_v16 = vld [vmem:[#allocation3 + $0xac] sm:$0xf] }
 0x50f   : > { %11040 = vmatprep.mubr.bf16.mxu1 %v12647_v45  ;;  %v8471_v31 = vrot.slane %v8469_v46, 4  ;;  %v8248_v35 = vshrl.u32 %v19145_v61, 16  ;;  %v8814_v57 = vor.u32 %v19134_v30, %v19132_v41  ;;  %v8859_v26 = vshll.u32 %v8521_v52, 16  ;;  %v7932_v58 = vld [vmem:[#allocation3 + $0xa4] sm:$0x1] }
 0x510   : > { %v8470_v54 = vsel %vm15940_vm12, %v12583_v51, %v8469_v46  ;;  %11041 = vmatmul.mubr.bf16.gmra.mxu1 %v12631_v42  ;;  %v8251_v49 = vshll.u32 %v19145_v61, 16  ;;  %v8257_v18 = vshll.u32 %v19157_v36, 16  ;;  %v8838_v9 = vor.u32 %v19153_v13, %v19151_v40  ;;  %v8332_v27 = vld [vmem:[#allocation3 + $0x9c] sm:$0xe]  ;;  %v19176_v43 = vld [vmem:[#allocation3 + $0xa8] sm:$0xf] }
 0x511   : > { %v8473_v17 = vsel %vm15940_vm12, %v8471_v31, %v8472_v15  ;;  %v8250_v4 = vrot.slane %v8248_v35, 4  ;;  %v8845_v32 = vshrl.u32 %v19127_v22, 16  ;;  %v8261_v30 = vshrl.u32 %v19157_v36, 16  ;;  %v19181_v45 = vld [vmem:[#allocation3 + $0xac] sm:$0xf] }
 0x512   : > { %v12663_v41 = vcombine.low %v8470_v54, %v8473_v17  ;;  %v19178_v0 = vrot.slane %v8856_v28, 4  ;;  %v12680_v1 = vcombine.low %v8521_v52, %v19166_v16  ;;  %v8253_v5 = vrot.slane %v8251_v49, 5  ;;  %v7933_v17 = vld [vmem:[#allocation3 + $0xb0] sm:$0x1] }
 0x513   : > { %v8259_v47 = vrot.slane %v8257_v18, 5  ;;  %v19183_v46 = vrot.slane %v8859_v26, 5  ;;  %v8263_v40 = vrot.slane %v8261_v30, 4  ;;  %v8267_v13 = vshll.u32 %v7932_v58, 16 }
 0x514   : > { %11202 = vmatmul.mubr.bf16.gmra.mxu0 %v12663_v41  ;;  %v8476_v51 = vrot.slane %v19157_v36, 5  ;;  %v8254_v42 = vor.u32 %v8253_v5, %v8250_v4  ;;  %v8479_v15 = vrot.slane %v7932_v58, 5  ;;  %v8272_v31 = vshrl.u32 %v19176_v43, 16  ;;  %v19194_v23 = vld [vmem:[#allocation3 + $0xb8] sm:$0xf] }
 0x515   : > { %11209 = vmatprep.mubr.bf16.mxu0 %v12680_v1  ;;  %v8275_v28 = vshll.u32 %v19176_v43, 16  ;;  %v8264_v35 = vor.u32 %v8263_v40, %v8259_v47  ;;  %v12584_v52 = vrot.slane %v8332_v27, 9  ;;  %v8281_v49 = vshll.u32 %v19181_v45, 16 }
 0x516   : > { %v8478_v54 = vrot.slane %v8476_v51, 4  ;;  %v8255_v18 = vrot.slane %v8254_v42, 4  ;;  %v8274_v26 = vrot.slane %v8272_v31, 4  ;;  %v8285_v30 = vshrl.u32 %v19181_v45, 16 }
 0x517   : > { %v8277_v41 = vrot.slane %v8275_v28, 5  ;;  %v8265_v10 = vrot.slane %v8264_v35, 4  ;;  %v8269_v48 = vrot.slane %v8267_v13, 5  ;;  %v8283_v4 = vrot.slane %v8281_v49, 5  ;;  %v8523_v35 = vld [vmem:[#allocation3 + $0xb4] sm:$0xf] }
 0x518   : > { %v8480_v58 = vsel %vm15940_vm12, %v8478_v54, %v8479_v15  ;;  %v8477_v1 = vsel %vm15940_vm12, %v12584_v52, %v8476_v51  ;;  %v8287_v27 = vrot.slane %v8285_v30, 4  ;;  %v8291_v40 = vshll.u32 %v7933_v17, 16 }
 0x519   : > { %v8278_v5 = vor.u32 %v8277_v41, %v8274_v26  ;;  %v8865_v42 = vshll.u32 %v19166_v16, 16  ;;  %v8260_v31 = vsel %vm15563_vm2, %v8255_v18, %v8259_v47  ;;  %v8270_v13 = vsel %vm15563_vm2, %v8265_v10, %v8269_v48 }
 0x51a   : > { %v12664_v28 = vcombine.low %v8477_v1, %v8480_v58  ;;  %v8869_v15 = vshrl.u32 %v19166_v16, 16  ;;  %v12648_v54 = vcombine.low %v8260_v31, %v8270_v13  ;;  %v8288_v51 = vor.u32 %v8287_v27, %v8283_v4  ;;  %v8333_v58 = vld [vmem:[#allocation3 + $0xa8] sm:$0xe]  ;;  %v19230_v27 = vld [vmem:[#allocation3 + $0xc4] sm:$0xf] }
 0x51b   : > { %v8279_v49 = vrot.slane %v8278_v5, 4  ;;  %v19202_v52 = vrot.slane %v8814_v57, 4  ;;  %v20867_v26 = vshrl.u32 %v19046_v8, 16  ;;  %v12632_v47 = vcombine.low %v19145_v61, %v19157_v36 }
 0x51c   : > { %11210 = vmatmul.mubr.bf16.gmra.mxu0 %v12664_v28  ;;  %v12681_v18 = vcombine.low %v8523_v35, %v19194_v23  ;;  %v8862_v48 = vor.u32 %v19183_v46, %v19178_v0  ;;  %11048 = vmatprep.mubr.bf16.mxu1 %v12648_v54  ;;  %v8289_v10 = vrot.slane %v8288_v51, 4  ;;  %v8293_v16 = vrot.slane %v8291_v40, 5  ;;  %v19234_v28 = vld [vmem:[#allocation3 + $0xb8] sm:$0xf] }
 0x51d   : > { %v19206_v41 = vrot.slane %v20867_v26, 4  ;;  %v8880_v30 = vshrl.u32 %v8523_v35, 16  ;;  %v19213_v57 = vrot.slane %v8838_v9, 4  ;;  %v20869_v8 = vshll.u32 %v19127_v22, 16  ;;  %11049 = vmatmul.mubr.bf16.gmra.mxu1 %v12632_v47  ;;  %v19232_v22 = vld [vmem:[#allocation3 + $0xb4] sm:$0xf] }
 0x51e   : > { %v19219_v5 = vrot.slane %v8845_v32, 4  ;;  %11217 = vmatprep.mubr.bf16.mxu0 %v12681_v18  ;;  %v8483_v61 = vrot.slane %v19181_v45, 5  ;;  %v19222_v36 = vrot.slane %v8865_v42, 5  ;;  %v19224_v0 = vrot.slane %v8869_v15, 4  ;;  %v19246_v47 = vld [vmem:[#allocation3 + $0xc0] sm:$0xf] }
 0x51f   : > { %20868 = vst [vmem:[#allocation36_spill] sm:$0xff] %v19213_v57  ;;  %v19217_v1 = vrot.slane %v20869_v8, 5  ;;  %v8284_v46 = vsel %vm15563_vm2, %v8279_v49, %v8283_v4  ;;  %v8294_v9 = vsel %vm15563_vm2, %v8289_v10, %v8293_v16  ;;  %v8486_v32 = vrot.slane %v7933_v17, 5  ;;  %v7934_v49 = vld [vmem:[#allocation3 + $0xbc] sm:$0x1] }
 0x520   : > { %20871 = vst [vmem:[#allocation31_spill] sm:$0xff] %v19219_v5  ;;  %20872 = vst [vmem:[#allocation38_spill] sm:$0xff] %v19222_v36  ;;  %v12649_v40 = vcombine.low %v8284_v46, %v8294_v9  ;;  %v12585_v31 = vrot.slane %v8333_v58, 9  ;;  %v8485_v13 = vrot.slane %v8483_v61, 4  ;;  %v19236_v42 = vrot.slane %v8862_v48, 4 }
 0x521   : > { %20870 = vst [vmem:[#allocation37_spill] sm:$0xff] %v19217_v1  ;;  %20873 = vst [vmem:[#allocation41_spill] sm:$0xff] %v19224_v0  ;;  %v19238_v15 = vrot.slane %v8880_v30, 4  ;;  %v8883_v54 = vshll.u32 %v8523_v35, 16  ;;  %v8889_v4 = vshll.u32 %v19194_v23, 16  ;;  %v8893_v51 = vshrl.u32 %v19194_v23, 16 }
 0x522   : > { %20874 = vst [vmem:[#allocation39_spill] sm:$0xff] %v19236_v42  ;;  %11056 = vmatprep.mubr.bf16.mxu1 %v12649_v40  ;;  %v8484_v26 = vsel %vm15940_vm12, %v12585_v31, %v8483_v61  ;;  %v8487_v17 = vsel %vm15940_vm12, %v8485_v13, %v8486_v32  ;;  %v8296_v18 = vshrl.u32 %v19232_v22, 16  ;;  %v12633_v35 = vcombine.low %v19176_v43, %v19181_v45  ;;  %v8334_v23 = vld [vmem:[#allocation3 + $0xb4] sm:$0xe]  ;;  %v19256_v46 = vld [vmem:[#allocation3 + $0x18] sm:$0xf] }
 0x523   : > { %v12665_v48 = vcombine.low %v8484_v26, %v8487_v17  ;;  %v12682_v10 = vcombine.low %v19246_v47, %v19230_v27  ;;  %v8299_v16 = vshll.u32 %v19232_v22, 16  ;;  %v8305_v58 = vshll.u32 %v19234_v28, 16  ;;  %v19262_v40 = vld [vmem:[#allocation3 + $0x1c] sm:$0xf]  ;;  %v9136_v42 = vld [vmem:[#allocation3 + $0x20] sm:$0x1] }
 0x524   : > { %v8298_v30 = vrot.slane %v8296_v18, 4  ;;  %v8309_v8 = vshrl.u32 %v19234_v28, 16  ;;  %v8315_v61 = vshll.u32 %v7934_v49, 16  ;;  %v19258_v9 = vrot.slane %v8883_v54, 5  ;;  %v19275_v5 = vld [vmem:[#allocation3 + $0x24] sm:$0xf] }
 0x525   : > { %v19260_v32 = vrot.slane %v8889_v4, 5  ;;  %11218 = vmatmul.mubr.bf16.gmra.mxu0 %v12665_v48  ;;  %v8301_v43 = vrot.slane %v8299_v16, 5  ;;  %v8493_v45 = vrot.slane %v7934_v49, 5  ;;  %11057 = vmatmul.mubr.bf16.gmra.mxu1 %v12633_v35  ;;  %v8307_v31 = vrot.slane %v8305_v58, 5 }
 0x526   : > { %11225 = vmatprep.mubr.bf16.mxu0 %v12682_v10  ;;  %v8311_v13 = vrot.slane %v8309_v8, 4  ;;  %v12586_v26 = vrot.slane %v8334_v23, 9  ;;  %v8490_v17 = vrot.slane %v19234_v28, 5  ;;  %v8317_v60 = vrot.slane %v8315_v61, 5  ;;  %v8527_v8 = vld [vmem:[#allocation3 + $0x14] sm:$0x1] }
 0x527   : > { %20875 = vst [vmem:[#allocation40_spill] sm:$0xff] %v19260_v32  ;;  %v8302_v18 = vor.u32 %v8301_v43, %v8298_v30  ;;  %v9153_v54 = vshrl.u32 %v19256_v46, 16  ;;  %v9156_v4 = vshll.u32 %v19256_v46, 16  ;;  %v9162_v35 = vshll.u32 %v19262_v40, 16 }
 0x528   : > { %v8312_v32 = vor.u32 %v8311_v13, %v8307_v31  ;;  %v8491_v49 = vsel %vm15940_vm12, %v12586_v26, %v8490_v17  ;;  %v8492_v48 = vrot.slane %v8490_v17, 4  ;;  %v9166_v23 = vshrl.u32 %v19262_v40, 16  ;;  %v8927_v17 = vld [vmem:[#allocation3 + $0xc] sm:$0xe] }
 0x529   : > { %v8303_v10 = vrot.slane %v8302_v18, 4  ;;  %v9155_v16 = vrot.slane %v9153_v54, 4  ;;  %v9158_v58 = vrot.slane %v9156_v4, 5  ;;  %v9164_v43 = vrot.slane %v9162_v35, 5  ;;  %v19283_v4 = vld [vmem:[#allocation3 + $0x28] sm:$0xf] }
 0x52a   : > { %v8313_v30 = vrot.slane %v8312_v32, 4  ;;  %v8494_v61 = vsel %vm15940_vm12, %v8492_v48, %v8493_v45  ;;  %v9172_v0 = vshll.u32 %v9136_v42, 16  ;;  %v19273_v36 = vrot.slane %v8893_v51, 4  ;;  %20877 = vst [vmem:[#allocation30_spill] sm:$0xff] %v19283_v4 }
 0x52b   : > { %v12666_v13 = vcombine.low %v8491_v49, %v8494_v61  ;;  %v9159_v57 = vor.u32 %v9158_v58, %v9155_v16  ;;  %v9168_v26 = vrot.slane %v9166_v23, 4  ;;  %v8308_v18 = vsel %vm15563_vm2, %v8303_v10, %v8307_v31  ;;  %v14954_v58 = vld [vmem:[#allocation3 + $0x10] sm:$0xf] }
 0x52c   : > { %20876 = vst [vmem:[#allocation42_spill] sm:$0xff] %v19273_v36  ;;  %v8318_v54 = vsel %vm15563_vm2, %v8313_v30, %v8317_v60  ;;  %v12634_v32 = vcombine.low %v19232_v22, %v19234_v28  ;;  %v8563_v45 = vshll.u32 %v8527_v8, 16  ;;  %v9174_v48 = vrot.slane %v9172_v0, 5  ;;  %v9137_v30 = vld [vmem:[#allocation3 + $0x2c] sm:$0x1] }
 0x52d   : > { %v12650_v42 = vcombine.low %v8308_v18, %v8318_v54  ;;  %11226 = vmatmul.mubr.bf16.gmra.mxu0 %v12666_v13  ;;  %v9160_v51 = vrot.slane %v9159_v57, 4  ;;  %v9169_v49 = vor.u32 %v9168_v26, %v9164_v43  ;;  %v12587_v16 = vrot.slane %v8927_v17, 9 }
 0x52e   : > { %v8565_v35 = vrot.slane %v8563_v45, 5  ;;  %v8993_v23 = vrot.slane %v14954_v58, 5  ;;  %v9177_v31 = vshrl.u32 %v19275_v5, 16  ;;  %v8996_v60 = vrot.slane %v8527_v8, 5  ;;  %v19293_v26 = vpop.f32.mrf.mxu0  ;;  %v19299_v45 = vpop.f32.mrf.mxu1 }
 0x52f   : > { %11064 = vmatprep.mubr.bf16.mxu1 %v12650_v42  ;;  %v9170_v10 = vrot.slane %v9169_v49, 4  ;;  %v9180_v22 = vshll.u32 %v19275_v5, 16  ;;  %v9186_v28 = vshll.u32 %v19283_v4, 16  ;;  %v9165_v57 = vsel %vm15563_vm2, %v9160_v51, %v9164_v43  ;;  %20878 = vst [vmem:[#allocation28_spill] sm:$0xff] %v19293_v26  ;;  %20879 = vst [vmem:[#allocation27_spill] sm:$0xff] %v19299_v45  ;;  %v14867_v26 = vld [vmem:[#allocation12 + $0x218] sm:$0xff]  }
 0x530   : > { %11065 = vmatmul.mubr.bf16.gmra.mxu1 %v12634_v32  ;;  %v8566_v0 = vsel %vm15563_vm2, %v18594_v14, %v8565_v35  ;;  %v8995_v61 = vrot.slane %v8993_v23, 4  ;;  %v9179_v13 = vrot.slane %v9177_v31, 4  ;;  %v8994_v17 = vsel %vm15940_vm12, %v12587_v16, %v8993_v23  ;;  %v8528_v32 = vld [vmem:[#allocation3 + $0x20] sm:$0x1]  ;;  %v8928_v49 = vld [vmem:[#allocation3 + $0x18] sm:$0xe] }
 0x531   : > { %v9175_v8 = vsel %vm15563_vm2, %v9170_v10, %v9174_v48  ;;  %v9182_v18 = vrot.slane %v9180_v22, 5  ;;  %v9188_v54 = vrot.slane %v9186_v28, 5  ;;  %v9190_v14 = vshrl.u32 %v19283_v4, 16  ;;  %v19312_v28 = vld [vmem:[#allocation3 + $0x30] sm:$0xf] }
 0x532   : > { %v12731_v43 = vcombine.low %v9165_v57, %v9175_v8  ;;  %v8997_v42 = vsel %vm15940_vm12, %v8995_v61, %v8996_v60  ;;  %v9196_v51 = vshll.u32 %v9137_v30, 16  ;;  %v12715_v35 = vcombine.low %v19256_v46, %v19262_v40  ;;  %v19314_v57 = vpop.f32.mrf.mxu0 }
 0x533   : > { %v12699_v48 = vcombine.low %v8994_v17, %v8997_v42  ;;  %v9183_v58 = vor.u32 %v9182_v18, %v9179_v13  ;;  %v20658_v16 = vrot.slane %v19283_v4, 5  ;;  %v20880_v23 = vsel %vm15563_vm2, %v18565_v24, %v18555_v50  ;;  %20881 = vst [vmem:[#allocation29_spill] sm:$0xff] %v19314_v57  ;;  %v14955_v13 = vld [vmem:[#allocation3 + $0x1c] sm:$0xf]  ;;  %v19318_v17 = vld [vmem:[#allocation3 + $0x34] sm:$0xf]  ;;  %v19320_v50 = vpop.f32.mrf.mxu1 }
 0x534   : > { %11427 = vmatprep.mubr.bf16.mxu0 %v12731_v43  ;;  %v12683_v31 = vcombine.low %v20880_v23, %v8566_v0  ;;  %v9192_v10 = vrot.slane %v9190_v14, 4  ;;  %v9612_v60 = vrot.slane %v9137_v30, 5  ;;  %v8587_v22 = vshll.u32 %v8528_v32, 16  ;;  %20882 = vst [vmem:[#allocation48_spill] sm:$0xff] %v19320_v50  ;;  %v9138_v43 = vld [vmem:[#allocation3 + $0x38] sm:$0x1] }
 0x535   : > { %11266 = vmatprep.mubr.bf16.mxu1 %v12699_v48  ;;  %11428 = vmatmul.mubr.bf16.vlgmr.msra.gmra.mxu0 %v12715_v35  ;;  %v9184_v46 = vrot.slane %v9183_v58, 4  ;;  %v9611_v40 = vrot.slane %v20658_v16, 4  ;;  %v12588_v61 = vrot.slane %v8928_v49, 9  ;;  %v9000_v8 = vrot.slane %v14955_v13, 5  ;;  %v14858_v42 = vld [vmem:[#allocation12 + $0x230] sm:$0xff]  }
 0x536   : > { %v9193_v24 = vor.u32 %v9192_v10, %v9188_v54  ;;  %v9198_v30 = vrot.slane %v9196_v51, 5  ;;  %v8589_v0 = vrot.slane %v8587_v22, 5  ;;  %v9003_v18 = vrot.slane %v8528_v32, 5  ;;  %v19334_v10 = vpop.f32.mrf.mxu0  ;;  %v8929_v16 = vld [vmem:[#allocation3 + $0x24] sm:$0xe] }
 0x537   : > { %v9189_v14 = vsel %vm15563_vm2, %v9184_v46, %v9188_v54  ;;  %v19326_v35 = vsel %vm15940_vm12, %v9611_v40, %v9612_v60  ;;  %v9001_v49 = vsel %vm15940_vm12, %v12588_v61, %v9000_v8  ;;  %v9002_v48 = vrot.slane %v9000_v8, 4  ;;  %20884 = vst [vmem:[#allocation50_spill] sm:$0xff] %v19334_v10  ;;  %v14956_v60 = vld [vmem:[#allocation12 + $0x238] sm:$0xff]   ;;  %v8529_v40 = vld [vmem:[#allocation3 + $0x2c] sm:$0x1]  ;;  %v19340_v61 = vpop.f32.mrf.mxu1  ;;  %v14861_v10 = vld [vmem:[#allocation12 + $0x228] sm:$0xff]  }
 0x538   : > { %20883 = vst [vmem:[#allocation49_spill] sm:$0xff] %v19326_v35  ;;  %11267 = vmatmul.mubr.bf16.vlgmr.msra.gmra.mxu1 %v12683_v31  ;;  %v9194_v58 = vrot.slane %v9193_v24, 4  ;;  %v8584_v51 = vor.u32 %v18585_v56, %v18582_v38  ;;  %v9201_v32 = vshrl.u32 %v19312_v28, 16  ;;  %v9204_v23 = vshll.u32 %v19312_v28, 16  ;;  %20885 = vst [vmem:[#allocation51_spill] sm:$0xff] %v19340_v61 }
 0x539   : > { %v9004_v54 = vsel %vm15940_vm12, %v9002_v48, %v9003_v18  ;;  %14430 = vmatpush3.bf16.msra.mxu1 %v14956_v60  ;;  %v9210_v22 = vshll.u32 %v19318_v17, 16  ;;  %v9214_v46 = vshrl.u32 %v19318_v17, 16  ;;  %v9220_v31 = vshll.u32 %v9138_v43, 16 }
 0x53a   : > { %v9199_v56 = vsel %vm15563_vm2, %v9194_v58, %v9198_v30  ;;  %v12700_v13 = vcombine.low %v9001_v49, %v9004_v54  ;;  %v8585_v8 = vrot.slane %v8584_v51, 4  ;;  %v9203_v24 = vrot.slane %v9201_v32, 4  ;;  %14431 = vmatprep.subr.bf16.mxu1 %v14858_v42  ;;  %v19352_v58 = vpop.f32.mrf.mxu0 }
 0x53b   : > { %v12732_v18 = vcombine.low %v9189_v14, %v9199_v56  ;;  %v9206_v48 = vrot.slane %v9204_v23, 5  ;;  %v9212_v60 = vrot.slane %v9210_v22, 5  ;;  %v9216_v57 = vrot.slane %v9214_v46, 4  ;;  %20886 = vst [vmem:[#allocation52_spill] sm:$0xff] %v19352_v58  ;;  %v14957_v23 = vld [vmem:[#allocation3 + $0x28] sm:$0xf]  ;;  %v19358_v46 = vpop.f32.mrf.mxu1 }
 0x53c   : > { %11274 = vmatprep.mubr.bf16.mxu1 %v12700_v13  ;;  %v12716_v43 = vcombine.low %v19275_v5, %v19283_v4  ;;  %v8580_v61 = vsel %vm15563_vm2, %v18580_v29, %v18582_v38  ;;  %v8590_v30 = vsel %vm15563_vm2, %v8585_v8, %v8589_v0  ;;  %v8611_v49 = vshll.u32 %v8529_v40, 16  ;;  %v19354_v22 = vld [vmem:[#allocation3 + $0x3c] sm:$0xf]  ;;  %v19356_v5 = vld [vmem:[#allocation3 + $0x40] sm:$0xf]  ;;  %20887 = vst [vmem:[#allocation53_spill] sm:$0xff] %v19358_v46 }
 0x53d   : > { %11435 = vmatprep.mubr.bf16.mxu0 %v12732_v18  ;;  %v9207_v14 = vor.u32 %v9206_v48, %v9203_v24  ;;  %v9217_v51 = vor.u32 %v9216_v57, %v9212_v60  ;;  %v12589_v32 = vrot.slane %v8929_v16, 9  ;;  %v9007_v54 = vrot.slane %v14957_v23, 5  ;;  %14432 = vmatpush3.bf16.msra.mxu1 %v14858_v42  ;;  %v14864_v13 = vld [vmem:[#allocation12 + $0x220] sm:$0xff]   ;;  %v9139_v48 = vld [vmem:[#allocation3 + $0x44] sm:$0x1] }
 0x53e   : > { %11436 = vmatmul.mubr.bf16.gmra.mxu0 %v12716_v43  ;;  %v12684_v29 = vcombine.low %v8580_v61, %v8590_v30  ;;  %v9222_v38 = vrot.slane %v9220_v31, 5  ;;  %v8613_v0 = vrot.slane %v8611_v49, 5  ;;  %v9010_v56 = vrot.slane %v8529_v40, 5  ;;  %14433 = vmatprep.subr.bf16.mxu1 %v14861_v10  ;;  %v8930_v58 = vld [vmem:[#allocation3 + $0x30] sm:$0xe] }
 0x53f   : > { %v9208_v8 = vrot.slane %v9207_v14, 4  ;;  %v9218_v24 = vrot.slane %v9217_v51, 4  ;;  %v9008_v16 = vsel %vm15940_vm12, %v12589_v32, %v9007_v54  ;;  %v9009_v57 = vrot.slane %v9007_v54, 4  ;;  %v19362_v18 = vpop.f32.mrf.mxu1  ;;  %v19369_v43 = vpop.f32.mrf.mxu0  ;;  %v8530_v51 = vld [vmem:[#allocation3 + $0x38] sm:$0x1] }
 0x540   : > { %11275 = vmatmul.mubr.bf16.gmra.mxu1 %v12684_v29  ;;  %v8608_v42 = vor.u32 %v18692_v63, %v18680_v11  ;;  %v9225_v61 = vshrl.u32 %v19354_v22, 16  ;;  %v9228_v31 = vshll.u32 %v19354_v22, 16  ;;  %v9234_v40 = vshll.u32 %v19356_v5, 16 }
 0x541   : > { %v9213_v30 = vsel %vm15563_vm2, %v9208_v8, %v9212_v60  ;;  %v9223_v49 = vsel %vm15563_vm2, %v9218_v24, %v9222_v38  ;;  %v9011_v14 = vsel %vm15940_vm12, %v9009_v57, %v9010_v56  ;;  %v9238_v63 = vshrl.u32 %v19356_v5, 16  ;;  %14434 = vmatpush3.bf16.msra.mxu1 %v14861_v10  ;;  %v19378_v32 = vpop.f32.mrf.mxu1  ;;  %v19380_v60 = vpop.f32.mrf.mxu0 }
 0x542   : > { %v12733_v23 = vcombine.low %v9213_v30, %v9223_v49  ;;  %v12701_v54 = vcombine.low %v9008_v16, %v9011_v14  ;;  %v8609_v29 = vrot.slane %v8608_v42, 4  ;;  %v9227_v46 = vrot.slane %v9225_v61, 4  ;;  %14435 = vmatprep.subr.bf16.mxu1 %v14864_v13  ;;  %v19394_v30 = vld [vmem:[#allocation3 + $0x48] sm:$0xf] }
 0x543   : > { %v9230_v8 = vrot.slane %v9228_v31, 5  ;;  %v9236_v38 = vrot.slane %v9234_v40, 5  ;;  %v9240_v24 = vrot.slane %v9238_v63, 4  ;;  %v9244_v50 = vshll.u32 %v9139_v48, 16  ;;  %v19382_v56 = vpop.f32.mrf.mxu1  ;;  %v19396_v49 = vpop.f32.mrf.mxu0  ;;  %v14958_v63 = vld [vmem:[#allocation3 + $0x34] sm:$0xf] }
 0x544   : > { %11443 = vmatprep.mubr.bf16.mxu0 %v12733_v23  ;;  %11282 = vmatprep.mubr.bf16.mxu1 %v12701_v54  ;;  %v12717_v16 = vcombine.low %v19312_v28, %v19318_v17  ;;  %v8614_v57 = vsel %vm15563_vm2, %v8609_v29, %v8613_v0  ;;  %v8635_v42 = vshll.u32 %v8530_v51, 16  ;;  %v8604_v61 = vsel %vm15563_vm2, %v18702_v19, %v18680_v11  ;;  %v19398_v23 = vld [vmem:[#allocation3 + $0x4c] sm:$0xf] }
 0x545   : > { %v9231_v48 = vor.u32 %v9230_v8, %v9227_v46  ;;  %v9241_v31 = vor.u32 %v9240_v24, %v9236_v38  ;;  %v12590_v40 = vrot.slane %v8930_v58, 9  ;;  %14436 = vmatpush3.bf16.msra.mxu1 %v14864_v13  ;;  %v12685_v14 = vcombine.low %v8604_v61, %v8614_v57  ;;  %v14870_v54 = vld [vmem:[#allocation12 + $0x210] sm:$0xff]   ;;  %v19402_v46 = vpop.f32.mrf.mxu1  ;;  %v8531_v61 = vld [vmem:[#allocation3 + $0x44] sm:$0x1] }
 0x546   : > { %11444 = vmatmul.mubr.bf16.gmra.mxu0 %v12717_v16  ;;  %v9246_v28 = vrot.slane %v9244_v50, 5  ;;  %v8637_v17 = vrot.slane %v8635_v42, 5  ;;  %v9014_v0 = vrot.slane %v14958_v63, 5  ;;  %14437 = vmatprep.subr.bf16.mxu1 %v14867_v26  ;;  %v9017_v19 = vrot.slane %v8530_v51, 5  ;;  %v9140_v42 = vld [vmem:[#allocation3 + $0x50] sm:$0x1] }
 0x547   : > { %v9232_v29 = vrot.slane %v9231_v48, 4  ;;  %v9242_v11 = vrot.slane %v9241_v31, 4  ;;  %v8632_v58 = vor.u32 %v18708_v53, %v18706_v37  ;;  %v9249_v8 = vshrl.u32 %v19394_v30, 16  ;;  %v19413_v48 = vpop.f32.mrf.mxu0 }
 0x548   : > { %11283 = vmatmul.mubr.bf16.gmra.mxu1 %v12685_v14  ;;  %v9015_v13 = vsel %vm15940_vm12, %v12590_v40, %v9014_v0  ;;  %v9016_v50 = vrot.slane %v9014_v0, 4  ;;  %v9252_v24 = vshll.u32 %v19394_v30, 16  ;;  %v9258_v53 = vshll.u32 %v19398_v23, 16  ;;  %v8931_v0 = vld [vmem:[#allocation3 + $0x3c] sm:$0xe] }
 0x549   : > { %v9237_v16 = vsel %vm15563_vm2, %v9232_v29, %v9236_v38  ;;  %v9247_v51 = vsel %vm15563_vm2, %v9242_v11, %v9246_v28  ;;  %v8633_v57 = vrot.slane %v8632_v58, 4  ;;  %14438 = vmatpush3.bf16.msra.mxu1 %v14867_v26  ;;  %v9251_v14 = vrot.slane %v9249_v8, 4  ;;  %v14873_v38 = vld [vmem:[#allocation12 + $0x208] sm:$0xff]  }
 0x54a   : > { %v12734_v31 = vcombine.low %v9237_v16, %v9247_v51  ;;  %v9018_v40 = vsel %vm15940_vm12, %v9016_v50, %v9017_v19  ;;  %v9254_v63 = vrot.slane %v9252_v24, 5  ;;  %14439 = vmatprep.subr.bf16.mxu1 %v14870_v54  ;;  %v9260_v11 = vrot.slane %v9258_v53, 5  ;;  %v14959_v24 = vld [vmem:[#allocation3 + $0x40] sm:$0xf] }
 0x54b   : > { %v12702_v29 = vcombine.low %v9015_v13, %v9018_v40  ;;  %v8638_v28 = vsel %vm15563_vm2, %v8633_v57, %v8637_v17  ;;  %v9262_v58 = vshrl.u32 %v19398_v23, 16  ;;  %v12718_v26 = vcombine.low %v19354_v22, %v19356_v5  ;;  %v19428_v57 = vld [vmem:[#allocation3 + $0x54] sm:$0xf]  ;;  %v19432_v40 = vld [vmem:[#allocation3 + $0x58] sm:$0xf] }
 0x54c   : > { %v19420_v10 = vpop.f32.mrf.mxu1  ;;  %11451 = vmatprep.mubr.bf16.mxu0 %v12734_v31  ;;  %v9255_v16 = vor.u32 %v9254_v63, %v9251_v14  ;;  %v9268_v19 = vshll.u32 %v9140_v42, 16  ;;  %v8659_v50 = vshll.u32 %v8531_v61, 16  ;;  %v8628_v13 = vsel %vm15563_vm2, %v18790_v6, %v18706_v37  ;;  %v14876_v14 = vld [vmem:[#allocation12 + $0x200] sm:$0xff]  }
 0x54d   : > { %11290 = vmatprep.mubr.bf16.mxu1 %v12702_v29  ;;  %v9264_v8 = vrot.slane %v9262_v58, 4  ;;  %v12591_v17 = vrot.slane %v8931_v0, 9  ;;  %v9021_v51 = vrot.slane %v14959_v24, 5  ;;  %v19430_v53 = vpop.f32.mrf.mxu0  ;;  %14440 = vmatpush3.bf16.msra.mxu1 %v14870_v54  ;;  %v12686_v22 = vcombine.low %v8628_v13, %v8638_v28 }
 0x54e   : > { %11452 = vmatmul.mubr.bf16.gmra.mxu0 %v12718_v26  ;;  %v9256_v5 = vrot.slane %v9255_v16, 4  ;;  %v9270_v42 = vrot.slane %v9268_v19, 5  ;;  %v9024_v31 = vrot.slane %v8531_v61, 5  ;;  %14441 = vmatprep.subr.bf16.mxu1 %v14873_v38  ;;  %v8661_v37 = vrot.slane %v8659_v50, 5  ;;  %v19436_v29 = vpop.f32.mrf.mxu1  ;;  %v9141_v61 = vld [vmem:[#allocation3 + $0x5c] sm:$0x1] }
 0x54f   : > { %v9265_v63 = vor.u32 %v9264_v8, %v9260_v11  ;;  %v9022_v6 = vsel %vm15940_vm12, %v12591_v17, %v9021_v51  ;;  %v9023_v0 = vrot.slane %v9021_v51, 4  ;;  %v8656_v28 = vor.u32 %v18796_v20, %v18794_v44  ;;  %v19448_v8 = vpop.f32.mrf.mxu0  ;;  %v8532_v51 = vld [vmem:[#allocation3 + $0x50] sm:$0x1] }
 0x550   : > { %11291 = vmatmul.mubr.bf16.gmra.mxu1 %v12686_v22  ;;  %v9261_v54 = vsel %vm15563_vm2, %v9256_v5, %v9260_v11  ;;  %v9273_v58 = vshrl.u32 %v19428_v57, 16  ;;  %v9276_v26 = vshll.u32 %v19428_v57, 16  ;;  %v9282_v50 = vshll.u32 %v19432_v40, 16 }
 0x551   : > { %v9266_v16 = vrot.slane %v9265_v63, 4  ;;  %v9025_v19 = vsel %vm15940_vm12, %v9023_v0, %v9024_v31  ;;  %v9286_v13 = vshrl.u32 %v19432_v40, 16  ;;  %14442 = vmatpush3.bf16.msra.mxu1 %v14873_v38  ;;  %v8657_v17 = vrot.slane %v8656_v28, 4  ;;  %v8932_v31 = vld [vmem:[#allocation3 + $0x48] sm:$0xe]  ;;  %v19452_v0 = vpop.f32.mrf.mxu1 }
 0x552   : > { %v12703_v11 = vcombine.low %v9022_v6, %v9025_v19  ;;  %v9275_v24 = vrot.slane %v9273_v58, 4  ;;  %v9278_v20 = vrot.slane %v9276_v26, 5  ;;  %14443 = vmatprep.subr.bf16.mxu1 %v14876_v14  ;;  %v9284_v5 = vrot.slane %v9282_v50, 5  ;;  %v19463_v26 = vld [vmem:[#allocation3 + $0x60] sm:$0xf] }
 0x553   : > { %v9271_v22 = vsel %vm15563_vm2, %v9266_v16, %v9270_v42  ;;  %v9288_v63 = vrot.slane %v9286_v13, 4  ;;  %v9292_v45 = vshll.u32 %v9141_v61, 16  ;;  %v8662_v38 = vsel %vm15563_vm2, %v8657_v17, %v8661_v37  ;;  %v19465_v16 = vpop.f32.mrf.mxu0  ;;  %v14960_v50 = vld [vmem:[#allocation3 + $0x4c] sm:$0xf] }
 0x554   : > { %v12735_v4 = vcombine.low %v9261_v54, %v9271_v22  ;;  %11298 = vmatprep.mubr.bf16.mxu1 %v12703_v11  ;;  %v9279_v6 = vor.u32 %v9278_v20, %v9275_v24  ;;  %v12719_v28 = vcombine.low %v19394_v30, %v19398_v23  ;;  %v8652_v42 = vsel %vm15563_vm2, %v18803_v34, %v18794_v44  ;;  %v19467_v11 = vld [vmem:[#allocation3 + $0x64] sm:$0xf]  ;;  %v19469_v34 = vpop.f32.mrf.mxu1  ;;  %v9142_v22 = vld [vmem:[#allocation3 + $0x68] sm:$0x1] }
 0x555   : > { %v9289_v61 = vor.u32 %v9288_v63, %v9284_v5  ;;  %v8683_v58 = vshll.u32 %v8532_v51, 16  ;;  %14444 = vmatpush3.bf16.msra.mxu1 %v14876_v14  ;;  %v12687_v54 = vcombine.low %v8652_v42, %v8662_v38  ;;  %v12592_v37 = vrot.slane %v8932_v31, 9  ;;  %v8533_v38 = vld [vmem:[#allocation3 + $0x5c] sm:$0x1] }
 0x556   : > { %11459 = vmatprep.mubr.bf16.mxu0 %v12735_v4  ;;  %v9280_v19 = vrot.slane %v9279_v6, 4  ;;  %v9028_v13 = vrot.slane %v14960_v50, 5  ;;  %v9294_v23 = vrot.slane %v9292_v45, 5  ;;  %v9031_v44 = vrot.slane %v8532_v51, 5  ;;  %v19482_v6 = vpop.f32.mrf.mxu0 }
 0x557   : > { %11460 = vmatmul.mubr.bf16.gmra.mxu0 %v12719_v28  ;;  %v9290_v30 = vrot.slane %v9289_v61, 4  ;;  %v8685_v17 = vrot.slane %v8683_v58, 5  ;;  %v8680_v20 = vor.u32 %v18807_v7, %v18805_v2  ;;  %v9297_v45 = vshrl.u32 %v19463_v26, 16 }
 0x558   : > { %11299 = vmatmul.mubr.bf16.gmra.mxu1 %v12687_v54  ;;  %v9285_v24 = vsel %vm15563_vm2, %v9280_v19, %v9284_v5  ;;  %v9029_v4 = vsel %vm15940_vm12, %v12592_v37, %v9028_v13  ;;  %v9030_v14 = vrot.slane %v9028_v13, 4  ;;  %v9300_v51 = vshll.u32 %v19463_v26, 16  ;;  %v8933_v37 = vld [vmem:[#allocation3 + $0x54] sm:$0xe] }
 0x559   : > { %v9295_v63 = vsel %vm15563_vm2, %v9290_v30, %v9294_v23  ;;  %v9306_v31 = vshll.u32 %v19467_v11, 16  ;;  %v8681_v42 = vrot.slane %v8680_v20, 4  ;;  %v9310_v7 = vshrl.u32 %v19467_v11, 16  ;;  %v14961_v20 = vld [vmem:[#allocation3 + $0x58] sm:$0xf] }
 0x55a   : > { %v12736_v5 = vcombine.low %v9285_v24, %v9295_v63  ;;  %v9032_v28 = vsel %vm15940_vm12, %v9030_v14, %v9031_v44  ;;  %v9299_v58 = vrot.slane %v9297_v45, 4  ;;  %v9302_v54 = vrot.slane %v9300_v51, 5  ;;  %v19487_v50 = vpop.f32.mrf.mxu1  ;;  %v19497_v45 = vld [vmem:[#allocation3 + $0x6c] sm:$0xf] }
 0x55b   : > { %v12704_v61 = vcombine.low %v9029_v4, %v9032_v28  ;;  %v9308_v19 = vrot.slane %v9306_v31, 5  ;;  %v8686_v13 = vsel %vm15563_vm2, %v8681_v42, %v8685_v17  ;;  %v9312_v30 = vrot.slane %v9310_v7, 4  ;;  %v19503_v42 = vld [vmem:[#allocation3 + $0x70] sm:$0xf] }
 0x55c   : > { %11467 = vmatprep.mubr.bf16.mxu0 %v12736_v5  ;;  %v9316_v23 = vshll.u32 %v9142_v22, 16  ;;  %v8707_v24 = vshll.u32 %v8533_v38, 16  ;;  %v12720_v44 = vcombine.low %v19428_v57, %v19432_v40  ;;  %v8676_v4 = vsel %vm15563_vm2, %v18810_v12, %v18805_v2  ;;  %v19499_v51 = vpop.f32.mrf.mxu0  ;;  %v19501_v17 = vpop.f32.mrf.mxu1 }
 0x55d   : > { %11306 = vmatprep.mubr.bf16.mxu1 %v12704_v61  ;;  %v9303_v14 = vor.u32 %v9302_v54, %v9299_v58  ;;  %v9035_v63 = vrot.slane %v14961_v20, 5  ;;  %20888 = vst [vmem:[#allocation54_spill] sm:$0xff] %v19501_v17  ;;  %v12688_v22 = vcombine.low %v8676_v4, %v8686_v13  ;;  %v9313_v31 = vor.u32 %v9312_v30, %v9308_v19  ;;  %v20890_v13 = vld [vmem:[#allocation43_spill] sm:$0xff]  ;;  %v20891_v30 = vld [vmem:[#allocation44_spill] sm:$0xff]  ;;  %v8534_v20 = vld [vmem:[#allocation3 + $0x68] sm:$0x1] }
 0x55e   : > { %v9318_v5 = vrot.slane %v9316_v23, 5  ;;  %v12593_v28 = vrot.slane %v8933_v37, 9  ;;  %v8709_v40 = vrot.slane %v8707_v24, 5  ;;  %v9038_v2 = vrot.slane %v8533_v38, 5  ;;  %v19505_v12 = vpop.f32.mrf.mxu0  ;;  %v19507_v61 = vpop.f32.mrf.mxu1  ;;  %v9143_v24 = vld [vmem:[#allocation3 + $0x74] sm:$0x1] }
 0x55f   : > { %11468 = vmatmul.mubr.bf16.gmra.mxu0 %v12720_v44  ;;  %v9304_v57 = vrot.slane %v9303_v14, 4  ;;  %v9037_v7 = vrot.slane %v9035_v63, 4  ;;  %20889 = vst [vmem:[#allocation55_spill] sm:$0xff] %v19507_v61  ;;  %v9314_v58 = vrot.slane %v9313_v31, 4  ;;  %v8704_v23 = vor.u32 %v20891_v30, %v20890_v13 }
 0x560   : > { %11307 = vmatmul.mubr.bf16.gmra.mxu1 %v12688_v22  ;;  %v9036_v54 = vsel %vm15940_vm12, %v12593_v28, %v9035_v63  ;;  %v9321_v37 = vshrl.u32 %v19497_v45, 16  ;;  %v9324_v4 = vshll.u32 %v19497_v45, 16  ;;  %v9330_v14 = vshll.u32 %v19503_v42, 16  ;;  %v19520_v22 = vpop.f32.mrf.mxu0  ;;  %v19524_v35 = vpop.f32.mrf.mxu1 }
 0x561   : > { %v9309_v44 = vsel %vm15563_vm2, %v9304_v57, %v9308_v19  ;;  %v9039_v38 = vsel %vm15940_vm12, %v9037_v7, %v9038_v2  ;;  %20892 = vst [vmem:[#allocation43_spill] sm:$0xff] %v19520_v22  ;;  %v9319_v63 = vsel %vm15563_vm2, %v9314_v58, %v9318_v5  ;;  %v8705_v28 = vrot.slane %v8704_v23, 4  ;;  %20893 = vst [vmem:[#allocation44_spill] sm:$0xff] %v19524_v35  ;;  %v8934_v2 = vld [vmem:[#allocation3 + $0x60] sm:$0xe] }
 0x562   : > { %v12705_v31 = vcombine.low %v9036_v54, %v9039_v38  ;;  %v9323_v30 = vrot.slane %v9321_v37, 4  ;;  %v12737_v19 = vcombine.low %v9309_v44, %v9319_v63  ;;  %v9326_v57 = vrot.slane %v9324_v4, 5  ;;  %v19530_v5 = vpop.f32.mrf.mxu0  ;;  %v20894_v54 = vld [vmem:[#allocation26_spill] sm:$0xff]  ;;  %v19538_v38 = vld [vmem:[#allocation3 + $0x78] sm:$0xf] }
 0x563   : > { %v9332_v36 = vrot.slane %v9330_v14, 5  ;;  %v9334_v7 = vshrl.u32 %v19503_v42, 16  ;;  %v8710_v61 = vsel %vm15563_vm2, %v8705_v28, %v8709_v40  ;;  %v9340_v22 = vshll.u32 %v9143_v24, 16  ;;  %v14962_v24 = vld [vmem:[#allocation3 + $0x64] sm:$0xf]  ;;  %v19542_v28 = vpop.f32.mrf.mxu1 }
 0x564   : > { %11314 = vmatprep.mubr.bf16.mxu1 %v12705_v31  ;;  %v8731_v17 = vshll.u32 %v8534_v20, 16  ;;  %11475 = vmatprep.mubr.bf16.mxu0 %v12737_v19  ;;  %v12721_v58 = vcombine.low %v19463_v26, %v19467_v11  ;;  %v8700_v23 = vsel %vm15563_vm2, %v20894_v54, %v20890_v13  ;;  %v9327_v37 = vor.u32 %v9326_v57, %v9323_v30  ;;  %v19540_v31 = vld [vmem:[#allocation3 + $0x7c] sm:$0xf]  ;;  %v20896_v57 = vld [vmem:[#allocation45_spill] sm:$0xff] }
 0x565   : > { %v9336_v44 = vrot.slane %v9334_v7, 4  ;;  %v12689_v4 = vcombine.low %v8700_v23, %v8710_v61  ;;  %v9342_v14 = vrot.slane %v9340_v22, 5  ;;  %v12594_v40 = vrot.slane %v8934_v2, 9  ;;  %20895 = vst [vmem:[#allocation26_spill] sm:$0xff] %v19542_v28  ;;  %v20897_v61 = vld [vmem:[#allocation46_spill] sm:$0xff] }
 0x566   : > { %v9042_v63 = vrot.slane %v14962_v24, 5  ;;  %v9328_v26 = vrot.slane %v9327_v37, 4  ;;  %v8733_v19 = vrot.slane %v8731_v17, 5  ;;  %v9045_v1 = vrot.slane %v8534_v20, 5  ;;  %v9144_v23 = vld [vmem:[#allocation3 + $0x80] sm:$0x1] }
 0x567   : > { %11476 = vmatmul.mubr.bf16.gmra.mxu0 %v12721_v58  ;;  %v9337_v11 = vor.u32 %v9336_v44, %v9332_v36  ;;  %v8728_v22 = vor.u32 %v20897_v61, %v20896_v57  ;;  %v9345_v7 = vshrl.u32 %v19538_v38, 16  ;;  %v9348_v17 = vshll.u32 %v19538_v38, 16  ;;  %v8535_v24 = vld [vmem:[#allocation3 + $0x74] sm:$0x1]  ;;  %v8935_v28 = vld [vmem:[#allocation3 + $0x6c] sm:$0xe] }
 0x568   : > { %11315 = vmatmul.mubr.bf16.gmra.mxu1 %v12689_v4  ;;  %v9043_v13 = vsel %vm15940_vm12, %v12594_v40, %v9042_v63  ;;  %v9044_v30 = vrot.slane %v9042_v63, 4  ;;  %v19549_v2 = vpop.f32.mrf.mxu0  ;;  %v9333_v54 = vsel %vm15563_vm2, %v9328_v26, %v9332_v36  ;;  %v9354_v20 = vshll.u32 %v19540_v31, 16  ;;  %v19558_v63 = vpop.f32.mrf.mxu1 }
 0x569   : > { %20898 = vst [vmem:[#allocation45_spill] sm:$0xff] %v19549_v2  ;;  %v9338_v58 = vrot.slane %v9337_v11, 4  ;;  %v8729_v44 = vrot.slane %v8728_v22, 4  ;;  %v9347_v4 = vrot.slane %v9345_v7, 4  ;;  %v9358_v40 = vshrl.u32 %v19540_v31, 16 }
 0x56a   : > { %v9046_v37 = vsel %vm15940_vm12, %v9044_v30, %v9045_v1  ;;  %v9350_v26 = vrot.slane %v9348_v17, 5  ;;  %v9356_v11 = vrot.slane %v9354_v20, 5  ;;  %v19562_v2 = vpop.f32.mrf.mxu0  ;;  %v9364_v22 = vshll.u32 %v9144_v23, 16  ;;  %v19574_v23 = vpop.f32.mrf.mxu1 }
 0x56b   : > { %v9343_v61 = vsel %vm15563_vm2, %v9338_v58, %v9342_v14  ;;  %v12706_v36 = vcombine.low %v9043_v13, %v9046_v37  ;;  %v8734_v1 = vsel %vm15563_vm2, %v8729_v44, %v8733_v19  ;;  %v9360_v30 = vrot.slane %v9358_v40, 4  ;;  %v14963_v37 = vld [vmem:[#allocation3 + $0x70] sm:$0xf]  ;;  %v19572_v19 = vld [vmem:[#allocation3 + $0x84] sm:$0xf]  ;;  %20899 = vst [vmem:[#allocation46_spill] sm:$0xff] %v19574_v23 }
 0x56c   : > { %v12738_v35 = vcombine.low %v9333_v54, %v9343_v61  ;;  %v12722_v7 = vcombine.low %v19497_v45, %v19503_v42  ;;  %v8724_v14 = vsel %vm15563_vm2, %v19017_v59, %v20896_v57  ;;  %v9351_v13 = vor.u32 %v9350_v26, %v9347_v4  ;;  %v19579_v59 = vpop.f32.mrf.mxu0 }
 0x56d   : > { %11322 = vmatprep.mubr.bf16.mxu1 %v12706_v36  ;;  %v8755_v58 = vshll.u32 %v8535_v24, 16  ;;  %v12690_v17 = vcombine.low %v8724_v14, %v8734_v1  ;;  %v9361_v20 = vor.u32 %v9360_v30, %v9356_v11  ;;  %v12595_v54 = vrot.slane %v8935_v28, 9  ;;  %v19577_v36 = vld [vmem:[#allocation3 + $0x88] sm:$0xf]  ;;  %20900 = vst [vmem:[#allocation56_spill] sm:$0xff] %v19579_v59 }
 0x56e   : > { %11483 = vmatprep.mubr.bf16.mxu0 %v12738_v35  ;;  %v9049_v61 = vrot.slane %v14963_v37, 5  ;;  %v8913_v44 = vshll.u32 %v19230_v27, 16  ;;  %v9352_v45 = vrot.slane %v9351_v13, 4  ;;  %v9366_v42 = vrot.slane %v9364_v22, 5  ;;  %v9145_v30 = vld [vmem:[#allocation3 + $0x8c] sm:$0x1]  ;;  %v19597_v37 = vpop.f32.mrf.mxu0 }
 0x56f   : > { %11484 = vmatmul.mubr.bf16.gmra.mxu0 %v12722_v7  ;;  %v9052_v40 = vrot.slane %v8535_v24, 5  ;;  %v9362_v35 = vrot.slane %v9361_v20, 4  ;;  %v8757_v57 = vrot.slane %v8755_v58, 5  ;;  %v8752_v1 = vor.u32 %v19023_v21, %v19021_v33 }
 0x570   : > { %11323 = vmatmul.mubr.bf16.gmra.mxu1 %v12690_v17  ;;  %v9050_v28 = vsel %vm15940_vm12, %v12595_v54, %v9049_v61  ;;  %v9051_v4 = vrot.slane %v9049_v61, 4  ;;  %v9357_v26 = vsel %vm15563_vm2, %v9352_v45, %v9356_v11  ;;  %v9369_v24 = vshrl.u32 %v19572_v19, 16  ;;  %v19595_v17 = vpop.f32.mrf.mxu1 }
 0x571   : > { %v9372_v22 = vshll.u32 %v19572_v19, 16  ;;  %v9367_v7 = vsel %vm15563_vm2, %v9362_v35, %v9366_v42  ;;  %v9378_v13 = vshll.u32 %v19577_v36, 16  ;;  %v9382_v58 = vshrl.u32 %v19577_v36, 16  ;;  %v8536_v42 = vld [vmem:[#allocation3 + $0x80] sm:$0x1] }
 0x572   : > { %v9053_v14 = vsel %vm15940_vm12, %v9051_v4, %v9052_v40  ;;  %v12739_v11 = vcombine.low %v9357_v26, %v9367_v7  ;;  %v8753_v21 = vrot.slane %v8752_v1, 4  ;;  %v9371_v54 = vrot.slane %v9369_v24, 4 }
 0x573   : > { %v12707_v20 = vcombine.low %v9050_v28, %v9053_v14  ;;  %v9374_v61 = vrot.slane %v9372_v22, 5  ;;  %v9380_v45 = vrot.slane %v9378_v13, 5  ;;  %v9384_v23 = vrot.slane %v9382_v58, 4  ;;  %v20903_v28 = vld [vmem:[#allocation47_spill] sm:$0xff]  ;;  %v14964_v58 = vld [vmem:[#allocation3 + $0x7c] sm:$0xf] }
 0x574   : > { %v9388_v59 = vshll.u32 %v9145_v30, 16  ;;  %v20901_v40 = vor.u32 %v19258_v9, %v19238_v15  ;;  %11491 = vmatprep.mubr.bf16.mxu0 %v12739_v11  ;;  %v12723_v4 = vcombine.low %v19538_v38, %v19540_v31  ;;  %v8748_v26 = vsel %vm15563_vm2, %v20903_v28, %v19021_v33  ;;  %v8936_v30 = vld [vmem:[#allocation3 + $0x78] sm:$0xe] }
 0x575   : > { %11330 = vmatprep.mubr.bf16.mxu1 %v12707_v20  ;;  %v8758_v1 = vsel %vm15563_vm2, %v8753_v21, %v8757_v57  ;;  %v20904_v24 = vshrl.u32 %v19246_v47, 16  ;;  %v9375_v9 = vor.u32 %v9374_v61, %v9371_v54  ;;  %v9385_v7 = vor.u32 %v9384_v23, %v9380_v45  ;;  %v19625_v23 = vld [vmem:[#allocation3 + $0x90] sm:$0xf] }
 0x576   : > { %v19602_v35 = vrot.slane %v20901_v40, 4  ;;  %v12691_v15 = vcombine.low %v8748_v26, %v8758_v1  ;;  %v19616_v14 = vpop.f32.mrf.mxu1  ;;  %v20905_v38 = vshll.u32 %v19246_v47, 16  ;;  %v8779_v33 = vshll.u32 %v8536_v42, 16  ;;  %v19623_v11 = vpop.f32.mrf.mxu0 }
 0x577   : > { %v19614_v22 = vrot.slane %v20904_v24, 4  ;;  %11492 = vmatmul.mubr.bf16.gmra.mxu0 %v12723_v4  ;;  %v9056_v57 = vrot.slane %v14964_v58, 5  ;;  %v9376_v20 = vrot.slane %v9375_v9, 4  ;;  %v9386_v21 = vrot.slane %v9385_v7, 4  ;;  %v19631_v4 = vld [vmem:[#allocation3 + $0x94] sm:$0xf] }
 0x578   : > { %20902 = vst [vmem:[#allocation57_spill] sm:$0xff] %v19602_v35  ;;  %v19620_v31 = vrot.slane %v20905_v38, 5  ;;  %11331 = vmatmul.mubr.bf16.gmra.mxu1 %v12691_v15  ;;  %v9390_v40 = vrot.slane %v9388_v59, 5  ;;  %v12596_v54 = vrot.slane %v8936_v30, 9  ;;  %v19627_v61 = vpop.f32.mrf.mxu1  ;;  %v19629_v47 = vrot.slane %v8913_v44, 5  ;;  %v19633_v24 = vpop.f32.mrf.mxu0  ;;  %v20910_v58 = vld [vmem:[#allocation34_spill] sm:$0xff] }
 0x579   : > { %v8781_v28 = vrot.slane %v8779_v33, 5  ;;  %v9058_v26 = vrot.slane %v9056_v57, 4  ;;  %v9059_v1 = vrot.slane %v8536_v42, 5  ;;  %v9381_v15 = vsel %vm15563_vm2, %v9376_v20, %v9380_v45  ;;  %v19643_v9 = vld [vmem:[#allocation3 + $0x98] sm:$0x1]  ;;  %v20909_v33 = vld [vmem:[#allocation33_spill] sm:$0xff] }
 0x57a   : > { %20906 = vst [vmem:[#allocation47_spill] sm:$0xff] %v19629_v47  ;;  %v9391_v59 = vsel %vm15563_vm2, %v9386_v21, %v9390_v40  ;;  %v9057_v30 = vsel %vm15940_vm12, %v12596_v54, %v9056_v57  ;;  %v12724_v44 = vcombine.low %v19572_v19, %v19577_v36  ;;  %20907 = vst [vmem:[#allocation58_spill] sm:$0xff] %v19643_v9  ;;  %v19645_v7 = vpop.f32.mrf.mxu1  ;;  %v9393_v20 = vshrl.u32 %v19625_v23, 16  ;;  %v19652_v21 = vpop.f32.mrf.mxu0  ;;  %v8537_v54 = vld [vmem:[#allocation3 + $0x8c] sm:$0x1] }
 0x57b   : > { %20908 = vst [vmem:[#allocation59_spill] sm:$0xff] %v19645_v7  ;;  %v12740_v42 = vcombine.low %v9381_v15, %v9391_v59  ;;  %v9060_v38 = vsel %vm15940_vm12, %v9058_v26, %v9059_v1  ;;  %v8776_v45 = vor.u32 %v20910_v58, %v20909_v33  ;;  %20911 = vst [vmem:[#allocation33_spill] sm:$0xff] %v19652_v21  ;;  %v9396_v57 = vshll.u32 %v19625_v23, 16  ;;  %v8937_v35 = vld [vmem:[#allocation3 + $0x84] sm:$0xe] }
 0x57c   : > { %v12708_v40 = vcombine.low %v9057_v30, %v9060_v38  ;;  %v9402_v19 = vshll.u32 %v19631_v4, 16  ;;  %v9406_v36 = vshrl.u32 %v19631_v4, 16  ;;  %v19657_v13 = vpop.f32.mrf.mxu1  ;;  %v9395_v26 = vrot.slane %v9393_v20, 4  ;;  %v19664_v7 = vpop.f32.mrf.mxu0 }
 0x57d   : > { %20912 = vst [vmem:[#allocation34_spill] sm:$0xff] %v19657_v13  ;;  %11499 = vmatprep.mubr.bf16.mxu0 %v12740_v42  ;;  %v8777_v15 = vrot.slane %v8776_v45, 4  ;;  %v9412_v1 = vshll.u32 %v19643_v9, 16  ;;  %v14045_v59 = vadd.f32 %v19380_v60, %v19369_v43  ;;  %v9398_v38 = vrot.slane %v9396_v57, 5  ;;  %20913 = vst [vmem:[#allocation60_spill] sm:$0xff] %v19664_v7  ;;  %v20914_v42 = vld [vmem:[#allocation32_spill] sm:$0xff] }
 0x57e   : > { %11338 = vmatprep.mubr.bf16.mxu1 %v12708_v40  ;;  %v9404_v58 = vrot.slane %v9402_v19, 5  ;;  %v9408_v47 = vrot.slane %v9406_v36, 4  ;;  %v8772_v45 = vsel %vm15563_vm2, %v20914_v42, %v20909_v33  ;;  %v8803_v43 = vshll.u32 %v8537_v54, 16  ;;  %v14965_v60 = vld [vmem:[#allocation3 + $0x88] sm:$0xf] }
 0x57f   : > { %11500 = vmatmul.mubr.bf16.gmra.mxu0 %v12724_v44  ;;  %v8782_v20 = vsel %vm15563_vm2, %v8777_v15, %v8781_v28  ;;  %v9063_v9 = vrot.slane %v14965_v60, 5  ;;  %v9399_v40 = vor.u32 %v9398_v38, %v9395_v26  ;;  %v9414_v19 = vrot.slane %v9412_v1, 5  ;;  %v19680_v26 = vld [vmem:[#allocation3 + $0x9c] sm:$0xf] }
 0x580   : > { %v12692_v30 = vcombine.low %v8772_v45, %v8782_v20  ;;  %v9409_v57 = vor.u32 %v9408_v47, %v9404_v58  ;;  %v19672_v36 = vpop.f32.mrf.mxu1  ;;  %v12597_v13 = vrot.slane %v8937_v35, 9  ;;  %v9066_v44 = vrot.slane %v8537_v54, 5  ;;  %v19690_v54 = vld [vmem:[#allocation3 + $0xa0] sm:$0xf]  ;;  %v8538_v45 = vld [vmem:[#allocation3 + $0x98] sm:$0x1] }
 0x581   : > { %v9065_v7 = vrot.slane %v9063_v9, 4  ;;  %v13933_v21 = vadd.f32 %v19378_v32, %v19362_v18  ;;  %v9400_v33 = vrot.slane %v9399_v40, 4  ;;  %v14048_v28 = vadd.f32 %v19413_v48, %v19396_v49 }
 0x582   : > { %11339 = vmatmul.mubr.bf16.gmra.mxu1 %v12692_v30  ;;  %v9410_v42 = vrot.slane %v9409_v57, 4  ;;  %v13936_v15 = vadd.f32 %v19402_v46, %v19382_v56  ;;  %v19682_v47 = vpop.f32.mrf.mxu0  ;;  %v8805_v1 = vrot.slane %v8803_v43, 5  ;;  %v9064_v35 = vsel %vm15940_vm12, %v12597_v13, %v9063_v9  ;;  %v19692_v30 = vld [vmem:[#allocation3 + $0xa4] sm:$0x1]  ;;  %v19700_v38 = vpop.f32.mrf.mxu1  ;;  %v20917_v9 = vld [vmem:[#allocation35_spill] sm:$0xff] }
 0x583   : > { %v9067_v18 = vsel %vm15940_vm12, %v9065_v7, %v9066_v44  ;;  %v19688_v32 = vadd.f32 %v14045_v59, %v13933_v21  ;;  %v9405_v56 = vsel %vm15563_vm2, %v9400_v33, %v9404_v58  ;;  %v8800_v7 = vor.u32 %v19119_v39, %v20917_v9  ;;  %v8938_v33 = vld [vmem:[#allocation3 + $0x90] sm:$0xe] }
 0x584   : > { %v9415_v49 = vsel %vm15563_vm2, %v9410_v42, %v9414_v19  ;;  %v12709_v46 = vcombine.low %v9064_v35, %v9067_v18  ;;  %v19698_v48 = vadd.f32 %v14048_v28, %v13936_v15  ;;  %v9417_v21 = vshrl.u32 %v19680_v26, 16  ;;  %v19711_v40 = vpop.f32.mrf.mxu0  ;;  %v19719_v35 = vpop.f32.mrf.mxu1 }
 0x585   : > { %20915 = vst [vmem:[#allocation32_spill] sm:$0xff] %v19688_v32  ;;  %v12741_v13 = vcombine.low %v9405_v56, %v9415_v49  ;;  %v9420_v59 = vshll.u32 %v19680_v26, 16  ;;  %v12725_v58 = vcombine.low %v19625_v23, %v19631_v4  ;;  %v9426_v20 = vshll.u32 %v19690_v54, 16  ;;  %v14969_v32 = vld [vmem:[#allocation3 + $0xb8] sm:$0xf] }
 0x586   : > { %20916 = vst [vmem:[#allocation61_spill] sm:$0xff] %v19698_v48  ;;  %11346 = vmatprep.mubr.bf16.mxu1 %v12709_v46  ;;  %v9430_v43 = vshrl.u32 %v19690_v54, 16  ;;  %v9436_v60 = vshll.u32 %v19692_v30, 16  ;;  %v8801_v57 = vrot.slane %v8800_v7, 4  ;;  %v9419_v39 = vrot.slane %v9417_v21, 4 }
 0x587   : > { %11507 = vmatprep.mubr.bf16.mxu0 %v12741_v13  ;;  %v9422_v19 = vrot.slane %v9420_v59, 5  ;;  %v14051_v44 = vadd.f32 %v19448_v8, %v19430_v53  ;;  %v8796_v23 = vsel %vm15563_vm2, %v19130_v62, %v20917_v9  ;;  %v9428_v42 = vrot.slane %v9426_v20, 5  ;;  %v14966_v46 = vld [vmem:[#allocation3 + $0x94] sm:$0xf]  ;;  %v19723_v59 = vpop.f32.mrf.mxu0  ;;  %v14968_v48 = vld [vmem:[#allocation3 + $0xac] sm:$0xf] }
 0x588   : > { %11508 = vmatmul.mubr.bf16.gmra.mxu0 %v12725_v58  ;;  %v9432_v28 = vrot.slane %v9430_v43, 4  ;;  %v8827_v15 = vshll.u32 %v8538_v45, 16  ;;  %v8806_v18 = vsel %vm15563_vm2, %v8801_v57, %v8805_v1  ;;  %v9438_v49 = vrot.slane %v9436_v60, 5 }
 0x589   : > { %v9423_v56 = vor.u32 %v9422_v19, %v9419_v39  ;;  %v9070_v13 = vrot.slane %v14966_v46, 5  ;;  %v12693_v53 = vcombine.low %v8796_v23, %v8806_v18  ;;  %v12598_v21 = vrot.slane %v8938_v33, 9  ;;  %v19733_v39 = vld [vmem:[#allocation3 + $0xa8] sm:$0xf]  ;;  %v19735_v19 = vld [vmem:[#allocation3 + $0xac] sm:$0xf]  ;;  %v19737_v33 = vpop.f32.mrf.mxu1 }
 0x58a   : > { %v9433_v8 = vor.u32 %v9432_v28, %v9428_v42  ;;  %v8829_v7 = vrot.slane %v8827_v15, 5  ;;  %v9073_v9 = vrot.slane %v8538_v45, 5  ;;  %v13939_v20 = vadd.f32 %v19436_v29, %v19420_v10  ;;  %v19755_v15 = vpop.f32.mrf.mxu0 }
 0x58b   : > { %v9424_v58 = vrot.slane %v9423_v56, 4  ;;  %v9072_v62 = vrot.slane %v9070_v13, 4  ;;  %11347 = vmatmul.mubr.bf16.gmra.mxu1 %v12693_v53  ;;  %v9071_v1 = vsel %vm15940_vm12, %v12598_v21, %v9070_v13  ;;  %v14054_v60 = vadd.f32 %v19482_v6, %v19465_v16  ;;  %v19747_v6 = vld [vmem:[#allocation3 + $0xb0] sm:$0x1] }
 0x58c   : > { %v9434_v43 = vrot.slane %v9433_v8, 4  ;;  %v13942_v57 = vadd.f32 %v19469_v34, %v19452_v0  ;;  %v19743_v45 = vadd.f32 %v14051_v44, %v13939_v20  ;;  %v12726_v16 = vcombine.low %v19680_v26, %v19690_v54  ;;  %20919 = vst [vmem:[#allocation62_spill] sm:$0xff] %v19747_v6 }
 0x58d   : > { %v9429_v10 = vsel %vm15563_vm2, %v9424_v58, %v9428_v42  ;;  %v9074_v29 = vsel %vm15940_vm12, %v9072_v62, %v9073_v9  ;;  %v8824_v28 = vor.u32 %v19206_v41, %v19147_v55  ;;  %v8539_v42 = vld [vmem:[#allocation3 + $0xa4] sm:$0x1]  ;;  %v9441_v44 = vshrl.u32 %v19733_v39, 16  ;;  %v8939_v41 = vld [vmem:[#allocation3 + $0x9c] sm:$0xe] }
 0x58e   : > { %20918 = vst [vmem:[#allocation35_spill] sm:$0xff] %v19743_v45  ;;  %v9439_v0 = vsel %vm15563_vm2, %v9434_v43, %v9438_v49  ;;  %v12710_v34 = vcombine.low %v9071_v1, %v9074_v29  ;;  %v19751_v23 = vadd.f32 %v14054_v60, %v13942_v57  ;;  %v9444_v56 = vshll.u32 %v19733_v39, 16 }
 0x58f   : > { %v12742_v18 = vcombine.low %v9429_v10, %v9439_v0  ;;  %v9450_v26 = vshll.u32 %v19735_v19, 16  ;;  %v8825_v46 = vrot.slane %v8824_v28, 4  ;;  %v9454_v49 = vshrl.u32 %v19735_v19, 16  ;;  %v19764_v8 = vpop.f32.mrf.mxu1  ;;  %v14967_v0 = vld [vmem:[#allocation3 + $0xa0] sm:$0xf] }
 0x590   : > { %20920 = vst [vmem:[#allocation63_spill] sm:$0xff] %v19751_v23  ;;  %11354 = vmatprep.mubr.bf16.mxu1 %v12710_v34  ;;  %v9460_v13 = vshll.u32 %v19747_v6, 16  ;;  %v14057_v53 = vadd.f32 %v19505_v12, %v19499_v51  ;;  %v9443_v21 = vrot.slane %v9441_v44, 4  ;;  %v9446_v58 = vrot.slane %v9444_v56, 5 }
 0x591   : > { %11515 = vmatprep.mubr.bf16.mxu0 %v12742_v18  ;;  %v9452_v62 = vrot.slane %v9450_v26, 5  ;;  %v8851_v9 = vshll.u32 %v8539_v42, 16  ;;  %v8820_v20 = vsel %vm15563_vm2, %v19202_v52, %v19147_v55  ;;  %v8830_v43 = vsel %vm15563_vm2, %v8825_v46, %v8829_v7  ;;  %v19772_v51 = vpop.f32.mrf.mxu0  ;;  %v19774_v12 = vpop.f32.mrf.mxu1  ;;  %v20921_v18 = vld [vmem:[#allocation54_spill] sm:$0xff]  ;;  %v20922_v55 = vld [vmem:[#allocation43_spill] sm:$0xff] }
 0x592   : > { %11516 = vmatmul.mubr.bf16.gmra.mxu0 %v12726_v16  ;;  %v9456_v1 = vrot.slane %v9454_v49, 4  ;;  %v9462_v60 = vrot.slane %v9460_v13, 5  ;;  %v12694_v57 = vcombine.low %v8820_v20, %v8830_v43  ;;  %v9447_v10 = vor.u32 %v9446_v58, %v9443_v21  ;;  %v20923_v13 = vld [vmem:[#allocation55_spill] sm:$0xff]  ;;  %v19794_v43 = vld [vmem:[#allocation3 + $0xb8] sm:$0xf] }
 0x593   : > { %v12599_v29 = vrot.slane %v8939_v41, 9  ;;  %v9077_v34 = vrot.slane %v14967_v0, 5  ;;  %v8853_v28 = vrot.slane %v8851_v9, 5  ;;  %v13945_v44 = vadd.f32 %v20921_v18, %v19487_v50  ;;  %v19780_v7 = vpop.f32.mrf.mxu0  ;;  %v19782_v56 = vpop.f32.mrf.mxu1  ;;  %v20924_v41 = vld [vmem:[#allocation44_spill] sm:$0xff]  ;;  %v19786_v58 = vld [vmem:[#allocation3 + $0xb4] sm:$0xf] }
 0x594   : > { %v9457_v16 = vor.u32 %v9456_v1, %v9452_v62  ;;  %v14060_v52 = vadd.f32 %v19530_v5, %v20922_v55  ;;  %11355 = vmatmul.mubr.bf16.gmra.mxu1 %v12694_v57  ;;  %v9448_v26 = vrot.slane %v9447_v10, 4  ;;  %v9080_v49 = vrot.slane %v8539_v42, 5  ;;  %v20927_v0 = vld [vmem:[#allocation37_spill] sm:$0xff] }
 0x595   : > { %v9079_v46 = vrot.slane %v9077_v34, 4  ;;  %v13948_v21 = vadd.f32 %v20924_v41, %v20923_v13  ;;  %v9078_v50 = vsel %vm15940_vm12, %v12599_v29, %v9077_v34  ;;  %v19790_v20 = vadd.f32 %v14057_v53, %v13945_v44  ;;  %v19796_v1 = vpop.f32.mrf.mxu0  ;;  %v19806_v53 = vld [vmem:[#allocation3 + $0xbc] sm:$0x1]  ;;  %v19808_v34 = vpop.f32.mrf.mxu1 }
 0x596   : > { %v9458_v9 = vrot.slane %v9457_v16, 4  ;;  %v12727_v5 = vcombine.low %v19733_v39, %v19735_v19  ;;  %v9453_v42 = vsel %vm15563_vm2, %v9448_v26, %v9452_v62  ;;  %v20928_v16 = vld [vmem:[#allocation31_spill] sm:$0xff]  ;;  %v9465_v44 = vshrl.u32 %v19786_v58, 16  ;;  %v20929_v41 = vld [vmem:[#allocation36_spill] sm:$0xff] }
 0x597   : > { %20925 = vst [vmem:[#allocation54_spill] sm:$0xff] %v19790_v20  ;;  %v9081_v57 = vsel %vm15940_vm12, %v9079_v46, %v9080_v49  ;;  %v19802_v10 = vadd.f32 %v14060_v52, %v13948_v21  ;;  %v8848_v29 = vor.u32 %v20928_v16, %v20927_v0  ;;  %v9468_v62 = vshll.u32 %v19786_v58, 16  ;;  %v8540_v49 = vld [vmem:[#allocation3 + $0xb0] sm:$0x1]  ;;  %v19816_v13 = vpop.f32.mrf.mxu0 }
 0x598   : > { %v9463_v39 = vsel %vm15563_vm2, %v9458_v9, %v9462_v60  ;;  %v12711_v18 = vcombine.low %v9078_v50, %v9081_v57  ;;  %v9474_v52 = vshll.u32 %v19794_v43, 16  ;;  %v9478_v46 = vshrl.u32 %v19794_v43, 16  ;;  %v8940_v57 = vld [vmem:[#allocation3 + $0xa8] sm:$0xe] }
 0x599   : > { %20926 = vst [vmem:[#allocation43_spill] sm:$0xff] %v19802_v10  ;;  %v12743_v55 = vcombine.low %v9453_v42, %v9463_v39  ;;  %v8849_v26 = vrot.slane %v8848_v29, 4  ;;  %v8844_v60 = vsel %vm15563_vm2, %v20929_v41, %v20927_v0  ;;  %v9467_v21 = vrot.slane %v9465_v44, 4  ;;  %v20930_v39 = vld [vmem:[#allocation45_spill] sm:$0xff] }
 0x59a   : > { %11362 = vmatprep.mubr.bf16.mxu1 %v12711_v18  ;;  %v9470_v9 = vrot.slane %v9468_v62, 5  ;;  %v9484_v50 = vshll.u32 %v19806_v53, 16  ;;  %v9476_v16 = vrot.slane %v9474_v52, 5  ;;  %v9480_v29 = vrot.slane %v9478_v46, 4  ;;  %v19827_v18 = vpop.f32.mrf.mxu1  ;;  %v20932_v46 = vld [vmem:[#allocation26_spill] sm:$0xff] }
 0x59b   : > { %11523 = vmatprep.mubr.bf16.mxu0 %v12743_v55  ;;  %v8854_v42 = vsel %vm15563_vm2, %v8849_v26, %v8853_v28  ;;  %v14063_v10 = vadd.f32 %v19562_v2, %v20930_v39  ;;  %v20931_v20 = vshrl.u32 %v19230_v27, 16  ;;  %v8875_v62 = vshll.u32 %v8540_v49, 16  ;;  %v20933_v27 = vld [vmem:[#allocation56_spill] sm:$0xff] }
 0x59c   : > { %11524 = vmatmul.mubr.bf16.gmra.mxu0 %v12727_v5  ;;  %v12695_v0 = vcombine.low %v8844_v60, %v8854_v42  ;;  %v9471_v44 = vor.u32 %v9470_v9, %v9467_v21  ;;  %v9481_v41 = vor.u32 %v9480_v29, %v9476_v16  ;;  %v9486_v55 = vrot.slane %v9484_v50, 5  ;;  %v19833_v26 = vpop.f32.mrf.mxu0  ;;  %v20934_v9 = vld [vmem:[#allocation46_spill] sm:$0xff]  ;;  %v19853_v29 = vld [vmem:[#allocation3 + $0xc4] sm:$0xf] }
 0x59d   : > { %v19831_v23 = vrot.slane %v20931_v20, 4  ;;  %v12600_v45 = vrot.slane %v8940_v57, 9  ;;  %v9084_v28 = vrot.slane %v14968_v48, 5  ;;  %v9087_v2 = vrot.slane %v8540_v49, 5  ;;  %v19841_v57 = vld [vmem:[#allocation3 + $0xc0] sm:$0xf]  ;;  %v19843_v48 = vpop.f32.mrf.mxu1 }
 0x59e   : > { %11363 = vmatmul.mubr.bf16.gmra.mxu1 %v12695_v0  ;;  %v9472_v52 = vrot.slane %v9471_v44, 4  ;;  %v13951_v39 = vadd.f32 %v19558_v63, %v20932_v46  ;;  %v14066_v20 = vadd.f32 %v19597_v37, %v20933_v27  ;;  %v9482_v5 = vrot.slane %v9481_v41, 4  ;;  %v19855_v0 = vld [vmem:[#allocation3 + $0xc8] sm:$0x1] }
 0x59f   : > { %v8877_v60 = vrot.slane %v8875_v62, 5  ;;  %v9086_v21 = vrot.slane %v9084_v28, 4  ;;  %v13954_v50 = vadd.f32 %v19595_v17, %v20934_v9  ;;  %v9085_v49 = vsel %vm15940_vm12, %v12600_v45, %v9084_v28  ;;  %v19857_v17 = vpop.f32.mrf.mxu0  ;;  %v20937_v45 = vld [vmem:[#allocation38_spill] sm:$0xff]  ;;  %v8541_v28 = vld [vmem:[#allocation3 + $0xbc] sm:$0x1] }
 0x5a0   : > { %v9477_v42 = vsel %vm15563_vm2, %v9472_v52, %v9476_v16  ;;  %v19849_v63 = vadd.f32 %v14063_v10, %v13951_v39  ;;  %v12728_v37 = vcombine.low %v19786_v58, %v19794_v43  ;;  %v9487_v44 = vsel %vm15563_vm2, %v9482_v5, %v9486_v55  ;;  %v20938_v10 = vld [vmem:[#allocation41_spill] sm:$0xff] }
 0x5a1   : > { %v9088_v16 = vsel %vm15940_vm12, %v9086_v21, %v9087_v2  ;;  %v19863_v62 = vadd.f32 %v14066_v20, %v13954_v50  ;;  %v8872_v41 = vor.u32 %v20938_v10, %v20937_v45  ;;  %v12744_v52 = vcombine.low %v9477_v42, %v9487_v44  ;;  %v19872_v2 = vpop.f32.mrf.mxu1  ;;  %v20939_v44 = vld [vmem:[#allocation39_spill] sm:$0xff] }
 0x5a2   : > { %20935 = vst [vmem:[#allocation55_spill] sm:$0xff] %v19849_v63  ;;  %v12712_v58 = vcombine.low %v9085_v49, %v9088_v16  ;;  %v9489_v46 = vshrl.u32 %v19841_v57, 16  ;;  %v9492_v39 = vshll.u32 %v19841_v57, 16  ;;  %v9498_v9 = vshll.u32 %v19853_v29, 16  ;;  %v19876_v49 = vpop.f32.mrf.mxu0 }
 0x5a3   : > { %20936 = vst [vmem:[#allocation44_spill] sm:$0xff] %v19863_v62  ;;  %v8873_v27 = vrot.slane %v8872_v41, 4  ;;  %v9502_v55 = vshrl.u32 %v19853_v29, 16  ;;  %v9508_v5 = vshll.u32 %v19855_v0, 16  ;;  %11531 = vmatprep.mubr.bf16.mxu0 %v12744_v52  ;;  %v14069_v50 = vadd.f32 %v19633_v24, %v19623_v11 }
 0x5a4   : > { %11370 = vmatprep.mubr.bf16.mxu1 %v12712_v58  ;;  %v9491_v20 = vrot.slane %v9489_v46, 4  ;;  %v9494_v21 = vrot.slane %v9492_v39, 5  ;;  %v8899_v42 = vshll.u32 %v8541_v28, 16  ;;  %11532 = vmatmul.mubr.bf16.gmra.mxu0 %v12728_v37  ;;  %v8868_v16 = vsel %vm15563_vm2, %v20939_v44, %v20937_v45  ;;  %v8941_v58 = vld [vmem:[#allocation3 + $0xb4] sm:$0xe]  ;;  %v19891_v44 = vpop.f32.mrf.mxu1 }
 0x5a5   : > { %v8878_v10 = vsel %vm15563_vm2, %v8873_v27, %v8877_v60  ;;  %v9500_v41 = vrot.slane %v9498_v9, 5  ;;  %v9504_v52 = vrot.slane %v9502_v55, 4  ;;  %v20940_v46 = vor.u32 %v19620_v31, %v19614_v22  ;;  %v20941_v9 = vld [vmem:[#allocation33_spill] sm:$0xff]  ;;  %v20942_v55 = vld [vmem:[#allocation60_spill] sm:$0xff]  ;;  %v20943_v31 = vld [vmem:[#allocation59_spill] sm:$0xff] }
 0x5a6   : > { %v12696_v11 = vcombine.low %v8868_v16, %v8878_v10  ;;  %v9495_v24 = vor.u32 %v9494_v21, %v9491_v20  ;;  %v9510_v62 = vrot.slane %v9508_v5, 5  ;;  %v8901_v63 = vrot.slane %v8899_v42, 5  ;;  %v19897_v20 = vpop.f32.mrf.mxu0 }
 0x5a7   : > { %v19887_v39 = vrot.slane %v20940_v46, 4  ;;  %v9505_v37 = vor.u32 %v9504_v52, %v9500_v41  ;;  %v9091_v6 = vrot.slane %v14969_v32, 5  ;;  %v13957_v45 = vadd.f32 %v19627_v61, %v19616_v14  ;;  %v20944_v46 = vld [vmem:[#allocation34_spill] sm:$0xff]  ;;  %v20945_v52 = vld [vmem:[#allocation40_spill] sm:$0xff] }
 0x5a8   : > { %11371 = vmatmul.mubr.bf16.gmra.mxu1 %v12696_v11  ;;  %v9496_v60 = vrot.slane %v9495_v24, 4  ;;  %v12601_v27 = vrot.slane %v8941_v58, 9  ;;  %v14072_v22 = vadd.f32 %v20942_v55, %v20941_v9  ;;  %v13960_v16 = vadd.f32 %v20944_v46, %v20943_v31  ;;  %v20946_v58 = vld [vmem:[#allocation42_spill] sm:$0xff]  ;;  %v8942_v9 = vld [vmem:[#allocation3 + $0xc0] sm:$0xe] }
 0x5a9   : > { %v9506_v5 = vrot.slane %v9505_v37, 4  ;;  %v9093_v21 = vrot.slane %v9091_v6, 4  ;;  %v9094_v42 = vrot.slane %v8541_v28, 5  ;;  %v19899_v32 = vadd.f32 %v14069_v50, %v13957_v45  ;;  %v8542_v24 = vld [vmem:[#allocation3 + $0xc8] sm:$0x1] }
 0x5aa   : > { %v9092_v14 = vsel %vm15940_vm12, %v12601_v27, %v9091_v6  ;;  %v19903_v61 = vadd.f32 %v14072_v22, %v13960_v16  ;;  %v12729_v10 = vcombine.low %v19841_v57, %v19853_v29  ;;  %v8896_v11 = vor.u32 %v20946_v58, %v20945_v52  ;;  %v647_v45 = vld [vmem:[#allocation3 + $0xcc] sm:$0x1]  ;;  %v19917_v27 = vpop.f32.mrf.mxu1  ;;  %v20947_v22 = vld [vmem:[#allocation57_spill] sm:$0xff] }
 0x5ab   : > { %v9501_v37 = vsel %vm15563_vm2, %v9496_v60, %v9500_v41  ;;  %v9511_v28 = vsel %vm15563_vm2, %v9506_v5, %v9510_v62  ;;  %v9095_v50 = vsel %vm15940_vm12, %v9093_v21, %v9094_v42  ;;  %v14075_v6 = vadd.f32 %v19711_v40, %v19682_v47  ;;  %v19923_v60 = vpop.f32.mrf.mxu0  ;;  %v14970_v16 = vld [vmem:[#allocation3 + $0xc4] sm:$0xf] }
 0x5ac   : > { %v12745_v57 = vcombine.low %v9501_v37, %v9511_v28  ;;  %v12713_v55 = vcombine.low %v9092_v14, %v9095_v50  ;;  %v8892_v31 = vsel %vm15563_vm2, %v20947_v22, %v20945_v52  ;;  %v8897_v41 = vrot.slane %v8896_v11, 4  ;;  %v19927_v40 = vpop.f32.mrf.mxu1  ;;  %v701_v11 = vld [vmem:[#allocation3 + $0xd4] sm:$0x1]  ;;  %v14972_v52 = vld [vmem:[#allocation3 + $0x20] sm:$0x1] }
 0x5ad   : > { %v8923_v62 = vshll.u32 %v8542_v24, 16  ;;  %v12602_v46 = vrot.slane %v8942_v9, 9  ;;  %v9098_v5 = vrot.slane %v14970_v16, 5  ;;  %v13963_v47 = vadd.f32 %v19700_v38, %v19672_v36  ;;  %v19937_v9 = vld [vmem:[#allocation3 + $0xd0] sm:$0xf]  ;;  %v19939_v36 = vpop.f32.mrf.mxu0 }
 0x5ae   : > { %11539 = vmatprep.mubr.bf16.mxu0 %v12745_v57  ;;  %11378 = vmatprep.mubr.bf16.mxu1 %v12713_v55  ;;  %v8902_v21 = vsel %vm15563_vm2, %v8897_v41, %v8901_v63  ;;  %v14078_v42 = vadd.f32 %v19755_v15, %v19723_v59  ;;  %v13966_v14 = vadd.f32 %v19737_v33, %v19719_v35  ;;  %v648_v58 = vsel %vm15493_vm6, 0, %v647_v45  ;;  %v19943_v63 = vpop.f32.mrf.mxu1  ;;  %v20949_v33 = vld [vmem:[#allocation47_spill] sm:$0xff]  ;;  %v14971_v16 = vld [vmem:[#allocation3 + $0x1c] sm:$0xf] }
 0x5af   : > { %11540 = vmatmul.mubr.bf16.gmra.mxu0 %v12729_v10  ;;  %v12697_v38 = vcombine.low %v8892_v31, %v8902_v21  ;;  %v9100_v37 = vrot.slane %v9098_v5, 4  ;;  %v9101_v28 = vrot.slane %v8542_v24, 5  ;;  %v19941_v50 = vadd.f32 %v14075_v6, %v13963_v47  ;;  %649 = vst [vmem:[#allocation3 + $0xcc] sm:$0x1] %v648_v58  ;;  %v19953_v10 = vpop.f32.mrf.mxu0  ;;  %v9537_v21 = vld [vmem:[#allocation3 + $0x24] sm:$0xe] }
 0x5b0   : > { %v9099_v35 = vsel %vm15940_vm12, %v12602_v46, %v9098_v5  ;;  %v19947_v59 = vadd.f32 %v14078_v42, %v13966_v14  ;;  %v8920_v15 = vor.u32 %v19831_v23, %v20949_v33  ;;  %v14081_v45 = vadd.f32 %v19780_v7, %v19772_v51  ;;  %v9536_v23 = vld [vmem:[#allocation3 + $0x18] sm:$0xe]  ;;  %v19965_v42 = vpop.f32.mrf.mxu1 }
 0x5b1   : > { %11379 = vmatmul.mubr.bf16.gmra.mxu1 %v12697_v38  ;;  %v9102_v24 = vsel %vm15940_vm12, %v9100_v37, %v9101_v28  ;;  %v702_v57 = vsel %vm15503_vm8, 0, %v701_v11  ;;  %v9522_v55 = vshll.u32 %v19937_v9, 16  ;;  %v9526_v22 = vshrl.u32 %v19937_v9, 16  ;;  %v14095_v38 = vpop.f32.mrf.mxu0 }
 0x5b2   : > { %v8925_v31 = vrot.slane %v8923_v62, 5  ;;  %v12714_v41 = vcombine.low %v9099_v35, %v9102_v24  ;;  %v8921_v46 = vrot.slane %v8920_v15, 4  ;;  %703 = vst [vmem:[#allocation3 + $0xd4] sm:$0x1] %v702_v57  ;;  %v9602_v51 = vrot.slane %v14971_v16, 5 }
 0x5b3   : > { %v19961_v7 = vrot.slane %v9522_v55, 5  ;;  %v9528_v5 = vrot.slane %v9526_v22, 4  ;;  %v13969_v47 = vadd.f32 %v19774_v12, %v19764_v8  ;;  %v9605_v58 = vrot.slane %v14972_v52, 5  ;;  %v20951_v55 = vld [vmem:[#allocation30_spill] sm:$0xff]  ;;  %v14974_v52 = vld [vmem:[#allocation3 + $0x38] sm:$0x1] }
 0x5b4   : > { %11386 = vmatprep.mubr.bf16.mxu1 %v12714_v41  ;;  %v8926_v14 = vsel %vm15563_vm2, %v8921_v46, %v8925_v31  ;;  %v9604_v62 = vrot.slane %v9602_v51, 4  ;;  %v14084_v11 = vadd.f32 %v19816_v13, %v19796_v1  ;;  %v8916_v37 = vsel %vm15563_vm2, %v19887_v39, %v20949_v33  ;;  %v14973_v41 = vld [vmem:[#allocation3 + $0x34] sm:$0xf] }
 0x5b5   : > { %v12603_v8 = vrot.slane %v9536_v23, 9  ;;  %v19975_v12 = vadd.f32 %v14081_v45, %v13969_v47  ;;  %v13972_v28 = vadd.f32 %v19808_v34, %v19782_v56  ;;  %v9529_v15 = vor.u32 %v9528_v5, %v19961_v7  ;;  %v19990_v56 = vpop.f32.mrf.mxu1  ;;  %v20953_v5 = vld [vmem:[#allocation49_spill] sm:$0xff]  ;;  %v9538_v47 = vld [vmem:[#allocation3 + $0x30] sm:$0xe] }
 0x5b6   : > { %v19979_v35 = vld [vmem:[#allocation3 + $0xcc] sm:$0xf]  ;;  %v9606_v24 = vsel %vm15940_vm12, %v9604_v62, %v9605_v58  ;;  %v12604_v1 = vrot.slane %v9537_v21, 9  ;;  %v14087_v13 = vadd.f32 %v19857_v17, %v19833_v26  ;;  %v12698_v6 = vcombine.low %v8916_v37, %v8926_v14 }
 0x5b7   : > { %v9513_v39 = vshrl.u32 %v19979_v35, 16  ;;  %v9516_v33 = vshll.u32 %v19979_v35, 16  ;;  %v9603_v45 = vsel %vm15940_vm12, %v12603_v8, %v9602_v51  ;;  %v19992_v57 = vadd.f32 %v14084_v11, %v13972_v28 }
 0x5b8   : > { %v12747_v34 = vcombine.low %v9603_v45, %v9606_v24  ;;  %v20952_v22 = vrot.slane %v20951_v55, 5  ;;  %v9616_v26 = vrot.slane %v14973_v41, 5  ;;  %v14097_v17 = vpop.f32.mrf.mxu0  ;;  %v9530_v21 = vrot.slane %v9529_v15, 4 }
 0x5b9   : > { %11387 = vmatmul.mubr.bf16.gmra.mxu1 %v12698_v6  ;;  %v19998_v46 = vld [vmem:[#allocation3 + $0xd4] sm:$0x1]  ;;  %v9515_v23 = vrot.slane %v9513_v39, 4  ;;  %v9518_v16 = vrot.slane %v9516_v33, 5  ;;  %v9619_v58 = vrot.slane %v14974_v52, 5  ;;  %v13975_v8 = vadd.f32 %v19843_v48, %v19827_v18 }
 0x5ba   : > { %v9610_v31 = vsel %vm15940_vm12, %v12604_v1, %v20952_v22  ;;  %v9532_v14 = vshll.u32 %v19998_v46, 16  ;;  %14445 = vmatprep.mubr.bf16.mxu1 %v12747_v34  ;;  %v9618_v62 = vrot.slane %v9616_v26, 4  ;;  %v14098_v11 = vpop.f32.mrf.mxu0  ;;  %v14090_v28 = vadd.f32 %v19897_v20, %v19876_v49  ;;  %v13986_v1 = vpop.f32.mrf.mxu1  ;;  %v14975_v33 = vld [vmem:[#allocation3 + $0x40] sm:$0xf] }
 0x5bb   : > { %v12748_v51 = vcombine.low %v9610_v31, %v20953_v5  ;;  %v9519_v37 = vor.u32 %v9518_v16, %v9515_v23  ;;  %v13978_v24 = vadd.f32 %v19891_v44, %v19872_v2  ;;  %v12605_v15 = vrot.slane %v9538_v47, 9  ;;  %v14976_v31 = vld [vmem:[#allocation3 + $0x4c] sm:$0xf] }
 0x5bc   : > { %v9534_v6 = vrot.slane %v9532_v14, 5  ;;  %v9620_v39 = vsel %vm15940_vm12, %v9618_v62, %v9619_v58  ;;  %v9623_v45 = vrot.slane %v14975_v33, 5  ;;  %v20010_v55 = vadd.f32 %v14087_v13, %v13975_v8  ;;  %v14100_v49 = vpop.f32.mrf.mxu0  ;;  %v13988_v23 = vpop.f32.mrf.mxu1  ;;  %v14978_v58 = vld [vmem:[#allocation3 + $0x50] sm:$0x1] }
 0x5bd   : > { %v9520_v34 = vrot.slane %v9519_v37, 4  ;;  %v20012_v22 = vadd.f32 %v14090_v28, %v13978_v24  ;;  %v9617_v48 = vsel %vm15940_vm12, %v12605_v15, %v9616_v26  ;;  %v14093_v2 = vadd.f32 %v19939_v36, %v19923_v60  ;;  %v9539_v60 = vld [vmem:[#allocation3 + $0x3c] sm:$0xe]  ;;  %v9540_v36 = vld [vmem:[#allocation3 + $0x48] sm:$0xe] }
 0x5be   : > { %v9535_v18 = vsel %vm15563_vm2, %v9530_v21, %v9534_v6  ;;  %v12730_v20 = vcombine.low %v19979_v35, %v19937_v9  ;;  %v12749_v13 = vcombine.low %v9617_v48, %v9620_v39  ;;  %v9630_v41 = vrot.slane %v14976_v31, 5  ;;  %v14101_v52 = vpop.f32.mrf.mxu0  ;;  %v14980_v28 = vld [vmem:[#allocation3 + $0x64] sm:$0xf]  ;;  %v14981_v31 = vld [vmem:[#allocation3 + $0x5c] sm:$0x1] }
 0x5bf   : > { %v9525_v44 = vsel %vm15563_vm2, %v9520_v34, %v19961_v7  ;;  %v9625_v5 = vrot.slane %v9623_v45, 4  ;;  %v13981_v26 = vadd.f32 %v19927_v40, %v19917_v27  ;;  %v14096_v47 = vadd.f32 %v14095_v38, %v19953_v10  ;;  %v14977_v7 = vld [vmem:[#allocation3 + $0x44] sm:$0x1]  ;;  %v13989_v10 = vpop.f32.mrf.mxu1 }
 0x5c0   : > { %v12746_v16 = vcombine.low %v9525_v44, %v9535_v18  ;;  %v9632_v21 = vrot.slane %v9630_v41, 4  ;;  %v13984_v25 = vadd.f32 %v19965_v42, %v19943_v63  ;;  %v9626_v35 = vrot.slane %v14977_v7, 5  ;;  %v14979_v63 = vld [vmem:[#allocation3 + $0x58] sm:$0xf] }
 0x5c1   : > { %14446 = vmatmul.mubr.bf16.vlgmr.msra.gmra.mxu1 %v12748_v51  ;;  %v20030_v14 = vadd.f32 %v14093_v2, %v13981_v26  ;;  %v14099_v62 = vadd.f32 %v14098_v11, %v14097_v17  ;;  %v9633_v27 = vrot.slane %v14978_v58, 5  ;;  %v12606_v38 = vrot.slane %v9539_v60, 9  ;;  %v14984_v58 = vld [vmem:[#allocation3 + $0x7c] sm:$0xf] }
 0x5c2   : > { %11547 = vmatprep.mubr.bf16.mxu0 %v12746_v16  ;;  %14449 = vmatprep.mubr.bf16.mxu1 %v12749_v13  ;;  %v20032_v40 = vadd.f32 %v14096_v47, %v13984_v25  ;;  %v9627_v51 = vsel %vm15940_vm12, %v9625_v5, %v9626_v35  ;;  %v12607_v37 = vrot.slane %v9540_v36, 9  ;;  %v9637_v42 = vrot.slane %v14979_v63, 5  ;;  %v9541_v13 = vld [vmem:[#allocation3 + $0x54] sm:$0xe]  ;;  %v14983_v25 = vld [vmem:[#allocation3 + $0x70] sm:$0xf] }
 0x5c3   : > { %11548 = vmatmul.mubr.bf16.gmra.mxu0 %v12730_v20  ;;  %v9634_v8 = vsel %vm15940_vm12, %v9632_v21, %v9633_v27  ;;  %v9644_v24 = vrot.slane %v14980_v28, 5  ;;  %v13987_v17 = vadd.f32 %v13986_v1, %v19990_v56  ;;  %v14102_v11 = vadd.f32 %v14101_v52, %v14100_v49 }
 0x5c4   : > { %v9624_v6 = vsel %vm15940_vm12, %v12606_v38, %v9623_v45  ;;  %v13990_v15 = vadd.f32 %v13989_v10, %v13988_v23  ;;  %v9631_v33 = vsel %vm15940_vm12, %v12607_v37, %v9630_v41  ;;  %v9639_v44 = vrot.slane %v9637_v42, 4  ;;  %v9542_v23 = vld [vmem:[#allocation3 + $0x60] sm:$0xe]  ;;  %v14982_v41 = vld [vmem:[#allocation3 + $0x68] sm:$0x1] }
 0x5c5   : > { %v12750_v39 = vcombine.low %v9624_v6, %v9627_v51  ;;  %v20043_v34 = vadd.f32 %v14099_v62, %v13987_v17  ;;  %v12751_v2 = vcombine.low %v9631_v33, %v9634_v8  ;;  %v9646_v56 = vrot.slane %v9644_v24, 4  ;;  %v9543_v17 = vld [vmem:[#allocation3 + $0x6c] sm:$0xe] }
 0x5c6   : > { %v20045_v20 = vadd.f32 %v14102_v11, %v13990_v15  ;;  %v9640_v45 = vrot.slane %v14981_v31, 5  ;;  %v9647_v26 = vrot.slane %v14982_v41, 5  ;;  %v12608_v36 = vrot.slane %v9541_v13, 9  ;;  %v9544_v11 = vld [vmem:[#allocation3 + $0x78] sm:$0xe] }
 0x5c7   : > { %v14103_v18 = vpop.f32.mrf.mxu0  ;;  %v13991_v48 = vpop.f32.mrf.mxu1  ;;  %v9651_v7 = vrot.slane %v14983_v25, 5  ;;  %v12609_v62 = vrot.slane %v9542_v23, 9  ;;  %v9658_v27 = vrot.slane %v14984_v58, 5  ;;  %v9696_v13 = vrot.slane %v19806_v53, 5 }
 0x5c8   : > { %v9641_v21 = vsel %vm15940_vm12, %v9639_v44, %v9640_v45  ;;  %v9648_v52 = vsel %vm15940_vm12, %v9646_v56, %v9647_v26  ;;  %v9638_v51 = vsel %vm15940_vm12, %v12608_v36, %v9637_v42  ;;  %v14985_v44 = vld [vmem:[#allocation3 + $0x74] sm:$0x1]  ;;  %v12610_v56 = vrot.slane %v9543_v17, 9 }
 0x5c9   : > { %14450 = vmatmul.mubr.bf16.gmra.mxu1 %v12750_v39  ;;  %v14104_v1 = vpop.f32.mrf.mxu0  ;;  %v13992_v49 = vpop.f32.mrf.mxu1  ;;  %v12752_v8 = vcombine.low %v9638_v51, %v9641_v21  ;;  %v9645_v28 = vsel %vm15940_vm12, %v12609_v62, %v9644_v24  ;;  %v9653_v15 = vrot.slane %v9651_v7, 4  ;;  %v9654_v42 = vrot.slane %v14985_v44, 5  ;;  %v9546_v44 = vld [vmem:[#allocation3 + $0x90] sm:$0xe] }
 0x5ca   : > { %14453 = vmatprep.mubr.bf16.mxu1 %v12751_v2  ;;  %v14105_v16 = vadd.f32 %v14104_v1, %v14103_v18  ;;  %v13993_v5 = vadd.f32 %v13992_v49, %v13991_v48  ;;  %v12753_v6 = vcombine.low %v9645_v28, %v9648_v52  ;;  %v9549_v18 = vld [vmem:[#allocation3 + $0xb4] sm:$0xe]  ;;  %v9660_v48 = vrot.slane %v9658_v27, 4  ;;  %v14986_v49 = vld [vmem:[#allocation3 + $0x80] sm:$0x1] }
 0x5cb   : > { %v14106_v47 = vpop.f32.mrf.mxu0  ;;  %v13994_v60 = vpop.f32.mrf.mxu1  ;;  %v9693_v2 = vrot.slane %v19794_v43, 5  ;;  %v12611_v1 = vrot.slane %v9544_v11, 9  ;;  %v9661_v31 = vrot.slane %v14986_v49, 5  ;;  %v12616_v23 = vrot.slane %v9549_v18, 9 }
 0x5cc   : > { %v20049_v35 = vadd.f32 %v14105_v16, %v13993_v5  ;;  %v9550_v5 = vld [vmem:[#allocation3 + $0xc0] sm:$0xe]  ;;  %v9652_v41 = vsel %vm15940_vm12, %v12610_v56, %v9651_v7  ;;  %v9655_v43 = vsel %vm15940_vm12, %v9653_v15, %v9654_v42  ;;  %v9700_v36 = vrot.slane %v19853_v29, 5 }
 0x5cd   : > { %v14107_v10 = vpop.f32.mrf.mxu0  ;;  %v13995_v38 = vpop.f32.mrf.mxu1  ;;  %v9695_v16 = vrot.slane %v9693_v2, 4  ;;  %v9662_v21 = vsel %vm15940_vm12, %v9660_v48, %v9661_v31  ;;  %v9672_v25 = vrot.slane %v19631_v4, 5  ;;  %v20071_v62 = vsel %vm15940_vm12, %v12616_v23, %v9693_v2  ;;  %v14988_v48 = vld [vmem:[#allocation3 + $0x8c] sm:$0x1] }
 0x5ce   : > { %v14108_v37 = vadd.f32 %v14107_v10, %v14106_v47  ;;  %v13996_v63 = vadd.f32 %v13995_v38, %v13994_v60  ;;  %v14987_v47 = vld [vmem:[#allocation3 + $0x88] sm:$0xf]  ;;  %v12617_v38 = vrot.slane %v9550_v5, 9  ;;  %v9702_v29 = vrot.slane %v9700_v36, 4 }
 0x5cf   : > { %v9665_v60 = vrot.slane %v14987_v47, 5  ;;  %v20075_v7 = vsel %vm15940_vm12, %v9695_v16, %v9696_v13  ;;  %v9703_v51 = vrot.slane %v19855_v0, 5  ;;  %v9659_v4 = vsel %vm15940_vm12, %v12611_v1, %v9658_v27  ;;  %v20954_v13 = vld [vmem:[#allocation58_spill] sm:$0xff] }
 0x5d0   : > { %v20057_v39 = vadd.f32 %v14108_v37, %v13996_v63  ;;  %v13997_v33 = vpop.f32.mrf.mxu1  ;;  %v12760_v10 = vcombine.low %v20071_v62, %v20075_v7  ;;  %v12754_v37 = vcombine.low %v9652_v41, %v9655_v43  ;;  %v12755_v28 = vcombine.low %v9659_v4, %v9662_v21  ;;  %v9548_v4 = vld [vmem:[#allocation3 + $0xa8] sm:$0xe] }
 0x5d1   : > { %14454 = vmatmul.mubr.bf16.gmra.mxu1 %v12752_v8  ;;  %v9667_v17 = vrot.slane %v9665_v60, 4  ;;  %v20088_v15 = vsel %vm15940_vm12, %v9702_v29, %v9703_v51  ;;  %v9674_v0 = vrot.slane %v9672_v25, 4  ;;  %v9668_v2 = vrot.slane %v14988_v48, 5  ;;  %v9547_v29 = vld [vmem:[#allocation3 + $0x9c] sm:$0xe] }
 0x5d2   : > { %14457 = vmatprep.mubr.bf16.mxu1 %v12753_v6  ;;  %v13998_v24 = vpop.f32.mrf.mxu1  ;;  %v20084_v6 = vsel %vm15940_vm12, %v12617_v38, %v9700_v36  ;;  %v9675_v56 = vrot.slane %v20954_v13, 5  ;;  %v9679_v23 = vrot.slane %v19690_v54, 5  ;;  %v9686_v41 = vrot.slane %v19735_v19, 5 }
 0x5d3   : > { %v13999_v45 = vadd.f32 %v13998_v24, %v13997_v33  ;;  %v9545_v33 = vld [vmem:[#allocation3 + $0x84] sm:$0xe]  ;;  %v12761_v27 = vcombine.low %v20084_v6, %v20088_v15  ;;  %v9669_v49 = vsel %vm15940_vm12, %v9667_v17, %v9668_v2  ;;  %v9682_v19 = vrot.slane %v19692_v30, 5 }
 0x5d4   : > { %v14109_v26 = vpop.f32.mrf.mxu0  ;;  %v14000_v53 = vpop.f32.mrf.mxu1  ;;  %v12612_v24 = vrot.slane %v9545_v33, 9  ;;  %v9676_v16 = vsel %vm15940_vm12, %v9674_v0, %v9675_v56  ;;  %v9681_v54 = vrot.slane %v9679_v23, 4  ;;  %v9688_v51 = vrot.slane %v9686_v41, 4 }
 0x5d5   : > { %v12615_v48 = vrot.slane %v9548_v4, 9 }
 0x5d6   : > { %v14110_v52 = vpop.f32.mrf.mxu0  ;;  %v14001_v58 = vpop.f32.mrf.mxu1  ;;  %v9666_v43 = vsel %vm15940_vm12, %v12612_v24, %v9665_v60  ;;  %v9683_v33 = vsel %vm15940_vm12, %v9681_v54, %v9682_v19 }
 0x5d7   : > { %v14111_v63 = vadd.f32 %v14110_v52, %v14109_v26  ;;  %v14002_v8 = vadd.f32 %v14001_v58, %v14000_v53  ;;  %v12756_v53 = vcombine.low %v9666_v43, %v9669_v49 }
 0x5d8   : > { %v14112_v11 = vpop.f32.mrf.mxu0 }
 0x5d9   : > { %14458 = vmatmul.mubr.bf16.gmra.mxu1 %v12754_v37  ;;  %v20090_v18 = vadd.f32 %v14111_v63, %v13999_v45  ;;  %v12613_v45 = vrot.slane %v9546_v44, 9 }
 0x5da   : > { %14461 = vmatprep.mubr.bf16.mxu1 %v12755_v28  ;;  %v14113_v42 = vpop.f32.mrf.mxu0 }
 0x5db   : > { %v14114_v1 = vadd.f32 %v14113_v42, %v14112_v11  ;;  %v9673_v36 = vsel %vm15940_vm12, %v12613_v45, %v9672_v25  ;;  %v12614_v11 = vrot.slane %v9547_v29, 9 }
 0x5dc   : > { %v14115_v31 = vpop.f32.mrf.mxu0  ;;  %v12757_v52 = vcombine.low %v9673_v36, %v9676_v16 }
 0x5dd   : > { %v20100_v5 = vadd.f32 %v14114_v1, %v14002_v8  ;;  %v14003_v26 = vpop.f32.mrf.mxu1  ;;  %v20955_v8 = vld [vmem:[#allocation62_spill] sm:$0xff]  ;;  %v9680_v42 = vsel %vm15940_vm12, %v12614_v11, %v9679_v23  ;;  %v9687_v1 = vsel %vm15940_vm12, %v12615_v48, %v9686_v41 }
 0x5de   : > { %v14116_v47 = vpop.f32.mrf.mxu0  ;;  %v9689_v28 = vrot.slane %v20955_v8, 5  ;;  %v12758_v56 = vcombine.low %v9680_v42, %v9683_v33 }
 0x5df   : > { %v14117_v21 = vadd.f32 %v14116_v47, %v14115_v31  ;;  %v14004_v58 = vpop.f32.mrf.mxu1 }
 0x5e0   : > { %v14118_v38 = vpop.f32.mrf.mxu0  ;;  %v14005_v37 = vadd.f32 %v14004_v58, %v14003_v26  ;;  %v9690_v2 = vsel %vm15940_vm12, %v9688_v51, %v9689_v28 }
 0x5e1   : > { %14462 = vmatmul.mubr.bf16.gmra.mxu1 %v12756_v53  ;;  %v14006_v60 = vpop.f32.mrf.mxu1  ;;  %v12759_v31 = vcombine.low %v9687_v1, %v9690_v2  ;;  %v9707_v53 = vrot.slane %v19937_v9, 5 }
 0x5e2   : > { %14465 = vmatprep.mubr.bf16.mxu1 %v12757_v52  ;;  %v14119_v63 = vpop.f32.mrf.mxu0  ;;  %v20109_v17 = vadd.f32 %v14117_v21, %v14005_v37  ;;  %v9551_v21 = vld [vmem:[#allocation3 + $0xcc] sm:$0xe] }
 0x5e3   : > { %v14120_v25 = vadd.f32 %v14119_v63, %v14118_v38  ;;  %v14007_v0 = vpop.f32.mrf.mxu1  ;;  %v9710_v38 = vrot.slane %v19998_v46, 5  ;;  %v12618_v29 = vrot.slane %v9551_v21, 9  ;;  %v9709_v51 = vrot.slane %v9707_v53, 4 }
 0x5e4   : > { %v14008_v44 = vadd.f32 %v14007_v0, %v14006_v60 }
 0x5e5   : > { %v14121_v30 = vpop.f32.mrf.mxu0  ;;  %v14009_v13 = vpop.f32.mrf.mxu1  ;;  %v9708_v63 = vsel %vm15940_vm12, %v12618_v29, %v9707_v53  ;;  %v9711_v46 = vsel %vm15940_vm12, %v9709_v51, %v9710_v38  ;;  %v20962_v38 = vld [vmem:[#allocation50_spill] sm:$0xff]  ;;  %v20963_v29 = vld [vmem:[#allocation52_spill] sm:$0xff] }
 0x5e6   : > { %v20119_v24 = vadd.f32 %v14120_v25, %v14008_v44  ;;  %v12762_v0 = vcombine.low %v9708_v63, %v9711_v46  ;;  %v14042_v51 = vadd.f32 %v20963_v29, %v20962_v38  ;;  %v20965_v63 = vld [vmem:[#allocation51_spill] sm:$0xff]  ;;  %v20966_v46 = vld [vmem:[#allocation53_spill] sm:$0xff] }
 0x5e7   : > { %v14122_v49 = vpop.f32.mrf.mxu0  ;;  %v14010_v16 = vpop.f32.mrf.mxu1 }
 0x5e8   : > { %v14123_v45 = vadd.f32 %v14122_v49, %v14121_v30  ;;  %v14011_v43 = vadd.f32 %v14010_v16, %v14009_v13  ;;  %v20959_v16 = vld [vmem:[#allocation48_spill] sm:$0xff] }
 0x5e9   : > { %14466 = vmatmul.mubr.bf16.gmra.mxu1 %v12758_v56  ;;  %v14124_v26 = vpop.f32.mrf.mxu0  ;;  %v14012_v47 = vpop.f32.mrf.mxu1 }
 0x5ea   : > { %14469 = vmatprep.mubr.bf16.mxu1 %v12759_v31  ;;  %v20122_v36 = vadd.f32 %v14123_v45, %v14011_v43  ;;  %v20958_v45 = vld [vmem:[#allocation27_spill] sm:$0xff] }
 0x5eb   : > { %v14125_v23 = vpop.f32.mrf.mxu0  ;;  %v14013_v54 = vpop.f32.mrf.mxu1  ;;  %v13927_v43 = vadd.f32 %v20959_v16, %v20958_v45  ;;  %v20968_v45 = vld [vmem:[#allocation35_spill] sm:$0xff] }
 0x5ec   : > { %v14126_v52 = vadd.f32 %v14125_v23, %v14124_v26  ;;  %v14014_v41 = vadd.f32 %v14013_v54, %v14012_v47  ;;  %v20960_v26 = vld [vmem:[#allocation28_spill] sm:$0xff]  ;;  %v20961_v47 = vld [vmem:[#allocation29_spill] sm:$0xff] }
 0x5ed   : > { %v14127_v58 = vpop.f32.mrf.mxu0  ;;  %v14039_v53 = vadd.f32 %v20961_v47, %v20960_v26 }
 0x5ee   : > { %v20125_v37 = vadd.f32 %v14126_v52, %v14014_v41 }
 0x5ef   : > { %v14128_v19 = vpop.f32.mrf.mxu0 }
 0x5f0   : > { %v14015_v4 = vpop.f32.mrf.mxu1  ;;  %v14129_v60 = vadd.f32 %v14128_v19, %v14127_v58  ;;  %v11108_v58 = vadd.f32 %v14039_v53, %v13927_v43 }
 0x5f1   : > { %14470 = vmatmul.mubr.bf16.gmra.mxu1 %v12760_v10  ;;  %v14130_v9 = vpop.f32.mrf.mxu0 }
 0x5f2   : > { %14473 = vmatprep.mubr.bf16.mxu1 %v12761_v27  ;;  %v14016_v8 = vpop.f32.mrf.mxu1 }
 0x5f3   : > { %v14017_v28 = vadd.f32 %v14016_v8, %v14015_v4  ;;  %v14131_v25 = vpop.f32.mrf.mxu0  ;;  %v13930_v8 = vadd.f32 %v20966_v46, %v20965_v63 }
 0x5f4   : > { %v14018_v11 = vpop.f32.mrf.mxu1  ;;  %v14132_v33 = vadd.f32 %v14131_v25, %v14130_v9 }
 0x5f5   : > { %v20137_v48 = vadd.f32 %v14129_v60, %v14017_v28  ;;  %v14261_v62 = vpop.f32.mrf.mxu0  ;;  %v20964_v60 = vld [vmem:[#allocation32_spill] sm:$0xff] }
 0x5f6   : > { %v14019_v7 = vpop.f32.mrf.mxu1 }
 0x5f7   : > { %20956 = vst [vmem:[#allocation37_spill] sm:$0xff] %v20137_v48  ;;  %v14020_v10 = vadd.f32 %v14019_v7, %v14018_v11  ;;  %v14262_v2 = vpop.f32.mrf.mxu0 }
 0x5f8   : > { %v14149_v6 = vpop.f32.mrf.mxu1  ;;  %v14263_v15 = vadd.f32 %v14262_v2, %v14261_v62 }
 0x5f9   : > { %14474 = vmatmul.mubr.bf16.gmra.mxu1 %v12762_v0  ;;  %v20139_v27 = vadd.f32 %v14132_v33, %v14020_v10  ;;  %v14264_v44 = vpop.f32.mrf.mxu0  ;;  %v11111_v0 = vadd.f32 %v14042_v51, %v13930_v8  ;;  %v20967_v10 = vld [vmem:[#allocation61_spill] sm:$0xff] }
 0x5fa   : > { %v14150_v3 = vpop.f32.mrf.mxu1 }
 0x5fb   : > { %20957 = vst [vmem:[#allocation31_spill] sm:$0xff] %v20139_v27  ;;  %v14151_v30 = vadd.f32 %v14150_v3, %v14149_v6  ;;  %v14265_v42 = vpop.f32.mrf.mxu0 }
 0x5fc   : > { %v14152_v13 = vpop.f32.mrf.mxu1  ;;  %v14266_v56 = vadd.f32 %v14265_v42, %v14264_v44 }
 0x5fd   : > { %v11269_v28 = vadd.f32 %v14151_v30, %v11108_v58 }
 0x5fe   : > { %v14153_v1 = vpop.f32.mrf.mxu1  ;;  %v20141_v49 = vpop.f32.mrf.mxu0 }
 0x5ff   : > { %v14154_v31 = vadd.f32 %v14153_v1, %v14152_v13  ;;  %v20169_v42 = vadd.f32 %v14263_v15, %v11269_v28  ;;  %v20971_v28 = vld [vmem:[#allocation43_spill] sm:$0xff] }
 0x600   : > { %v14155_v23 = vpop.f32.mrf.mxu1  ;;  %v20147_v21 = vpop.f32.mrf.mxu0 }
 0x601   : > { %v11272_v6 = vadd.f32 %v14154_v31, %v11111_v0 }
 0x602   : > { %v14156_v52 = vpop.f32.mrf.mxu1  ;;  %v20149_v54 = vpop.f32.mrf.mxu0 }
 0x603   : > { %v14157_v41 = vadd.f32 %v14156_v52, %v14155_v23  ;;  %v20178_v47 = vadd.f32 %v14266_v56, %v11272_v6  ;;  %v20969_v52 = vld [vmem:[#allocation63_spill] sm:$0xff] }
 0x604   : > { %v14158_v19 = vpop.f32.mrf.mxu1  ;;  %v20153_v4 = vpop.f32.mrf.mxu0 }
 0x605   : > { %v20156_v9 = vadd.f32 %v14157_v41, %v20964_v60 }
 0x606   : > { %v14159_v25 = vpop.f32.mrf.mxu1  ;;  %v20160_v11 = vpop.f32.mrf.mxu0 }
 0x607   : > { %v14160_v33 = vadd.f32 %v14159_v25, %v14158_v19  ;;  %v20970_v19 = vld [vmem:[#allocation54_spill] sm:$0xff] }
 0x608   : > { %v14161_v62 = vpop.f32.mrf.mxu1  ;;  %v20162_v7 = vpop.f32.mrf.mxu0 }
 0x609   : > { %v20165_v2 = vadd.f32 %v14160_v33, %v20967_v10 }
 0x60a   : > { %v14162_v44 = vpop.f32.mrf.mxu1  ;;  %v20167_v3 = vpop.f32.mrf.mxu0 }
 0x60b   : > { %v14163_v13 = vadd.f32 %v14162_v44, %v14161_v62  ;;  %v20972_v44 = vld [vmem:[#allocation55_spill] sm:$0xff] }
 0x60c   : > { %v14164_v1 = vpop.f32.mrf.mxu1  ;;  %v20171_v30 = vpop.f32.mrf.mxu0 }
 0x60d   : > { %v20174_v16 = vadd.f32 %v14163_v13, %v20968_v45 }
 0x60e   : > { %v14165_v43 = vpop.f32.mrf.mxu1  ;;  %v20176_v26 = vpop.f32.mrf.mxu0 }
 0x60f   : > { %v14166_v53 = vadd.f32 %v14165_v43, %v14164_v1 }
 0x610   : > { %v14167_v23 = vpop.f32.mrf.mxu1  ;;  %v20180_v31 = vpop.f32.mrf.mxu0 }
 0x611   : > { %v20183_v41 = vadd.f32 %v14166_v53, %v20969_v52  ;;  %v20973_v52 = vld [vmem:[#allocation44_spill] sm:$0xff] }
 0x612   : > { %v14168_v15 = vpop.f32.mrf.mxu1  ;;  %v20185_v58 = vpop.f32.mrf.mxu0 }
 0x613   : > { %v14169_v38 = vadd.f32 %v14168_v15, %v14167_v23 }
 0x614   : > { %v14170_v29 = vpop.f32.mrf.mxu1  ;;  %v20187_v51 = vpop.f32.mrf.mxu0 }
 0x615   : > { %v20190_v60 = vadd.f32 %v14169_v38, %v20970_v19 }
 0x616   : > { %v14171_v63 = vpop.f32.mrf.mxu1 }
 0x617   : > { %v14172_v56 = vadd.f32 %v14171_v63, %v14170_v29  ;;  %v20192_v46 = vpop.f32.mrf.mxu0 }
 0x618   : > { %v14173_v8 = vpop.f32.mrf.mxu1 }
 0x619   : > { %v20195_v25 = vadd.f32 %v14172_v56, %v20971_v28  ;;  %v20197_v33 = vpop.f32.mrf.mxu0 }
 0x61a   : > { %v14174_v0 = vpop.f32.mrf.mxu1 }
 0x61b   : > { %v14175_v62 = vadd.f32 %v14174_v0, %v14173_v8  ;;  %v20199_v10 = vpop.f32.mrf.mxu0 }
 0x61c   : > { %v14176_v6 = vpop.f32.mrf.mxu1 }
 0x61d   : > { %v20202_v13 = vadd.f32 %v14175_v62, %v20972_v44  ;;  %v20204_v1 = vpop.f32.mrf.mxu0 }
 0x61e   : > { %v14177_v45 = vpop.f32.mrf.mxu1 }
 0x61f   : > { %v14178_v43 = vadd.f32 %v14177_v45, %v14176_v6  ;;  %v20206_v53 = vpop.f32.mrf.mxu0 }
 0x620   : > { %v14179_v23 = vpop.f32.mrf.mxu1 }
 0x621   : > { %v20209_v15 = vadd.f32 %v14178_v43, %v20973_v52  ;;  %v20211_v38 = vpop.f32.mrf.mxu0 }
 0x622   : > { %v14180_v29 = vpop.f32.mrf.mxu1 }
 0x623   : > { %20974 = vst [vmem:[#allocation36_spill] sm:$0xff] %v20209_v15  ;;  %v14181_v19 = vadd.f32 %v14180_v29, %v14179_v23  ;;  %v20213_v63 = vpop.f32.mrf.mxu0 }
 0x624   : > { %v14182_v56 = vpop.f32.mrf.mxu1 }
 0x625   : > { %v20216_v8 = vadd.f32 %v14181_v19, %v19899_v32  ;;  %v20218_v28 = vpop.f32.mrf.mxu0 }
 0x626   : > { %v14183_v0 = vpop.f32.mrf.mxu1 }
 0x627   : > { %v14184_v62 = vadd.f32 %v14183_v0, %v14182_v56  ;;  %v20220_v6 = vpop.f32.mrf.mxu0 }
 0x628   : > { %20975 = vst [vmem:[#allocation45_spill] sm:$0xff] %v20220_v6  ;;  %v14185_v44 = vpop.f32.mrf.mxu1 }
 0x629   : > { %v20223_v45 = vadd.f32 %v14184_v62, %v19903_v61  ;;  %v20225_v43 = vpop.f32.mrf.mxu0 }
 0x62a   : > { %20976 = vst [vmem:[#allocation26_spill] sm:$0xff] %v20225_v43  ;;  %v14186_v52 = vpop.f32.mrf.mxu1 }
 0x62b   : > { %v14187_v23 = vadd.f32 %v14186_v52, %v14185_v44  ;;  %v20227_v29 = vpop.f32.mrf.mxu0 }
 0x62c   : > { %20977 = vst [vmem:[#allocation56_spill] sm:$0xff] %v20227_v29  ;;  %v14188_v27 = vpop.f32.mrf.mxu1 }
 0x62d   : > { %v20230_v32 = vadd.f32 %v14187_v23, %v19941_v50  ;;  %v20232_v19 = vpop.f32.mrf.mxu0 }
 0x62e   : > { %20979 = vst [vmem:[#allocation38_spill] sm:$0xff] %v20232_v19  ;;  %v14189_v48 = vpop.f32.mrf.mxu1 }
 0x62f   : > { %20978 = vst [vmem:[#allocation46_spill] sm:$0xff] %v20230_v32  ;;  %v14190_v56 = vadd.f32 %v14189_v48, %v14188_v27  ;;  %v20234_v0 = vpop.f32.mrf.mxu0 }
 0x630   : > { %v14191_v6 = vpop.f32.mrf.mxu1 }
 0x631   : > { %v20237_v61 = vadd.f32 %v14190_v56, %v19947_v59  ;;  %v20239_v62 = vpop.f32.mrf.mxu0 }
 0x632   : > { %v14192_v43 = vpop.f32.mrf.mxu1 }
 0x633   : > { %20980 = vst [vmem:[#allocation41_spill] sm:$0xff] %v20237_v61  ;;  %v14193_v44 = vadd.f32 %v14192_v43, %v14191_v6  ;;  %v20241_v52 = vpop.f32.mrf.mxu0 }
 0x634   : > { %v14194_v29 = vpop.f32.mrf.mxu1 }
 0x635   : > { %v20244_v50 = vadd.f32 %v14193_v44, %v19975_v12  ;;  %v20246_v23 = vpop.f32.mrf.mxu0 }
 0x636   : > { %20981 = vst [vmem:[#allocation39_spill] sm:$0xff] %v20246_v23  ;;  %v14195_v19 = vpop.f32.mrf.mxu1 }
 0x637   : > { %v14196_v48 = vadd.f32 %v14195_v19, %v14194_v29  ;;  %v20251_v59 = vpop.f32.mrf.mxu0 }
 0x638   : > { %v14197_v27 = vpop.f32.mrf.mxu1  ;;  %20983 = vst [vmem:[#allocation60_spill] sm:$0xff] %v20251_v59 }
 0x639   : > { %v20249_v32 = vadd.f32 %v14196_v48, %v19992_v57  ;;  %v20256_v43 = vpop.f32.mrf.mxu0 }
 0x63a   : > { %v14198_v56 = vpop.f32.mrf.mxu1 }
 0x63b   : > { %20982 = vst [vmem:[#allocation33_spill] sm:$0xff] %v20249_v32  ;;  %v14199_v61 = vadd.f32 %v14198_v56, %v14197_v27  ;;  %v20261_v29 = vpop.f32.mrf.mxu0 }
 0x63c   : > { %v14200_v15 = vpop.f32.mrf.mxu1  ;;  %20986 = vst [vmem:[#allocation40_spill] sm:$0xff] %v20261_v29 }
 0x63d   : > { %v20254_v6 = vadd.f32 %v14199_v61, %v20010_v55  ;;  %v20263_v32 = vpop.f32.mrf.mxu0 }
 0x63e   : > { %v14201_v12 = vpop.f32.mrf.mxu1  ;;  %20987 = vst [vmem:[#allocation42_spill] sm:$0xff] %v20263_v32 }
 0x63f   : > { %20984 = vst [vmem:[#allocation59_spill] sm:$0xff] %v20254_v6  ;;  %v14202_v44 = vadd.f32 %v14201_v12, %v14200_v15  ;;  %v20268_v56 = vpop.f32.mrf.mxu0 }
 0x641   : > { %v20259_v23 = vadd.f32 %v14202_v44, %v20012_v22  ;;  %v20273_v12 = vpop.f32.mrf.mxu0 }
 0x642   : > { %v14203_v19 = vpop.f32.mrf.mxu1 }
 0x643   : > { %20985 = vst [vmem:[#allocation34_spill] sm:$0xff] %v20259_v23 }
 0x644   : > { %v14204_v57 = vpop.f32.mrf.mxu1 }
 0x645   : > { %v14205_v48 = vadd.f32 %v14204_v57, %v14203_v19  ;;  %v20278_v57 = vpop.f32.mrf.mxu0 }
 0x646   : > { %v14206_v59 = vpop.f32.mrf.mxu1 }
 0x647   : > { %v20266_v27 = vadd.f32 %v14205_v48, %v20030_v14  ;;  %v20283_v32 = vpop.f32.mrf.mxu0 }
 0x648   : > { %v14207_v55 = vpop.f32.mrf.mxu1 }
 0x649   : > { %v14208_v61 = vadd.f32 %v14207_v55, %v14206_v59  ;;  %v20285_v6 = vpop.f32.mrf.mxu0 }
 0x64a   : > { %20991 = vst [vmem:[#allocation25_spill] sm:$0xff] %v20285_v6 }
 0x64b   : > { %v20271_v15 = vadd.f32 %v14208_v61, %v20032_v40  ;;  %v14209_v22 = vpop.f32.mrf.mxu1 }
 0x64d   : > { %20988 = vst [vmem:[#allocation57_spill] sm:$0xff] %v20271_v15  ;;  %v14210_v44 = vpop.f32.mrf.mxu1 }
 0x64e   : > { %v14211_v23 = vadd.f32 %v14210_v44, %v14209_v22  ;;  %v20290_v44 = vpop.f32.mrf.mxu0 }
 0x64f   : > { %v14212_v29 = vpop.f32.mrf.mxu1 }
 0x650   : > { %v20276_v19 = vadd.f32 %v14211_v23, %v20043_v34 }
 0x651   : > { %v14213_v14 = vpop.f32.mrf.mxu1 }
 0x652   : > { %20989 = vst [vmem:[#allocation24_spill] sm:$0xff] %v20276_v19  ;;  %v14214_v48 = vadd.f32 %v14213_v14, %v14212_v29 }
 0x654   : > { %v20281_v59 = vadd.f32 %v14214_v48, %v20045_v20  ;;  %v14215_v55 = vpop.f32.mrf.mxu1 }
 0x656   : > { %20990 = vst [vmem:[#allocation47_spill] sm:$0xff] %v20281_v59  ;;  %v14216_v40 = vpop.f32.mrf.mxu1  ;;  %v20295_v59 = vpop.f32.mrf.mxu0 }
 0x657   : > { %v14217_v61 = vadd.f32 %v14216_v40, %v14215_v55 }
 0x658   : > { %v14218_v15 = vpop.f32.mrf.mxu1 }
 0x659   : > { %v20288_v22 = vadd.f32 %v14217_v61, %v20049_v35  ;;  %v20300_v35 = vpop.f32.mrf.mxu0 }
 0x65a   : > { %v14219_v34 = vpop.f32.mrf.mxu1  ;;  %20994 = vst [vmem:[#allocation58_spill] sm:$0xff] %v20300_v35 }
 0x65b   : > { %v14220_v23 = vadd.f32 %v14219_v34, %v14218_v15  ;;  %v20305_v34 = vpop.f32.mrf.mxu0 }
 0x65d   : > { %v20293_v29 = vadd.f32 %v14220_v23, %v20057_v39 }
 0x65e   : > { %v14221_v20 = vpop.f32.mrf.mxu1 }
 0x65f   : > { %20992 = vst [vmem:[#allocation30_spill] sm:$0xff] %v20293_v29 }
 0x660   : > { %v14222_v14 = vpop.f32.mrf.mxu1 }
 0x661   : > { %v14223_v48 = vadd.f32 %v14222_v14, %v14221_v20  ;;  %v20310_v14 = vpop.f32.mrf.mxu0 }
 0x662   : > { %v14224_v19 = vpop.f32.mrf.mxu1 }
 0x663   : > { %v20298_v55 = vadd.f32 %v14223_v48, %v20090_v18 }
 0x664   : > { %v14225_v40 = vpop.f32.mrf.mxu1 }
 0x665   : > { %20993 = vst [vmem:[#allocation49_spill] sm:$0xff] %v20298_v55  ;;  %v14226_v6 = vadd.f32 %v14225_v40, %v14224_v19  ;;  %v20315_v55 = vpop.f32.mrf.mxu0 }
 0x667   : > { %v20303_v15 = vadd.f32 %v14226_v6, %v20100_v5  ;;  %v20317_v35 = vpop.f32.mrf.mxu0 }
 0x668   : > { %v14227_v61 = vpop.f32.mrf.mxu1 }
 0x669   : > { %20995 = vst [vmem:[#allocation62_spill] sm:$0xff] %v20303_v15 }
 0x66a   : > { %v14228_v39 = vpop.f32.mrf.mxu1 }
 0x66b   : > { %v14229_v23 = vadd.f32 %v14228_v39, %v14227_v61 }
 0x66c   : > { %v14230_v29 = vpop.f32.mrf.mxu1 }
 0x66d   : > { %v20308_v20 = vadd.f32 %v14229_v23, %v20109_v17 }
 0x66e   : > { %v14231_v18 = vpop.f32.mrf.mxu1 }
 0x66f   : > { %v14232_v48 = vadd.f32 %v14231_v18, %v14230_v29  ;;  %v20324_v29 = vpop.f32.mrf.mxu0 }
 0x671   : > { %v20313_v19 = vadd.f32 %v14232_v48, %v20119_v24  ;;  %v14233_v40 = vpop.f32.mrf.mxu1 }
 0x673   : > { %20996 = vst [vmem:[#allocation27_spill] sm:$0xff] %v20313_v19  ;;  %v14234_v5 = vpop.f32.mrf.mxu1 }
 0x674   : > { %v14235_v6 = vadd.f32 %v14234_v5, %v14233_v40  ;;  %v14269_v40 = vadd.f32 %v20147_v21, %v20141_v49  ;;  %v20335_v5 = vpop.f32.mrf.mxu0  ;;  %v20352_v49 = vld [vmem:[%s20616_s9] ss:$0 sm:$0xff] }
 0x675   : > { %v14236_v15 = vpop.f32.mrf.mxu1 }
 0x676   : > { %v20320_v61 = vadd.f32 %v14235_v6, %v20122_v36 }
 0x677   : > { %v14237_v17 = vpop.f32.mrf.mxu1 }
 0x678   : > { %20997 = vst [vmem:[#allocation48_spill] sm:$0xff] %v20320_v61  ;;  %v14238_v39 = vadd.f32 %v14237_v17, %v14236_v15  ;;  %v11438_v15 = vadd.f32 %v14269_v40, %v20156_v9  ;;  %v20343_v17 = vld [vmem:[%s20615_s8] ss:$0 sm:$0xff] }
 0x679   : > { %v20322_v23 = vpop.f32.mrf.mxu1 }
 0x67a   : > { %v20327_v24 = vadd.f32 %v14238_v39, %v20125_v37  ;;  %v14272_v37 = vadd.f32 %v20153_v4, %v20149_v54  ;;  %v20347_v39 = vpop.f32.mrf.mxu0 }
 0x67b   : > { %v20329_v18 = vpop.f32.mrf.mxu1  ;;  %21001 = vst [vmem:[#allocation52_spill] sm:$0xff] %v20347_v39 }
 0x67c   : > { %20998 = vst [vmem:[#allocation28_spill] sm:$0xff] %v20327_v24  ;;  %v11441_v61 = vadd.f32 %v14272_v37, %v20165_v2 }
 0x67d   : > { %v20331_v48 = vpop.f32.mrf.mxu1 }
 0x67e   : > { %20999 = vst [vmem:[#allocation29_spill] sm:$0xff] %v20331_v48  ;;  %v14281_v48 = vadd.f32 %v20180_v31, %v20176_v26  ;;  %v14278_v31 = vadd.f32 %v20171_v30, %v20167_v3 }
 0x67f   : > { %v20337_v36 = vpop.f32.mrf.mxu1 }
 0x680   : > { %21000 = vst [vmem:[#allocation50_spill] sm:$0xff] %v20337_v36  ;;  %v20358_v36 = vpop.f32.mrf.mxu0 }
 0x681   : > { %v14447_v6 = vpop.f32.mrf.mxu1 }
 0x682   : > { %v11599_v24 = vadd.f32 %v14447_v6, %v11438_v15  ;;  %v14275_v6 = vadd.f32 %v20162_v7, %v20160_v11  ;;  %v20373_v11 = vpop.f32.mrf.mxu0 }
 0x683   : > { %v11590_v21 = vpop.f32.mrf.mxu1 }
 0x684   : > { %v11726_v9 = vmul.f32 %v20343_v17, %v11599_v24  ;;  %v11591_v40 = vadd.f32 %v11590_v21, %v20169_v42  ;;  %v11454_v21 = vadd.f32 %v14281_v48, %v20190_v60 }
 0x685   : > { %v14448_v19 = vpop.f32.mrf.mxu1 }
 0x686   : > { %v11765_v54 = vadd.f32 %v20352_v49, %v11726_v9  ;;  %v11724_v4 = vmul.f32 %v20343_v17, %v11591_v40  ;;  %v11602_v15 = vadd.f32 %v14448_v19, %v11441_v61  ;;  %v11446_v40 = vadd.f32 %v14275_v6, %v20174_v16  ;;  %v20389_v6 = vpop.f32.mrf.mxu0 }
 0x687   : > { %v11593_v39 = vpop.f32.mrf.mxu1  ;;  %v14284_v19 = vadd.f32 %v20187_v51, %v20185_v58 }
 0x688   : > { %v11797_v24 = vmax.f32 %v11765_v54, 0.0  ;;  %v11763_v42 = vadd.f32 %v20352_v49, %v11724_v4  ;;  %v11727_v2 = vmul.f32 %v20343_v17, %v11602_v15  ;;  %v11594_v37 = vadd.f32 %v11593_v39, %v20178_v47 }
 0x689   : > { %v14451_v9 = vpop.f32.mrf.mxu1  ;;  %v11457_v48 = vadd.f32 %v14284_v19, %v20195_v25  ;;  %v11449_v4 = vadd.f32 %v14278_v31, %v20183_v41  ;;  %v14293_v15 = vadd.f32 %v20211_v38, %v20206_v53  ;;  %v14290_v31 = vadd.f32 %v20204_v1, %v20199_v10 }
 0x68a   : > { %11829 = vst [vmem:[%s20375_s13 + $0x10] sm:$0xff] %v11797_v24  ;;  %v11795_v7 = vmax.f32 %v11763_v42, 0.0  ;;  %v11766_v26 = vadd.f32 %v20352_v49, %v11727_v2  ;;  %v11725_v47 = vmul.f32 %v20343_v17, %v11594_v37  ;;  %v11615_v16 = vadd.f32 %v14451_v9, %v11454_v21 }
 0x68b   : > { %v11606_v60 = vpop.f32.mrf.mxu1  ;;  %v14287_v42 = vadd.f32 %v20197_v33, %v20192_v46  ;;  %v11470_v38 = vadd.f32 %v14293_v15, %v20216_v8  ;;  %v14296_v21 = vadd.f32 %v20218_v28, %v20213_v63  ;;  %v20403_v33 = vpop.f32.mrf.mxu0  ;;  %v21004_v15 = vld [vmem:[#allocation26_spill] sm:$0xff] }
 0x68c   : > { %11827 = vst [vmem:[%s20375_s13] sm:$0xff] %v11795_v7  ;;  %v11798_v58 = vmax.f32 %v11766_v26, 0.0  ;;  %v11764_v51 = vadd.f32 %v20352_v49, %v11725_v47  ;;  %v11607_v61 = vadd.f32 %v11606_v60, %v11446_v40  ;;  %v11730_v39 = vmul.f32 %v20343_v17, %v11615_v16 }
 0x68d   : > { %v14452_v54 = vpop.f32.mrf.mxu1  ;;  %v11462_v46 = vadd.f32 %v14287_v42, %v20202_v13  ;;  %v11473_v63 = vadd.f32 %v14296_v21, %v20223_v45 }
 0x68e   : > { %11830 = vst [vmem:[%s20375_s13 + $0x18] sm:$0xff] %v11798_v58  ;;  %v11796_v3 = vmax.f32 %v11764_v51, 0.0  ;;  %v11728_v30 = vmul.f32 %v20343_v17, %v11607_v61  ;;  %v11618_v24 = vadd.f32 %v14452_v54, %v11457_v48  ;;  %v11769_v25 = vadd.f32 %v20352_v49, %v11730_v39  ;;  %v21002_v61 = vld [vmem:[#allocation36_spill] sm:$0xff]  ;;  %v20417_v39 = vpop.f32.mrf.mxu0 }
 0x68f   : > { %v11609_v2 = vpop.f32.mrf.mxu1  ;;  %v14305_v58 = vadd.f32 %v20239_v62, %v20234_v0  ;;  %v11465_v48 = vadd.f32 %v14290_v31, %v21002_v61  ;;  %v21009_v31 = vld [vmem:[#allocation33_spill] sm:$0xff] }
 0x690   : > { %11828 = vst [vmem:[%s20375_s13 + $0x8] sm:$0xff] %v11796_v3  ;;  %v11767_v41 = vadd.f32 %v20352_v49, %v11728_v30  ;;  %v11731_v37 = vmul.f32 %v20343_v17, %v11618_v24  ;;  %v11610_v53 = vadd.f32 %v11609_v2, %v11449_v4  ;;  %v11801_v9 = vmax.f32 %v11769_v25, 0.0  ;;  %v21003_v4 = vld [vmem:[#allocation45_spill] sm:$0xff]  ;;  %v21005_v2 = vld [vmem:[#allocation39_spill] sm:$0xff]  ;;  %v20431_v21 = vpop.f32.mrf.mxu0 }
 0x691   : > { %v14455_v40 = vpop.f32.mrf.mxu1  ;;  %v14299_v3 = vadd.f32 %v21004_v15, %v21003_v4  ;;  %v11486_v24 = vadd.f32 %v14305_v58, %v20244_v50  ;;  %v21010_v58 = vld [vmem:[#allocation41_spill] sm:$0xff] }
 0x692   : > { %v11799_v19 = vmax.f32 %v11767_v41, 0.0  ;;  %v11770_v7 = vadd.f32 %v20352_v49, %v11731_v37  ;;  %v11729_v26 = vmul.f32 %v20343_v17, %v11610_v53  ;;  %v11631_v47 = vadd.f32 %v14455_v40, %v11470_v38  ;;  %11833 = vst [vmem:[%s20375_s13 + $0x30] sm:$0xff] %v11801_v9  ;;  %v21006_v53 = vld [vmem:[#allocation46_spill] sm:$0xff]  ;;  %v20445_v61 = vpop.f32.mrf.mxu0 }
 0x693   : > { %v11622_v8 = vpop.f32.mrf.mxu1  ;;  %v14308_v41 = vadd.f32 %v21005_v2, %v20241_v52  ;;  %v11478_v38 = vadd.f32 %v14299_v3, %v21006_v53  ;;  %v21013_v53 = vld [vmem:[#allocation40_spill] sm:$0xff] }
 0x694   : > { %11831 = vst [vmem:[%s20375_s13 + $0x20] sm:$0xff] %v11799_v19  ;;  %v11802_v28 = vmax.f32 %v11770_v7, 0.0  ;;  %v11768_v13 = vadd.f32 %v20352_v49, %v11729_v26  ;;  %v11734_v16 = vmul.f32 %v20343_v17, %v11631_v47  ;;  %v11623_v60 = vadd.f32 %v11622_v8, %v11462_v46  ;;  %v21007_v19 = vld [vmem:[#allocation56_spill] sm:$0xff]  ;;  %v21008_v7 = vld [vmem:[#allocation38_spill] sm:$0xff]  ;;  %v20459_v2 = vpop.f32.mrf.mxu0 }
 0x695   : > { %v14456_v51 = vpop.f32.mrf.mxu1  ;;  %v14302_v26 = vadd.f32 %v21008_v7, %v21007_v19  ;;  %v11489_v8 = vadd.f32 %v14308_v41, %v21009_v31  ;;  %v21016_v31 = vld [vmem:[#allocation34_spill] sm:$0xff] }
 0x696   : > { %11834 = vst [vmem:[%s20375_s13 + $0x38] sm:$0xff] %v11802_v28  ;;  %v11800_v10 = vmax.f32 %v11768_v13, 0.0  ;;  %v11773_v1 = vadd.f32 %v20352_v49, %v11734_v16  ;;  %v11732_v45 = vmul.f32 %v20343_v17, %v11623_v60  ;;  %v11634_v54 = vadd.f32 %v14456_v51, %v11473_v63 }
 0x697   : > { %v11625_v30 = vpop.f32.mrf.mxu1  ;;  %v14317_v16 = vadd.f32 %v20273_v12, %v20268_v56  ;;  %v11481_v51 = vadd.f32 %v14302_v26, %v21010_v58  ;;  %v14329_v26 = vadd.f32 %v20310_v14, %v20305_v34 }
 0x698   : > { %11832 = vst [vmem:[%s20375_s13 + $0x28] sm:$0xff] %v11800_v10  ;;  %v11805_v0 = vmax.f32 %v11773_v1, 0.0  ;;  %v11771_v62 = vadd.f32 %v20352_v49, %v11732_v45  ;;  %v11735_v42 = vmul.f32 %v20343_v17, %v11634_v54  ;;  %v11626_v25 = vadd.f32 %v11625_v30, %v11465_v48  ;;  %v21011_v54 = vld [vmem:[#allocation60_spill] sm:$0xff] }
 0x699   : > { %v14459_v37 = vpop.f32.mrf.mxu1  ;;  %v14311_v4 = vadd.f32 %v20256_v43, %v21011_v54  ;;  %v11502_v3 = vadd.f32 %v14317_v16, %v20266_v27  ;;  %v14332_v54 = vadd.f32 %v20317_v35, %v20315_v55 }
 0x69a   : > { %11837 = vst [vmem:[%s20375_s13 + $0x50] sm:$0xff] %v11805_v0  ;;  %v11803_v9 = vmax.f32 %v11771_v62, 0.0  ;;  %v11774_v50 = vadd.f32 %v20352_v49, %v11735_v42  ;;  %v11733_v40 = vmul.f32 %v20343_v17, %v11626_v25  ;;  %v11647_v46 = vadd.f32 %v14459_v37, %v11486_v24  ;;  %v21012_v42 = vld [vmem:[#allocation59_spill] sm:$0xff] }
 0x69b   : > { %v11638_v47 = vpop.f32.mrf.mxu1  ;;  %v14320_v0 = vadd.f32 %v20283_v32, %v20278_v57  ;;  %v11494_v25 = vadd.f32 %v14311_v4, %v21012_v42 }
 0x69c   : > { %11835 = vst [vmem:[%s20375_s13 + $0x40] sm:$0xff] %v11803_v9  ;;  %v11806_v52 = vmax.f32 %v11774_v50, 0.0  ;;  %v11772_v63 = vadd.f32 %v20352_v49, %v11733_v40  ;;  %v11738_v28 = vmul.f32 %v20343_v17, %v11647_v46  ;;  %v11639_v13 = vadd.f32 %v11638_v47, %v11478_v38  ;;  %v21014_v38 = vld [vmem:[#allocation42_spill] sm:$0xff]  ;;  %v21015_v40 = vld [vmem:[#allocation57_spill] sm:$0xff] }
 0x69d   : > { %v14460_v60 = vpop.f32.mrf.mxu1  ;;  %v14314_v9 = vadd.f32 %v21014_v38, %v21013_v53  ;;  %v11505_v46 = vadd.f32 %v14320_v0, %v21015_v40  ;;  %v21021_v53 = vld [vmem:[#allocation47_spill] sm:$0xff] }
 0x69e   : > { %11838 = vst [vmem:[%s20375_s13 + $0x58] sm:$0xff] %v11806_v52  ;;  %v11804_v48 = vmax.f32 %v11772_v63, 0.0  ;;  %v11777_v10 = vadd.f32 %v20352_v49, %v11738_v28  ;;  %v11736_v1 = vmul.f32 %v20343_v17, %v11639_v13  ;;  %v11650_v45 = vadd.f32 %v14460_v60, %v11489_v8  ;;  %v20473_v52 = vpop.f32.mrf.mxu0  ;;  %v21017_v60 = vld [vmem:[#allocation25_spill] sm:$0xff] }
 0x69f   : > { %v11641_v15 = vpop.f32.mrf.mxu1  ;;  %v11497_v8 = vadd.f32 %v14314_v9, %v21016_v31  ;;  %v14323_v58 = vadd.f32 %v20290_v44, %v21017_v60  ;;  %v21022_v31 = vld [vmem:[#allocation52_spill] sm:$0xff] }
 0x6a0   : > { %11836 = vst [vmem:[%s20375_s13 + $0x48] sm:$0xff] %v11804_v48  ;;  %v11809_v56 = vmax.f32 %v11777_v10, 0.0  ;;  %v11775_v12 = vadd.f32 %v20352_v49, %v11736_v1  ;;  %v11739_v30 = vmul.f32 %v20343_v17, %v11650_v45  ;;  %v11642_v24 = vadd.f32 %v11641_v15, %v11481_v51  ;;  %v14351_v34 = vpop.f32.mrf.mxu0  ;;  %v21018_v15 = vld [vmem:[#allocation24_spill] sm:$0xff] }
 0x6a1   : > { %v14463_v62 = vpop.f32.mrf.mxu1  ;;  %v11518_v48 = vadd.f32 %v14329_v26, %v20288_v22 }
 0x6a2   : > { %11841 = vst [vmem:[%s20375_s13 + $0x70] sm:$0xff] %v11809_v56  ;;  %v11807_v43 = vmax.f32 %v11775_v12, 0.0  ;;  %v11778_v27 = vadd.f32 %v20352_v49, %v11739_v30  ;;  %v11737_v41 = vmul.f32 %v20343_v17, %v11642_v24  ;;  %v11663_v37 = vadd.f32 %v14463_v62, %v11502_v3  ;;  %v21019_v30 = vld [vmem:[#allocation58_spill] sm:$0xff] }
 0x6a3   : > { %v11654_v50 = vpop.f32.mrf.mxu1  ;;  %v11510_v3 = vadd.f32 %v14323_v58, %v21018_v15  ;;  %v14326_v24 = vadd.f32 %v21019_v30, %v20295_v59  ;;  %v21020_v62 = vld [vmem:[#allocation30_spill] sm:$0xff]  ;;  %v14347_v30 = vadd.f32 %v20445_v61, %v20431_v21 }
 0x6a4   : > { %11839 = vst [vmem:[%s20375_s13 + $0x60] sm:$0xff] %v11807_v43  ;;  %v11810_v32 = vmax.f32 %v11778_v27, 0.0  ;;  %v11776_v57 = vadd.f32 %v20352_v49, %v11737_v41  ;;  %v11742_v19 = vmul.f32 %v20343_v17, %v11663_v37  ;;  %v11655_v7 = vadd.f32 %v11654_v50, %v11494_v25  ;;  %v14352_v25 = vpop.f32.mrf.mxu0 }
 0x6a5   : > { %v14464_v47 = vpop.f32.mrf.mxu1  ;;  %v11521_v42 = vadd.f32 %v14332_v54, %v21020_v62  ;;  %v14341_v41 = vadd.f32 %v20389_v6, %v20373_v11  ;;  %v11513_v38 = vadd.f32 %v14326_v24, %v21021_v53  ;;  %v14353_v58 = vadd.f32 %v14352_v25, %v14351_v34  ;;  %v21029_v24 = vld [vmem:[#allocation31_spill] sm:$0xff] }
 0x6a6   : > { %11842 = vst [vmem:[%s20375_s13 + $0x78] sm:$0xff] %v11810_v32  ;;  %v11808_v63 = vmax.f32 %v11776_v57, 0.0  ;;  %v11781_v28 = vadd.f32 %v20352_v49, %v11742_v19  ;;  %v11740_v13 = vmul.f32 %v20343_v17, %v11655_v7  ;;  %v11666_v16 = vadd.f32 %v14464_v47, %v11505_v46  ;;  %v14354_v6 = vpop.f32.mrf.mxu0 }
 0x6a7   : > { %v11657_v51 = vpop.f32.mrf.mxu1  ;;  %v14335_v46 = vadd.f32 %v20335_v5, %v20324_v29  ;;  %v14241_v32 = vadd.f32 %v20329_v18, %v20322_v23  ;;  %v11534_v11 = vadd.f32 %v14341_v41, %v20308_v20  ;;  %v14344_v29 = vadd.f32 %v20417_v39, %v20403_v33  ;;  %v21023_v23 = vld [vmem:[#allocation49_spill] sm:$0xff] }
 0x6a8   : > { %11840 = vst [vmem:[%s20375_s13 + $0x68] sm:$0xff] %v11808_v63  ;;  %v11813_v14 = vmax.f32 %v11781_v28, 0.0  ;;  %v11779_v10 = vadd.f32 %v20352_v49, %v11740_v13  ;;  %v11743_v1 = vmul.f32 %v20343_v17, %v11666_v16  ;;  %v11658_v45 = vadd.f32 %v11657_v51, %v11497_v8  ;;  %v21024_v16 = vld [vmem:[#allocation37_spill] sm:$0xff]  ;;  %v14355_v39 = vpop.f32.mrf.mxu0 }
 0x6a9   : > { %v14467_v4 = vpop.f32.mrf.mxu1  ;;  %v14338_v8 = vadd.f32 %v20358_v36, %v21022_v31  ;;  %v11526_v18 = vadd.f32 %v14335_v46, %v21023_v23  ;;  %v11389_v60 = vadd.f32 %v14241_v32, %v21024_v16  ;;  %v21025_v51 = vld [vmem:[#allocation29_spill] sm:$0xff]  ;;  %v14356_v62 = vadd.f32 %v14355_v39, %v14354_v6 }
 0x6aa   : > { %11845 = vst [vmem:[%s20375_s13 + $0x90] sm:$0xff] %v11813_v14  ;;  %v11811_v44 = vmax.f32 %v11779_v10, 0.0  ;;  %v11782_v22 = vadd.f32 %v20352_v49, %v11743_v1  ;;  %v11741_v56 = vmul.f32 %v20343_v17, %v11658_v45  ;;  %v11679_v12 = vadd.f32 %v14467_v4, %v11518_v48  ;;  %v21026_v48 = vld [vmem:[#allocation50_spill] sm:$0xff]  ;;  %v21027_v10 = vld [vmem:[#allocation27_spill] sm:$0xff] }
 0x6ab   : > { %v11670_v0 = vpop.f32.mrf.mxu1  ;;  %v14244_v36 = vadd.f32 %v21026_v48, %v21025_v51  ;;  %v11537_v33 = vadd.f32 %v14344_v29, %v21027_v10  ;;  %v11550_v25 = vadd.f32 %v14353_v58, %v11389_v60 }
 0x6ac   : > { %11843 = vst [vmem:[%s20375_s13 + $0x80] sm:$0xff] %v11811_v44  ;;  %v11814_v55 = vmax.f32 %v11782_v22, 0.0  ;;  %v11780_v35 = vadd.f32 %v20352_v49, %v11741_v56  ;;  %v11746_v43 = vmul.f32 %v20343_v17, %v11679_v12  ;;  %v11671_v27 = vadd.f32 %v11670_v0, %v11510_v3  ;;  %v21028_v3 = vld [vmem:[#allocation62_spill] sm:$0xff] }
 0x6ad   : > { %v14468_v37 = vpop.f32.mrf.mxu1  ;;  %v11529_v44 = vadd.f32 %v14338_v8, %v21028_v3  ;;  %v11392_v0 = vadd.f32 %v14244_v36, %v21029_v24 }
 0x6ae   : > { %11846 = vst [vmem:[%s20375_s13 + $0x98] sm:$0xff] %v11814_v55  ;;  %v11812_v59 = vmax.f32 %v11780_v35, 0.0  ;;  %v11785_v9 = vadd.f32 %v20352_v49, %v11746_v43  ;;  %v11744_v50 = vmul.f32 %v20343_v17, %v11671_v27  ;;  %v11682_v40 = vadd.f32 %v14468_v37, %v11521_v42  ;;  %v21030_v37 = vld [vmem:[#allocation48_spill] sm:$0xff] }
 0x6af   : > { %v11673_v57 = vpop.f32.mrf.mxu1  ;;  %v11542_v53 = vadd.f32 %v14347_v30, %v21030_v37 }
 0x6b0   : > { %11844 = vst [vmem:[%s20375_s13 + $0x88] sm:$0xff] %v11812_v59  ;;  %v11817_v19 = vmax.f32 %v11785_v9, 0.0  ;;  %v11783_v7 = vadd.f32 %v20352_v49, %v11744_v50  ;;  %v11747_v26 = vmul.f32 %v20343_v17, %v11682_v40  ;;  %v11674_v47 = vadd.f32 %v11673_v57, %v11513_v38 }
 0x6b1   : > { %v14471_v5 = vpop.f32.mrf.mxu1  ;;  %v14350_v9 = vadd.f32 %v20473_v52, %v20459_v2  ;;  %v11553_v40 = vadd.f32 %v14356_v62, %v11392_v0 }
 0x6b2   : > { %11849 = vst [vmem:[%s20375_s13 + $0xb0] sm:$0xff] %v11817_v19  ;;  %v11815_v20 = vmax.f32 %v11783_v7, 0.0  ;;  %v11786_v63 = vadd.f32 %v20352_v49, %v11747_v26  ;;  %v11745_v28 = vmul.f32 %v20343_v17, %v11674_v47  ;;  %v11695_v13 = vadd.f32 %v14471_v5, %v11534_v11  ;;  %v21031_v19 = vld [vmem:[#allocation28_spill] sm:$0xff] }
 0x6b3   : > { %v11686_v14 = vpop.f32.mrf.mxu1  ;;  %v11545_v7 = vadd.f32 %v14350_v9, %v21031_v19 }
 0x6b4   : > { %11847 = vst [vmem:[%s20375_s13 + $0xa0] sm:$0xff] %v11815_v20  ;;  %v11818_v1 = vmax.f32 %v11786_v63, 0.0  ;;  %v11784_v45 = vadd.f32 %v20352_v49, %v11745_v28  ;;  %v11750_v54 = vmul.f32 %v20343_v17, %v11695_v13  ;;  %v11687_v4 = vadd.f32 %v11686_v14, %v11526_v18 }
 0x6b5   : > { %v14472_v15 = vpop.f32.mrf.mxu1 }
 0x6b6   : > { %11850 = vst [vmem:[%s20375_s13 + $0xb8] sm:$0xff] %v11818_v1  ;;  %v11816_v34 = vmax.f32 %v11784_v45, 0.0  ;;  %v11789_v22 = vadd.f32 %v20352_v49, %v11750_v54  ;;  %v11748_v56 = vmul.f32 %v20343_v17, %v11687_v4  ;;  %v11698_v12 = vadd.f32 %v14472_v15, %v11537_v33 }
 0x6b7   : > { %v11689_v42 = vpop.f32.mrf.mxu1 }
 0x6b8   : > { %11848 = vst [vmem:[%s20375_s13 + $0xa8] sm:$0xff] %v11816_v34  ;;  %v11821_v55 = vmax.f32 %v11789_v22, 0.0  ;;  %v11787_v35 = vadd.f32 %v20352_v49, %v11748_v56  ;;  %v11751_v43 = vmul.f32 %v20343_v17, %v11698_v12  ;;  %v11690_v27 = vadd.f32 %v11689_v42, %v11529_v44 }
 0x6b9   : > { %v14475_v41 = vpop.f32.mrf.mxu1 }
 0x6ba   : > { %11853 = vst [vmem:[%s20375_s13 + $0xd0] sm:$0xff] %v11821_v55  ;;  %v11819_v38 = vmax.f32 %v11787_v35, 0.0  ;;  %v11790_v21 = vadd.f32 %v20352_v49, %v11751_v43  ;;  %v11749_v61 = vmul.f32 %v20343_v17, %v11690_v27  ;;  %v11711_v59 = vadd.f32 %v14475_v41, %v11550_v25 }
 0x6bb   : > { %v11702_v50 = vpop.f32.mrf.mxu1 }
 0x6bc   : > { %11851 = vst [vmem:[%s20375_s13 + $0xc0] sm:$0xff] %v11819_v38  ;;  %v11822_v46 = vmax.f32 %v11790_v21, 0.0  ;;  %v11788_v32 = vadd.f32 %v20352_v49, %v11749_v61  ;;  %v11754_v57 = vmul.f32 %v20343_v17, %v11711_v59  ;;  %v11703_v11 = vadd.f32 %v11702_v50, %v11542_v53 }
 0x6bd   : > { %v14476_v6 = vpop.f32.mrf.mxu1 }
 0x6be   : > { %11854 = vst [vmem:[%s20375_s13 + $0xd8] sm:$0xff] %v11822_v46  ;;  %v11820_v26 = vmax.f32 %v11788_v32, 0.0  ;;  %v11793_v2 = vadd.f32 %v20352_v49, %v11754_v57  ;;  %v11752_v52 = vmul.f32 %v20343_v17, %v11703_v11  ;;  %v11714_v47 = vadd.f32 %v14476_v6, %v11553_v40 }
 0x6bf   : > { %v11705_v31 = vpop.f32.mrf.mxu1 }
 0x6c0   : > { %11852 = vst [vmem:[%s20375_s13 + $0xc8] sm:$0xff] %v11820_v26  ;;  %v11825_v8 = vmax.f32 %v11793_v2, 0.0  ;;  %v11791_v29 = vadd.f32 %v20352_v49, %v11752_v52  ;;  %v11755_v5 = vmul.f32 %v20343_v17, %v11714_v47  ;;  %v11706_v23 = vadd.f32 %v11705_v31, %v11545_v7 }
 0x6c2   : > { %11857 = vst [vmem:[%s20375_s13 + $0xf0] sm:$0xff] %v11825_v8  ;;  %v11823_v18 = vmax.f32 %v11791_v29, 0.0  ;;  %v11794_v20 = vadd.f32 %v20352_v49, %v11755_v5  ;;  %v11753_v63 = vmul.f32 %v20343_v17, %v11706_v23 }
 0x6c4   : > { %11855 = vst [vmem:[%s20375_s13 + $0xe0] sm:$0xff] %v11823_v18  ;;  %v11826_v28 = vmax.f32 %v11794_v20, 0.0  ;;  %v11792_v13 = vadd.f32 %v20352_v49, %v11753_v63 }
 0x6c6   : > { %11858 = vst [vmem:[%s20375_s13 + $0xf8] sm:$0xff] %v11826_v28  ;;  %v11824_v16 = vmax.f32 %v11792_v13, 0.0 }
 0x6c8   : > { %11856 = vst [vmem:[%s20375_s13 + $0xe8] sm:$0xff] %v11824_v16 }
 0x6c9   : > { %15136 = shalt.err (!%p15133_p6)
}
 0x6ca   : > { %s15137_s18 = scalar_lea.hbm %s20561_s29, 4096  ;;  %s15141_s22 = scalar_lea.hbm %s20617_s10, 32768 }
 0x6cb   : > { %p15138_p7 = scmp.ne.s32.totalorder %s20561_s29, %s15137_s18  ;;  %p15142_p10 = scmp.lt.s32.totalorder %s20561_s29, %s20617_s10 }
 0x6cc   : > { %p15143_p0 = scmp.lt.s32.totalorder %s15141_s22, %s15137_s18 }
 0x6cd   : > { %p15139_p3 = pnand %p15138_p7, %p21032_p12 }
 0x6ce   : > { %p15144_p11 = por %p15143_p0, %p15142_p10 }
 0x6cf   : > { %p15140_p8 = pneg %p15139_p3 }
 0x6d1   : > { %p15145_p9 = pnand %p15144_p11, %p15140_p8 }
 0x6d3   : > { %15148 = shalt.err (!%p15145_p9)
}
 0x6d4   : > { %s15210_s28 = smov 128   ;;  %s15211_s24 = smov 8  }
 0x6d5   : > { %14493 = dma.vmem_to_hbm [thread:$0]  (%p21032_p12), %s20563_s23, 4096, %s20561_s29, %s11860_s19, %s15210_s28, %s15210_s28, %s15211_s24  }
 0x6d6 PF: > { %s21033_s12 = sld [smem:[#allocation19_spill]]  ;;  %p14523_p13 = scmp.ge.s32.totalorder %s15199_s16, 2 }
 0x6d7   : > { %s21034_s13 = sld [smem:[#allocation21_spill]] }
 0x6dc   : > { %s11888_s20 = sand.u32 1, %s21033_s12  }
 0x6dd   : > { %p21035_p2 = scmp.ne.s32.totalorder %s21034_s13, 0  ;;  %s11889_s11 = scalar_lea.sflag [#allocation6], %s11888_s20 }
 0x6df   : > { %p14513_p5 = pnand %p14523_p13, %p21035_p2 }
 0x6e1   : > { %p14514_p1 = pneg %p14513_p5 }
 0x6e3   : > { %15182 = dma.done.wait (%p14514_p1), %s11889_s11, 4096  }
 0x6e4   : > { %15184 = vsyncadd (%p14514_p1), %s11889_s11, 4294963200  ;;  %s21036_s16 = sld [smem:[#allocation22_spill]]  ;;  %s21039_s13 = smov %s15191_s14 }
 0x6e5   : > { %s21037_s21 = sld [smem:[#allocation20_spill]] }
 0x6e6   : > { %s21038_s15 = sld [smem:[#allocation23_spill]] }
 0x6ea   : > { %p27_p4 = scmp.ge.s32.totalorder %s21036_s16, 10  }
 0x6eb   : > { %s21040_s14 = smov %s21037_s21 }
 0x6ec   :  { %29 = sbr.rel (!%p27_p4) target bundleno = 13 (0xd), region = 136 }
 0x6f1   :  { %11894 = vsyncpa [#allocation5], 1 }
 0x6f2   :  { %11896 = vsyncpa [#allocation5 + $0x1], 1 }
 0x6f3   :  { %11897 = vsyncpa [#allocation8], 1 }
 0x6f4   :  { %11899 = vsyncpa [#allocation8 + $0x1], 1 }
 0x6f5   :  { %11900 = vsyncpa [#allocation11], 1 }
 0x6f6   :  { %11901 = vsyncpa [#allocation6], 1 }
 0x6f7   :  { %11903 = vsyncpa [#allocation6 + $0x1], 1 }

</bundles_post_ra>
